<compile_context>
chip_gen: v7x
topology: tpu7x:2x2x1
jax: 0.10.0
libtpu: 0.0.40
codegen_flags: <defaults>
</compile_context>

<pallas_src>
import jax
import jax.numpy as jnp
from jax.experimental import pallas as pl
from jax.experimental.pallas import tpu as pltpu

_VMEM_LIMIT = 16 * 1024 * 1024  # actual usage is ~2 MiB; generous headroom


# --------------------------- trace-time weight prep -------------------------

def _fold_bn_3x3(w_hwio, bn):
    """Fold eval-mode BN scale into a 3x3 conv -> (9, Cin, Cout) bf16 + (1,Cout) f32 bias."""
    scale, bias = bn
    cin, cout = w_hwio.shape[2], w_hwio.shape[3]
    w = (w_hwio * scale.reshape(1, 1, 1, -1)).reshape(9, cin, cout)
    return w.astype(jnp.bfloat16), bias.reshape(1, -1).astype(jnp.float32)


def _fold_bn_1x1(w_io, bn):
    scale, bias = bn
    return ((w_io * scale.reshape(1, -1)).astype(jnp.bfloat16),
            bias.reshape(1, -1).astype(jnp.float32))


def _subsample_matrix(h, w):
    """0/1 selection S so that (S @ flat(x))[io*(w//2)+jo] == flat(x)[(2io)*w + 2jo]."""
    ho, wo = h // 2, w // 2
    rows = jnp.arange(ho * wo)
    src = (2 * (rows // wo)) * w + 2 * (rows % wo)
    return (src[:, None] == jnp.arange(h * w)[None, :]).astype(jnp.bfloat16)


# ------------------------- fused whole-network kernel -----------------------

def build_fused_resnet(params, input_shape):
    """Build a forward fn whose body is ONE pallas_call running the whole ResNet."""
    N, _, H, W = input_shape
    assert H % 4 == 0 and W % 4 == 0, "two stride-2 stages need spatial % 4 == 0"

    cin_img = params['conv1'].shape[2]
    c0 = params['conv1'].shape[3]
    num_classes = params['fc_w'].shape[1]

    operands = []

    def add(arr):
        operands.append(arr)
        return len(operands) - 1

    # stem
    w_s, b_s = _fold_bn_3x3(params['conv1'], params['bn1'])
    stem_w, stem_b = add(w_s), add(b_s)

    # padded conv-input VMEM scratch buffers, one per distinct (h, w, c)
    pad_shapes, pad_index = [], {}

    def pad_idx(h, w, c):
        key = (h, w, c)
        if key not in pad_index:
            pad_index[key] = len(pad_shapes)
            pad_shapes.append((h + 2, w + 2, c))
        return pad_index[key]

    sel_index = {}

    def sel_idx(h, w):
        if (h, w) not in sel_index:
            sel_index[(h, w)] = add(_subsample_matrix(h, w))
        return sel_index[(h, w)]

    blocks = []
    flops = 2 * H * W * 9 * cin_img * c0
    cur_h, cur_w, cur_c = H, W, c0
    for stage in params['layers']:
        for blk in stage:
            s = blk['stride']
            planes = blk['conv1'].shape[3]
            h_out, w_out = cur_h // s, cur_w // s
            w1, b1 = _fold_bn_3x3(blk['conv1'], blk['bn1'])
            w2, b2 = _fold_bn_3x3(blk['conv2'], blk['bn2'])
            info = dict(stride=s, h_in=cur_h, w_in=cur_w, c_in=cur_c,
                        h_out=h_out, w_out=w_out, planes=planes,
                        pad_in=pad_idx(cur_h, cur_w, cur_c),
                        pad_mid=pad_idx(h_out, w_out, planes),
                        w1=add(w1), b1=add(b1), w2=add(w2), b2=add(b2))
            if s == 2:
                info['sel'] = sel_idx(cur_h, cur_w)
                flops += 2 * h_out * w_out * cur_h * cur_w * (planes + cur_c)
            if 'down_w' in blk:
                wd, bd = _fold_bn_1x1(blk['down_w'], blk['down_bn'])
                info['wd'], info['bd'] = add(wd), add(bd)
                flops += 2 * h_out * w_out * cur_c * planes
            flops += 2 * cur_h * cur_w * 9 * cur_c * planes      # conv1 (full res)
            flops += 2 * h_out * w_out * 9 * planes * planes     # conv2
            blocks.append(info)
            cur_h, cur_w, cur_c = h_out, w_out, planes

    fc_w = add(params['fc_w'].astype(jnp.float32))
    fc_b = add(params['fc_b'].reshape(1, -1).astype(jnp.float32))
    final_h, final_w = cur_h, cur_w
    flops += cur_h * cur_w * cur_c + 2 * cur_c * num_classes
    flops *= N

    n_ops = len(operands)

    def kernel(*refs):
        x_ref = refs[0]
        wref = refs[1:1 + n_ops]
        o_ref = refs[1 + n_ops]
        pads = refs[2 + n_ops:]

        f32, bf16 = jnp.float32, jnp.bfloat16

        # Zero the padded buffers; interiors are overwritten before every use, so
        # only the one-pixel borders need to stay zero.
        for pr in pads:
            pr[...] = jnp.zeros_like(pr)

        def conv3x3(read_patch, wi, bi, relu):
            """9-tap shifted-matmul 3x3 conv; bf16 MXU operands, f32 accum/epilogue."""
            acc = None
            for t in range(9):
                d = jnp.dot(read_patch(t // 3, t % 3), wref[wi][t],
                            preferred_element_type=f32)
                acc = d if acc is None else acc + d
            acc = acc + wref[bi][...]
            return jnp.maximum(acc, 0.0) if relu else acc

        def fill_pad(pi, act, h, w, c):
            pads[pi][1:h + 1, 1:w + 1, :] = act.reshape(h, w, c)

        def pad_reader(pi, h, w, c):
            def rd(kh, kw):
                return pads[pi][kh:kh + h, kw:kw + w, :].reshape(h * w, c).astype(bf16)
            return rd

        # ---- stem conv + BN + ReLU (input arrives pre-padded, bf16) ----
        def stem_reader(kh, kw):
            return x_ref[0, kh:kh + H, kw:kw + W, :].reshape(H * W, cin_img)

        act = conv3x3(stem_reader, stem_w, stem_b, True)          # (H*W, c0) f32

        # ---- BasicBlocks, all activations VMEM-resident ----
        for info in blocks:
            s = info['stride']
            h_in, w_in, c_in = info['h_in'], info['w_in'], info['c_in']
            h_out, w_out, planes = info['h_out'], info['w_out'], info['planes']

            fill_pad(info['pad_in'], act, h_in, w_in, c_in)
            y = conv3x3(pad_reader(info['pad_in'], h_in, w_in, c_in),
                        info['w1'], info['b1'], True)             # (h_in*w_in, planes)

            if s == 2:
                # stride-2 conv == row-subsampled stride-1 conv; the subsample is a
                # tiny 0/1 selection matmul (MXU only, no strided memory access).
                sel = wref[info['sel']][...]
                y = jnp.dot(sel, y.astype(bf16), preferred_element_type=f32)
                short_in = jnp.dot(sel, act.astype(bf16), preferred_element_type=f32)
            else:
                short_in = act

            if 'wd' in info:                                      # 1x1 downsample + BN
                residual = (jnp.dot(short_in.astype(bf16), wref[info['wd']][...],
                                    preferred_element_type=f32)
                            + wref[info['bd']][...])
            else:
                residual = short_in

            fill_pad(info['pad_mid'], y, h_out, w_out, planes)
            y = conv3x3(pad_reader(info['pad_mid'], h_out, w_out, planes),
                        info['w2'], info['b2'], False)
            act = jnp.maximum(y + residual, 0.0)                  # (h_out*w_out, planes)

        # ---- head: global average pool + fc (fused, no HBM round trip) ----
        pooled = jnp.sum(act, axis=0, keepdims=True) * (1.0 / (final_h * final_w))
        logits = (jnp.dot(pooled, wref[fc_w][...], preferred_element_type=f32)
                  + wref[fc_b][...])
        o_ref[...] = logits.reshape(1, 1, num_classes)

    def resident_spec(arr):
        nd = arr.ndim
        return pl.BlockSpec(arr.shape, lambda *_: (0,) * nd)      # whole-array, resident

    in_specs = [pl.BlockSpec((1, H + 2, W + 2, cin_img), lambda i: (i, 0, 0, 0))]
    in_specs += [resident_spec(a) for a in operands]
    out_specs = pl.BlockSpec((1, 1, num_classes), lambda i: (i, 0, 0))

    bytes_accessed = (N * (H + 2) * (W + 2) * cin_img * 2
                      + sum(int(a.size) * a.dtype.itemsize for a in operands)
                      + N * num_classes * 4)

    call = pl.pallas_call(
        kernel,
        grid=(N,),
        in_specs=in_specs,
        out_specs=out_specs,
        out_shape=jax.ShapeDtypeStruct((N, 1, num_classes), jnp.float32),
        scratch_shapes=[pltpu.VMEM(s, jnp.float32) for s in pad_shapes],
        compiler_params=pltpu.CompilerParams(
            dimension_semantics=("parallel",),   # batch split across v7x's 2 TCs
            vmem_limit_bytes=_VMEM_LIMIT),
        cost_estimate=pl.CostEstimate(flops=int(flops), transcendentals=0,
                                      bytes_accessed=int(bytes_accessed)),
    )

    def forward(x_nchw):
        x = jnp.transpose(x_nchw, (0, 2, 3, 1)).astype(jnp.bfloat16)   # NHWC, bf16
        x_pad = jnp.pad(x, ((0, 0), (1, 1), (1, 1), (0, 0)))
        out = call(x_pad, *operands)
        return out.reshape(N, num_classes)

    return forward


# --------------------------- parameters (torch init) -----------------------

def kaiming3x3(key, cin, cout):
    fan_out = 9 * cout
    std = (2.0 / fan_out) ** 0.5
    return std * jax.random.normal(key, (3, 3, cin, cout), jnp.float32)


def kaiming1x1(key, cin, cout):
    fan_out = cout
    std = (2.0 / fan_out) ** 0.5
    return std * jax.random.normal(key, (cin, cout), jnp.float32)


def bn_params(c, eps=1e-5):
    # eval-mode BatchNorm with default running stats and constant-initialized affine
    gamma = jnp.ones((c,), jnp.float32)
    beta = jnp.zeros((c,), jnp.float32)
    mean = jnp.zeros((c,), jnp.float32)
    var = jnp.ones((c,), jnp.float32)
    scale = gamma / jnp.sqrt(var + eps)
    bias = beta - mean * scale
    return scale, bias


def init_params(key, num_filters=(16, 16, 32, 64), n=1, num_classes=10):
    keys = iter(jax.random.split(key, 128))
    params = {
        'conv1': kaiming3x3(next(keys), 3, num_filters[0]),
        'bn1': bn_params(num_filters[0]),
    }
    inplanes = num_filters[0]
    layers = []
    for planes, layer_stride in zip(num_filters[1:], (1, 2, 2)):
        blocks = []
        for bi in range(n):
            s = layer_stride if bi == 0 else 1
            blk = {
                'stride': s,
                'conv1': kaiming3x3(next(keys), inplanes, planes),
                'bn1': bn_params(planes),
                'conv2': kaiming3x3(next(keys), planes, planes),
                'bn2': bn_params(planes),
            }
            if s != 1 or inplanes != planes:
                blk['down_w'] = kaiming1x1(next(keys), inplanes, planes)
                blk['down_bn'] = bn_params(planes)
            blocks.append(blk)
            inplanes = planes
        layers.append(blocks)
    params['layers'] = layers
    fan_in = num_filters[3]
    bound = 1.0 / (fan_in ** 0.5)
    params['fc_w'] = jax.random.uniform(next(keys), (fan_in, num_classes),
                                        jnp.float32, -bound, bound)
    params['fc_b'] = jax.random.uniform(next(keys), (num_classes,),
                                        jnp.float32, -bound, bound)
    return params


# ----------------------------- pure-JAX reference ---------------------------

def _conv_ref(x, w_hwio, stride, padding):
    # Same operand precision as the Pallas path: bf16 inputs, f32 accumulation.
    return jax.lax.conv_general_dilated(
        x.astype(jnp.bfloat16), w_hwio.astype(jnp.bfloat16),
        (stride, stride), padding,
        dimension_numbers=('NHWC', 'HWIO', 'NHWC'),
        preferred_element_type=jnp.float32)


def resnet_forward_ref(params, x_nchw):
    def bn(x, sb):
        s, b = sb
        return x * s.reshape(1, 1, 1, -1) + b.reshape(1, 1, 1, -1)

    x = jnp.transpose(x_nchw, (0, 2, 3, 1))
    x = jnp.maximum(bn(_conv_ref(x, params['conv1'], 1, ((1, 1), (1, 1))),
                       params['bn1']), 0.0)
    for blocks in params['layers']:
        for blk in blocks:
            s = blk['stride']
            out = jnp.maximum(bn(_conv_ref(x, blk['conv1'], s, ((1, 1), (1, 1))),
                                 blk['bn1']), 0.0)
            out = bn(_conv_ref(out, blk['conv2'], 1, ((1, 1), (1, 1))), blk['bn2'])
            if 'down_w' in blk:
                w = blk['down_w'].reshape(1, 1, *blk['down_w'].shape)
                res = bn(_conv_ref(x, w, s, ((0, 0), (0, 0))), blk['down_bn'])
            else:
                res = x
            x = jnp.maximum(out + res, 0.0)
    pooled = jnp.mean(x, axis=(1, 2))
    return pooled @ params['fc_w'] + params['fc_b'].reshape(1, -1)


# ---------------------------------- main ------------------------------------

if __name__ == "__main__":
    key = jax.random.PRNGKey(0)
    k_param, k_x = jax.random.split(key)

    # depth = 8 (n = (8-2)//6 = 1 BasicBlock per stage), num_filters = [16,16,32,64]
    params = init_params(k_param, num_filters=(16, 16, 32, 64), n=1, num_classes=10)

    # PyTorch conv1 expects 3 input channels; NCHW input like the torch module.
    x = jax.random.normal(k_x, (2, 3, 16, 16), jnp.float32)

    forward = build_fused_resnet(params, x.shape)
    fwd = jax.jit(forward)
    logits = jax.block_until_ready(fwd(x))

    ref = jax.block_until_ready(resnet_forward_ref(params, x))
    assert logits.shape == (2, 10)
    assert bool(jnp.all(jnp.isfinite(logits)))
    assert bool(jnp.allclose(logits, ref, atol=2e-2, rtol=2e-2)), \
        f"mismatch: max abs diff {float(jnp.max(jnp.abs(logits - ref)))}"

    print("KERNEL_OK")
</pallas_src>

<mosaic_0001>
module attributes {stable_mosaic.version = 11 : i64} {
  func.func @kernel(%arg0: i32, %arg1: memref<1x18x18x3xbf16, #tpu.memory_space<vmem>>, %arg2: memref<9x3x16xbf16, #tpu.memory_space<vmem>>, %arg3: memref<1x16xf32, #tpu.memory_space<vmem>>, %arg4: memref<9x16x16xbf16, #tpu.memory_space<vmem>>, %arg5: memref<1x16xf32, #tpu.memory_space<vmem>>, %arg6: memref<9x16x16xbf16, #tpu.memory_space<vmem>>, %arg7: memref<1x16xf32, #tpu.memory_space<vmem>>, %arg8: memref<9x16x32xbf16, #tpu.memory_space<vmem>>, %arg9: memref<1x32xf32, #tpu.memory_space<vmem>>, %arg10: memref<9x32x32xbf16, #tpu.memory_space<vmem>>, %arg11: memref<1x32xf32, #tpu.memory_space<vmem>>, %arg12: memref<64x256xbf16, #tpu.memory_space<vmem>>, %arg13: memref<16x32xbf16, #tpu.memory_space<vmem>>, %arg14: memref<1x32xf32, #tpu.memory_space<vmem>>, %arg15: memref<9x32x64xbf16, #tpu.memory_space<vmem>>, %arg16: memref<1x64xf32, #tpu.memory_space<vmem>>, %arg17: memref<9x64x64xbf16, #tpu.memory_space<vmem>>, %arg18: memref<1x64xf32, #tpu.memory_space<vmem>>, %arg19: memref<16x64xbf16, #tpu.memory_space<vmem>>, %arg20: memref<32x64xbf16, #tpu.memory_space<vmem>>, %arg21: memref<1x64xf32, #tpu.memory_space<vmem>>, %arg22: memref<64x10xf32, #tpu.memory_space<vmem>>, %arg23: memref<1x10xf32, #tpu.memory_space<vmem>>, %arg24: memref<1x1x10xf32, #tpu.memory_space<vmem>>, %arg25: memref<18x18x16xf32, #tpu.memory_space<vmem>>, %arg26: memref<10x10x32xf32, #tpu.memory_space<vmem>>, %arg27: memref<6x6x64xf32, #tpu.memory_space<vmem>>) attributes {dimension_semantics = [#tpu.dimension_semantics<parallel>], iteration_bounds = array<i64: 2>, scalar_prefetch = 0 : i64, scratch_operands = 3 : i64, tpu.core_type = #tpu.core_type<tc>, window_params = [{transform_indices = @transform_0, window_bounds = array<i64: 1, 18, 18, 3>}, {pipeline_mode = #tpu.pipeline_mode<synchronous>, transform_indices = @transform_1, window_bounds = array<i64: 9, 3, 16>}, {pipeline_mode = #tpu.pipeline_mode<synchronous>, transform_indices = @transform_2, window_bounds = array<i64: 1, 16>}, {pipeline_mode = #tpu.pipeline_mode<synchronous>, transform_indices = @transform_3, window_bounds = array<i64: 9, 16, 16>}, {pipeline_mode = #tpu.pipeline_mode<synchronous>, transform_indices = @transform_4, window_bounds = array<i64: 1, 16>}, {pipeline_mode = #tpu.pipeline_mode<synchronous>, transform_indices = @transform_5, window_bounds = array<i64: 9, 16, 16>}, {pipeline_mode = #tpu.pipeline_mode<synchronous>, transform_indices = @transform_6, window_bounds = array<i64: 1, 16>}, {pipeline_mode = #tpu.pipeline_mode<synchronous>, transform_indices = @transform_7, window_bounds = array<i64: 9, 16, 32>}, {pipeline_mode = #tpu.pipeline_mode<synchronous>, transform_indices = @transform_8, window_bounds = array<i64: 1, 32>}, {pipeline_mode = #tpu.pipeline_mode<synchronous>, transform_indices = @transform_9, window_bounds = array<i64: 9, 32, 32>}, {pipeline_mode = #tpu.pipeline_mode<synchronous>, transform_indices = @transform_10, window_bounds = array<i64: 1, 32>}, {pipeline_mode = #tpu.pipeline_mode<synchronous>, transform_indices = @transform_11, window_bounds = array<i64: 64, 256>}, {pipeline_mode = #tpu.pipeline_mode<synchronous>, transform_indices = @transform_12, window_bounds = array<i64: 16, 32>}, {pipeline_mode = #tpu.pipeline_mode<synchronous>, transform_indices = @transform_13, window_bounds = array<i64: 1, 32>}, {pipeline_mode = #tpu.pipeline_mode<synchronous>, transform_indices = @transform_14, window_bounds = array<i64: 9, 32, 64>}, {pipeline_mode = #tpu.pipeline_mode<synchronous>, transform_indices = @transform_15, window_bounds = array<i64: 1, 64>}, {pipeline_mode = #tpu.pipeline_mode<synchronous>, transform_indices = @transform_16, window_bounds = array<i64: 9, 64, 64>}, {pipeline_mode = #tpu.pipeline_mode<synchronous>, transform_indices = @transform_17, window_bounds = array<i64: 1, 64>}, {pipeline_mode = #tpu.pipeline_mode<synchronous>, transform_indices = @transform_18, window_bounds = array<i64: 16, 64>}, {pipeline_mode = #tpu.pipeline_mode<synchronous>, transform_indices = @transform_19, window_bounds = array<i64: 32, 64>}, {pipeline_mode = #tpu.pipeline_mode<synchronous>, transform_indices = @transform_20, window_bounds = array<i64: 1, 64>}, {pipeline_mode = #tpu.pipeline_mode<synchronous>, transform_indices = @transform_21, window_bounds = array<i64: 64, 10>}, {pipeline_mode = #tpu.pipeline_mode<synchronous>, transform_indices = @transform_22, window_bounds = array<i64: 1, 10>}, {transform_indices = @transform_23, window_bounds = array<i64: 1, 1, 10>}]} {
    %cst = arith.constant 0.000000e+00 : f32
    %0 = vector.broadcast %cst : f32 to vector<18x18x16xf32>
    %c0 = arith.constant 0 : index
    %c0_0 = arith.constant 0 : index
    %c0_1 = arith.constant 0 : index
    %1 = vector.load %arg25[%c0, %c0_0, %c0_1] : memref<18x18x16xf32, #tpu.memory_space<vmem>>, vector<18x18x16xf32>
    tpu.vector_store %arg25[%c0, %c0_0, %c0_1], %0 {strides = array<i32>} : memref<18x18x16xf32, #tpu.memory_space<vmem>>, vector<18x18x16xf32>,
    %cst_2 = arith.constant 0.000000e+00 : f32
    %2 = vector.broadcast %cst_2 : f32 to vector<10x10x32xf32>
    %c0_3 = arith.constant 0 : index
    %c0_4 = arith.constant 0 : index
    %c0_5 = arith.constant 0 : index
    %3 = vector.load %arg26[%c0_3, %c0_4, %c0_5] : memref<10x10x32xf32, #tpu.memory_space<vmem>>, vector<10x10x32xf32>
    tpu.vector_store %arg26[%c0_3, %c0_4, %c0_5], %2 {strides = array<i32>} : memref<10x10x32xf32, #tpu.memory_space<vmem>>, vector<10x10x32xf32>,
    %cst_6 = arith.constant 0.000000e+00 : f32
    %4 = vector.broadcast %cst_6 : f32 to vector<6x6x64xf32>
    %c0_7 = arith.constant 0 : index
    %c0_8 = arith.constant 0 : index
    %c0_9 = arith.constant 0 : index
    %5 = vector.load %arg27[%c0_7, %c0_8, %c0_9] : memref<6x6x64xf32, #tpu.memory_space<vmem>>, vector<6x6x64xf32>
    tpu.vector_store %arg27[%c0_7, %c0_8, %c0_9], %4 {strides = array<i32>} : memref<6x6x64xf32, #tpu.memory_space<vmem>>, vector<6x6x64xf32>,
    %c0_10 = arith.constant 0 : index
    %c0_11 = arith.constant 0 : index
    %c0_12 = arith.constant 0 : index
    %c0_13 = arith.constant 0 : index
    %6 = vector.load %arg1[%c0_10, %c0_11, %c0_12, %c0_13] : memref<1x18x18x3xbf16, #tpu.memory_space<vmem>>, vector<1x16x16x3xbf16>
    %7 = vector.shape_cast %6 : vector<1x16x16x3xbf16> to vector<16x16x3xbf16>
    %8 = vector.shape_cast %7 : vector<16x16x3xbf16> to vector<256x3xbf16>
    %c0_14 = arith.constant 0 : index
    %c0_15 = arith.constant 0 : index
    %c0_16 = arith.constant 0 : index
    %9 = vector.load %arg2[%c0_14, %c0_15, %c0_16] : memref<9x3x16xbf16, #tpu.memory_space<vmem>>, vector<1x3x16xbf16>
    %10 = vector.shape_cast %9 : vector<1x3x16xbf16> to vector<3x16xbf16>
    %cst_17 = arith.constant dense<0.000000e+00> : vector<256x16xf32>
    %11 = tpu.matmul %8, %10, %cst_17 {dimension_numbers = #tpu.dot_dimension_numbers<[1], [0], [0], [1], [0, 0, 1, 1], [], []>} : vector<256x3xbf16>, vector<3x16xbf16>, vector<256x16xf32> -> vector<256x16xf32>
    %c0_18 = arith.constant 0 : index
    %c0_19 = arith.constant 0 : index
    %c1 = arith.constant 1 : index
    %c0_20 = arith.constant 0 : index
    %12 = vector.load %arg1[%c0_18, %c0_19, %c1, %c0_20] : memref<1x18x18x3xbf16, #tpu.memory_space<vmem>>, vector<1x16x16x3xbf16>
    %13 = vector.shape_cast %12 : vector<1x16x16x3xbf16> to vector<16x16x3xbf16>
    %14 = vector.shape_cast %13 : vector<16x16x3xbf16> to vector<256x3xbf16>
    %c1_21 = arith.constant 1 : index
    %c0_22 = arith.constant 0 : index
    %c0_23 = arith.constant 0 : index
    %15 = vector.load %arg2[%c1_21, %c0_22, %c0_23] : memref<9x3x16xbf16, #tpu.memory_space<vmem>>, vector<1x3x16xbf16>
    %16 = vector.shape_cast %15 : vector<1x3x16xbf16> to vector<3x16xbf16>
    %cst_24 = arith.constant dense<0.000000e+00> : vector<256x16xf32>
    %17 = tpu.matmul %14, %16, %cst_24 {dimension_numbers = #tpu.dot_dimension_numbers<[1], [0], [0], [1], [0, 0, 1, 1], [], []>} : vector<256x3xbf16>, vector<3x16xbf16>, vector<256x16xf32> -> vector<256x16xf32>
    %18 = arith.addf %11, %17 : vector<256x16xf32>
    %c0_25 = arith.constant 0 : index
    %c0_26 = arith.constant 0 : index
    %c2 = arith.constant 2 : index
    %c0_27 = arith.constant 0 : index
    %19 = vector.load %arg1[%c0_25, %c0_26, %c2, %c0_27] : memref<1x18x18x3xbf16, #tpu.memory_space<vmem>>, vector<1x16x16x3xbf16>
    %20 = vector.shape_cast %19 : vector<1x16x16x3xbf16> to vector<16x16x3xbf16>
    %21 = vector.shape_cast %20 : vector<16x16x3xbf16> to vector<256x3xbf16>
    %c2_28 = arith.constant 2 : index
    %c0_29 = arith.constant 0 : index
    %c0_30 = arith.constant 0 : index
    %22 = vector.load %arg2[%c2_28, %c0_29, %c0_30] : memref<9x3x16xbf16, #tpu.memory_space<vmem>>, vector<1x3x16xbf16>
    %23 = vector.shape_cast %22 : vector<1x3x16xbf16> to vector<3x16xbf16>
    %cst_31 = arith.constant dense<0.000000e+00> : vector<256x16xf32>
    %24 = tpu.matmul %21, %23, %cst_31 {dimension_numbers = #tpu.dot_dimension_numbers<[1], [0], [0], [1], [0, 0, 1, 1], [], []>} : vector<256x3xbf16>, vector<3x16xbf16>, vector<256x16xf32> -> vector<256x16xf32>
    %25 = arith.addf %18, %24 : vector<256x16xf32>
    %c0_32 = arith.constant 0 : index
    %c1_33 = arith.constant 1 : index
    %c0_34 = arith.constant 0 : index
    %c0_35 = arith.constant 0 : index
    %26 = vector.load %arg1[%c0_32, %c1_33, %c0_34, %c0_35] : memref<1x18x18x3xbf16, #tpu.memory_space<vmem>>, vector<1x16x16x3xbf16>
    %27 = vector.shape_cast %26 : vector<1x16x16x3xbf16> to vector<16x16x3xbf16>
    %28 = vector.shape_cast %27 : vector<16x16x3xbf16> to vector<256x3xbf16>
    %c3 = arith.constant 3 : index
    %c0_36 = arith.constant 0 : index
    %c0_37 = arith.constant 0 : index
    %29 = vector.load %arg2[%c3, %c0_36, %c0_37] : memref<9x3x16xbf16, #tpu.memory_space<vmem>>, vector<1x3x16xbf16>
    %30 = vector.shape_cast %29 : vector<1x3x16xbf16> to vector<3x16xbf16>
    %cst_38 = arith.constant dense<0.000000e+00> : vector<256x16xf32>
    %31 = tpu.matmul %28, %30, %cst_38 {dimension_numbers = #tpu.dot_dimension_numbers<[1], [0], [0], [1], [0, 0, 1, 1], [], []>} : vector<256x3xbf16>, vector<3x16xbf16>, vector<256x16xf32> -> vector<256x16xf32>
    %32 = arith.addf %25, %31 : vector<256x16xf32>
    %c0_39 = arith.constant 0 : index
    %c1_40 = arith.constant 1 : index
    %c1_41 = arith.constant 1 : index
    %c0_42 = arith.constant 0 : index
    %33 = vector.load %arg1[%c0_39, %c1_40, %c1_41, %c0_42] : memref<1x18x18x3xbf16, #tpu.memory_space<vmem>>, vector<1x16x16x3xbf16>
    %34 = vector.shape_cast %33 : vector<1x16x16x3xbf16> to vector<16x16x3xbf16>
    %35 = vector.shape_cast %34 : vector<16x16x3xbf16> to vector<256x3xbf16>
    %c4 = arith.constant 4 : index
    %c0_43 = arith.constant 0 : index
    %c0_44 = arith.constant 0 : index
    %36 = vector.load %arg2[%c4, %c0_43, %c0_44] : memref<9x3x16xbf16, #tpu.memory_space<vmem>>, vector<1x3x16xbf16>
    %37 = vector.shape_cast %36 : vector<1x3x16xbf16> to vector<3x16xbf16>
    %cst_45 = arith.constant dense<0.000000e+00> : vector<256x16xf32>
    %38 = tpu.matmul %35, %37, %cst_45 {dimension_numbers = #tpu.dot_dimension_numbers<[1], [0], [0], [1], [0, 0, 1, 1], [], []>} : vector<256x3xbf16>, vector<3x16xbf16>, vector<256x16xf32> -> vector<256x16xf32>
    %39 = arith.addf %32, %38 : vector<256x16xf32>
    %c0_46 = arith.constant 0 : index
    %c1_47 = arith.constant 1 : index
    %c2_48 = arith.constant 2 : index
    %c0_49 = arith.constant 0 : index
    %40 = vector.load %arg1[%c0_46, %c1_47, %c2_48, %c0_49] : memref<1x18x18x3xbf16, #tpu.memory_space<vmem>>, vector<1x16x16x3xbf16>
    %41 = vector.shape_cast %40 : vector<1x16x16x3xbf16> to vector<16x16x3xbf16>
    %42 = vector.shape_cast %41 : vector<16x16x3xbf16> to vector<256x3xbf16>
    %c5 = arith.constant 5 : index
    %c0_50 = arith.constant 0 : index
    %c0_51 = arith.constant 0 : index
    %43 = vector.load %arg2[%c5, %c0_50, %c0_51] : memref<9x3x16xbf16, #tpu.memory_space<vmem>>, vector<1x3x16xbf16>
    %44 = vector.shape_cast %43 : vector<1x3x16xbf16> to vector<3x16xbf16>
    %cst_52 = arith.constant dense<0.000000e+00> : vector<256x16xf32>
    %45 = tpu.matmul %42, %44, %cst_52 {dimension_numbers = #tpu.dot_dimension_numbers<[1], [0], [0], [1], [0, 0, 1, 1], [], []>} : vector<256x3xbf16>, vector<3x16xbf16>, vector<256x16xf32> -> vector<256x16xf32>
    %46 = arith.addf %39, %45 : vector<256x16xf32>
    %c0_53 = arith.constant 0 : index
    %c2_54 = arith.constant 2 : index
    %c0_55 = arith.constant 0 : index
    %c0_56 = arith.constant 0 : index
    %47 = vector.load %arg1[%c0_53, %c2_54, %c0_55, %c0_56] : memref<1x18x18x3xbf16, #tpu.memory_space<vmem>>, vector<1x16x16x3xbf16>
    %48 = vector.shape_cast %47 : vector<1x16x16x3xbf16> to vector<16x16x3xbf16>
    %49 = vector.shape_cast %48 : vector<16x16x3xbf16> to vector<256x3xbf16>
    %c6 = arith.constant 6 : index
    %c0_57 = arith.constant 0 : index
    %c0_58 = arith.constant 0 : index
    %50 = vector.load %arg2[%c6, %c0_57, %c0_58] : memref<9x3x16xbf16, #tpu.memory_space<vmem>>, vector<1x3x16xbf16>
    %51 = vector.shape_cast %50 : vector<1x3x16xbf16> to vector<3x16xbf16>
    %cst_59 = arith.constant dense<0.000000e+00> : vector<256x16xf32>
    %52 = tpu.matmul %49, %51, %cst_59 {dimension_numbers = #tpu.dot_dimension_numbers<[1], [0], [0], [1], [0, 0, 1, 1], [], []>} : vector<256x3xbf16>, vector<3x16xbf16>, vector<256x16xf32> -> vector<256x16xf32>
    %53 = arith.addf %46, %52 : vector<256x16xf32>
    %c0_60 = arith.constant 0 : index
    %c2_61 = arith.constant 2 : index
    %c1_62 = arith.constant 1 : index
    %c0_63 = arith.constant 0 : index
    %54 = vector.load %arg1[%c0_60, %c2_61, %c1_62, %c0_63] : memref<1x18x18x3xbf16, #tpu.memory_space<vmem>>, vector<1x16x16x3xbf16>
    %55 = vector.shape_cast %54 : vector<1x16x16x3xbf16> to vector<16x16x3xbf16>
    %56 = vector.shape_cast %55 : vector<16x16x3xbf16> to vector<256x3xbf16>
    %c7 = arith.constant 7 : index
    %c0_64 = arith.constant 0 : index
    %c0_65 = arith.constant 0 : index
    %57 = vector.load %arg2[%c7, %c0_64, %c0_65] : memref<9x3x16xbf16, #tpu.memory_space<vmem>>, vector<1x3x16xbf16>
    %58 = vector.shape_cast %57 : vector<1x3x16xbf16> to vector<3x16xbf16>
    %cst_66 = arith.constant dense<0.000000e+00> : vector<256x16xf32>
    %59 = tpu.matmul %56, %58, %cst_66 {dimension_numbers = #tpu.dot_dimension_numbers<[1], [0], [0], [1], [0, 0, 1, 1], [], []>} : vector<256x3xbf16>, vector<3x16xbf16>, vector<256x16xf32> -> vector<256x16xf32>
    %60 = arith.addf %53, %59 : vector<256x16xf32>
    %c0_67 = arith.constant 0 : index
    %c2_68 = arith.constant 2 : index
    %c2_69 = arith.constant 2 : index
    %c0_70 = arith.constant 0 : index
    %61 = vector.load %arg1[%c0_67, %c2_68, %c2_69, %c0_70] : memref<1x18x18x3xbf16, #tpu.memory_space<vmem>>, vector<1x16x16x3xbf16>
    %62 = vector.shape_cast %61 : vector<1x16x16x3xbf16> to vector<16x16x3xbf16>
    %63 = vector.shape_cast %62 : vector<16x16x3xbf16> to vector<256x3xbf16>
    %c8 = arith.constant 8 : index
    %c0_71 = arith.constant 0 : index
    %c0_72 = arith.constant 0 : index
    %64 = vector.load %arg2[%c8, %c0_71, %c0_72] : memref<9x3x16xbf16, #tpu.memory_space<vmem>>, vector<1x3x16xbf16>
    %65 = vector.shape_cast %64 : vector<1x3x16xbf16> to vector<3x16xbf16>
    %cst_73 = arith.constant dense<0.000000e+00> : vector<256x16xf32>
    %66 = tpu.matmul %63, %65, %cst_73 {dimension_numbers = #tpu.dot_dimension_numbers<[1], [0], [0], [1], [0, 0, 1, 1], [], []>} : vector<256x3xbf16>, vector<3x16xbf16>, vector<256x16xf32> -> vector<256x16xf32>
    %67 = arith.addf %60, %66 : vector<256x16xf32>
    %c0_74 = arith.constant 0 : index
    %c0_75 = arith.constant 0 : index
    %68 = vector.load %arg3[%c0_74, %c0_75] : memref<1x16xf32, #tpu.memory_space<vmem>>, vector<1x16xf32>
    %69 = vector.broadcast %68 : vector<1x16xf32> to vector<256x16xf32>
    %70 = arith.addf %67, %69 : vector<256x16xf32>
    %cst_76 = arith.constant 0.000000e+00 : f32
    %71 = vector.broadcast %cst_76 : f32 to vector<256x16xf32>
    %72 = arith.maximumf %70, %71 : vector<256x16xf32>
    %73 = vector.shape_cast %72 : vector<256x16xf32> to vector<16x16x16xf32>
    %c1_77 = arith.constant 1 : index
    %c1_78 = arith.constant 1 : index
    %c0_79 = arith.constant 0 : index
    %74 = vector.load %arg25[%c1_77, %c1_78, %c0_79] : memref<18x18x16xf32, #tpu.memory_space<vmem>>, vector<16x16x16xf32>
    tpu.vector_store %arg25[%c1_77, %c1_78, %c0_79], %73 {strides = array<i32>} : memref<18x18x16xf32, #tpu.memory_space<vmem>>, vector<16x16x16xf32>,
    %c0_80 = arith.constant 0 : index
    %c0_81 = arith.constant 0 : index
    %c0_82 = arith.constant 0 : index
    %75 = vector.load %arg25[%c0_80, %c0_81, %c0_82] : memref<18x18x16xf32, #tpu.memory_space<vmem>>, vector<16x16x16xf32>
    %76 = vector.shape_cast %75 : vector<16x16x16xf32> to vector<256x16xf32>
    %77 = arith.truncf %76 : vector<256x16xf32> to vector<256x16xbf16>
    %c0_83 = arith.constant 0 : index
    %c0_84 = arith.constant 0 : index
    %c0_85 = arith.constant 0 : index
    %78 = vector.load %arg4[%c0_83, %c0_84, %c0_85] : memref<9x16x16xbf16, #tpu.memory_space<vmem>>, vector<1x16x16xbf16>
    %79 = vector.shape_cast %78 : vector<1x16x16xbf16> to vector<16x16xbf16>
    %cst_86 = arith.constant dense<0.000000e+00> : vector<256x16xf32>
    %80 = tpu.matmul %77, %79, %cst_86 {dimension_numbers = #tpu.dot_dimension_numbers<[1], [0], [0], [1], [0, 0, 1, 1], [], []>} : vector<256x16xbf16>, vector<16x16xbf16>, vector<256x16xf32> -> vector<256x16xf32>
    %c0_87 = arith.constant 0 : index
    %c1_88 = arith.constant 1 : index
    %c0_89 = arith.constant 0 : index
    %81 = vector.load %arg25[%c0_87, %c1_88, %c0_89] : memref<18x18x16xf32, #tpu.memory_space<vmem>>, vector<16x16x16xf32>
    %82 = vector.shape_cast %81 : vector<16x16x16xf32> to vector<256x16xf32>
    %83 = arith.truncf %82 : vector<256x16xf32> to vector<256x16xbf16>
    %c1_90 = arith.constant 1 : index
    %c0_91 = arith.constant 0 : index
    %c0_92 = arith.constant 0 : index
    %84 = vector.load %arg4[%c1_90, %c0_91, %c0_92] : memref<9x16x16xbf16, #tpu.memory_space<vmem>>, vector<1x16x16xbf16>
    %85 = vector.shape_cast %84 : vector<1x16x16xbf16> to vector<16x16xbf16>
    %cst_93 = arith.constant dense<0.000000e+00> : vector<256x16xf32>
    %86 = tpu.matmul %83, %85, %cst_93 {dimension_numbers = #tpu.dot_dimension_numbers<[1], [0], [0], [1], [0, 0, 1, 1], [], []>} : vector<256x16xbf16>, vector<16x16xbf16>, vector<256x16xf32> -> vector<256x16xf32>
    %87 = arith.addf %80, %86 : vector<256x16xf32>
    %c0_94 = arith.constant 0 : index
    %c2_95 = arith.constant 2 : index
    %c0_96 = arith.constant 0 : index
    %88 = vector.load %arg25[%c0_94, %c2_95, %c0_96] : memref<18x18x16xf32, #tpu.memory_space<vmem>>, vector<16x16x16xf32>
    %89 = vector.shape_cast %88 : vector<16x16x16xf32> to vector<256x16xf32>
    %90 = arith.truncf %89 : vector<256x16xf32> to vector<256x16xbf16>
    %c2_97 = arith.constant 2 : index
    %c0_98 = arith.constant 0 : index
    %c0_99 = arith.constant 0 : index
    %91 = vector.load %arg4[%c2_97, %c0_98, %c0_99] : memref<9x16x16xbf16, #tpu.memory_space<vmem>>, vector<1x16x16xbf16>
    %92 = vector.shape_cast %91 : vector<1x16x16xbf16> to vector<16x16xbf16>
    %cst_100 = arith.constant dense<0.000000e+00> : vector<256x16xf32>
    %93 = tpu.matmul %90, %92, %cst_100 {dimension_numbers = #tpu.dot_dimension_numbers<[1], [0], [0], [1], [0, 0, 1, 1], [], []>} : vector<256x16xbf16>, vector<16x16xbf16>, vector<256x16xf32> -> vector<256x16xf32>
    %94 = arith.addf %87, %93 : vector<256x16xf32>
    %c1_101 = arith.constant 1 : index
    %c0_102 = arith.constant 0 : index
    %c0_103 = arith.constant 0 : index
    %95 = vector.load %arg25[%c1_101, %c0_102, %c0_103] : memref<18x18x16xf32, #tpu.memory_space<vmem>>, vector<16x16x16xf32>
    %96 = vector.shape_cast %95 : vector<16x16x16xf32> to vector<256x16xf32>
    %97 = arith.truncf %96 : vector<256x16xf32> to vector<256x16xbf16>
    %c3_104 = arith.constant 3 : index
    %c0_105 = arith.constant 0 : index
    %c0_106 = arith.constant 0 : index
    %98 = vector.load %arg4[%c3_104, %c0_105, %c0_106] : memref<9x16x16xbf16, #tpu.memory_space<vmem>>, vector<1x16x16xbf16>
    %99 = vector.shape_cast %98 : vector<1x16x16xbf16> to vector<16x16xbf16>
    %cst_107 = arith.constant dense<0.000000e+00> : vector<256x16xf32>
    %100 = tpu.matmul %97, %99, %cst_107 {dimension_numbers = #tpu.dot_dimension_numbers<[1], [0], [0], [1], [0, 0, 1, 1], [], []>} : vector<256x16xbf16>, vector<16x16xbf16>, vector<256x16xf32> -> vector<256x16xf32>
    %101 = arith.addf %94, %100 : vector<256x16xf32>
    %c1_108 = arith.constant 1 : index
    %c1_109 = arith.constant 1 : index
    %c0_110 = arith.constant 0 : index
    %102 = vector.load %arg25[%c1_108, %c1_109, %c0_110] : memref<18x18x16xf32, #tpu.memory_space<vmem>>, vector<16x16x16xf32>
    %103 = vector.shape_cast %102 : vector<16x16x16xf32> to vector<256x16xf32>
    %104 = arith.truncf %103 : vector<256x16xf32> to vector<256x16xbf16>
    %c4_111 = arith.constant 4 : index
    %c0_112 = arith.constant 0 : index
    %c0_113 = arith.constant 0 : index
    %105 = vector.load %arg4[%c4_111, %c0_112, %c0_113] : memref<9x16x16xbf16, #tpu.memory_space<vmem>>, vector<1x16x16xbf16>
    %106 = vector.shape_cast %105 : vector<1x16x16xbf16> to vector<16x16xbf16>
    %cst_114 = arith.constant dense<0.000000e+00> : vector<256x16xf32>
    %107 = tpu.matmul %104, %106, %cst_114 {dimension_numbers = #tpu.dot_dimension_numbers<[1], [0], [0], [1], [0, 0, 1, 1], [], []>} : vector<256x16xbf16>, vector<16x16xbf16>, vector<256x16xf32> -> vector<256x16xf32>
    %108 = arith.addf %101, %107 : vector<256x16xf32>
    %c1_115 = arith.constant 1 : index
    %c2_116 = arith.constant 2 : index
    %c0_117 = arith.constant 0 : index
    %109 = vector.load %arg25[%c1_115, %c2_116, %c0_117] : memref<18x18x16xf32, #tpu.memory_space<vmem>>, vector<16x16x16xf32>
    %110 = vector.shape_cast %109 : vector<16x16x16xf32> to vector<256x16xf32>
    %111 = arith.truncf %110 : vector<256x16xf32> to vector<256x16xbf16>
    %c5_118 = arith.constant 5 : index
    %c0_119 = arith.constant 0 : index
    %c0_120 = arith.constant 0 : index
    %112 = vector.load %arg4[%c5_118, %c0_119, %c0_120] : memref<9x16x16xbf16, #tpu.memory_space<vmem>>, vector<1x16x16xbf16>
    %113 = vector.shape_cast %112 : vector<1x16x16xbf16> to vector<16x16xbf16>
    %cst_121 = arith.constant dense<0.000000e+00> : vector<256x16xf32>
    %114 = tpu.matmul %111, %113, %cst_121 {dimension_numbers = #tpu.dot_dimension_numbers<[1], [0], [0], [1], [0, 0, 1, 1], [], []>} : vector<256x16xbf16>, vector<16x16xbf16>, vector<256x16xf32> -> vector<256x16xf32>
    %115 = arith.addf %108, %114 : vector<256x16xf32>
    %c2_122 = arith.constant 2 : index
    %c0_123 = arith.constant 0 : index
    %c0_124 = arith.constant 0 : index
    %116 = vector.load %arg25[%c2_122, %c0_123, %c0_124] : memref<18x18x16xf32, #tpu.memory_space<vmem>>, vector<16x16x16xf32>
    %117 = vector.shape_cast %116 : vector<16x16x16xf32> to vector<256x16xf32>
    %118 = arith.truncf %117 : vector<256x16xf32> to vector<256x16xbf16>
    %c6_125 = arith.constant 6 : index
    %c0_126 = arith.constant 0 : index
    %c0_127 = arith.constant 0 : index
    %119 = vector.load %arg4[%c6_125, %c0_126, %c0_127] : memref<9x16x16xbf16, #tpu.memory_space<vmem>>, vector<1x16x16xbf16>
    %120 = vector.shape_cast %119 : vector<1x16x16xbf16> to vector<16x16xbf16>
    %cst_128 = arith.constant dense<0.000000e+00> : vector<256x16xf32>
    %121 = tpu.matmul %118, %120, %cst_128 {dimension_numbers = #tpu.dot_dimension_numbers<[1], [0], [0], [1], [0, 0, 1, 1], [], []>} : vector<256x16xbf16>, vector<16x16xbf16>, vector<256x16xf32> -> vector<256x16xf32>
    %122 = arith.addf %115, %121 : vector<256x16xf32>
    %c2_129 = arith.constant 2 : index
    %c1_130 = arith.constant 1 : index
    %c0_131 = arith.constant 0 : index
    %123 = vector.load %arg25[%c2_129, %c1_130, %c0_131] : memref<18x18x16xf32, #tpu.memory_space<vmem>>, vector<16x16x16xf32>
    %124 = vector.shape_cast %123 : vector<16x16x16xf32> to vector<256x16xf32>
    %125 = arith.truncf %124 : vector<256x16xf32> to vector<256x16xbf16>
    %c7_132 = arith.constant 7 : index
    %c0_133 = arith.constant 0 : index
    %c0_134 = arith.constant 0 : index
    %126 = vector.load %arg4[%c7_132, %c0_133, %c0_134] : memref<9x16x16xbf16, #tpu.memory_space<vmem>>, vector<1x16x16xbf16>
    %127 = vector.shape_cast %126 : vector<1x16x16xbf16> to vector<16x16xbf16>
    %cst_135 = arith.constant dense<0.000000e+00> : vector<256x16xf32>
    %128 = tpu.matmul %125, %127, %cst_135 {dimension_numbers = #tpu.dot_dimension_numbers<[1], [0], [0], [1], [0, 0, 1, 1], [], []>} : vector<256x16xbf16>, vector<16x16xbf16>, vector<256x16xf32> -> vector<256x16xf32>
    %129 = arith.addf %122, %128 : vector<256x16xf32>
    %c2_136 = arith.constant 2 : index
    %c2_137 = arith.constant 2 : index
    %c0_138 = arith.constant 0 : index
    %130 = vector.load %arg25[%c2_136, %c2_137, %c0_138] : memref<18x18x16xf32, #tpu.memory_space<vmem>>, vector<16x16x16xf32>
    %131 = vector.shape_cast %130 : vector<16x16x16xf32> to vector<256x16xf32>
    %132 = arith.truncf %131 : vector<256x16xf32> to vector<256x16xbf16>
    %c8_139 = arith.constant 8 : index
    %c0_140 = arith.constant 0 : index
    %c0_141 = arith.constant 0 : index
    %133 = vector.load %arg4[%c8_139, %c0_140, %c0_141] : memref<9x16x16xbf16, #tpu.memory_space<vmem>>, vector<1x16x16xbf16>
    %134 = vector.shape_cast %133 : vector<1x16x16xbf16> to vector<16x16xbf16>
    %cst_142 = arith.constant dense<0.000000e+00> : vector<256x16xf32>
    %135 = tpu.matmul %132, %134, %cst_142 {dimension_numbers = #tpu.dot_dimension_numbers<[1], [0], [0], [1], [0, 0, 1, 1], [], []>} : vector<256x16xbf16>, vector<16x16xbf16>, vector<256x16xf32> -> vector<256x16xf32>
    %136 = arith.addf %129, %135 : vector<256x16xf32>
    %c0_143 = arith.constant 0 : index
    %c0_144 = arith.constant 0 : index
    %137 = vector.load %arg5[%c0_143, %c0_144] : memref<1x16xf32, #tpu.memory_space<vmem>>, vector<1x16xf32>
    %138 = vector.broadcast %137 : vector<1x16xf32> to vector<256x16xf32>
    %139 = arith.addf %136, %138 : vector<256x16xf32>
    %cst_145 = arith.constant 0.000000e+00 : f32
    %140 = vector.broadcast %cst_145 : f32 to vector<256x16xf32>
    %141 = arith.maximumf %139, %140 : vector<256x16xf32>
    %142 = vector.shape_cast %141 : vector<256x16xf32> to vector<16x16x16xf32>
    %c1_146 = arith.constant 1 : index
    %c1_147 = arith.constant 1 : index
    %c0_148 = arith.constant 0 : index
    %143 = vector.load %arg25[%c1_146, %c1_147, %c0_148] : memref<18x18x16xf32, #tpu.memory_space<vmem>>, vector<16x16x16xf32>
    tpu.vector_store %arg25[%c1_146, %c1_147, %c0_148], %142 {strides = array<i32>} : memref<18x18x16xf32, #tpu.memory_space<vmem>>, vector<16x16x16xf32>,
    %c0_149 = arith.constant 0 : index
    %c0_150 = arith.constant 0 : index
    %c0_151 = arith.constant 0 : index
    %144 = vector.load %arg25[%c0_149, %c0_150, %c0_151] : memref<18x18x16xf32, #tpu.memory_space<vmem>>, vector<16x16x16xf32>
    %145 = vector.shape_cast %144 : vector<16x16x16xf32> to vector<256x16xf32>
    %146 = arith.truncf %145 : vector<256x16xf32> to vector<256x16xbf16>
    %c0_152 = arith.constant 0 : index
    %c0_153 = arith.constant 0 : index
    %c0_154 = arith.constant 0 : index
    %147 = vector.load %arg6[%c0_152, %c0_153, %c0_154] : memref<9x16x16xbf16, #tpu.memory_space<vmem>>, vector<1x16x16xbf16>
    %148 = vector.shape_cast %147 : vector<1x16x16xbf16> to vector<16x16xbf16>
    %cst_155 = arith.constant dense<0.000000e+00> : vector<256x16xf32>
    %149 = tpu.matmul %146, %148, %cst_155 {dimension_numbers = #tpu.dot_dimension_numbers<[1], [0], [0], [1], [0, 0, 1, 1], [], []>} : vector<256x16xbf16>, vector<16x16xbf16>, vector<256x16xf32> -> vector<256x16xf32>
    %c0_156 = arith.constant 0 : index
    %c1_157 = arith.constant 1 : index
    %c0_158 = arith.constant 0 : index
    %150 = vector.load %arg25[%c0_156, %c1_157, %c0_158] : memref<18x18x16xf32, #tpu.memory_space<vmem>>, vector<16x16x16xf32>
    %151 = vector.shape_cast %150 : vector<16x16x16xf32> to vector<256x16xf32>
    %152 = arith.truncf %151 : vector<256x16xf32> to vector<256x16xbf16>
    %c1_159 = arith.constant 1 : index
    %c0_160 = arith.constant 0 : index
    %c0_161 = arith.constant 0 : index
    %153 = vector.load %arg6[%c1_159, %c0_160, %c0_161] : memref<9x16x16xbf16, #tpu.memory_space<vmem>>, vector<1x16x16xbf16>
    %154 = vector.shape_cast %153 : vector<1x16x16xbf16> to vector<16x16xbf16>
    %cst_162 = arith.constant dense<0.000000e+00> : vector<256x16xf32>
    %155 = tpu.matmul %152, %154, %cst_162 {dimension_numbers = #tpu.dot_dimension_numbers<[1], [0], [0], [1], [0, 0, 1, 1], [], []>} : vector<256x16xbf16>, vector<16x16xbf16>, vector<256x16xf32> -> vector<256x16xf32>
    %156 = arith.addf %149, %155 : vector<256x16xf32>
    %c0_163 = arith.constant 0 : index
    %c2_164 = arith.constant 2 : index
    %c0_165 = arith.constant 0 : index
    %157 = vector.load %arg25[%c0_163, %c2_164, %c0_165] : memref<18x18x16xf32, #tpu.memory_space<vmem>>, vector<16x16x16xf32>
    %158 = vector.shape_cast %157 : vector<16x16x16xf32> to vector<256x16xf32>
    %159 = arith.truncf %158 : vector<256x16xf32> to vector<256x16xbf16>
    %c2_166 = arith.constant 2 : index
    %c0_167 = arith.constant 0 : index
    %c0_168 = arith.constant 0 : index
    %160 = vector.load %arg6[%c2_166, %c0_167, %c0_168] : memref<9x16x16xbf16, #tpu.memory_space<vmem>>, vector<1x16x16xbf16>
    %161 = vector.shape_cast %160 : vector<1x16x16xbf16> to vector<16x16xbf16>
    %cst_169 = arith.constant dense<0.000000e+00> : vector<256x16xf32>
    %162 = tpu.matmul %159, %161, %cst_169 {dimension_numbers = #tpu.dot_dimension_numbers<[1], [0], [0], [1], [0, 0, 1, 1], [], []>} : vector<256x16xbf16>, vector<16x16xbf16>, vector<256x16xf32> -> vector<256x16xf32>
    %163 = arith.addf %156, %162 : vector<256x16xf32>
    %c1_170 = arith.constant 1 : index
    %c0_171 = arith.constant 0 : index
    %c0_172 = arith.constant 0 : index
    %164 = vector.load %arg25[%c1_170, %c0_171, %c0_172] : memref<18x18x16xf32, #tpu.memory_space<vmem>>, vector<16x16x16xf32>
    %165 = vector.shape_cast %164 : vector<16x16x16xf32> to vector<256x16xf32>
    %166 = arith.truncf %165 : vector<256x16xf32> to vector<256x16xbf16>
    %c3_173 = arith.constant 3 : index
    %c0_174 = arith.constant 0 : index
    %c0_175 = arith.constant 0 : index
    %167 = vector.load %arg6[%c3_173, %c0_174, %c0_175] : memref<9x16x16xbf16, #tpu.memory_space<vmem>>, vector<1x16x16xbf16>
    %168 = vector.shape_cast %167 : vector<1x16x16xbf16> to vector<16x16xbf16>
    %cst_176 = arith.constant dense<0.000000e+00> : vector<256x16xf32>
    %169 = tpu.matmul %166, %168, %cst_176 {dimension_numbers = #tpu.dot_dimension_numbers<[1], [0], [0], [1], [0, 0, 1, 1], [], []>} : vector<256x16xbf16>, vector<16x16xbf16>, vector<256x16xf32> -> vector<256x16xf32>
    %170 = arith.addf %163, %169 : vector<256x16xf32>
    %c1_177 = arith.constant 1 : index
    %c1_178 = arith.constant 1 : index
    %c0_179 = arith.constant 0 : index
    %171 = vector.load %arg25[%c1_177, %c1_178, %c0_179] : memref<18x18x16xf32, #tpu.memory_space<vmem>>, vector<16x16x16xf32>
    %172 = vector.shape_cast %171 : vector<16x16x16xf32> to vector<256x16xf32>
    %173 = arith.truncf %172 : vector<256x16xf32> to vector<256x16xbf16>
    %c4_180 = arith.constant 4 : index
    %c0_181 = arith.constant 0 : index
    %c0_182 = arith.constant 0 : index
    %174 = vector.load %arg6[%c4_180, %c0_181, %c0_182] : memref<9x16x16xbf16, #tpu.memory_space<vmem>>, vector<1x16x16xbf16>
    %175 = vector.shape_cast %174 : vector<1x16x16xbf16> to vector<16x16xbf16>
    %cst_183 = arith.constant dense<0.000000e+00> : vector<256x16xf32>
    %176 = tpu.matmul %173, %175, %cst_183 {dimension_numbers = #tpu.dot_dimension_numbers<[1], [0], [0], [1], [0, 0, 1, 1], [], []>} : vector<256x16xbf16>, vector<16x16xbf16>, vector<256x16xf32> -> vector<256x16xf32>
    %177 = arith.addf %170, %176 : vector<256x16xf32>
    %c1_184 = arith.constant 1 : index
    %c2_185 = arith.constant 2 : index
    %c0_186 = arith.constant 0 : index
    %178 = vector.load %arg25[%c1_184, %c2_185, %c0_186] : memref<18x18x16xf32, #tpu.memory_space<vmem>>, vector<16x16x16xf32>
    %179 = vector.shape_cast %178 : vector<16x16x16xf32> to vector<256x16xf32>
    %180 = arith.truncf %179 : vector<256x16xf32> to vector<256x16xbf16>
    %c5_187 = arith.constant 5 : index
    %c0_188 = arith.constant 0 : index
    %c0_189 = arith.constant 0 : index
    %181 = vector.load %arg6[%c5_187, %c0_188, %c0_189] : memref<9x16x16xbf16, #tpu.memory_space<vmem>>, vector<1x16x16xbf16>
    %182 = vector.shape_cast %181 : vector<1x16x16xbf16> to vector<16x16xbf16>
    %cst_190 = arith.constant dense<0.000000e+00> : vector<256x16xf32>
    %183 = tpu.matmul %180, %182, %cst_190 {dimension_numbers = #tpu.dot_dimension_numbers<[1], [0], [0], [1], [0, 0, 1, 1], [], []>} : vector<256x16xbf16>, vector<16x16xbf16>, vector<256x16xf32> -> vector<256x16xf32>
    %184 = arith.addf %177, %183 : vector<256x16xf32>
    %c2_191 = arith.constant 2 : index
    %c0_192 = arith.constant 0 : index
    %c0_193 = arith.constant 0 : index
    %185 = vector.load %arg25[%c2_191, %c0_192, %c0_193] : memref<18x18x16xf32, #tpu.memory_space<vmem>>, vector<16x16x16xf32>
    %186 = vector.shape_cast %185 : vector<16x16x16xf32> to vector<256x16xf32>
    %187 = arith.truncf %186 : vector<256x16xf32> to vector<256x16xbf16>
    %c6_194 = arith.constant 6 : index
    %c0_195 = arith.constant 0 : index
    %c0_196 = arith.constant 0 : index
    %188 = vector.load %arg6[%c6_194, %c0_195, %c0_196] : memref<9x16x16xbf16, #tpu.memory_space<vmem>>, vector<1x16x16xbf16>
    %189 = vector.shape_cast %188 : vector<1x16x16xbf16> to vector<16x16xbf16>
    %cst_197 = arith.constant dense<0.000000e+00> : vector<256x16xf32>
    %190 = tpu.matmul %187, %189, %cst_197 {dimension_numbers = #tpu.dot_dimension_numbers<[1], [0], [0], [1], [0, 0, 1, 1], [], []>} : vector<256x16xbf16>, vector<16x16xbf16>, vector<256x16xf32> -> vector<256x16xf32>
    %191 = arith.addf %184, %190 : vector<256x16xf32>
    %c2_198 = arith.constant 2 : index
    %c1_199 = arith.constant 1 : index
    %c0_200 = arith.constant 0 : index
    %192 = vector.load %arg25[%c2_198, %c1_199, %c0_200] : memref<18x18x16xf32, #tpu.memory_space<vmem>>, vector<16x16x16xf32>
    %193 = vector.shape_cast %192 : vector<16x16x16xf32> to vector<256x16xf32>
    %194 = arith.truncf %193 : vector<256x16xf32> to vector<256x16xbf16>
    %c7_201 = arith.constant 7 : index
    %c0_202 = arith.constant 0 : index
    %c0_203 = arith.constant 0 : index
    %195 = vector.load %arg6[%c7_201, %c0_202, %c0_203] : memref<9x16x16xbf16, #tpu.memory_space<vmem>>, vector<1x16x16xbf16>
    %196 = vector.shape_cast %195 : vector<1x16x16xbf16> to vector<16x16xbf16>
    %cst_204 = arith.constant dense<0.000000e+00> : vector<256x16xf32>
    %197 = tpu.matmul %194, %196, %cst_204 {dimension_numbers = #tpu.dot_dimension_numbers<[1], [0], [0], [1], [0, 0, 1, 1], [], []>} : vector<256x16xbf16>, vector<16x16xbf16>, vector<256x16xf32> -> vector<256x16xf32>
    %198 = arith.addf %191, %197 : vector<256x16xf32>
    %c2_205 = arith.constant 2 : index
    %c2_206 = arith.constant 2 : index
    %c0_207 = arith.constant 0 : index
    %199 = vector.load %arg25[%c2_205, %c2_206, %c0_207] : memref<18x18x16xf32, #tpu.memory_space<vmem>>, vector<16x16x16xf32>
    %200 = vector.shape_cast %199 : vector<16x16x16xf32> to vector<256x16xf32>
    %201 = arith.truncf %200 : vector<256x16xf32> to vector<256x16xbf16>
    %c8_208 = arith.constant 8 : index
    %c0_209 = arith.constant 0 : index
    %c0_210 = arith.constant 0 : index
    %202 = vector.load %arg6[%c8_208, %c0_209, %c0_210] : memref<9x16x16xbf16, #tpu.memory_space<vmem>>, vector<1x16x16xbf16>
    %203 = vector.shape_cast %202 : vector<1x16x16xbf16> to vector<16x16xbf16>
    %cst_211 = arith.constant dense<0.000000e+00> : vector<256x16xf32>
    %204 = tpu.matmul %201, %203, %cst_211 {dimension_numbers = #tpu.dot_dimension_numbers<[1], [0], [0], [1], [0, 0, 1, 1], [], []>} : vector<256x16xbf16>, vector<16x16xbf16>, vector<256x16xf32> -> vector<256x16xf32>
    %205 = arith.addf %198, %204 : vector<256x16xf32>
    %c0_212 = arith.constant 0 : index
    %c0_213 = arith.constant 0 : index
    %206 = vector.load %arg7[%c0_212, %c0_213] : memref<1x16xf32, #tpu.memory_space<vmem>>, vector<1x16xf32>
    %207 = vector.broadcast %206 : vector<1x16xf32> to vector<256x16xf32>
    %208 = arith.addf %205, %207 : vector<256x16xf32>
    %209 = arith.addf %208, %72 : vector<256x16xf32>
    %cst_214 = arith.constant 0.000000e+00 : f32
    %210 = vector.broadcast %cst_214 : f32 to vector<256x16xf32>
    %211 = arith.maximumf %209, %210 : vector<256x16xf32>
    %212 = vector.shape_cast %211 : vector<256x16xf32> to vector<16x16x16xf32>
    %c1_215 = arith.constant 1 : index
    %c1_216 = arith.constant 1 : index
    %c0_217 = arith.constant 0 : index
    %213 = vector.load %arg25[%c1_215, %c1_216, %c0_217] : memref<18x18x16xf32, #tpu.memory_space<vmem>>, vector<16x16x16xf32>
    tpu.vector_store %arg25[%c1_215, %c1_216, %c0_217], %212 {strides = array<i32>} : memref<18x18x16xf32, #tpu.memory_space<vmem>>, vector<16x16x16xf32>,
    %c0_218 = arith.constant 0 : index
    %c0_219 = arith.constant 0 : index
    %c0_220 = arith.constant 0 : index
    %214 = vector.load %arg25[%c0_218, %c0_219, %c0_220] : memref<18x18x16xf32, #tpu.memory_space<vmem>>, vector<16x16x16xf32>
    %215 = vector.shape_cast %214 : vector<16x16x16xf32> to vector<256x16xf32>
    %216 = arith.truncf %215 : vector<256x16xf32> to vector<256x16xbf16>
    %c0_221 = arith.constant 0 : index
    %c0_222 = arith.constant 0 : index
    %c0_223 = arith.constant 0 : index
    %217 = vector.load %arg8[%c0_221, %c0_222, %c0_223] : memref<9x16x32xbf16, #tpu.memory_space<vmem>>, vector<1x16x32xbf16>
    %218 = vector.shape_cast %217 : vector<1x16x32xbf16> to vector<16x32xbf16>
    %cst_224 = arith.constant dense<0.000000e+00> : vector<256x32xf32>
    %219 = tpu.matmul %216, %218, %cst_224 {dimension_numbers = #tpu.dot_dimension_numbers<[1], [0], [0], [1], [0, 0, 1, 1], [], []>} : vector<256x16xbf16>, vector<16x32xbf16>, vector<256x32xf32> -> vector<256x32xf32>
    %c0_225 = arith.constant 0 : index
    %c1_226 = arith.constant 1 : index
    %c0_227 = arith.constant 0 : index
    %220 = vector.load %arg25[%c0_225, %c1_226, %c0_227] : memref<18x18x16xf32, #tpu.memory_space<vmem>>, vector<16x16x16xf32>
    %221 = vector.shape_cast %220 : vector<16x16x16xf32> to vector<256x16xf32>
    %222 = arith.truncf %221 : vector<256x16xf32> to vector<256x16xbf16>
    %c1_228 = arith.constant 1 : index
    %c0_229 = arith.constant 0 : index
    %c0_230 = arith.constant 0 : index
    %223 = vector.load %arg8[%c1_228, %c0_229, %c0_230] : memref<9x16x32xbf16, #tpu.memory_space<vmem>>, vector<1x16x32xbf16>
    %224 = vector.shape_cast %223 : vector<1x16x32xbf16> to vector<16x32xbf16>
    %cst_231 = arith.constant dense<0.000000e+00> : vector<256x32xf32>
    %225 = tpu.matmul %222, %224, %cst_231 {dimension_numbers = #tpu.dot_dimension_numbers<[1], [0], [0], [1], [0, 0, 1, 1], [], []>} : vector<256x16xbf16>, vector<16x32xbf16>, vector<256x32xf32> -> vector<256x32xf32>
    %226 = arith.addf %219, %225 : vector<256x32xf32>
    %c0_232 = arith.constant 0 : index
    %c2_233 = arith.constant 2 : index
    %c0_234 = arith.constant 0 : index
    %227 = vector.load %arg25[%c0_232, %c2_233, %c0_234] : memref<18x18x16xf32, #tpu.memory_space<vmem>>, vector<16x16x16xf32>
    %228 = vector.shape_cast %227 : vector<16x16x16xf32> to vector<256x16xf32>
    %229 = arith.truncf %228 : vector<256x16xf32> to vector<256x16xbf16>
    %c2_235 = arith.constant 2 : index
    %c0_236 = arith.constant 0 : index
    %c0_237 = arith.constant 0 : index
    %230 = vector.load %arg8[%c2_235, %c0_236, %c0_237] : memref<9x16x32xbf16, #tpu.memory_space<vmem>>, vector<1x16x32xbf16>
    %231 = vector.shape_cast %230 : vector<1x16x32xbf16> to vector<16x32xbf16>
    %cst_238 = arith.constant dense<0.000000e+00> : vector<256x32xf32>
    %232 = tpu.matmul %229, %231, %cst_238 {dimension_numbers = #tpu.dot_dimension_numbers<[1], [0], [0], [1], [0, 0, 1, 1], [], []>} : vector<256x16xbf16>, vector<16x32xbf16>, vector<256x32xf32> -> vector<256x32xf32>
    %233 = arith.addf %226, %232 : vector<256x32xf32>
    %c1_239 = arith.constant 1 : index
    %c0_240 = arith.constant 0 : index
    %c0_241 = arith.constant 0 : index
    %234 = vector.load %arg25[%c1_239, %c0_240, %c0_241] : memref<18x18x16xf32, #tpu.memory_space<vmem>>, vector<16x16x16xf32>
    %235 = vector.shape_cast %234 : vector<16x16x16xf32> to vector<256x16xf32>
    %236 = arith.truncf %235 : vector<256x16xf32> to vector<256x16xbf16>
    %c3_242 = arith.constant 3 : index
    %c0_243 = arith.constant 0 : index
    %c0_244 = arith.constant 0 : index
    %237 = vector.load %arg8[%c3_242, %c0_243, %c0_244] : memref<9x16x32xbf16, #tpu.memory_space<vmem>>, vector<1x16x32xbf16>
    %238 = vector.shape_cast %237 : vector<1x16x32xbf16> to vector<16x32xbf16>
    %cst_245 = arith.constant dense<0.000000e+00> : vector<256x32xf32>
    %239 = tpu.matmul %236, %238, %cst_245 {dimension_numbers = #tpu.dot_dimension_numbers<[1], [0], [0], [1], [0, 0, 1, 1], [], []>} : vector<256x16xbf16>, vector<16x32xbf16>, vector<256x32xf32> -> vector<256x32xf32>
    %240 = arith.addf %233, %239 : vector<256x32xf32>
    %c1_246 = arith.constant 1 : index
    %c1_247 = arith.constant 1 : index
    %c0_248 = arith.constant 0 : index
    %241 = vector.load %arg25[%c1_246, %c1_247, %c0_248] : memref<18x18x16xf32, #tpu.memory_space<vmem>>, vector<16x16x16xf32>
    %242 = vector.shape_cast %241 : vector<16x16x16xf32> to vector<256x16xf32>
    %243 = arith.truncf %242 : vector<256x16xf32> to vector<256x16xbf16>
    %c4_249 = arith.constant 4 : index
    %c0_250 = arith.constant 0 : index
    %c0_251 = arith.constant 0 : index
    %244 = vector.load %arg8[%c4_249, %c0_250, %c0_251] : memref<9x16x32xbf16, #tpu.memory_space<vmem>>, vector<1x16x32xbf16>
    %245 = vector.shape_cast %244 : vector<1x16x32xbf16> to vector<16x32xbf16>
    %cst_252 = arith.constant dense<0.000000e+00> : vector<256x32xf32>
    %246 = tpu.matmul %243, %245, %cst_252 {dimension_numbers = #tpu.dot_dimension_numbers<[1], [0], [0], [1], [0, 0, 1, 1], [], []>} : vector<256x16xbf16>, vector<16x32xbf16>, vector<256x32xf32> -> vector<256x32xf32>
    %247 = arith.addf %240, %246 : vector<256x32xf32>
    %c1_253 = arith.constant 1 : index
    %c2_254 = arith.constant 2 : index
    %c0_255 = arith.constant 0 : index
    %248 = vector.load %arg25[%c1_253, %c2_254, %c0_255] : memref<18x18x16xf32, #tpu.memory_space<vmem>>, vector<16x16x16xf32>
    %249 = vector.shape_cast %248 : vector<16x16x16xf32> to vector<256x16xf32>
    %250 = arith.truncf %249 : vector<256x16xf32> to vector<256x16xbf16>
    %c5_256 = arith.constant 5 : index
    %c0_257 = arith.constant 0 : index
    %c0_258 = arith.constant 0 : index
    %251 = vector.load %arg8[%c5_256, %c0_257, %c0_258] : memref<9x16x32xbf16, #tpu.memory_space<vmem>>, vector<1x16x32xbf16>
    %252 = vector.shape_cast %251 : vector<1x16x32xbf16> to vector<16x32xbf16>
    %cst_259 = arith.constant dense<0.000000e+00> : vector<256x32xf32>
    %253 = tpu.matmul %250, %252, %cst_259 {dimension_numbers = #tpu.dot_dimension_numbers<[1], [0], [0], [1], [0, 0, 1, 1], [], []>} : vector<256x16xbf16>, vector<16x32xbf16>, vector<256x32xf32> -> vector<256x32xf32>
    %254 = arith.addf %247, %253 : vector<256x32xf32>
    %c2_260 = arith.constant 2 : index
    %c0_261 = arith.constant 0 : index
    %c0_262 = arith.constant 0 : index
    %255 = vector.load %arg25[%c2_260, %c0_261, %c0_262] : memref<18x18x16xf32, #tpu.memory_space<vmem>>, vector<16x16x16xf32>
    %256 = vector.shape_cast %255 : vector<16x16x16xf32> to vector<256x16xf32>
    %257 = arith.truncf %256 : vector<256x16xf32> to vector<256x16xbf16>
    %c6_263 = arith.constant 6 : index
    %c0_264 = arith.constant 0 : index
    %c0_265 = arith.constant 0 : index
    %258 = vector.load %arg8[%c6_263, %c0_264, %c0_265] : memref<9x16x32xbf16, #tpu.memory_space<vmem>>, vector<1x16x32xbf16>
    %259 = vector.shape_cast %258 : vector<1x16x32xbf16> to vector<16x32xbf16>
    %cst_266 = arith.constant dense<0.000000e+00> : vector<256x32xf32>
    %260 = tpu.matmul %257, %259, %cst_266 {dimension_numbers = #tpu.dot_dimension_numbers<[1], [0], [0], [1], [0, 0, 1, 1], [], []>} : vector<256x16xbf16>, vector<16x32xbf16>, vector<256x32xf32> -> vector<256x32xf32>
    %261 = arith.addf %254, %260 : vector<256x32xf32>
    %c2_267 = arith.constant 2 : index
    %c1_268 = arith.constant 1 : index
    %c0_269 = arith.constant 0 : index
    %262 = vector.load %arg25[%c2_267, %c1_268, %c0_269] : memref<18x18x16xf32, #tpu.memory_space<vmem>>, vector<16x16x16xf32>
    %263 = vector.shape_cast %262 : vector<16x16x16xf32> to vector<256x16xf32>
    %264 = arith.truncf %263 : vector<256x16xf32> to vector<256x16xbf16>
    %c7_270 = arith.constant 7 : index
    %c0_271 = arith.constant 0 : index
    %c0_272 = arith.constant 0 : index
    %265 = vector.load %arg8[%c7_270, %c0_271, %c0_272] : memref<9x16x32xbf16, #tpu.memory_space<vmem>>, vector<1x16x32xbf16>
    %266 = vector.shape_cast %265 : vector<1x16x32xbf16> to vector<16x32xbf16>
    %cst_273 = arith.constant dense<0.000000e+00> : vector<256x32xf32>
    %267 = tpu.matmul %264, %266, %cst_273 {dimension_numbers = #tpu.dot_dimension_numbers<[1], [0], [0], [1], [0, 0, 1, 1], [], []>} : vector<256x16xbf16>, vector<16x32xbf16>, vector<256x32xf32> -> vector<256x32xf32>
    %268 = arith.addf %261, %267 : vector<256x32xf32>
    %c2_274 = arith.constant 2 : index
    %c2_275 = arith.constant 2 : index
    %c0_276 = arith.constant 0 : index
    %269 = vector.load %arg25[%c2_274, %c2_275, %c0_276] : memref<18x18x16xf32, #tpu.memory_space<vmem>>, vector<16x16x16xf32>
    %270 = vector.shape_cast %269 : vector<16x16x16xf32> to vector<256x16xf32>
    %271 = arith.truncf %270 : vector<256x16xf32> to vector<256x16xbf16>
    %c8_277 = arith.constant 8 : index
    %c0_278 = arith.constant 0 : index
    %c0_279 = arith.constant 0 : index
    %272 = vector.load %arg8[%c8_277, %c0_278, %c0_279] : memref<9x16x32xbf16, #tpu.memory_space<vmem>>, vector<1x16x32xbf16>
    %273 = vector.shape_cast %272 : vector<1x16x32xbf16> to vector<16x32xbf16>
    %cst_280 = arith.constant dense<0.000000e+00> : vector<256x32xf32>
    %274 = tpu.matmul %271, %273, %cst_280 {dimension_numbers = #tpu.dot_dimension_numbers<[1], [0], [0], [1], [0, 0, 1, 1], [], []>} : vector<256x16xbf16>, vector<16x32xbf16>, vector<256x32xf32> -> vector<256x32xf32>
    %275 = arith.addf %268, %274 : vector<256x32xf32>
    %c0_281 = arith.constant 0 : index
    %c0_282 = arith.constant 0 : index
    %276 = vector.load %arg9[%c0_281, %c0_282] : memref<1x32xf32, #tpu.memory_space<vmem>>, vector<1x32xf32>
    %277 = vector.broadcast %276 : vector<1x32xf32> to vector<256x32xf32>
    %278 = arith.addf %275, %277 : vector<256x32xf32>
    %cst_283 = arith.constant 0.000000e+00 : f32
    %279 = vector.broadcast %cst_283 : f32 to vector<256x32xf32>
    %280 = arith.maximumf %278, %279 : vector<256x32xf32>
    %c0_284 = arith.constant 0 : index
    %c0_285 = arith.constant 0 : index
    %281 = vector.load %arg12[%c0_284, %c0_285] : memref<64x256xbf16, #tpu.memory_space<vmem>>, vector<64x256xbf16>
    %282 = arith.truncf %280 : vector<256x32xf32> to vector<256x32xbf16>
    %cst_286 = arith.constant dense<0.000000e+00> : vector<64x32xf32>
    %283 = tpu.matmul %281, %282, %cst_286 {dimension_numbers = #tpu.dot_dimension_numbers<[1], [0], [0], [1], [0, 0, 1, 1], [], []>} : vector<64x256xbf16>, vector<256x32xbf16>, vector<64x32xf32> -> vector<64x32xf32>
    %284 = arith.truncf %211 : vector<256x16xf32> to vector<256x16xbf16>
    %cst_287 = arith.constant dense<0.000000e+00> : vector<64x16xf32>
    %285 = tpu.matmul %281, %284, %cst_287 {dimension_numbers = #tpu.dot_dimension_numbers<[1], [0], [0], [1], [0, 0, 1, 1], [], []>} : vector<64x256xbf16>, vector<256x16xbf16>, vector<64x16xf32> -> vector<64x16xf32>
    %286 = arith.truncf %285 : vector<64x16xf32> to vector<64x16xbf16>
    %c0_288 = arith.constant 0 : index
    %c0_289 = arith.constant 0 : index
    %287 = vector.load %arg13[%c0_288, %c0_289] : memref<16x32xbf16, #tpu.memory_space<vmem>>, vector<16x32xbf16>
    %cst_290 = arith.constant dense<0.000000e+00> : vector<64x32xf32>
    %288 = tpu.matmul %286, %287, %cst_290 {dimension_numbers = #tpu.dot_dimension_numbers<[1], [0], [0], [1], [0, 0, 1, 1], [], []>} : vector<64x16xbf16>, vector<16x32xbf16>, vector<64x32xf32> -> vector<64x32xf32>
    %c0_291 = arith.constant 0 : index
    %c0_292 = arith.constant 0 : index
    %289 = vector.load %arg14[%c0_291, %c0_292] : memref<1x32xf32, #tpu.memory_space<vmem>>, vector<1x32xf32>
    %290 = vector.broadcast %289 : vector<1x32xf32> to vector<64x32xf32>
    %291 = arith.addf %288, %290 : vector<64x32xf32>
    %292 = vector.shape_cast %283 : vector<64x32xf32> to vector<8x8x32xf32>
    %c1_293 = arith.constant 1 : index
    %c1_294 = arith.constant 1 : index
    %c0_295 = arith.constant 0 : index
    %293 = vector.load %arg26[%c1_293, %c1_294, %c0_295] : memref<10x10x32xf32, #tpu.memory_space<vmem>>, vector<8x8x32xf32>
    tpu.vector_store %arg26[%c1_293, %c1_294, %c0_295], %292 {strides = array<i32>} : memref<10x10x32xf32, #tpu.memory_space<vmem>>, vector<8x8x32xf32>,
    %c0_296 = arith.constant 0 : index
    %c0_297 = arith.constant 0 : index
    %c0_298 = arith.constant 0 : index
    %294 = vector.load %arg26[%c0_296, %c0_297, %c0_298] : memref<10x10x32xf32, #tpu.memory_space<vmem>>, vector<8x8x32xf32>
    %295 = vector.shape_cast %294 : vector<8x8x32xf32> to vector<64x32xf32>
    %296 = arith.truncf %295 : vector<64x32xf32> to vector<64x32xbf16>
    %c0_299 = arith.constant 0 : index
    %c0_300 = arith.constant 0 : index
    %c0_301 = arith.constant 0 : index
    %297 = vector.load %arg10[%c0_299, %c0_300, %c0_301] : memref<9x32x32xbf16, #tpu.memory_space<vmem>>, vector<1x32x32xbf16>
    %298 = vector.shape_cast %297 : vector<1x32x32xbf16> to vector<32x32xbf16>
    %cst_302 = arith.constant dense<0.000000e+00> : vector<64x32xf32>
    %299 = tpu.matmul %296, %298, %cst_302 {dimension_numbers = #tpu.dot_dimension_numbers<[1], [0], [0], [1], [0, 0, 1, 1], [], []>} : vector<64x32xbf16>, vector<32x32xbf16>, vector<64x32xf32> -> vector<64x32xf32>
    %c0_303 = arith.constant 0 : index
    %c1_304 = arith.constant 1 : index
    %c0_305 = arith.constant 0 : index
    %300 = vector.load %arg26[%c0_303, %c1_304, %c0_305] : memref<10x10x32xf32, #tpu.memory_space<vmem>>, vector<8x8x32xf32>
    %301 = vector.shape_cast %300 : vector<8x8x32xf32> to vector<64x32xf32>
    %302 = arith.truncf %301 : vector<64x32xf32> to vector<64x32xbf16>
    %c1_306 = arith.constant 1 : index
    %c0_307 = arith.constant 0 : index
    %c0_308 = arith.constant 0 : index
    %303 = vector.load %arg10[%c1_306, %c0_307, %c0_308] : memref<9x32x32xbf16, #tpu.memory_space<vmem>>, vector<1x32x32xbf16>
    %304 = vector.shape_cast %303 : vector<1x32x32xbf16> to vector<32x32xbf16>
    %cst_309 = arith.constant dense<0.000000e+00> : vector<64x32xf32>
    %305 = tpu.matmul %302, %304, %cst_309 {dimension_numbers = #tpu.dot_dimension_numbers<[1], [0], [0], [1], [0, 0, 1, 1], [], []>} : vector<64x32xbf16>, vector<32x32xbf16>, vector<64x32xf32> -> vector<64x32xf32>
    %306 = arith.addf %299, %305 : vector<64x32xf32>
    %c0_310 = arith.constant 0 : index
    %c2_311 = arith.constant 2 : index
    %c0_312 = arith.constant 0 : index
    %307 = vector.load %arg26[%c0_310, %c2_311, %c0_312] : memref<10x10x32xf32, #tpu.memory_space<vmem>>, vector<8x8x32xf32>
    %308 = vector.shape_cast %307 : vector<8x8x32xf32> to vector<64x32xf32>
    %309 = arith.truncf %308 : vector<64x32xf32> to vector<64x32xbf16>
    %c2_313 = arith.constant 2 : index
    %c0_314 = arith.constant 0 : index
    %c0_315 = arith.constant 0 : index
    %310 = vector.load %arg10[%c2_313, %c0_314, %c0_315] : memref<9x32x32xbf16, #tpu.memory_space<vmem>>, vector<1x32x32xbf16>
    %311 = vector.shape_cast %310 : vector<1x32x32xbf16> to vector<32x32xbf16>
    %cst_316 = arith.constant dense<0.000000e+00> : vector<64x32xf32>
    %312 = tpu.matmul %309, %311, %cst_316 {dimension_numbers = #tpu.dot_dimension_numbers<[1], [0], [0], [1], [0, 0, 1, 1], [], []>} : vector<64x32xbf16>, vector<32x32xbf16>, vector<64x32xf32> -> vector<64x32xf32>
    %313 = arith.addf %306, %312 : vector<64x32xf32>
    %c1_317 = arith.constant 1 : index
    %c0_318 = arith.constant 0 : index
    %c0_319 = arith.constant 0 : index
    %314 = vector.load %arg26[%c1_317, %c0_318, %c0_319] : memref<10x10x32xf32, #tpu.memory_space<vmem>>, vector<8x8x32xf32>
    %315 = vector.shape_cast %314 : vector<8x8x32xf32> to vector<64x32xf32>
    %316 = arith.truncf %315 : vector<64x32xf32> to vector<64x32xbf16>
    %c3_320 = arith.constant 3 : index
    %c0_321 = arith.constant 0 : index
    %c0_322 = arith.constant 0 : index
    %317 = vector.load %arg10[%c3_320, %c0_321, %c0_322] : memref<9x32x32xbf16, #tpu.memory_space<vmem>>, vector<1x32x32xbf16>
    %318 = vector.shape_cast %317 : vector<1x32x32xbf16> to vector<32x32xbf16>
    %cst_323 = arith.constant dense<0.000000e+00> : vector<64x32xf32>
    %319 = tpu.matmul %316, %318, %cst_323 {dimension_numbers = #tpu.dot_dimension_numbers<[1], [0], [0], [1], [0, 0, 1, 1], [], []>} : vector<64x32xbf16>, vector<32x32xbf16>, vector<64x32xf32> -> vector<64x32xf32>
    %320 = arith.addf %313, %319 : vector<64x32xf32>
    %c1_324 = arith.constant 1 : index
    %c1_325 = arith.constant 1 : index
    %c0_326 = arith.constant 0 : index
    %321 = vector.load %arg26[%c1_324, %c1_325, %c0_326] : memref<10x10x32xf32, #tpu.memory_space<vmem>>, vector<8x8x32xf32>
    %322 = vector.shape_cast %321 : vector<8x8x32xf32> to vector<64x32xf32>
    %323 = arith.truncf %322 : vector<64x32xf32> to vector<64x32xbf16>
    %c4_327 = arith.constant 4 : index
    %c0_328 = arith.constant 0 : index
    %c0_329 = arith.constant 0 : index
    %324 = vector.load %arg10[%c4_327, %c0_328, %c0_329] : memref<9x32x32xbf16, #tpu.memory_space<vmem>>, vector<1x32x32xbf16>
    %325 = vector.shape_cast %324 : vector<1x32x32xbf16> to vector<32x32xbf16>
    %cst_330 = arith.constant dense<0.000000e+00> : vector<64x32xf32>
    %326 = tpu.matmul %323, %325, %cst_330 {dimension_numbers = #tpu.dot_dimension_numbers<[1], [0], [0], [1], [0, 0, 1, 1], [], []>} : vector<64x32xbf16>, vector<32x32xbf16>, vector<64x32xf32> -> vector<64x32xf32>
    %327 = arith.addf %320, %326 : vector<64x32xf32>
    %c1_331 = arith.constant 1 : index
    %c2_332 = arith.constant 2 : index
    %c0_333 = arith.constant 0 : index
    %328 = vector.load %arg26[%c1_331, %c2_332, %c0_333] : memref<10x10x32xf32, #tpu.memory_space<vmem>>, vector<8x8x32xf32>
    %329 = vector.shape_cast %328 : vector<8x8x32xf32> to vector<64x32xf32>
    %330 = arith.truncf %329 : vector<64x32xf32> to vector<64x32xbf16>
    %c5_334 = arith.constant 5 : index
    %c0_335 = arith.constant 0 : index
    %c0_336 = arith.constant 0 : index
    %331 = vector.load %arg10[%c5_334, %c0_335, %c0_336] : memref<9x32x32xbf16, #tpu.memory_space<vmem>>, vector<1x32x32xbf16>
    %332 = vector.shape_cast %331 : vector<1x32x32xbf16> to vector<32x32xbf16>
    %cst_337 = arith.constant dense<0.000000e+00> : vector<64x32xf32>
    %333 = tpu.matmul %330, %332, %cst_337 {dimension_numbers = #tpu.dot_dimension_numbers<[1], [0], [0], [1], [0, 0, 1, 1], [], []>} : vector<64x32xbf16>, vector<32x32xbf16>, vector<64x32xf32> -> vector<64x32xf32>
    %334 = arith.addf %327, %333 : vector<64x32xf32>
    %c2_338 = arith.constant 2 : index
    %c0_339 = arith.constant 0 : index
    %c0_340 = arith.constant 0 : index
    %335 = vector.load %arg26[%c2_338, %c0_339, %c0_340] : memref<10x10x32xf32, #tpu.memory_space<vmem>>, vector<8x8x32xf32>
    %336 = vector.shape_cast %335 : vector<8x8x32xf32> to vector<64x32xf32>
    %337 = arith.truncf %336 : vector<64x32xf32> to vector<64x32xbf16>
    %c6_341 = arith.constant 6 : index
    %c0_342 = arith.constant 0 : index
    %c0_343 = arith.constant 0 : index
    %338 = vector.load %arg10[%c6_341, %c0_342, %c0_343] : memref<9x32x32xbf16, #tpu.memory_space<vmem>>, vector<1x32x32xbf16>
    %339 = vector.shape_cast %338 : vector<1x32x32xbf16> to vector<32x32xbf16>
    %cst_344 = arith.constant dense<0.000000e+00> : vector<64x32xf32>
    %340 = tpu.matmul %337, %339, %cst_344 {dimension_numbers = #tpu.dot_dimension_numbers<[1], [0], [0], [1], [0, 0, 1, 1], [], []>} : vector<64x32xbf16>, vector<32x32xbf16>, vector<64x32xf32> -> vector<64x32xf32>
    %341 = arith.addf %334, %340 : vector<64x32xf32>
    %c2_345 = arith.constant 2 : index
    %c1_346 = arith.constant 1 : index
    %c0_347 = arith.constant 0 : index
    %342 = vector.load %arg26[%c2_345, %c1_346, %c0_347] : memref<10x10x32xf32, #tpu.memory_space<vmem>>, vector<8x8x32xf32>
    %343 = vector.shape_cast %342 : vector<8x8x32xf32> to vector<64x32xf32>
    %344 = arith.truncf %343 : vector<64x32xf32> to vector<64x32xbf16>
    %c7_348 = arith.constant 7 : index
    %c0_349 = arith.constant 0 : index
    %c0_350 = arith.constant 0 : index
    %345 = vector.load %arg10[%c7_348, %c0_349, %c0_350] : memref<9x32x32xbf16, #tpu.memory_space<vmem>>, vector<1x32x32xbf16>
    %346 = vector.shape_cast %345 : vector<1x32x32xbf16> to vector<32x32xbf16>
    %cst_351 = arith.constant dense<0.000000e+00> : vector<64x32xf32>
    %347 = tpu.matmul %344, %346, %cst_351 {dimension_numbers = #tpu.dot_dimension_numbers<[1], [0], [0], [1], [0, 0, 1, 1], [], []>} : vector<64x32xbf16>, vector<32x32xbf16>, vector<64x32xf32> -> vector<64x32xf32>
    %348 = arith.addf %341, %347 : vector<64x32xf32>
    %c2_352 = arith.constant 2 : index
    %c2_353 = arith.constant 2 : index
    %c0_354 = arith.constant 0 : index
    %349 = vector.load %arg26[%c2_352, %c2_353, %c0_354] : memref<10x10x32xf32, #tpu.memory_space<vmem>>, vector<8x8x32xf32>
    %350 = vector.shape_cast %349 : vector<8x8x32xf32> to vector<64x32xf32>
    %351 = arith.truncf %350 : vector<64x32xf32> to vector<64x32xbf16>
    %c8_355 = arith.constant 8 : index
    %c0_356 = arith.constant 0 : index
    %c0_357 = arith.constant 0 : index
    %352 = vector.load %arg10[%c8_355, %c0_356, %c0_357] : memref<9x32x32xbf16, #tpu.memory_space<vmem>>, vector<1x32x32xbf16>
    %353 = vector.shape_cast %352 : vector<1x32x32xbf16> to vector<32x32xbf16>
    %cst_358 = arith.constant dense<0.000000e+00> : vector<64x32xf32>
    %354 = tpu.matmul %351, %353, %cst_358 {dimension_numbers = #tpu.dot_dimension_numbers<[1], [0], [0], [1], [0, 0, 1, 1], [], []>} : vector<64x32xbf16>, vector<32x32xbf16>, vector<64x32xf32> -> vector<64x32xf32>
    %355 = arith.addf %348, %354 : vector<64x32xf32>
    %c0_359 = arith.constant 0 : index
    %c0_360 = arith.constant 0 : index
    %356 = vector.load %arg11[%c0_359, %c0_360] : memref<1x32xf32, #tpu.memory_space<vmem>>, vector<1x32xf32>
    %357 = vector.broadcast %356 : vector<1x32xf32> to vector<64x32xf32>
    %358 = arith.addf %355, %357 : vector<64x32xf32>
    %359 = arith.addf %358, %291 : vector<64x32xf32>
    %cst_361 = arith.constant 0.000000e+00 : f32
    %360 = vector.broadcast %cst_361 : f32 to vector<64x32xf32>
    %361 = arith.maximumf %359, %360 : vector<64x32xf32>
    %362 = vector.shape_cast %361 : vector<64x32xf32> to vector<8x8x32xf32>
    %c1_362 = arith.constant 1 : index
    %c1_363 = arith.constant 1 : index
    %c0_364 = arith.constant 0 : index
    %363 = vector.load %arg26[%c1_362, %c1_363, %c0_364] : memref<10x10x32xf32, #tpu.memory_space<vmem>>, vector<8x8x32xf32>
    tpu.vector_store %arg26[%c1_362, %c1_363, %c0_364], %362 {strides = array<i32>} : memref<10x10x32xf32, #tpu.memory_space<vmem>>, vector<8x8x32xf32>,
    %c0_365 = arith.constant 0 : index
    %c0_366 = arith.constant 0 : index
    %c0_367 = arith.constant 0 : index
    %364 = vector.load %arg26[%c0_365, %c0_366, %c0_367] : memref<10x10x32xf32, #tpu.memory_space<vmem>>, vector<8x8x32xf32>
    %365 = vector.shape_cast %364 : vector<8x8x32xf32> to vector<64x32xf32>
    %366 = arith.truncf %365 : vector<64x32xf32> to vector<64x32xbf16>
    %c0_368 = arith.constant 0 : index
    %c0_369 = arith.constant 0 : index
    %c0_370 = arith.constant 0 : index
    %367 = vector.load %arg15[%c0_368, %c0_369, %c0_370] : memref<9x32x64xbf16, #tpu.memory_space<vmem>>, vector<1x32x64xbf16>
    %368 = vector.shape_cast %367 : vector<1x32x64xbf16> to vector<32x64xbf16>
    %cst_371 = arith.constant dense<0.000000e+00> : vector<64x64xf32>
    %369 = tpu.matmul %366, %368, %cst_371 {dimension_numbers = #tpu.dot_dimension_numbers<[1], [0], [0], [1], [0, 0, 1, 1], [], []>} : vector<64x32xbf16>, vector<32x64xbf16>, vector<64x64xf32> -> vector<64x64xf32>
    %c0_372 = arith.constant 0 : index
    %c1_373 = arith.constant 1 : index
    %c0_374 = arith.constant 0 : index
    %370 = vector.load %arg26[%c0_372, %c1_373, %c0_374] : memref<10x10x32xf32, #tpu.memory_space<vmem>>, vector<8x8x32xf32>
    %371 = vector.shape_cast %370 : vector<8x8x32xf32> to vector<64x32xf32>
    %372 = arith.truncf %371 : vector<64x32xf32> to vector<64x32xbf16>
    %c1_375 = arith.constant 1 : index
    %c0_376 = arith.constant 0 : index
    %c0_377 = arith.constant 0 : index
    %373 = vector.load %arg15[%c1_375, %c0_376, %c0_377] : memref<9x32x64xbf16, #tpu.memory_space<vmem>>, vector<1x32x64xbf16>
    %374 = vector.shape_cast %373 : vector<1x32x64xbf16> to vector<32x64xbf16>
    %cst_378 = arith.constant dense<0.000000e+00> : vector<64x64xf32>
    %375 = tpu.matmul %372, %374, %cst_378 {dimension_numbers = #tpu.dot_dimension_numbers<[1], [0], [0], [1], [0, 0, 1, 1], [], []>} : vector<64x32xbf16>, vector<32x64xbf16>, vector<64x64xf32> -> vector<64x64xf32>
    %376 = arith.addf %369, %375 : vector<64x64xf32>
    %c0_379 = arith.constant 0 : index
    %c2_380 = arith.constant 2 : index
    %c0_381 = arith.constant 0 : index
    %377 = vector.load %arg26[%c0_379, %c2_380, %c0_381] : memref<10x10x32xf32, #tpu.memory_space<vmem>>, vector<8x8x32xf32>
    %378 = vector.shape_cast %377 : vector<8x8x32xf32> to vector<64x32xf32>
    %379 = arith.truncf %378 : vector<64x32xf32> to vector<64x32xbf16>
    %c2_382 = arith.constant 2 : index
    %c0_383 = arith.constant 0 : index
    %c0_384 = arith.constant 0 : index
    %380 = vector.load %arg15[%c2_382, %c0_383, %c0_384] : memref<9x32x64xbf16, #tpu.memory_space<vmem>>, vector<1x32x64xbf16>
    %381 = vector.shape_cast %380 : vector<1x32x64xbf16> to vector<32x64xbf16>
    %cst_385 = arith.constant dense<0.000000e+00> : vector<64x64xf32>
    %382 = tpu.matmul %379, %381, %cst_385 {dimension_numbers = #tpu.dot_dimension_numbers<[1], [0], [0], [1], [0, 0, 1, 1], [], []>} : vector<64x32xbf16>, vector<32x64xbf16>, vector<64x64xf32> -> vector<64x64xf32>
    %383 = arith.addf %376, %382 : vector<64x64xf32>
    %c1_386 = arith.constant 1 : index
    %c0_387 = arith.constant 0 : index
    %c0_388 = arith.constant 0 : index
    %384 = vector.load %arg26[%c1_386, %c0_387, %c0_388] : memref<10x10x32xf32, #tpu.memory_space<vmem>>, vector<8x8x32xf32>
    %385 = vector.shape_cast %384 : vector<8x8x32xf32> to vector<64x32xf32>
    %386 = arith.truncf %385 : vector<64x32xf32> to vector<64x32xbf16>
    %c3_389 = arith.constant 3 : index
    %c0_390 = arith.constant 0 : index
    %c0_391 = arith.constant 0 : index
    %387 = vector.load %arg15[%c3_389, %c0_390, %c0_391] : memref<9x32x64xbf16, #tpu.memory_space<vmem>>, vector<1x32x64xbf16>
    %388 = vector.shape_cast %387 : vector<1x32x64xbf16> to vector<32x64xbf16>
    %cst_392 = arith.constant dense<0.000000e+00> : vector<64x64xf32>
    %389 = tpu.matmul %386, %388, %cst_392 {dimension_numbers = #tpu.dot_dimension_numbers<[1], [0], [0], [1], [0, 0, 1, 1], [], []>} : vector<64x32xbf16>, vector<32x64xbf16>, vector<64x64xf32> -> vector<64x64xf32>
    %390 = arith.addf %383, %389 : vector<64x64xf32>
    %c1_393 = arith.constant 1 : index
    %c1_394 = arith.constant 1 : index
    %c0_395 = arith.constant 0 : index
    %391 = vector.load %arg26[%c1_393, %c1_394, %c0_395] : memref<10x10x32xf32, #tpu.memory_space<vmem>>, vector<8x8x32xf32>
    %392 = vector.shape_cast %391 : vector<8x8x32xf32> to vector<64x32xf32>
    %393 = arith.truncf %392 : vector<64x32xf32> to vector<64x32xbf16>
    %c4_396 = arith.constant 4 : index
    %c0_397 = arith.constant 0 : index
    %c0_398 = arith.constant 0 : index
    %394 = vector.load %arg15[%c4_396, %c0_397, %c0_398] : memref<9x32x64xbf16, #tpu.memory_space<vmem>>, vector<1x32x64xbf16>
    %395 = vector.shape_cast %394 : vector<1x32x64xbf16> to vector<32x64xbf16>
    %cst_399 = arith.constant dense<0.000000e+00> : vector<64x64xf32>
    %396 = tpu.matmul %393, %395, %cst_399 {dimension_numbers = #tpu.dot_dimension_numbers<[1], [0], [0], [1], [0, 0, 1, 1], [], []>} : vector<64x32xbf16>, vector<32x64xbf16>, vector<64x64xf32> -> vector<64x64xf32>
    %397 = arith.addf %390, %396 : vector<64x64xf32>
    %c1_400 = arith.constant 1 : index
    %c2_401 = arith.constant 2 : index
    %c0_402 = arith.constant 0 : index
    %398 = vector.load %arg26[%c1_400, %c2_401, %c0_402] : memref<10x10x32xf32, #tpu.memory_space<vmem>>, vector<8x8x32xf32>
    %399 = vector.shape_cast %398 : vector<8x8x32xf32> to vector<64x32xf32>
    %400 = arith.truncf %399 : vector<64x32xf32> to vector<64x32xbf16>
    %c5_403 = arith.constant 5 : index
    %c0_404 = arith.constant 0 : index
    %c0_405 = arith.constant 0 : index
    %401 = vector.load %arg15[%c5_403, %c0_404, %c0_405] : memref<9x32x64xbf16, #tpu.memory_space<vmem>>, vector<1x32x64xbf16>
    %402 = vector.shape_cast %401 : vector<1x32x64xbf16> to vector<32x64xbf16>
    %cst_406 = arith.constant dense<0.000000e+00> : vector<64x64xf32>
    %403 = tpu.matmul %400, %402, %cst_406 {dimension_numbers = #tpu.dot_dimension_numbers<[1], [0], [0], [1], [0, 0, 1, 1], [], []>} : vector<64x32xbf16>, vector<32x64xbf16>, vector<64x64xf32> -> vector<64x64xf32>
    %404 = arith.addf %397, %403 : vector<64x64xf32>
    %c2_407 = arith.constant 2 : index
    %c0_408 = arith.constant 0 : index
    %c0_409 = arith.constant 0 : index
    %405 = vector.load %arg26[%c2_407, %c0_408, %c0_409] : memref<10x10x32xf32, #tpu.memory_space<vmem>>, vector<8x8x32xf32>
    %406 = vector.shape_cast %405 : vector<8x8x32xf32> to vector<64x32xf32>
    %407 = arith.truncf %406 : vector<64x32xf32> to vector<64x32xbf16>
    %c6_410 = arith.constant 6 : index
    %c0_411 = arith.constant 0 : index
    %c0_412 = arith.constant 0 : index
    %408 = vector.load %arg15[%c6_410, %c0_411, %c0_412] : memref<9x32x64xbf16, #tpu.memory_space<vmem>>, vector<1x32x64xbf16>
    %409 = vector.shape_cast %408 : vector<1x32x64xbf16> to vector<32x64xbf16>
    %cst_413 = arith.constant dense<0.000000e+00> : vector<64x64xf32>
    %410 = tpu.matmul %407, %409, %cst_413 {dimension_numbers = #tpu.dot_dimension_numbers<[1], [0], [0], [1], [0, 0, 1, 1], [], []>} : vector<64x32xbf16>, vector<32x64xbf16>, vector<64x64xf32> -> vector<64x64xf32>
    %411 = arith.addf %404, %410 : vector<64x64xf32>
    %c2_414 = arith.constant 2 : index
    %c1_415 = arith.constant 1 : index
    %c0_416 = arith.constant 0 : index
    %412 = vector.load %arg26[%c2_414, %c1_415, %c0_416] : memref<10x10x32xf32, #tpu.memory_space<vmem>>, vector<8x8x32xf32>
    %413 = vector.shape_cast %412 : vector<8x8x32xf32> to vector<64x32xf32>
    %414 = arith.truncf %413 : vector<64x32xf32> to vector<64x32xbf16>
    %c7_417 = arith.constant 7 : index
    %c0_418 = arith.constant 0 : index
    %c0_419 = arith.constant 0 : index
    %415 = vector.load %arg15[%c7_417, %c0_418, %c0_419] : memref<9x32x64xbf16, #tpu.memory_space<vmem>>, vector<1x32x64xbf16>
    %416 = vector.shape_cast %415 : vector<1x32x64xbf16> to vector<32x64xbf16>
    %cst_420 = arith.constant dense<0.000000e+00> : vector<64x64xf32>
    %417 = tpu.matmul %414, %416, %cst_420 {dimension_numbers = #tpu.dot_dimension_numbers<[1], [0], [0], [1], [0, 0, 1, 1], [], []>} : vector<64x32xbf16>, vector<32x64xbf16>, vector<64x64xf32> -> vector<64x64xf32>
    %418 = arith.addf %411, %417 : vector<64x64xf32>
    %c2_421 = arith.constant 2 : index
    %c2_422 = arith.constant 2 : index
    %c0_423 = arith.constant 0 : index
    %419 = vector.load %arg26[%c2_421, %c2_422, %c0_423] : memref<10x10x32xf32, #tpu.memory_space<vmem>>, vector<8x8x32xf32>
    %420 = vector.shape_cast %419 : vector<8x8x32xf32> to vector<64x32xf32>
    %421 = arith.truncf %420 : vector<64x32xf32> to vector<64x32xbf16>
    %c8_424 = arith.constant 8 : index
    %c0_425 = arith.constant 0 : index
    %c0_426 = arith.constant 0 : index
    %422 = vector.load %arg15[%c8_424, %c0_425, %c0_426] : memref<9x32x64xbf16, #tpu.memory_space<vmem>>, vector<1x32x64xbf16>
    %423 = vector.shape_cast %422 : vector<1x32x64xbf16> to vector<32x64xbf16>
    %cst_427 = arith.constant dense<0.000000e+00> : vector<64x64xf32>
    %424 = tpu.matmul %421, %423, %cst_427 {dimension_numbers = #tpu.dot_dimension_numbers<[1], [0], [0], [1], [0, 0, 1, 1], [], []>} : vector<64x32xbf16>, vector<32x64xbf16>, vector<64x64xf32> -> vector<64x64xf32>
    %425 = arith.addf %418, %424 : vector<64x64xf32>
    %c0_428 = arith.constant 0 : index
    %c0_429 = arith.constant 0 : index
    %426 = vector.load %arg16[%c0_428, %c0_429] : memref<1x64xf32, #tpu.memory_space<vmem>>, vector<1x64xf32>
    %427 = vector.broadcast %426 : vector<1x64xf32> to vector<64x64xf32>
    %428 = arith.addf %425, %427 : vector<64x64xf32>
    %cst_430 = arith.constant 0.000000e+00 : f32
    %429 = vector.broadcast %cst_430 : f32 to vector<64x64xf32>
    %430 = arith.maximumf %428, %429 : vector<64x64xf32>
    %c0_431 = arith.constant 0 : index
    %c0_432 = arith.constant 0 : index
    %431 = vector.load %arg19[%c0_431, %c0_432] : memref<16x64xbf16, #tpu.memory_space<vmem>>, vector<16x64xbf16>
    %432 = arith.truncf %430 : vector<64x64xf32> to vector<64x64xbf16>
    %cst_433 = arith.constant dense<0.000000e+00> : vector<16x64xf32>
    %433 = tpu.matmul %431, %432, %cst_433 {dimension_numbers = #tpu.dot_dimension_numbers<[1], [0], [0], [1], [0, 0, 1, 1], [], []>} : vector<16x64xbf16>, vector<64x64xbf16>, vector<16x64xf32> -> vector<16x64xf32>
    %434 = arith.truncf %361 : vector<64x32xf32> to vector<64x32xbf16>
    %cst_434 = arith.constant dense<0.000000e+00> : vector<16x32xf32>
    %435 = tpu.matmul %431, %434, %cst_434 {dimension_numbers = #tpu.dot_dimension_numbers<[1], [0], [0], [1], [0, 0, 1, 1], [], []>} : vector<16x64xbf16>, vector<64x32xbf16>, vector<16x32xf32> -> vector<16x32xf32>
    %436 = arith.truncf %435 : vector<16x32xf32> to vector<16x32xbf16>
    %c0_435 = arith.constant 0 : index
    %c0_436 = arith.constant 0 : index
    %437 = vector.load %arg20[%c0_435, %c0_436] : memref<32x64xbf16, #tpu.memory_space<vmem>>, vector<32x64xbf16>
    %cst_437 = arith.constant dense<0.000000e+00> : vector<16x64xf32>
    %438 = tpu.matmul %436, %437, %cst_437 {dimension_numbers = #tpu.dot_dimension_numbers<[1], [0], [0], [1], [0, 0, 1, 1], [], []>} : vector<16x32xbf16>, vector<32x64xbf16>, vector<16x64xf32> -> vector<16x64xf32>
    %c0_438 = arith.constant 0 : index
    %c0_439 = arith.constant 0 : index
    %439 = vector.load %arg21[%c0_438, %c0_439] : memref<1x64xf32, #tpu.memory_space<vmem>>, vector<1x64xf32>
    %440 = vector.broadcast %439 : vector<1x64xf32> to vector<16x64xf32>
    %441 = arith.addf %438, %440 : vector<16x64xf32>
    %442 = vector.shape_cast %433 : vector<16x64xf32> to vector<4x4x64xf32>
    %c1_440 = arith.constant 1 : index
    %c1_441 = arith.constant 1 : index
    %c0_442 = arith.constant 0 : index
    %443 = vector.load %arg27[%c1_440, %c1_441, %c0_442] : memref<6x6x64xf32, #tpu.memory_space<vmem>>, vector<4x4x64xf32>
    tpu.vector_store %arg27[%c1_440, %c1_441, %c0_442], %442 {strides = array<i32>} : memref<6x6x64xf32, #tpu.memory_space<vmem>>, vector<4x4x64xf32>,
    %c0_443 = arith.constant 0 : index
    %c0_444 = arith.constant 0 : index
    %c0_445 = arith.constant 0 : index
    %444 = vector.load %arg27[%c0_443, %c0_444, %c0_445] : memref<6x6x64xf32, #tpu.memory_space<vmem>>, vector<4x4x64xf32>
    %445 = vector.shape_cast %444 : vector<4x4x64xf32> to vector<16x64xf32>
    %446 = arith.truncf %445 : vector<16x64xf32> to vector<16x64xbf16>
    %c0_446 = arith.constant 0 : index
    %c0_447 = arith.constant 0 : index
    %c0_448 = arith.constant 0 : index
    %447 = vector.load %arg17[%c0_446, %c0_447, %c0_448] : memref<9x64x64xbf16, #tpu.memory_space<vmem>>, vector<1x64x64xbf16>
    %448 = vector.shape_cast %447 : vector<1x64x64xbf16> to vector<64x64xbf16>
    %cst_449 = arith.constant dense<0.000000e+00> : vector<16x64xf32>
    %449 = tpu.matmul %446, %448, %cst_449 {dimension_numbers = #tpu.dot_dimension_numbers<[1], [0], [0], [1], [0, 0, 1, 1], [], []>} : vector<16x64xbf16>, vector<64x64xbf16>, vector<16x64xf32> -> vector<16x64xf32>
    %c0_450 = arith.constant 0 : index
    %c1_451 = arith.constant 1 : index
    %c0_452 = arith.constant 0 : index
    %450 = vector.load %arg27[%c0_450, %c1_451, %c0_452] : memref<6x6x64xf32, #tpu.memory_space<vmem>>, vector<4x4x64xf32>
    %451 = vector.shape_cast %450 : vector<4x4x64xf32> to vector<16x64xf32>
    %452 = arith.truncf %451 : vector<16x64xf32> to vector<16x64xbf16>
    %c1_453 = arith.constant 1 : index
    %c0_454 = arith.constant 0 : index
    %c0_455 = arith.constant 0 : index
    %453 = vector.load %arg17[%c1_453, %c0_454, %c0_455] : memref<9x64x64xbf16, #tpu.memory_space<vmem>>, vector<1x64x64xbf16>
    %454 = vector.shape_cast %453 : vector<1x64x64xbf16> to vector<64x64xbf16>
    %cst_456 = arith.constant dense<0.000000e+00> : vector<16x64xf32>
    %455 = tpu.matmul %452, %454, %cst_456 {dimension_numbers = #tpu.dot_dimension_numbers<[1], [0], [0], [1], [0, 0, 1, 1], [], []>} : vector<16x64xbf16>, vector<64x64xbf16>, vector<16x64xf32> -> vector<16x64xf32>
    %456 = arith.addf %449, %455 : vector<16x64xf32>
    %c0_457 = arith.constant 0 : index
    %c2_458 = arith.constant 2 : index
    %c0_459 = arith.constant 0 : index
    %457 = vector.load %arg27[%c0_457, %c2_458, %c0_459] : memref<6x6x64xf32, #tpu.memory_space<vmem>>, vector<4x4x64xf32>
    %458 = vector.shape_cast %457 : vector<4x4x64xf32> to vector<16x64xf32>
    %459 = arith.truncf %458 : vector<16x64xf32> to vector<16x64xbf16>
    %c2_460 = arith.constant 2 : index
    %c0_461 = arith.constant 0 : index
    %c0_462 = arith.constant 0 : index
    %460 = vector.load %arg17[%c2_460, %c0_461, %c0_462] : memref<9x64x64xbf16, #tpu.memory_space<vmem>>, vector<1x64x64xbf16>
    %461 = vector.shape_cast %460 : vector<1x64x64xbf16> to vector<64x64xbf16>
    %cst_463 = arith.constant dense<0.000000e+00> : vector<16x64xf32>
    %462 = tpu.matmul %459, %461, %cst_463 {dimension_numbers = #tpu.dot_dimension_numbers<[1], [0], [0], [1], [0, 0, 1, 1], [], []>} : vector<16x64xbf16>, vector<64x64xbf16>, vector<16x64xf32> -> vector<16x64xf32>
    %463 = arith.addf %456, %462 : vector<16x64xf32>
    %c1_464 = arith.constant 1 : index
    %c0_465 = arith.constant 0 : index
    %c0_466 = arith.constant 0 : index
    %464 = vector.load %arg27[%c1_464, %c0_465, %c0_466] : memref<6x6x64xf32, #tpu.memory_space<vmem>>, vector<4x4x64xf32>
    %465 = vector.shape_cast %464 : vector<4x4x64xf32> to vector<16x64xf32>
    %466 = arith.truncf %465 : vector<16x64xf32> to vector<16x64xbf16>
    %c3_467 = arith.constant 3 : index
    %c0_468 = arith.constant 0 : index
    %c0_469 = arith.constant 0 : index
    %467 = vector.load %arg17[%c3_467, %c0_468, %c0_469] : memref<9x64x64xbf16, #tpu.memory_space<vmem>>, vector<1x64x64xbf16>
    %468 = vector.shape_cast %467 : vector<1x64x64xbf16> to vector<64x64xbf16>
    %cst_470 = arith.constant dense<0.000000e+00> : vector<16x64xf32>
    %469 = tpu.matmul %466, %468, %cst_470 {dimension_numbers = #tpu.dot_dimension_numbers<[1], [0], [0], [1], [0, 0, 1, 1], [], []>} : vector<16x64xbf16>, vector<64x64xbf16>, vector<16x64xf32> -> vector<16x64xf32>
    %470 = arith.addf %463, %469 : vector<16x64xf32>
    %c1_471 = arith.constant 1 : index
    %c1_472 = arith.constant 1 : index
    %c0_473 = arith.constant 0 : index
    %471 = vector.load %arg27[%c1_471, %c1_472, %c0_473] : memref<6x6x64xf32, #tpu.memory_space<vmem>>, vector<4x4x64xf32>
    %472 = vector.shape_cast %471 : vector<4x4x64xf32> to vector<16x64xf32>
    %473 = arith.truncf %472 : vector<16x64xf32> to vector<16x64xbf16>
    %c4_474 = arith.constant 4 : index
    %c0_475 = arith.constant 0 : index
    %c0_476 = arith.constant 0 : index
    %474 = vector.load %arg17[%c4_474, %c0_475, %c0_476] : memref<9x64x64xbf16, #tpu.memory_space<vmem>>, vector<1x64x64xbf16>
    %475 = vector.shape_cast %474 : vector<1x64x64xbf16> to vector<64x64xbf16>
    %cst_477 = arith.constant dense<0.000000e+00> : vector<16x64xf32>
    %476 = tpu.matmul %473, %475, %cst_477 {dimension_numbers = #tpu.dot_dimension_numbers<[1], [0], [0], [1], [0, 0, 1, 1], [], []>} : vector<16x64xbf16>, vector<64x64xbf16>, vector<16x64xf32> -> vector<16x64xf32>
    %477 = arith.addf %470, %476 : vector<16x64xf32>
    %c1_478 = arith.constant 1 : index
    %c2_479 = arith.constant 2 : index
    %c0_480 = arith.constant 0 : index
    %478 = vector.load %arg27[%c1_478, %c2_479, %c0_480] : memref<6x6x64xf32, #tpu.memory_space<vmem>>, vector<4x4x64xf32>
    %479 = vector.shape_cast %478 : vector<4x4x64xf32> to vector<16x64xf32>
    %480 = arith.truncf %479 : vector<16x64xf32> to vector<16x64xbf16>
    %c5_481 = arith.constant 5 : index
    %c0_482 = arith.constant 0 : index
    %c0_483 = arith.constant 0 : index
    %481 = vector.load %arg17[%c5_481, %c0_482, %c0_483] : memref<9x64x64xbf16, #tpu.memory_space<vmem>>, vector<1x64x64xbf16>
    %482 = vector.shape_cast %481 : vector<1x64x64xbf16> to vector<64x64xbf16>
    %cst_484 = arith.constant dense<0.000000e+00> : vector<16x64xf32>
    %483 = tpu.matmul %480, %482, %cst_484 {dimension_numbers = #tpu.dot_dimension_numbers<[1], [0], [0], [1], [0, 0, 1, 1], [], []>} : vector<16x64xbf16>, vector<64x64xbf16>, vector<16x64xf32> -> vector<16x64xf32>
    %484 = arith.addf %477, %483 : vector<16x64xf32>
    %c2_485 = arith.constant 2 : index
    %c0_486 = arith.constant 0 : index
    %c0_487 = arith.constant 0 : index
    %485 = vector.load %arg27[%c2_485, %c0_486, %c0_487] : memref<6x6x64xf32, #tpu.memory_space<vmem>>, vector<4x4x64xf32>
    %486 = vector.shape_cast %485 : vector<4x4x64xf32> to vector<16x64xf32>
    %487 = arith.truncf %486 : vector<16x64xf32> to vector<16x64xbf16>
    %c6_488 = arith.constant 6 : index
    %c0_489 = arith.constant 0 : index
    %c0_490 = arith.constant 0 : index
    %488 = vector.load %arg17[%c6_488, %c0_489, %c0_490] : memref<9x64x64xbf16, #tpu.memory_space<vmem>>, vector<1x64x64xbf16>
    %489 = vector.shape_cast %488 : vector<1x64x64xbf16> to vector<64x64xbf16>
    %cst_491 = arith.constant dense<0.000000e+00> : vector<16x64xf32>
    %490 = tpu.matmul %487, %489, %cst_491 {dimension_numbers = #tpu.dot_dimension_numbers<[1], [0], [0], [1], [0, 0, 1, 1], [], []>} : vector<16x64xbf16>, vector<64x64xbf16>, vector<16x64xf32> -> vector<16x64xf32>
    %491 = arith.addf %484, %490 : vector<16x64xf32>
    %c2_492 = arith.constant 2 : index
    %c1_493 = arith.constant 1 : index
    %c0_494 = arith.constant 0 : index
    %492 = vector.load %arg27[%c2_492, %c1_493, %c0_494] : memref<6x6x64xf32, #tpu.memory_space<vmem>>, vector<4x4x64xf32>
    %493 = vector.shape_cast %492 : vector<4x4x64xf32> to vector<16x64xf32>
    %494 = arith.truncf %493 : vector<16x64xf32> to vector<16x64xbf16>
    %c7_495 = arith.constant 7 : index
    %c0_496 = arith.constant 0 : index
    %c0_497 = arith.constant 0 : index
    %495 = vector.load %arg17[%c7_495, %c0_496, %c0_497] : memref<9x64x64xbf16, #tpu.memory_space<vmem>>, vector<1x64x64xbf16>
    %496 = vector.shape_cast %495 : vector<1x64x64xbf16> to vector<64x64xbf16>
    %cst_498 = arith.constant dense<0.000000e+00> : vector<16x64xf32>
    %497 = tpu.matmul %494, %496, %cst_498 {dimension_numbers = #tpu.dot_dimension_numbers<[1], [0], [0], [1], [0, 0, 1, 1], [], []>} : vector<16x64xbf16>, vector<64x64xbf16>, vector<16x64xf32> -> vector<16x64xf32>
    %498 = arith.addf %491, %497 : vector<16x64xf32>
    %c2_499 = arith.constant 2 : index
    %c2_500 = arith.constant 2 : index
    %c0_501 = arith.constant 0 : index
    %499 = vector.load %arg27[%c2_499, %c2_500, %c0_501] : memref<6x6x64xf32, #tpu.memory_space<vmem>>, vector<4x4x64xf32>
    %500 = vector.shape_cast %499 : vector<4x4x64xf32> to vector<16x64xf32>
    %501 = arith.truncf %500 : vector<16x64xf32> to vector<16x64xbf16>
    %c8_502 = arith.constant 8 : index
    %c0_503 = arith.constant 0 : index
    %c0_504 = arith.constant 0 : index
    %502 = vector.load %arg17[%c8_502, %c0_503, %c0_504] : memref<9x64x64xbf16, #tpu.memory_space<vmem>>, vector<1x64x64xbf16>
    %503 = vector.shape_cast %502 : vector<1x64x64xbf16> to vector<64x64xbf16>
    %cst_505 = arith.constant dense<0.000000e+00> : vector<16x64xf32>
    %504 = tpu.matmul %501, %503, %cst_505 {dimension_numbers = #tpu.dot_dimension_numbers<[1], [0], [0], [1], [0, 0, 1, 1], [], []>} : vector<16x64xbf16>, vector<64x64xbf16>, vector<16x64xf32> -> vector<16x64xf32>
    %505 = arith.addf %498, %504 : vector<16x64xf32>
    %c0_506 = arith.constant 0 : index
    %c0_507 = arith.constant 0 : index
    %506 = vector.load %arg18[%c0_506, %c0_507] : memref<1x64xf32, #tpu.memory_space<vmem>>, vector<1x64xf32>
    %507 = vector.broadcast %506 : vector<1x64xf32> to vector<16x64xf32>
    %508 = arith.addf %505, %507 : vector<16x64xf32>
    %509 = arith.addf %508, %441 : vector<16x64xf32>
    %cst_508 = arith.constant 0.000000e+00 : f32
    %510 = vector.broadcast %cst_508 : f32 to vector<16x64xf32>
    %511 = arith.maximumf %509, %510 : vector<16x64xf32>
    %cst_509 = arith.constant dense<0.000000e+00> : vector<64xf32>
    %512 = vector.multi_reduction <add>, %511, %cst_509 [0] : vector<16x64xf32> to vector<64xf32>
    %513 = vector.shape_cast %512 : vector<64xf32> to vector<1x64xf32>
    %cst_510 = arith.constant 6.250000e-02 : f32
    %514 = vector.broadcast %cst_510 : f32 to vector<1x64xf32>
    %515 = arith.mulf %513, %514 : vector<1x64xf32>
    %c0_511 = arith.constant 0 : index
    %c0_512 = arith.constant 0 : index
    %516 = vector.load %arg22[%c0_511, %c0_512] : memref<64x10xf32, #tpu.memory_space<vmem>>, vector<64x10xf32>
    %cst_513 = arith.constant dense<0.000000e+00> : vector<1x10xf32>
    %517 = tpu.matmul %515, %516, %cst_513 {dimension_numbers = #tpu.dot_dimension_numbers<[1], [0], [0], [1], [0, 0, 1, 1], [], []>} : vector<1x64xf32>, vector<64x10xf32>, vector<1x10xf32> -> vector<1x10xf32>
    %c0_514 = arith.constant 0 : index
    %c0_515 = arith.constant 0 : index
    %518 = vector.load %arg23[%c0_514, %c0_515] : memref<1x10xf32, #tpu.memory_space<vmem>>, vector<1x10xf32>
    %519 = arith.addf %517, %518 : vector<1x10xf32>
    %520 = vector.shape_cast %519 : vector<1x10xf32> to vector<1x1x10xf32>
    %c0_516 = arith.constant 0 : index
    %c0_517 = arith.constant 0 : index
    %c0_518 = arith.constant 0 : index
    %521 = vector.load %arg24[%c0_516, %c0_517, %c0_518] : memref<1x1x10xf32, #tpu.memory_space<vmem>>, vector<1x1x10xf32>
    tpu.vector_store %arg24[%c0_516, %c0_517, %c0_518], %520 {strides = array<i32>} : memref<1x1x10xf32, #tpu.memory_space<vmem>>, vector<1x1x10xf32>,
    return
  }
  func.func @transform_0(%arg0: i32) -> (i32, i32, i32, i32) {
    %c0_i32 = arith.constant 0 : i32
    %c0_i32_0 = arith.constant 0 : i32
    %c0_i32_1 = arith.constant 0 : i32
    %c0_i32_2 = arith.constant 0 : i32
    return %arg0, %c0_i32, %c0_i32_0, %c0_i32_1 : i32, i32, i32, i32
  }
  func.func @transform_1(%arg0: i32) -> (i32, i32, i32) {
    %c0_i32 = arith.constant 0 : i32
    %c0_i32_0 = arith.constant 0 : i32
    %c0_i32_1 = arith.constant 0 : i32
    %c0_i32_2 = arith.constant 0 : i32
    return %c0_i32, %c0_i32_0, %c0_i32_1 : i32, i32, i32
  }
  func.func @transform_2(%arg0: i32) -> (i32, i32) {
    %c0_i32 = arith.constant 0 : i32
    %c0_i32_0 = arith.constant 0 : i32
    %c0_i32_1 = arith.constant 0 : i32
    return %c0_i32, %c0_i32_0 : i32, i32
  }
  func.func @transform_3(%arg0: i32) -> (i32, i32, i32) {
    %c0_i32 = arith.constant 0 : i32
    %c0_i32_0 = arith.constant 0 : i32
    %c0_i32_1 = arith.constant 0 : i32
    %c0_i32_2 = arith.constant 0 : i32
    return %c0_i32, %c0_i32_0, %c0_i32_1 : i32, i32, i32
  }
  func.func @transform_4(%arg0: i32) -> (i32, i32) {
    %c0_i32 = arith.constant 0 : i32
    %c0_i32_0 = arith.constant 0 : i32
    %c0_i32_1 = arith.constant 0 : i32
    return %c0_i32, %c0_i32_0 : i32, i32
  }
  func.func @transform_5(%arg0: i32) -> (i32, i32, i32) {
    %c0_i32 = arith.constant 0 : i32
    %c0_i32_0 = arith.constant 0 : i32
    %c0_i32_1 = arith.constant 0 : i32
    %c0_i32_2 = arith.constant 0 : i32
    return %c0_i32, %c0_i32_0, %c0_i32_1 : i32, i32, i32
  }
  func.func @transform_6(%arg0: i32) -> (i32, i32) {
    %c0_i32 = arith.constant 0 : i32
    %c0_i32_0 = arith.constant 0 : i32
    %c0_i32_1 = arith.constant 0 : i32
    return %c0_i32, %c0_i32_0 : i32, i32
  }
  func.func @transform_7(%arg0: i32) -> (i32, i32, i32) {
    %c0_i32 = arith.constant 0 : i32
    %c0_i32_0 = arith.constant 0 : i32
    %c0_i32_1 = arith.constant 0 : i32
    %c0_i32_2 = arith.constant 0 : i32
    return %c0_i32, %c0_i32_0, %c0_i32_1 : i32, i32, i32
  }
  func.func @transform_8(%arg0: i32) -> (i32, i32) {
    %c0_i32 = arith.constant 0 : i32
    %c0_i32_0 = arith.constant 0 : i32
    %c0_i32_1 = arith.constant 0 : i32
    return %c0_i32, %c0_i32_0 : i32, i32
  }
  func.func @transform_9(%arg0: i32) -> (i32, i32, i32) {
    %c0_i32 = arith.constant 0 : i32
    %c0_i32_0 = arith.constant 0 : i32
    %c0_i32_1 = arith.constant 0 : i32
    %c0_i32_2 = arith.constant 0 : i32
    return %c0_i32, %c0_i32_0, %c0_i32_1 : i32, i32, i32
  }
  func.func @transform_10(%arg0: i32) -> (i32, i32) {
    %c0_i32 = arith.constant 0 : i32
    %c0_i32_0 = arith.constant 0 : i32
    %c0_i32_1 = arith.constant 0 : i32
    return %c0_i32, %c0_i32_0 : i32, i32
  }
  func.func @transform_11(%arg0: i32) -> (i32, i32) {
    %c0_i32 = arith.constant 0 : i32
    %c0_i32_0 = arith.constant 0 : i32
    %c0_i32_1 = arith.constant 0 : i32
    return %c0_i32, %c0_i32_0 : i32, i32
  }
  func.func @transform_12(%arg0: i32) -> (i32, i32) {
    %c0_i32 = arith.constant 0 : i32
    %c0_i32_0 = arith.constant 0 : i32
    %c0_i32_1 = arith.constant 0 : i32
    return %c0_i32, %c0_i32_0 : i32, i32
  }
  func.func @transform_13(%arg0: i32) -> (i32, i32) {
    %c0_i32 = arith.constant 0 : i32
    %c0_i32_0 = arith.constant 0 : i32
    %c0_i32_1 = arith.constant 0 : i32
    return %c0_i32, %c0_i32_0 : i32, i32
  }
  func.func @transform_14(%arg0: i32) -> (i32, i32, i32) {
    %c0_i32 = arith.constant 0 : i32
    %c0_i32_0 = arith.constant 0 : i32
    %c0_i32_1 = arith.constant 0 : i32
    %c0_i32_2 = arith.constant 0 : i32
    return %c0_i32, %c0_i32_0, %c0_i32_1 : i32, i32, i32
  }
  func.func @transform_15(%arg0: i32) -> (i32, i32) {
    %c0_i32 = arith.constant 0 : i32
    %c0_i32_0 = arith.constant 0 : i32
    %c0_i32_1 = arith.constant 0 : i32
    return %c0_i32, %c0_i32_0 : i32, i32
  }
  func.func @transform_16(%arg0: i32) -> (i32, i32, i32) {
    %c0_i32 = arith.constant 0 : i32
    %c0_i32_0 = arith.constant 0 : i32
    %c0_i32_1 = arith.constant 0 : i32
    %c0_i32_2 = arith.constant 0 : i32
    return %c0_i32, %c0_i32_0, %c0_i32_1 : i32, i32, i32
  }
  func.func @transform_17(%arg0: i32) -> (i32, i32) {
    %c0_i32 = arith.constant 0 : i32
    %c0_i32_0 = arith.constant 0 : i32
    %c0_i32_1 = arith.constant 0 : i32
    return %c0_i32, %c0_i32_0 : i32, i32
  }
  func.func @transform_18(%arg0: i32) -> (i32, i32) {
    %c0_i32 = arith.constant 0 : i32
    %c0_i32_0 = arith.constant 0 : i32
    %c0_i32_1 = arith.constant 0 : i32
    return %c0_i32, %c0_i32_0 : i32, i32
  }
  func.func @transform_19(%arg0: i32) -> (i32, i32) {
    %c0_i32 = arith.constant 0 : i32
    %c0_i32_0 = arith.constant 0 : i32
    %c0_i32_1 = arith.constant 0 : i32
    return %c0_i32, %c0_i32_0 : i32, i32
  }
  func.func @transform_20(%arg0: i32) -> (i32, i32) {
    %c0_i32 = arith.constant 0 : i32
    %c0_i32_0 = arith.constant 0 : i32
    %c0_i32_1 = arith.constant 0 : i32
    return %c0_i32, %c0_i32_0 : i32, i32
  }
  func.func @transform_21(%arg0: i32) -> (i32, i32) {
    %c0_i32 = arith.constant 0 : i32
    %c0_i32_0 = arith.constant 0 : i32
    %c0_i32_1 = arith.constant 0 : i32
    return %c0_i32, %c0_i32_0 : i32, i32
  }
  func.func @transform_22(%arg0: i32) -> (i32, i32) {
    %c0_i32 = arith.constant 0 : i32
    %c0_i32_0 = arith.constant 0 : i32
    %c0_i32_1 = arith.constant 0 : i32
    return %c0_i32, %c0_i32_0 : i32, i32
  }
  func.func @transform_23(%arg0: i32) -> (i32, i32, i32) {
    %c0_i32 = arith.constant 0 : i32
    %c0_i32_0 = arith.constant 0 : i32
    %c0_i32_1 = arith.constant 0 : i32
    return %arg0, %c0_i32, %c0_i32_0 : i32, i32, i32
  }
}

</mosaic_0001>

<bundles_post_ra>
// kernel: forward.1
= control target key start
LH: loop header
LB: loop body
LE: loop exit
PB: predicated region body
PF: predicated region fallthrough
CT: control target
= control target key end

     0   :  { %s27253_s0 = inlined_call_operand.vmem [shape: bf16[2,18,18,3], index: 0, kind: input, shape index: {}]   ;;  %s27254_s1 = inlined_call_operand.vmem [shape: bf16[9,3,16], index: 1, kind: input, shape index: {}]   ;;  %s27255_s2 = inlined_call_operand.vmem [shape: f32[1,16], index: 2, kind: input, shape index: {}, may-alias: {2,4,6}]   ;;  %s27256_s3 = inlined_call_operand.vmem [shape: bf16[9,16,16], index: 3, kind: input, shape index: {}]   ;;  %s27257_s4 = inlined_call_operand.vmem [shape: f32[1,16], index: 4, kind: input, shape index: {}, may-alias: {2,4,6}]   ;;  %s27258_s5 = inlined_call_operand.vmem [shape: bf16[9,16,16], index: 5, kind: input, shape index: {}]   ;;  %s27259_s6 = inlined_call_operand.vmem [shape: f32[1,16], index: 6, kind: input, shape index: {}, may-alias: {2,4,6}]   ;;  %s27260_s7 = inlined_call_operand.vmem [shape: bf16[9,16,32], index: 7, kind: input, shape index: {}]   ;;  %s27261_s8 = inlined_call_operand.vmem [shape: f32[1,32], index: 8, kind: input, shape index: {}, may-alias: {8,10,13}]   ;;  %s27262_s9 = inlined_call_operand.vmem [shape: bf16[9,32,32], index: 9, kind: input, shape index: {}]   ;;  %s27263_s10 = inlined_call_operand.vmem [shape: f32[1,32], index: 10, kind: input, shape index: {}, may-alias: {8,10,13}]   ;;  %s27264_s11 = inlined_call_operand.vmem [shape: bf16[64,256], index: 11, kind: input, shape index: {}]   ;;  %s27265_s12 = inlined_call_operand.vmem [shape: bf16[16,32], index: 12, kind: input, shape index: {}]   ;;  %s27266_s13 = inlined_call_operand.vmem [shape: f32[1,32], index: 13, kind: input, shape index: {}, may-alias: {8,10,13}]   ;;  %s27267_s14 = inlined_call_operand.vmem [shape: bf16[9,32,64], index: 14, kind: input, shape index: {}]   ;;  %s27268_s15 = inlined_call_operand.vmem [shape: f32[1,64], index: 15, kind: input, shape index: {}, may-alias: {15,17,20}]   ;;  %s27269_s16 = inlined_call_operand.vmem [shape: bf16[9,64,64], index: 16, kind: input, shape index: {}]   ;;  %s27270_s17 = inlined_call_operand.vmem [shape: f32[1,64], index: 17, kind: input, shape index: {}, may-alias: {15,17,20}]   ;;  %s27271_s18 = inlined_call_operand.vmem [shape: bf16[16,64], index: 18, kind: input, shape index: {}]   ;;  %s27272_s19 = inlined_call_operand.vmem [shape: bf16[32,64], index: 19, kind: input, shape index: {}]   ;;  %s27273_s20 = inlined_call_operand.vmem [shape: f32[1,64], index: 20, kind: input, shape index: {}, may-alias: {15,17,20}]   ;;  %s27274_s21 = inlined_call_operand.vmem [shape: f32[64,10], index: 21, kind: input, shape index: {}]   ;;  %s27275_s22 = inlined_call_operand.vmem [shape: f32[1,10], index: 22, kind: input, shape index: {}]   ;;  %s27276_s23 = inlined_call_operand.hbm [shape: f32[2,1,10], index: 23, kind: output, shape index: {}]  }
   0x1   :  { %27378 = sst [smem:[#allocation55_spill]] %s27253_s0 }
   0x2   :  { %27379 = sst [smem:[#allocation56_spill]] %s27254_s1 }
   0x3   :  { %27380 = sst [smem:[#allocation57_spill]] %s27255_s2 }
   0x4   :  { %27381 = sst [smem:[#allocation58_spill]] %s27256_s3 }
   0x5   :  { %27382 = sst [smem:[#allocation59_spill]] %s27257_s4 }
   0x6   :  { %27383 = sst [smem:[#allocation60_spill]] %s27258_s5 }
   0x7   :  { %27384 = sst [smem:[#allocation61_spill]] %s27259_s6 }
   0x8   :  { %27385 = sst [smem:[#allocation62_spill]] %s27260_s7 }
   0x9   :  { %27386 = sst [smem:[#allocation63_spill]] %s27261_s8 }
   0xa   :  { %27387 = sst [smem:[#allocation64_spill]] %s27262_s9 }
   0xb   :  { %27388 = sst [smem:[#allocation65_spill]] %s27263_s10 }
   0xc   :  { %28 = vsyncpa [#allocation6], 0 }
   0xd   :  { %30 = vsyncpa [#allocation6 + $0x1], 0  ;;  %s22687_s4 = smov 0   ;;  %s22689_s30 = smov 0  }
   0xe   :  { %s22691_s24 = smov 0   ;;  %s22693_s25 = smov 0  }
   0xf LB: > { %27389 = sst [smem:[#allocation8_spill]] %s22556_s24  ;;  %s22708_s5 = sadd.s32 4294967295, %s22560_s25   ;;  %s22560_s25 = sphi %s22693_s25, %s27621_s25   ;;  %s22556_s24 = sphi %s22691_s24, %s27623_s24   ;;  %s22552_s30 = sphi %s22689_s30, %s27625_s30   ;;  %s22548_s4 = sphi %s22687_s4, %s27624_s4  }
  0x10   : > { %s17197_s1 = sadd.s32 4294967294, %s22560_s25   ;;  %s22712_s26 = sadd.s32 1, %s22560_s25  }
  0x11   : > { %27390 = sst [smem:[#allocation9_spill]] %s22712_s26  ;;  %s531_s2 = sadd.s32 1, %s22556_s24 }
  0x12   : > { %s528_s6 = ssub.s32 %s22560_s25, %s22712_s26  ;;  %p541_p0 = scmp.ne.s32.totalorder %s22556_s24, %s22552_s30 }
  0x13   : > { %p529_p1 = scmp.eq.s32.totalorder %s528_s6, 0  ;;  %p542_p2 = scmp.eq.s32.totalorder %s22708_s5, 1 }
  0x14   : > { %p547_p3 = scmp.ne.s32.totalorder %s22552_s30, %s22548_s4  ;;  %p548_p4 = scmp.eq.s32.totalorder %s17197_s1, 1 }
  0x15   : > { %s22723_s27 = scalar_select %p529_p1, %s22556_s24, %s531_s2  }
  0x16   : > { %p22725_p5 = por %p542_p2, %p541_p0  ;;  %p22729_p6 = por %p548_p4, %p547_p3 }
  0x17   : > { %27391 = sst [smem:[#allocation10_spill]] %s22723_s27  ;;  %p17200_p7 = scmp.ge.s32.totalorder %s22560_s25, 1 }
  0x18   : > { %p640_p8 = scmp.lt.s32.totalorder %s22560_s25, 3 }
  0x1a   : > { %p641_p9 = pnand %p17200_p7, %p640_p8 }
  0x1c   : > { %644 = sbr.rel (%p641_p9) target bundleno = 4804 (0x12c4), region = 112 }
  0x23   : > { %s27394_s0 = sld [smem:[#allocation56_spill]]  ;;  %vm1329_vm0 = vcmask 1040384   ;;  %vm1330_vm1 = vcmask 1041408   ;;  %p703_p10 = scmp.lt.s32.totalorder %s22708_s5, 1  ;;  %v22562_v1 = vmov 65535   ;;  %vm1280_vm4 = vcmask 23552  }
  0x24   : > { %v1331_v2 = vsel %vm1329_vm0, 4294967295, %v22562_v1  ;;  %vm843_vm2 = vsmask.f32 3328  ;;  %vm844_vm3 = vsmask.f32 7440  ;;  %s27396_s24 = sld [smem:[#allocation55_spill]] }
  0x25   : > { %v22739_v3 = vsel %vm1330_vm1, %v1331_v2, 0  ;;  %s704_s1 = scalar_select %p703_p10, %s22708_s5, 1  ;;  %vm22788_vm5 = vmor %vm843_vm2, %vm844_vm3  ;;  %vm1837_vm6 = vcmask 1042432   ;;  %vm1838_vm7 = vcmask 1046532   ;;  %vm709_vm9 = vcmask 130048  }
  0x26   : > { %27395 = vst [vmem:[#allocation11_spill] sm:$0xff] %v22739_v3  ;;  %vm23094_vm8 = vmor %vm1837_vm6, %vm1838_vm7  ;;  %vm712_vm10 = vcmask 123904   ;;  %s27481_s27 = sld [smem:[#allocation58_spill]]  ;;  %s27541_s3 = sld [smem:[#allocation62_spill]]  ;;  %vm765_vm11 = vcmask 261120   ;;  %vm767_vm12 = vcmask 254976  }
  0x27   : > { %s22267_s29 = smul.u32 216, %s704_s1  ;;  %s27527_s1 = sld [smem:[#allocation60_spill]]  ;;  %vm22564_vm13 = vmmov 0   ;;  %vm16028_vm14 = vcmask 523264   ;;  %vm787_vm15 = vcmask 521216   ;;  %vm16193_vm0 = vcmask 519168  }
  0x28   : > { %s27617_s8 = sld [smem:[#allocation63_spill]]  ;;  %s27619_s9 = sld [smem:[#allocation64_spill]]  ;;  %vm17127_vm1 = vcmask 73728  }
  0x29   : > { %v17202_v0 = vld [vmem:[%s27394_s0 + $0x2] sm:$0x3]  ;;  %v826_v4 = vld [vmem:[%s27394_s0] sm:$0x3]  ;;  %v17283_v22 = vld [vmem:[%s27394_s0 + $0x4] sm:$0x3] }
  0x2a   : > { %v1334_v5 = vand.u32 %v17202_v0, %v22739_v3  ;;  %v22747_v6 = vand.u32 %v22739_v3, %v826_v4  ;;  %s22752_s26 = scalar_lea.vmem %s27396_s24, %s22267_s29  ;;  %v22796_v37 = vand.u32 %v17283_v22, %v22739_v3  ;;  %s27482_s24 = sld [smem:[#allocation57_spill]] }
  0x2b   : > { %v22755_v7 = vld [vmem:[%s22752_s26] sm:$0xf]  ;;  %v22758_v8 = vld [vmem:[%s22752_s26 + $0x4] sm:$0xf]  ;;  %v827_v9 = vld [vmem:[%s22752_s26 + $0x8] sm:$0x1] }
  0x2c   : > { %19430 = vmatprep.subr.bf16.mxu0 %v1334_v5  ;;  %v847_v10 = vshrl.u32 %v22755_v7, 16  ;;  %v850_v11 = vshll.u32 %v22755_v7, 16  ;;  %v856_v12 = vshll.u32 %v22758_v8, 16  ;;  %v860_v13 = vshrl.u32 %v22758_v8, 16  ;;  %v22767_v14 = vld [vmem:[%s22752_s26 + $0xc] sm:$0xf] }
  0x2d   : > { %19431 = vmatpush3.bf16.msra.mxu0 %v1334_v5  ;;  %v866_v15 = vshll.u32 %v827_v9, 16  ;;  %v22770_v16 = vld [vmem:[%s22752_s26 + $0x10] sm:$0xf]  ;;  %v22773_v17 = vld [vmem:[%s22752_s26 + $0x14] sm:$0x1]  ;;  %v871_v24 = vshrl.u32 %v22767_v14, 16 }
  0x2e   : > { %19464 = vmatprep.subr.bf16.mxu0 %v22747_v6  ;;  %v849_v18 = vrot.slane %v847_v10, 4  ;;  %v852_v19 = vrot.slane %v850_v11, 5  ;;  %v858_v20 = vrot.slane %v856_v12, 5  ;;  %v862_v21 = vrot.slane %v860_v13, 4  ;;  %v22784_v31 = vld [vmem:[%s22752_s26 + $0x18] sm:$0xf] }
  0x2f   : > { %v868_v23 = vrot.slane %v866_v15, 5  ;;  %v874_v25 = vshll.u32 %v22767_v14, 16  ;;  %v880_v26 = vshll.u32 %v22770_v16, 16  ;;  %v884_v29 = vshrl.u32 %v22770_v16, 16  ;;  %v22793_v36 = vld [vmem:[%s22752_s26 + $0x1c] sm:$0xf] }
  0x30   : > { %v853_v27 = vor.u32 %v852_v19, %v849_v18  ;;  %v863_v28 = vor.u32 %v862_v21, %v858_v20  ;;  %v890_v30 = vshll.u32 %v22773_v17, 16  ;;  %v873_v33 = vrot.slane %v871_v24, 4  ;;  %v829_v44 = vld [vmem:[%s22752_s26 + $0x20] sm:$0x1]  ;;  %v22809_v51 = vld [vmem:[%s22752_s26 + $0x24] sm:$0xf] }
  0x31   : > { %v876_v34 = vrot.slane %v874_v25, 5  ;;  %v882_v35 = vrot.slane %v880_v26, 5  ;;  %v886_v40 = vrot.slane %v884_v29, 4  ;;  %v895_v45 = vshrl.u32 %v22784_v31, 16  ;;  %v22812_v56 = vld [vmem:[%s22752_s26 + $0x28] sm:$0xf] }
  0x32   : > { %v854_v38 = vrot.slane %v853_v27, 4  ;;  %v864_v39 = vrot.slane %v863_v28, 4  ;;  %v892_v43 = vrot.slane %v890_v30, 5  ;;  %v898_v46 = vshll.u32 %v22784_v31, 16  ;;  %v830_v63 = vld [vmem:[%s22752_s26 + $0x2c] sm:$0x1] }
  0x33   : > { %v877_v42 = vor.u32 %v876_v34, %v873_v33  ;;  %v887_v49 = vor.u32 %v886_v40, %v882_v35  ;;  %v904_v50 = vshll.u32 %v22793_v36, 16  ;;  %v897_v54 = vrot.slane %v895_v45, 4  ;;  %v22825_v10 = vld [vmem:[%s22752_s26 + $0x30] sm:$0xf]  ;;  %v22828_v18 = vld [vmem:[%s22752_s26 + $0x34] sm:$0xf] }
  0x34   : > { %v859_v47 = vsel %vm22788_vm5, %v854_v38, %v858_v20  ;;  %v869_v48 = vsel %vm22788_vm5, %v864_v39, %v868_v23  ;;  %v900_v55 = vrot.slane %v898_v46, 5  ;;  %v908_v59 = vshrl.u32 %v22793_v36, 16  ;;  %v22835_v25 = vld [vmem:[%s22752_s26 + $0x38] sm:$0x1]  ;;  %v22843_v40 = vld [vmem:[%s22752_s26 + $0x3c] sm:$0xf] }
  0x35   : > { %v17203_v52 = vcombine.low %v859_v47, %v869_v48  ;;  %v878_v53 = vrot.slane %v877_v42, 4  ;;  %v888_v57 = vrot.slane %v887_v49, 4  ;;  %v906_v58 = vrot.slane %v904_v50, 5  ;;  %v22850_v46 = vld [vmem:[%s22752_s26 + $0x40] sm:$0xf]  ;;  %s27542_s29 = sld [smem:[#allocation61_spill]] }
  0x36   : > { %v914_v60 = vshll.u32 %v829_v44, 16  ;;  %v901_v62 = vor.u32 %v900_v55, %v897_v54  ;;  %v919_v0 = vshrl.u32 %v22809_v51, 16  ;;  %v922_v1 = vshll.u32 %v22809_v51, 16  ;;  %v22855_v50 = vld [vmem:[%s22752_s26 + $0x44] sm:$0x1]  ;;  %s27620_s10 = sld [smem:[#allocation65_spill]] }
  0x37   : > { %19432 = vmatprep.mubr.msk.bf16.mxu0 %vm1280_vm4, %v17203_v52  ;;  %v883_v61 = vsel %vm22788_vm5, %v878_v53, %v882_v35  ;;  %v893_v2 = vsel %vm22788_vm5, %v888_v57, %v892_v43  ;;  %v910_v4 = vrot.slane %v908_v59, 4  ;;  %v928_v9 = vshll.u32 %v22812_v56, 16  ;;  %v23043_v3 = vld [vmem:[%s22752_s26 + $0xbc] sm:$0x1]  ;;  %s18555_s6 = sshll.u32 %s22708_s5, 4  ;;  %s22566_s5 = smov [#allocation5]  }
  0x38   : > { %v916_v5 = vrot.slane %v914_v60, 5  ;;  %v17204_v11 = vcombine.low %v883_v61, %v893_v2  ;;  %v902_v12 = vrot.slane %v901_v62, 4  ;;  %v921_v13 = vrot.slane %v919_v0, 4  ;;  %v22863_v61 = vld [vmem:[%s22752_s26 + $0x48] sm:$0xf] }
  0x39   : > { %v924_v15 = vrot.slane %v922_v1, 5  ;;  %v911_v19 = vor.u32 %v910_v4, %v906_v58  ;;  %v930_v20 = vrot.slane %v928_v9, 5  ;;  %v932_v21 = vshrl.u32 %v22812_v56, 16  ;;  %v22869_v2 = vld [vmem:[%s22752_s26 + $0x4c] sm:$0xf] }
  0x3a   : > { %v938_v22 = vshll.u32 %v830_v63, 16  ;;  %19433 = vmatmul.mubr.msk.bf16.vlgmr.msra.gmra.mrb[0].mxu0 %vm1280_vm4, %v17204_v11  ;;  %v907_v23 = vsel %vm22788_vm5, %v902_v12, %v906_v58  ;;  %v943_v26 = vshrl.u32 %v22825_v10, 16  ;;  %v946_v27 = vshll.u32 %v22825_v10, 16 }
  0x3b   : > { %v925_v24 = vor.u32 %v924_v15, %v921_v13  ;;  %v912_v28 = vrot.slane %v911_v19, 4  ;;  %v934_v29 = vrot.slane %v932_v21, 4  ;;  %v952_v33 = vshll.u32 %v22828_v18, 16  ;;  %19465 = vmatpush3.bf16.msra.mxu0 %v22747_v6  ;;  %v22874_v19 = vld [vmem:[%s22752_s26 + $0x50] sm:$0x1] }
  0x3c   : > { %v940_v30 = vrot.slane %v938_v22, 5  ;;  %v945_v35 = vrot.slane %v943_v26, 4  ;;  %v948_v38 = vrot.slane %v946_v27, 5  ;;  %v956_v39 = vshrl.u32 %v22828_v18, 16  ;;  %19498 = vmatprep.subr.bf16.mxu0 %v22796_v37  ;;  %v22884_v26 = vld [vmem:[%s22752_s26 + $0x54] sm:$0xf] }
  0x3d   : > { %v926_v34 = vrot.slane %v925_v24, 4  ;;  %v917_v42 = vsel %vm22788_vm5, %v912_v28, %v916_v5  ;;  %v935_v43 = vor.u32 %v934_v29, %v930_v20  ;;  %v954_v44 = vrot.slane %v952_v33, 5  ;;  %v22887_v33 = vld [vmem:[%s22752_s26 + $0x58] sm:$0xf] }
  0x3e   : > { %v962_v45 = vshll.u32 %v22835_v25, 16  ;;  %v17205_v6 = vcombine.low %v907_v23, %v917_v42  ;;  %v949_v48 = vor.u32 %v948_v38, %v945_v35  ;;  %v958_v49 = vrot.slane %v956_v39, 4 }
  0x3f   : > { %v931_v47 = vsel %vm22788_vm5, %v926_v34, %v930_v20  ;;  %v936_v52 = vrot.slane %v935_v43, 4  ;;  %v967_v54 = vshrl.u32 %v22843_v40, 16  ;;  %v970_v55 = vshll.u32 %v22843_v40, 16 }
  0x40   : > { %v964_v53 = vrot.slane %v962_v45, 5  ;;  %19436 = vmatprep.mubr.msk.bf16.mxu0 %vm1280_vm4, %v17205_v6  ;;  %v950_v57 = vrot.slane %v949_v48, 4  ;;  %v959_v58 = vor.u32 %v958_v49, %v954_v44  ;;  %v976_v59 = vshll.u32 %v22850_v46, 16  ;;  %v22896_v49 = vld [vmem:[%s22752_s26 + $0x5c] sm:$0x1] }
  0x41   : > { %v980_v60 = vshrl.u32 %v22850_v46, 16  ;;  %v941_v62 = vsel %vm22788_vm5, %v936_v52, %v940_v30  ;;  %v969_v63 = vrot.slane %v967_v54, 4  ;;  %v972_v0 = vrot.slane %v970_v55, 5 }
  0x42   : > { %v986_v1 = vshll.u32 %v22855_v50, 16  ;;  %v17206_v4 = vcombine.low %v931_v47, %v941_v62  ;;  %v955_v5 = vsel %vm22788_vm5, %v950_v57, %v954_v44  ;;  %v960_v9 = vrot.slane %v959_v58, 4 }
  0x43   : > { %v978_v11 = vrot.slane %v976_v59, 5  ;;  %v973_v12 = vor.u32 %v972_v0, %v969_v63  ;;  %v982_v13 = vrot.slane %v980_v60, 4  ;;  %v991_v20 = vshrl.u32 %v22863_v61, 16  ;;  %v22906_v59 = vld [vmem:[%s22752_s26 + $0x64] sm:$0xf] }
  0x44   : > { %v988_v15 = vrot.slane %v986_v1, 5  ;;  %19437 = vmatmul.mubr.msk.bf16.gmra.mrb[4].mxu0 %vm1280_vm4, %v17206_v4  ;;  %v965_v21 = vsel %vm22788_vm5, %v960_v9, %v964_v53  ;;  %v994_v22 = vshll.u32 %v22863_v61, 16  ;;  %v1000_v23 = vshll.u32 %v22869_v2, 16  ;;  %v22900_v53 = vld [vmem:[%s22752_s26 + $0x60] sm:$0xf] }
  0x45   : > { %v1004_v24 = vshrl.u32 %v22869_v2, 16  ;;  %v17207_v27 = vcombine.low %v955_v5, %v965_v21  ;;  %v974_v28 = vrot.slane %v973_v12, 4  ;;  %v983_v29 = vor.u32 %v982_v13, %v978_v11  ;;  %v22916_v13 = vld [vmem:[%s22752_s26 + $0x68] sm:$0x1]  ;;  %v22921_v21 = vld [vmem:[%s22752_s26 + $0x6c] sm:$0xf] }
  0x46   : > { %v993_v30 = vrot.slane %v991_v20, 4  ;;  %v996_v34 = vrot.slane %v994_v22, 5  ;;  %v1002_v35 = vrot.slane %v1000_v23, 5  ;;  %v1010_v39 = vshll.u32 %v22874_v19, 16  ;;  %27399 = vst [vmem:[#allocation12_spill] sm:$0xff] %v22916_v13 }
  0x47   : > { %v1006_v38 = vrot.slane %v1004_v24, 4  ;;  %19440 = vmatprep.mubr.msk.bf16.mxu0 %vm1280_vm4, %v17207_v27  ;;  %v979_v42 = vsel %vm22788_vm5, %v974_v28, %v978_v11  ;;  %v984_v43 = vrot.slane %v983_v29, 4  ;;  %v1015_v44 = vshrl.u32 %v22884_v26, 16  ;;  %v22924_v28 = vld [vmem:[%s22752_s26 + $0x70] sm:$0xf] }
  0x48   : > { %v1018_v45 = vshll.u32 %v22884_v26, 16  ;;  %v997_v6 = vor.u32 %v996_v34, %v993_v30  ;;  %v1012_v48 = vrot.slane %v1010_v39, 5  ;;  %v1024_v52 = vshll.u32 %v22887_v33, 16 }
  0x49   : > { %v1007_v47 = vor.u32 %v1006_v38, %v1002_v35  ;;  %v989_v54 = vsel %vm22788_vm5, %v984_v43, %v988_v15  ;;  %v1017_v55 = vrot.slane %v1015_v44, 4  ;;  %v1028_v58 = vshrl.u32 %v22887_v33, 16  ;;  %v22932_v43 = vld [vmem:[%s22752_s26 + $0x74] sm:$0x1] }
  0x4a   : > { %v1020_v57 = vrot.slane %v1018_v45, 5  ;;  %v17208_v60 = vcombine.low %v979_v42, %v989_v54  ;;  %v998_v62 = vrot.slane %v997_v6, 4  ;;  %v1026_v0 = vrot.slane %v1024_v52, 5  ;;  %27400 = vst [vmem:[#allocation13_spill] sm:$0xff] %v22932_v43  ;;  %v22938_v52 = vld [vmem:[%s22752_s26 + $0x78] sm:$0xf] }
  0x4b   : > { %v1008_v63 = vrot.slane %v1007_v47, 4  ;;  %v1030_v4 = vrot.slane %v1028_v58, 4  ;;  %v1034_v5 = vshll.u32 %v22896_v49, 16  ;;  %v1039_v9 = vshrl.u32 %v22900_v53, 16 }
  0x4c   : > { %v1021_v1 = vor.u32 %v1020_v57, %v1017_v55  ;;  %19441 = vmatmul.mubr.msk.bf16.gmra.mrb[8].mxu0 %vm1280_vm4, %v17208_v60  ;;  %v1003_v11 = vsel %vm22788_vm5, %v998_v62, %v1002_v35  ;;  %v1042_v15 = vshll.u32 %v22900_v53, 16  ;;  %v1048_v20 = vshll.u32 %v22906_v59, 16 }
  0x4d   : > { %v1013_v12 = vsel %vm22788_vm5, %v1008_v63, %v1012_v48  ;;  %v1031_v24 = vor.u32 %v1030_v4, %v1026_v0  ;;  %v1036_v27 = vrot.slane %v1034_v5, 5  ;;  %v1041_v29 = vrot.slane %v1039_v9, 4  ;;  %v22947_v4 = vld [vmem:[%s22752_s26 + $0x80] sm:$0x1] }
  0x4e   : > { %v17209_v22 = vcombine.low %v1003_v11, %v1013_v12  ;;  %v1022_v23 = vrot.slane %v1021_v1, 4  ;;  %v1044_v30 = vrot.slane %v1042_v15, 5  ;;  %v1050_v34 = vrot.slane %v1048_v20, 5  ;;  %v22944_v1 = vld [vmem:[%s22752_s26 + $0x7c] sm:$0xf]  ;;  %27401 = vst [vmem:[#allocation14_spill] sm:$0xff] %v22947_v4 }
  0x4f   : > { %v1052_v35 = vshrl.u32 %v22906_v59, 16  ;;  %v1032_v39 = vrot.slane %v1031_v24, 4  ;;  %v1058_v42 = vshll.u32 %v22916_v13, 16  ;;  %v1063_v44 = vshrl.u32 %v22921_v21, 16  ;;  %v22952_v15 = vld [vmem:[%s22752_s26 + $0x84] sm:$0xf] }
  0x50   : > { %19444 = vmatprep.mubr.msk.bf16.mxu0 %vm1280_vm4, %v17209_v22  ;;  %v1027_v38 = vsel %vm22788_vm5, %v1022_v23, %v1026_v0  ;;  %v1045_v45 = vor.u32 %v1044_v30, %v1041_v29  ;;  %v1066_v47 = vshll.u32 %v22921_v21, 16  ;;  %v1072_v48 = vshll.u32 %v22924_v28, 16 }
  0x51   : > { %v1054_v6 = vrot.slane %v1052_v35, 4  ;;  %v1037_v54 = vsel %vm22788_vm5, %v1032_v39, %v1036_v27  ;;  %v1060_v55 = vrot.slane %v1058_v42, 5  ;;  %v1065_v57 = vrot.slane %v1063_v44, 4  ;;  %v22959_v27 = vld [vmem:[%s22752_s26 + $0x88] sm:$0xf] }
  0x52   : > { %v1076_v58 = vshrl.u32 %v22924_v28, 16  ;;  %v17210_v60 = vcombine.low %v1027_v38, %v1037_v54  ;;  %v1046_v62 = vrot.slane %v1045_v45, 4  ;;  %v1068_v0 = vrot.slane %v1066_v47, 5  ;;  %v22966_v45 = vld [vmem:[%s22752_s26 + $0x8c] sm:$0x1] }
  0x53   : > { %v1055_v63 = vor.u32 %v1054_v6, %v1050_v34  ;;  %v1074_v5 = vrot.slane %v1072_v48, 5  ;;  %v1082_v11 = vshll.u32 %v22932_v43, 16  ;;  %v1087_v12 = vshrl.u32 %v22938_v52, 16  ;;  %27402 = vst [vmem:[#allocation15_spill] sm:$0xff] %v22966_v45 }
  0x54   : > { %v1078_v9 = vrot.slane %v1076_v58, 4  ;;  %19445 = vmatmul.mubr.msk.bf16.gmra.mrb[12].mxu0 %vm1280_vm4, %v17210_v60  ;;  %v1051_v20 = vsel %vm22788_vm5, %v1046_v62, %v1050_v34  ;;  %v1069_v23 = vor.u32 %v1068_v0, %v1065_v57  ;;  %v1090_v24 = vshll.u32 %v22938_v52, 16  ;;  %v22970_v57 = vld [vmem:[%s22752_s26 + $0x90] sm:$0xf] }
  0x55   : > { %v1056_v22 = vrot.slane %v1055_v63, 4  ;;  %v1084_v30 = vrot.slane %v1082_v11, 5  ;;  %v1089_v35 = vrot.slane %v1087_v12, 4  ;;  %v1096_v38 = vshll.u32 %v22944_v1, 16  ;;  %v22976_v63 = vld [vmem:[%s22752_s26 + $0x94] sm:$0xf] }
  0x56   : > { %v1079_v29 = vor.u32 %v1078_v9, %v1074_v5  ;;  %v1070_v42 = vrot.slane %v1069_v23, 4  ;;  %v1092_v44 = vrot.slane %v1090_v24, 5  ;;  %v1100_v34 = vshrl.u32 %v22944_v1, 16 }
  0x57   : > { %v1061_v39 = vsel %vm22788_vm5, %v1056_v22, %v1060_v55  ;;  %v1098_v48 = vrot.slane %v1096_v38, 5  ;;  %v1106_v54 = vshll.u32 %v22947_v4, 16  ;;  %v1111_v55 = vshrl.u32 %v22952_v15, 16 }
  0x58   : > { %v17211_v6 = vcombine.low %v1051_v20, %v1061_v39  ;;  %v1080_v47 = vrot.slane %v1079_v29, 4  ;;  %v1075_v58 = vsel %vm22788_vm5, %v1070_v42, %v1074_v5  ;;  %v1093_v60 = vor.u32 %v1092_v44, %v1089_v35  ;;  %v22986_v39 = vld [vmem:[%s22752_s26 + $0x98] sm:$0x1]  ;;  %v22989_v42 = vld [vmem:[%s22752_s26 + $0x9c] sm:$0xf] }
  0x59   : > { %v1102_v62 = vrot.slane %v1100_v34, 4  ;;  %v1108_v9 = vrot.slane %v1106_v54, 5  ;;  %v1114_v11 = vshll.u32 %v22952_v15, 16  ;;  %v1120_v12 = vshll.u32 %v22959_v27, 16  ;;  %27403 = vst [vmem:[#allocation16_spill] sm:$0xff] %v22986_v39 }
  0x5a   : > { %19448 = vmatprep.mubr.msk.bf16.mxu0 %vm1280_vm4, %v17211_v6  ;;  %v1085_v0 = vsel %vm22788_vm5, %v1080_v47, %v1084_v30  ;;  %v1094_v5 = vrot.slane %v1093_v60, 4  ;;  %v1113_v23 = vrot.slane %v1111_v55, 4  ;;  %v1124_v35 = vshrl.u32 %v22959_v27, 16 }
  0x5b   : > { %v17212_v20 = vcombine.low %v1075_v58, %v1085_v0  ;;  %v1103_v22 = vor.u32 %v1102_v62, %v1098_v48  ;;  %v1116_v24 = vrot.slane %v1114_v11, 5  ;;  %v1122_v29 = vrot.slane %v1120_v12, 5 }
  0x5c   : > { %v1130_v38 = vshll.u32 %v22966_v45, 16  ;;  %v1099_v30 = vsel %vm22788_vm5, %v1094_v5, %v1098_v48  ;;  %v1135_v34 = vshrl.u32 %v22970_v57, 16  ;;  %v1138_v6 = vshll.u32 %v22970_v57, 16  ;;  %v23001_v48 = vld [vmem:[%s22752_s26 + $0xa0] sm:$0xf] }
  0x5d   : > { %19449 = vmatmul.mubr.msk.bf16.gmra.mrb[16].mxu0 %vm1280_vm4, %v17212_v20  ;;  %v1104_v44 = vrot.slane %v1103_v22, 4  ;;  %v1117_v47 = vor.u32 %v1116_v24, %v1113_v23  ;;  %v1126_v54 = vrot.slane %v1124_v35, 4  ;;  %v1144_v60 = vshll.u32 %v22976_v63, 16  ;;  %v23004_v23 = vld [vmem:[%s22752_s26 + $0xa4] sm:$0x1] }
  0x5e   : > { %v1132_v58 = vrot.slane %v1130_v38, 5  ;;  %v1137_v55 = vrot.slane %v1135_v34, 4  ;;  %v1140_v0 = vrot.slane %v1138_v6, 5  ;;  %v1148_v11 = vshrl.u32 %v22976_v63, 16  ;;  %27404 = vst [vmem:[#allocation17_spill] sm:$0xff] %v23004_v23 }
  0x5f   : > { %v1109_v62 = vsel %vm22788_vm5, %v1104_v44, %v1108_v9  ;;  %v1118_v20 = vrot.slane %v1117_v47, 4  ;;  %v1127_v5 = vor.u32 %v1126_v54, %v1122_v29  ;;  %v1146_v22 = vrot.slane %v1144_v60, 5  ;;  %v23009_v9 = vld [vmem:[%s22752_s26 + $0xa8] sm:$0xf]  ;;  %v23017_v47 = vld [vmem:[%s22752_s26 + $0xac] sm:$0xf] }
  0x60   : > { %v17213_v12 = vcombine.low %v1099_v30, %v1109_v62  ;;  %v1141_v24 = vor.u32 %v1140_v0, %v1137_v55  ;;  %v1150_v35 = vrot.slane %v1148_v11, 4  ;;  %v1154_v38 = vshll.u32 %v22986_v39, 16 }
  0x61   : > { %v1159_v41 = vshrl.u32 %v22989_v42, 16  ;;  %v1123_v44 = vsel %vm22788_vm5, %v1118_v20, %v1122_v29  ;;  %v1128_v30 = vrot.slane %v1127_v5, 4  ;;  %v1162_v34 = vshll.u32 %v22989_v42, 16  ;;  %v23023_v29 = vld [vmem:[%s22752_s26 + $0xb0] sm:$0x1] }
  0x62   : > { %19452 = vmatprep.mubr.msk.bf16.mxu0 %vm1280_vm4, %v17213_v12  ;;  %v1168_v6 = vshll.u32 %v23001_v48, 16  ;;  %v1142_v54 = vrot.slane %v1141_v24, 4  ;;  %v1151_v60 = vor.u32 %v1150_v35, %v1146_v22  ;;  %v1156_v62 = vrot.slane %v1154_v38, 5  ;;  %27405 = vst [vmem:[#allocation18_spill] sm:$0xff] %v23023_v29 }
  0x63   : > { %v1161_v55 = vrot.slane %v1159_v41, 4  ;;  %v1133_v0 = vsel %vm22788_vm5, %v1128_v30, %v1132_v58  ;;  %v1164_v11 = vrot.slane %v1162_v34, 5  ;;  %v1172_v12 = vshrl.u32 %v23001_v48, 16 }
  0x64   : > { %v1170_v39 = vrot.slane %v1168_v6, 5  ;;  %v17214_v20 = vcombine.low %v1123_v44, %v1133_v0  ;;  %v1147_v5 = vsel %vm22788_vm5, %v1142_v54, %v1146_v22  ;;  %v1152_v45 = vrot.slane %v1151_v60, 4  ;;  %v23036_v6 = vld [vmem:[%s22752_s26 + $0xb4] sm:$0xf] }
  0x65   : > { %v1178_v24 = vshll.u32 %v23004_v23, 16  ;;  %v1165_v35 = vor.u32 %v1164_v11, %v1161_v55  ;;  %v1174_v41 = vrot.slane %v1172_v12, 4  ;;  %v1183_v38 = vshrl.u32 %v23009_v9, 16  ;;  %v23039_v11 = vld [vmem:[%s22752_s26 + $0xb8] sm:$0xf] }
  0x66   : > { %v1186_v58 = vshll.u32 %v23009_v9, 16  ;;  %19453 = vmatmul.mubr.msk.bf16.gmra.mrb[20].mxu0 %vm1280_vm4, %v17214_v20  ;;  %v1157_v30 = vsel %vm22788_vm5, %v1152_v45, %v1156_v62  ;;  %v1192_v34 = vshll.u32 %v23017_v47, 16  ;;  %v1196_v22 = vshrl.u32 %v23017_v47, 16 }
  0x67   : > { %v1180_v44 = vrot.slane %v1178_v24, 5  ;;  %v17215_v54 = vcombine.low %v1147_v5, %v1157_v30  ;;  %v1166_v60 = vrot.slane %v1165_v35, 4  ;;  %v1175_v55 = vor.u32 %v1174_v41, %v1170_v39 }
  0x68   : > { %v1185_v0 = vrot.slane %v1183_v38, 4  ;;  %v1188_v12 = vrot.slane %v1186_v58, 5  ;;  %v1194_v23 = vrot.slane %v1192_v34, 5  ;;  %v1198_v4 = vrot.slane %v1196_v22, 4 }
  0x69   : > { %v1202_v20 = vshll.u32 %v23023_v29, 16  ;;  %19456 = vmatprep.mubr.msk.bf16.mxu0 %vm1280_vm4, %v17215_v54  ;;  %v1171_v45 = vsel %vm22788_vm5, %v1166_v60, %v1170_v39  ;;  %v1176_v62 = vrot.slane %v1175_v55, 4  ;;  %v1207_v5 = vshrl.u32 %v23036_v6, 16 }
  0x6a   : > { %v1210_v24 = vshll.u32 %v23036_v6, 16  ;;  %v1189_v35 = vor.u32 %v1188_v12, %v1185_v0  ;;  %v1199_v41 = vor.u32 %v1198_v4, %v1194_v23  ;;  %v1216_v58 = vshll.u32 %v23039_v11, 16 }
  0x6b   : > { %v1204_v38 = vrot.slane %v1202_v20, 5  ;;  %v1181_v30 = vsel %vm22788_vm5, %v1176_v62, %v1180_v44  ;;  %v1209_v34 = vrot.slane %v1207_v5, 4  ;;  %v1220_v54 = vshrl.u32 %v23039_v11, 16 }
  0x6c   : > { %v1212_v22 = vrot.slane %v1210_v24, 5  ;;  %v17216_v29 = vcombine.low %v1171_v45, %v1181_v30  ;;  %v1190_v43 = vrot.slane %v1189_v35, 4  ;;  %v1200_v39 = vrot.slane %v1199_v41, 4  ;;  %v27411_v30 = vld [vmem:[#allocation11_spill] sm:$0xff] }
  0x6d   : > { %v1218_v60 = vrot.slane %v1216_v58, 5  ;;  %v1222_v13 = vrot.slane %v1220_v54, 4  ;;  %v1226_v0 = vshll.u32 %v23043_v3, 16  ;;  %v17236_v4 = vcombine.low %v22767_v14, %v22770_v16  ;;  %v1802_v58 = vld [vmem:[%s22752_s26 + $0x9c] sm:$0xe] }
  0x6e   : > { %v1213_v55 = vor.u32 %v1212_v22, %v1209_v34  ;;  %v1849_v12 = vrot.slane %v22770_v16, 5  ;;  %v1852_v44 = vrot.slane %v22773_v17, 5  ;;  %19457 = vmatmul.mubr.msk.bf16.gmra.mrb[24].mxu0 %vm1280_vm4, %v17216_v29  ;;  %v1195_v20 = vsel %vm22788_vm5, %v1190_v43, %v1194_v23  ;;  %v1790_v43 = vld [vmem:[%s22752_s26 + $0xc] sm:$0xe]  ;;  %v27410_v34 = vld [vmem:[#allocation13_spill] sm:$0xff] }
  0x6f   : > { %v1205_v45 = vsel %vm22788_vm5, %v1200_v39, %v1204_v38  ;;  %v1223_v24 = vor.u32 %v1222_v13, %v1218_v60  ;;  %v1228_v35 = vrot.slane %v1226_v0, 5  ;;  %v17239_v41 = vcombine.low %v22825_v10, %v22828_v18  ;;  %v1803_v38 = vld [vmem:[%s22752_s26 + $0xa8] sm:$0xe] }
  0x70   : > { %v17217_v62 = vcombine.low %v1195_v20, %v1205_v45  ;;  %v1214_v5 = vrot.slane %v1213_v55, 4  ;;  %v17240_v14 = vcombine.low %v22843_v40, %v22850_v46  ;;  %v17241_v16 = vcombine.low %v22863_v61, %v22869_v2  ;;  %v27414_v29 = vld [vmem:[#allocation16_spill] sm:$0xff] }
  0x71   : > { %v1224_v13 = vrot.slane %v1223_v24, 4  ;;  %v17268_v20 = vrot.slane %v1790_v43, 9  ;;  %v1851_v45 = vrot.slane %v1849_v12, 4  ;;  %v1797_v43 = vld [vmem:[%s22752_s26 + $0x60] sm:$0xe]  ;;  %v1884_v39 = vrot.slane %v22869_v2, 5 }
  0x72   : > { %19460 = vmatprep.mubr.msk.bf16.mxu0 %vm1280_vm4, %v17217_v62  ;;  %v1219_v23 = vsel %vm22788_vm5, %v1214_v5, %v1218_v60  ;;  %v1793_v62 = vld [vmem:[%s22752_s26 + $0x30] sm:$0xe]  ;;  %v27408_v5 = vcombine.low %v22755_v7, %v22758_v8  ;;  %v17237_v7 = vcombine.low %v22784_v31, %v22793_v36  ;;  %v1873_v8 = vrot.slane %v22835_v25, 5  ;;  %v22359_v0 = vld [vmem:[%s27481_s27 + $0x8] sm:$0xff]  }
  0x73   : > { %v1229_v54 = vsel %vm22788_vm5, %v1224_v13, %v1228_v35  ;;  %v23106_v24 = vsel %vm23094_vm8, %v17268_v20, %v1849_v12  ;;  %v23110_v35 = vsel %vm23094_vm8, %v1851_v45, %v1852_v44  ;;  %v1795_v13 = vld [vmem:[%s22752_s26 + $0x48] sm:$0xe]  ;;  %v1796_v12 = vld [vmem:[%s22752_s26 + $0x54] sm:$0xe]  ;;  %v17238_v31 = vcombine.low %v22809_v51, %v22812_v56 }
  0x74   : > { %v17218_v55 = vcombine.low %v1219_v23, %v1229_v54  ;;  %v1794_v23 = vld [vmem:[%s22752_s26 + $0x3c] sm:$0xe]  ;;  %v17271_v54 = vrot.slane %v1793_v62, 9  ;;  %v1880_v62 = vrot.slane %v22855_v50, 5  ;;  %v17273_v60 = vrot.slane %v1795_v13, 9 }
  0x75   : > { %v17272_v45 = vrot.slane %v1794_v23, 9  ;;  %v1886_v51 = vrot.slane %v1884_v39, 4  ;;  %v1887_v56 = vrot.slane %v22874_v19, 5  ;;  %v1801_v19 = vld [vmem:[%s22752_s26 + $0x90] sm:$0xe]  ;;  %v1905_v22 = vrot.slane %v22924_v28, 5 }
  0x76   : > { %19461 = vmatmul.mubr.msk.bf16.gmra.mrb[28].mxu0 %vm1280_vm4, %v17218_v55  ;;  %v1870_v55 = vrot.slane %v22828_v18, 5  ;;  %v23145_v13 = vsel %vm23094_vm8, %v17273_v60, %v1884_v39  ;;  %v1891_v60 = vrot.slane %v22887_v33, 5  ;;  %v1894_v39 = vrot.slane %v22896_v49, 5 }
  0x77   : > { %19466 = vmatprep.mubr.msk.bf16.mxu0 %vm1280_vm4, %v27408_v5  ;;  %v1877_v5 = vrot.slane %v22850_v46, 5  ;;  %v1929_v10 = vrot.slane %v27414_v29, 5  ;;  %v17280_v18 = vrot.slane %v1802_v58, 9  ;;  %v27415_v29 = vld [vmem:[#allocation17_spill] sm:$0xff]  ;;  %v27417_v61 = vcombine.low %v22884_v26, %v22887_v33  ;;  %v22492_v26 = vld [vmem:[%s22752_s26 + $0x4] sm:$0xf] }
  0x78   : > { %v23123_v20 = vsel %vm23094_vm8, %v17271_v54, %v1870_v55  ;;  %v1872_v44 = vrot.slane %v1870_v55, 4  ;;  %v1798_v54 = vld [vmem:[%s22752_s26 + $0x6c] sm:$0xe]  ;;  %v17348_v55 = vld [vmem:[%s27394_s0 + $0x6] sm:$0x3]  ;;  %v1893_v49 = vrot.slane %v1891_v60, 4  ;;  %v27418_v2 = vcombine.low %v22900_v53, %v22906_v59 }
  0x79   : > { %v23137_v25 = vsel %vm23094_vm8, %v17272_v45, %v1877_v5  ;;  %v1879_v23 = vrot.slane %v1877_v5, 4  ;;  %v23164_v45 = vsel %vm23094_vm8, %v1886_v51, %v1887_v56  ;;  %v17275_v5 = vrot.slane %v1797_v43, 9 }
  0x7a   : > { %v23133_v36 = vsel %vm23094_vm8, %v1872_v44, %v1873_v8  ;;  %v1799_v8 = vld [vmem:[%s22752_s26 + $0x78] sm:$0xe]  ;;  %v17274_v44 = vrot.slane %v1796_v12, 9  ;;  %v17276_v56 = vrot.slane %v1798_v54, 9  ;;  %v1936_v58 = vrot.slane %v27415_v29, 5 }
  0x7b   : > { %v1842_v33 = vrot.slane %v22492_v26, 5  ;;  %v27421_v53 = vcombine.low %v22952_v15, %v22959_v27  ;;  %v22494_v15 = vld [vmem:[%s22752_s26 + $0x1c] sm:$0xf]  ;;  %v27426_v26 = vcombine.low %v23106_v24, %v23110_v35  ;;  %v27427_v24 = vcombine.low %v23123_v20, %v23133_v36 }
  0x7c   : > { %v23172_v12 = vsel %vm23094_vm8, %v17274_v44, %v1891_v60  ;;  %v1908_v44 = vrot.slane %v27410_v34, 5  ;;  %v23187_v60 = vand.u32 %v17348_v55, %v27411_v30  ;;  %v1912_v55 = vrot.slane %v22944_v1, 5 }
  0x7d   : > { %v17279_v34 = vrot.slane %v1801_v19, 9 }
  0x7e   : > { %19467 = vmatmul.mubr.msk.bf16.vlgmr.msra.gmra.mrb[0].mxu0 %vm1280_vm4, %v17236_v4  ;;  %v23156_v4 = vsel %vm23094_vm8, %v1879_v23, %v1880_v62  ;;  %v27409_v23 = vld [vmem:[#allocation12_spill] sm:$0xff]  ;;  %v23183_v62 = vsel %vm23094_vm8, %v1893_v49, %v1894_v39  ;;  %v1907_v39 = vrot.slane %v1905_v22, 4 }
  0x7f   : > { %19470 = vmatprep.mubr.msk.bf16.mxu0 %vm1280_vm4, %v17237_v7  ;;  %19499 = vmatpush3.bf16.msra.mxu0 %v22796_v37  ;;  %v1898_v37 = vrot.slane %v22906_v59, 5  ;;  %v1800_v7 = vld [vmem:[%s22752_s26 + $0x84] sm:$0xe]  ;;  %v1901_v50 = vrot.slane %v27409_v23, 5  ;;  %v17277_v23 = vrot.slane %v1799_v8, 9  ;;  %v27412_v8 = vld [vmem:[#allocation14_spill] sm:$0xff]  ;;  %v27422_v59 = vcombine.low %v22970_v57, %v22976_v63 }
  0x80   : > { %19532 = vmatprep.subr.bf16.mxu0 %v23187_v60  ;;  %v1915_v49 = vrot.slane %v27412_v8, 5  ;;  %v1914_v8 = vrot.slane %v1912_v55, 4  ;;  %v27428_v35 = vcombine.low %v23137_v25, %v23156_v4  ;;  %v22327_v4 = vld [vmem:[%s22752_s26 + $0xc] sm:$0xff]  }
  0x81   : > { %v23178_v51 = vsel %vm23094_vm8, %v17275_v5, %v1898_v37  ;;  %v1900_v43 = vrot.slane %v1898_v37, 4  ;;  %v23198_v37 = vsel %vm23094_vm8, %v17276_v56, %v1905_v22  ;;  %v17278_v5 = vrot.slane %v1800_v7, 9 }
  0x82   : > { %v1919_v22 = vrot.slane %v22959_v27, 5  ;;  %v1933_v7 = vrot.slane %v23001_v48, 5  ;;  %v1856_v27 = vrot.slane %v22494_v15, 5  ;;  %v23452_v15 = vld [vmem:[%s22752_s26 + $0x10] sm:$0xf] }
  0x83   : > { %v23194_v54 = vsel %vm23094_vm8, %v1900_v43, %v1901_v50  ;;  %v23209_v50 = vsel %vm23094_vm8, %v1907_v39, %v1908_v44  ;;  %v27413_v43 = vld [vmem:[#allocation15_spill] sm:$0xff]  ;;  %v1926_v44 = vrot.slane %v22976_v63, 5  ;;  %v1804_v39 = vld [vmem:[%s22752_s26 + $0xb4] sm:$0xe] }
  0x84   : > { %v1922_v56 = vrot.slane %v27413_v43, 5  ;;  %v23227_v43 = vsel %vm23094_vm8, %v17278_v5, %v1919_v22  ;;  %v1921_v19 = vrot.slane %v1919_v22, 4  ;;  %v17281_v22 = vrot.slane %v1803_v38, 9 }
  0x85   : > { %v17282_v38 = vrot.slane %v1804_v39, 9  ;;  %v27431_v20 = vcombine.low %v23178_v51, %v23194_v54  ;;  %v27432_v36 = vcombine.low %v23198_v37, %v23209_v50  ;;  %v22330_v51 = vld [vmem:[%s22752_s26 + $0x30] sm:$0xff]   ;;  %v22331_v54 = vld [vmem:[%s22752_s26 + $0x3c] sm:$0xff]   ;;  %v23418_v37 = vld [vmem:[%s22752_s26 + $0x4c] sm:$0xf] }
  0x86   : > { %19471 = vmatmul.mubr.msk.bf16.gmra.mrb[4].mxu0 %vm1280_vm4, %v17238_v31  ;;  %v23221_v31 = vsel %vm23094_vm8, %v17277_v23, %v1912_v55  ;;  %v23236_v23 = vsel %vm23094_vm8, %v17279_v34, %v1926_v44  ;;  %v1928_v55 = vrot.slane %v1926_v44, 4  ;;  %v23243_v5 = vsel %vm23094_vm8, %v1921_v19, %v1922_v56  ;;  %v27416_v19 = vld [vmem:[#allocation18_spill] sm:$0xff]  ;;  %v23421_v50 = vld [vmem:[%s22752_s26 + $0x50] sm:$0x1] }
  0x87   : > { %19474 = vmatprep.mubr.msk.bf16.mxu0 %vm1280_vm4, %v17239_v41  ;;  %v23232_v41 = vsel %vm23094_vm8, %v1914_v8, %v1915_v49  ;;  %v23254_v8 = vsel %vm23094_vm8, %v17280_v18, %v1933_v7  ;;  %v1935_v44 = vrot.slane %v1933_v7, 4  ;;  %v1940_v56 = vrot.slane %v23017_v47, 5 }
  0x88   : > { %v23250_v34 = vsel %vm23094_vm8, %v1928_v55, %v1929_v10  ;;  %v1943_v29 = vrot.slane %v27416_v19, 5  ;;  %v1947_v10 = vrot.slane %v23039_v11, 5  ;;  %v1950_v55 = vrot.slane %v23043_v3, 5  ;;  %v22493_v19 = vld [vmem:[%s22752_s26 + $0x8] sm:$0x1] }
  0x89   : > { %v17296_v17 = vcombine.low %v23236_v23, %v23250_v34  ;;  %v23262_v49 = vsel %vm23094_vm8, %v1935_v44, %v1936_v58  ;;  %v23274_v39 = vsel %vm23094_vm8, %v17281_v22, %v1940_v56  ;;  %v1942_v18 = vrot.slane %v1940_v56, 4  ;;  %v1789_v56 = vld [vmem:[%s22752_s26] sm:$0xe] }
  0x8a   : > { %v17297_v7 = vcombine.low %v23254_v8, %v23262_v49  ;;  %v23282_v3 = vsel %vm23094_vm8, %v17282_v38, %v1947_v10  ;;  %v1949_v40 = vrot.slane %v1947_v10, 4  ;;  %v27420_v44 = vcombine.low %v22938_v52, %v22944_v1  ;;  %v1791_v38 = vld [vmem:[%s22752_s26 + $0x18] sm:$0xe]  ;;  %v22332_v49 = vld [vmem:[%s22752_s26 + $0x48] sm:$0xff]  }
  0x8b   : > { %v1944_v46 = vsel %vm23094_vm8, %v1942_v18, %v1943_v29  ;;  %v1845_v29 = vrot.slane %v22493_v19, 5  ;;  %v27423_v52 = vcombine.low %v22989_v42, %v23001_v48  ;;  %v27424_v1 = vcombine.low %v23009_v9, %v23017_v47  ;;  %v1792_v47 = vld [vmem:[%s22752_s26 + $0x24] sm:$0xe]  ;;  %v22496_v18 = vld [vmem:[%s22752_s26 + $0x28] sm:$0xf]  ;;  %v22333_v8 = vld [vmem:[%s22752_s26 + $0x54] sm:$0xff]  }
  0x8c   : > { %v1951_v58 = vsel %vm23094_vm8, %v1949_v40, %v1950_v55  ;;  %v17269_v42 = vrot.slane %v1791_v38, 9  ;;  %v1858_v48 = vrot.slane %v1856_v27, 4  ;;  %v22495_v55 = vld [vmem:[%s22752_s26 + $0x20] sm:$0x1]  ;;  %v27425_v9 = vcombine.low %v23036_v6, %v23039_v11  ;;  %v22497_v11 = vld [vmem:[%s22752_s26 + $0x2c] sm:$0x1] }
  0x8d   : > { %v17299_v22 = vcombine.low %v23282_v3, %v1951_v58  ;;  %v1863_v3 = vrot.slane %v22496_v18, 5  ;;  %v17429_v58 = vld [vmem:[%s27394_s0 + $0x8] sm:$0x3]  ;;  %v27433_v25 = vcombine.low %v23221_v31, %v23232_v41  ;;  %v3435_v41 = vrot.slane %v23421_v50, 5  ;;  %v22335_v38 = vld [vmem:[%s22752_s26 + $0x6c] sm:$0xff]  }
  0x8e   : > { %19475 = vmatmul.mubr.msk.bf16.gmra.mrb[8].mxu0 %vm1280_vm4, %v17240_v14  ;;  %v17298_v14 = vcombine.low %v23274_v39, %v1944_v46  ;;  %v1859_v39 = vrot.slane %v22495_v55, 5  ;;  %v1857_v40 = vsel %vm23094_vm8, %v17269_v42, %v1856_v27  ;;  %v17467_v31 = vld [vmem:[%s22752_s26 + $0x48] sm:$0xe]  ;;  %v23470_v18 = vld [vmem:[%s22752_s26 + $0x1c] sm:$0xf] }
  0x8f   : > { %19478 = vmatprep.mubr.msk.bf16.mxu0 %vm1280_vm4, %v17241_v16  ;;  %v27419_v16 = vcombine.low %v22921_v21, %v22924_v28  ;;  %v17267_v21 = vrot.slane %v1789_v56, 9  ;;  %v1844_v28 = vrot.slane %v1842_v33, 4  ;;  %v1865_v6 = vrot.slane %v1863_v3, 4 }
  0x90   : > { %v1860_v46 = vsel %vm23094_vm8, %v1858_v48, %v1859_v39  ;;  %v17483_v23 = vrot.slane %v17467_v31, 9  ;;  %v2663_v39 = vshll.u32 %v23452_v15, 16 }
  0x91   : > { %v1843_v57 = vsel %vm23094_vm8, %v17267_v21, %v1842_v33  ;;  %v1846_v63 = vsel %vm23094_vm8, %v1844_v28, %v1845_v29  ;;  %v27429_v29 = vcombine.low %v23145_v13, %v23164_v45  ;;  %v27434_v13 = vcombine.low %v23227_v43, %v23243_v5  ;;  %v22328_v45 = vld [vmem:[%s22752_s26 + $0x18] sm:$0xff]  }
  0x92   : > { %v17284_v10 = vcombine.low %v1843_v57, %v1846_v63  ;;  %v3432_v43 = vrot.slane %v23418_v37, 5  ;;  %v22334_v57 = vld [vmem:[%s22752_s26 + $0x60] sm:$0xff]  }
  0x94   : > { %v3434_v5 = vrot.slane %v3432_v43, 4  ;;  %v23430_v34 = vsel %vm23094_vm8, %v17483_v23, %v3432_v43 }
  0x96   : > { %19479 = vmatmul.mubr.msk.bf16.gmra.mrb[12].mxu0 %vm1280_vm4, %v27417_v61  ;;  %v17270_v61 = vrot.slane %v1792_v47, 9  ;;  %v2667_v47 = vshrl.u32 %v23452_v15, 16 }
  0x97   : > { %19482 = vmatprep.mubr.msk.bf16.mxu0 %vm1280_vm4, %v27418_v2  ;;  %v17286_v2 = vcombine.low %v1857_v40, %v1860_v46  ;;  %v23474_v46 = vld [vmem:[%s22752_s26 + $0x7c] sm:$0xf] }
  0x98   : > { %v1864_v33 = vsel %vm23094_vm8, %v17270_v61, %v1863_v3  ;;  %v17471_v61 = vld [vmem:[%s22752_s26 + $0x78] sm:$0xe] }
  0x9e   : > { %19483 = vmatmul.mubr.msk.bf16.gmra.mrb[16].mxu0 %vm1280_vm4, %v27419_v16  ;;  %v1866_v16 = vrot.slane %v22497_v11, 5 }
  0x9f   : > { %19486 = vmatprep.mubr.msk.bf16.mxu0 %vm1280_vm4, %v27420_v44  ;;  %v3136_v44 = vand.u32 %v17429_v58, %v27411_v30  ;;  %v23477_v58 = vld [vmem:[%s22752_s26 + $0x80] sm:$0x1] }
  0xa0   : > { %v1867_v56 = vsel %vm23094_vm8, %v1865_v6, %v1866_v16  ;;  %v3463_v6 = vrot.slane %v23477_v58, 5 }
  0xa1   : > { %v17287_v19 = vcombine.low %v1864_v33, %v1867_v56  ;;  %v22336_v33 = vld [vmem:[%s22752_s26 + $0x78] sm:$0xff]   ;;  %v2669_v56 = vrot.slane %v2667_v47, 4 }
  0xa6   : > { %19487 = vmatmul.mubr.msk.bf16.gmra.mrb[20].mxu0 %vm1280_vm4, %v27421_v53  ;;  %v23444_v53 = vld [vmem:[%s22752_s26 + $0x68] sm:$0x1] }
  0xa7   : > { %19490 = vmatprep.mubr.msk.bf16.mxu0 %vm1280_vm4, %v27422_v59  ;;  %v17469_v59 = vld [vmem:[%s22752_s26 + $0x60] sm:$0xe]  ;;  %v3449_v28 = vrot.slane %v23444_v53, 5 }
  0xae   : > { %19491 = vmatmul.mubr.msk.bf16.gmra.mrb[24].mxu0 %vm1280_vm4, %v27423_v52  ;;  %v17485_v52 = vrot.slane %v17469_v59, 9 }
  0xaf   : > { %19494 = vmatprep.mubr.msk.bf16.mxu0 %vm1280_vm4, %v27424_v1  ;;  %v17381_v1 = vld [vmem:[%s22752_s26 + $0xc] sm:$0xf] }
  0xb0   : > { %v2654_v48 = vshrl.u32 %v17381_v1, 16  ;;  %v2657_v55 = vshll.u32 %v17381_v1, 16 }
  0xb2   : > { %v2656_v11 = vrot.slane %v2654_v48, 4  ;;  %v2659_v16 = vrot.slane %v2657_v55, 5 }
  0xb6   : > { %19495 = vmatmul.mubr.msk.bf16.gmra.mrb[28].mxu0 %vm1280_vm4, %v27425_v9 }
  0xb7   : > { %19500 = vmatprep.mubr.msk.bf16.mxu0 %vm1280_vm4, %v17284_v10  ;;  %v17384_v10 = vld [vmem:[%s22752_s26 + $0x18] sm:$0xf] }
  0xb8   : > { %v2678_v3 = vshrl.u32 %v17384_v10, 16  ;;  %v2681_v40 = vshll.u32 %v17384_v10, 16 }
  0xbe   : > { %19501 = vmatmul.mubr.msk.bf16.vlgmr.msra.gmra.mrb[0].mxu0 %vm1280_vm4, %v27426_v26  ;;  %v17487_v26 = vrot.slane %v17471_v61, 9 }
  0xbf   : > { %19504 = vmatprep.mubr.msk.bf16.mxu0 %vm1280_vm4, %v17286_v2  ;;  %19533 = vmatpush3.bf16.msra.mxu0 %v23187_v60  ;;  %v27430_v60 = vcombine.low %v23172_v12, %v23183_v62  ;;  %v22329_v62 = vld [vmem:[%s22752_s26 + $0x24] sm:$0xff]   ;;  %v3460_v2 = vrot.slane %v23474_v46, 5 }
  0xc0   : > { %19566 = vmatprep.subr.bf16.mxu0 %v3136_v44 }
  0xc6   : > { %19505 = vmatmul.mubr.msk.bf16.gmra.mrb[4].mxu0 %vm1280_vm4, %v17287_v19  ;;  %v2687_v19 = vshll.u32 %v23470_v18, 16 }
  0xc7   : > { %19508 = vmatprep.mubr.msk.bf16.mxu0 %vm1280_vm4, %v27427_v24  ;;  %v2691_v24 = vshrl.u32 %v23470_v18, 16 }
  0xc9   : > { %v2693_v31 = vrot.slane %v2691_v24, 4 }
  0xce   : > { %19509 = vmatmul.mubr.msk.bf16.gmra.mrb[8].mxu0 %vm1280_vm4, %v27428_v35  ;;  %v3462_v35 = vrot.slane %v3460_v2, 4 }
  0xcf   : > { %19512 = vmatprep.mubr.msk.bf16.mxu0 %vm1280_vm4, %v27429_v29  ;;  %v23489_v29 = vld [vmem:[%s22752_s26 + $0x14] sm:$0x1] }
  0xd6   : > { %19513 = vmatmul.mubr.msk.bf16.gmra.mrb[12].mxu0 %vm1280_vm4, %v27430_v60  ;;  %v23492_v60 = vld [vmem:[%s22752_s26 + $0x20] sm:$0x1] }
  0xd7   : > { %19516 = vmatprep.mubr.msk.bf16.mxu0 %vm1280_vm4, %v27431_v20  ;;  %v2680_v20 = vrot.slane %v2678_v3, 4  ;;  %v2697_v43 = vshll.u32 %v23492_v60, 16  ;;  %v22338_v3 = vld [vmem:[%s22752_s26 + $0x90] sm:$0xff]  }
  0xde   : > { %19517 = vmatmul.mubr.msk.bf16.gmra.mrb[16].mxu0 %vm1280_vm4, %v27432_v36  ;;  %v2683_v36 = vrot.slane %v2681_v40, 5 }
  0xdf   : > { %19520 = vmatprep.mubr.msk.bf16.mxu0 %vm1280_vm4, %v27433_v25  ;;  %v23496_v25 = vsel %vm23094_vm8, %v17487_v26, %v3460_v2 }
  0xe0   : > { %27435 = vst [vmem:[#allocation12_spill] sm:$0xff] %v23496_v25  ;;  %v2684_v23 = vor.u32 %v2683_v36, %v2680_v20 }
  0xe2   : > { %v23539_v2 = vrot.slane %v2684_v23, 4  ;;  %v23569_v23 = vld [vmem:[%s22752_s26 + $0xb0] sm:$0x1] }
  0xe6   : > { %19521 = vmatmul.mubr.msk.bf16.gmra.mrb[20].mxu0 %vm1280_vm4, %v27434_v13  ;;  %v22337_v13 = vld [vmem:[%s22752_s26 + $0x84] sm:$0xff]  }
  0xe7   : > { %19524 = vmatprep.mubr.msk.bf16.mxu0 %vm1280_vm4, %v17296_v17  ;;  %v17494_v17 = vld [vmem:[%s27394_s0 + $0xa] sm:$0x3] }
  0xe8   : > { %v23409_v12 = vand.u32 %v17494_v17, %v27411_v30  ;;  %v17387_v17 = vld [vmem:[%s22752_s26 + $0x24] sm:$0xf] }
  0xe9   : > { %v2702_v59 = vshrl.u32 %v17387_v17, 16 }
  0xeb   : > { %v2704_v26 = vrot.slane %v2702_v59, 4 }
  0xee   : > { %19525 = vmatmul.mubr.msk.bf16.gmra.mrb[24].mxu0 %vm1280_vm4, %v17297_v7  ;;  %v23435_v7 = vsel %vm23094_vm8, %v3434_v5, %v3435_v41  ;;  %v23513_v5 = vld [vmem:[%s22752_s26 + $0x28] sm:$0xf] }
  0xef   : > { %19528 = vmatprep.mubr.msk.bf16.mxu0 %vm1280_vm4, %v17298_v14  ;;  %v2711_v48 = vshll.u32 %v23513_v5, 16  ;;  %v2715_v55 = vshrl.u32 %v23513_v5, 16 }
  0xf6   : > { %19529 = vmatmul.mubr.msk.bf16.gmra.mrb[28].mxu0 %vm1280_vm4, %v17299_v22  ;;  %v23441_v22 = vld [vmem:[%s22752_s26 + $0x64] sm:$0xf] }
  0xf7   : > { %19534 = vmatprep.mubr.msk.bf16.mxu0 %vm1280_vm4, %v22327_v4  ;;  %v3446_v21 = vrot.slane %v23441_v22, 5  ;;  %v23501_v4 = vsel %vm23094_vm8, %v3462_v35, %v3463_v6 }
  0xf8   : > { %27436 = vst [vmem:[#allocation13_spill] sm:$0xff] %v23501_v4  ;;  %v23639_v4 = vld [vmem:[%s22752_s26 + $0x58] sm:$0xf] }
  0xf9   : > { %v3448_v27 = vrot.slane %v3446_v21, 4  ;;  %v23457_v63 = vsel %vm23094_vm8, %v17485_v52, %v3446_v21  ;;  %v2705_v21 = vshll.u32 %v17387_v17, 16  ;;  %v2717_v17 = vrot.slane %v2715_v55, 4 }
  0xfb   : > { %v23463_v42 = vsel %vm23094_vm8, %v3448_v27, %v3449_v28  ;;  %v17473_v28 = vld [vmem:[%s22752_s26 + $0x90] sm:$0xe] }
  0xfe   : > { %19535 = vmatmul.mubr.msk.bf16.vlgmr.msra.gmra.mrb[0].mxu0 %vm1280_vm4, %v22328_v45  ;;  %v2660_v45 = vor.u32 %v2659_v16, %v2656_v11  ;;  %v22339_v11 = vld [vmem:[%s22752_s26 + $0x9c] sm:$0xff]   ;;  %v2699_v16 = vrot.slane %v2697_v43, 5 }
  0xff   : > { %19538 = vmatprep.mubr.msk.bf16.mxu0 %vm1280_vm4, %v22329_v62  ;;  %19567 = vmatpush3.bf16.msra.mxu0 %v3136_v44  ;;  %v23483_v44 = vrot.slane %v2663_v39, 5  ;;  %v23532_v39 = vld [vmem:[%s22752_s26 + $0x34] sm:$0xf]  ;;  %v17393_v43 = vld [vmem:[%s22752_s26 + $0x3c] sm:$0xf] }
 0x100   : > { %19600 = vmatprep.subr.bf16.mxu0 %v23409_v12  ;;  %v23525_v27 = vrot.slane %v2660_v45, 4  ;;  %v2735_v20 = vshll.u32 %v23532_v39, 16  ;;  %v23556_v45 = vrot.slane %v2711_v48, 5  ;;  %v23621_v62 = vld [vmem:[%s22752_s26 + $0xc8] sm:$0x1] }
 0x101   : > { %v2670_v41 = vor.u32 %v2669_v56, %v23483_v44 }
 0x102   : > { %v2718_v48 = vor.u32 %v2717_v17, %v23556_v45  ;;  %v22341_v17 = vld [vmem:[%s22752_s26 + $0xb4] sm:$0xff]  }
 0x103   : > { %v23535_v40 = vrot.slane %v2670_v41, 4  ;;  %v23566_v41 = vld [vmem:[%s22752_s26 + $0xac] sm:$0xf] }
 0x106   : > { %19539 = vmatmul.mubr.msk.bf16.gmra.mrb[4].mxu0 %vm1280_vm4, %v22330_v51  ;;  %v2673_v51 = vshll.u32 %v23489_v29, 16 }
 0x107   : > { %19542 = vmatprep.mubr.msk.bf16.mxu0 %vm1280_vm4, %v22331_v54  ;;  %v23507_v54 = vrot.slane %v2687_v19, 5  ;;  %v23551_v19 = vld [vmem:[%s22752_s26 + $0x2c] sm:$0x1] }
 0x108   : > { %v23537_v61 = vrot.slane %v2673_v51, 5  ;;  %v2739_v51 = vshrl.u32 %v23532_v39, 16 }
 0x109   : > { %v2694_v10 = vor.u32 %v2693_v31, %v23507_v54  ;;  %v2666_v31 = vsel %vm22788_vm5, %v23525_v27, %v23483_v44 }
 0x10a   : > { %v2741_v55 = vrot.slane %v2739_v51, 4 }
 0x10e   : > { %19543 = vmatmul.mubr.msk.bf16.gmra.mrb[8].mxu0 %vm1280_vm4, %v22332_v49  ;;  %v23516_v49 = vld [vmem:[%s22752_s26 + $0x94] sm:$0xf] }
 0x10f   : > { %19546 = vmatprep.mubr.msk.bf16.mxu0 %vm1280_vm4, %v22333_v8  ;;  %v23519_v8 = vld [vmem:[%s22752_s26 + $0x98] sm:$0x1]  ;;  %v3474_v52 = vrot.slane %v23516_v49, 5 }
 0x110   : > { %v3477_v1 = vrot.slane %v23519_v8, 5 }
 0x111   : > { %v3476_v47 = vrot.slane %v3474_v52, 4 }
 0x113   : > { %v23548_v56 = vsel %vm23094_vm8, %v3476_v47, %v3477_v1  ;;  %v3491_v1 = vrot.slane %v23569_v23, 5  ;;  %v23583_v47 = vld [vmem:[%s22752_s26 + $0x40] sm:$0xf] }
 0x114   : > { %27438 = vst [vmem:[#allocation14_spill] sm:$0xff] %v23548_v56 }
 0x116   : > { %19547 = vmatmul.mubr.msk.bf16.gmra.mrb[12].mxu0 %vm1280_vm4, %v22334_v57  ;;  %v17390_v57 = vld [vmem:[%s22752_s26 + $0x30] sm:$0xf] }
 0x117   : > { %19550 = vmatprep.mubr.msk.bf16.mxu0 %vm1280_vm4, %v22335_v38  ;;  %v17489_v38 = vrot.slane %v17473_v28, 9  ;;  %v2726_v24 = vshrl.u32 %v17390_v57, 16  ;;  %v2729_v35 = vshll.u32 %v17390_v57, 16  ;;  %v17475_v28 = vld [vmem:[%s22752_s26 + $0xa8] sm:$0xe] }
 0x118   : > { %v23577_v57 = vld [vmem:[%s22752_s26 + $0x38] sm:$0x1] }
 0x119   : > { %v23543_v6 = vsel %vm23094_vm8, %v17489_v38, %v3474_v52  ;;  %v3488_v52 = vrot.slane %v23566_v41, 5  ;;  %v2728_v44 = vrot.slane %v2726_v24, 4  ;;  %v2731_v27 = vrot.slane %v2729_v35, 5 }
 0x11a   : > { %27437 = vst [vmem:[#allocation11_spill] sm:$0xff] %v23543_v6  ;;  %v23579_v38 = vrot.slane %v2735_v20, 5  ;;  %v2690_v24 = vsel %vm22788_vm5, %v23539_v2, %v23507_v54  ;;  %v2753_v35 = vshll.u32 %v17393_v43, 16  ;;  %v2745_v54 = vshll.u32 %v23577_v57, 16 }
 0x11b   : > { %v2759_v2 = vshll.u32 %v23583_v47, 16  ;;  %v2783_v6 = vshll.u32 %v23418_v37, 16 }
 0x11c   : > { %v2747_v56 = vrot.slane %v2745_v54, 5 }
 0x11e   : > { %19551 = vmatmul.mubr.msk.bf16.gmra.mrb[16].mxu0 %vm1280_vm4, %v22336_v33  ;;  %v2707_v33 = vrot.slane %v2705_v21, 5  ;;  %v2721_v21 = vshll.u32 %v23551_v19, 16 }
 0x11f   : > { %19554 = vmatprep.mubr.msk.bf16.mxu0 %vm1280_vm4, %v22337_v13  ;;  %v2695_v13 = vrot.slane %v2694_v10, 4  ;;  %v17491_v10 = vrot.slane %v17475_v28, 9 }
 0x120   : > { %v2708_v59 = vor.u32 %v2707_v33, %v2704_v26  ;;  %v22340_v26 = vld [vmem:[%s22752_s26 + $0xa8] sm:$0xff]   ;;  %v2676_v33 = vsel %vm22788_vm5, %v23535_v40, %v23537_v61  ;;  %v23603_v36 = vrot.slane %v2721_v21, 5  ;;  %v2742_v21 = vor.u32 %v2741_v55, %v23579_v38 }
 0x121   : > { %v23596_v20 = vsel %vm23094_vm8, %v17491_v10, %v3488_v52  ;;  %v2700_v51 = vsel %vm22788_vm5, %v2695_v13, %v2699_v16  ;;  %v17396_v40 = vld [vmem:[%s22752_s26 + $0x48] sm:$0xf]  ;;  %v2719_v13 = vrot.slane %v2718_v48, 4  ;;  %v17430_v9 = vcombine.low %v2666_v31, %v2676_v33  ;;  %v23627_v48 = vld [vmem:[%s22752_s26 + $0x44] sm:$0x1] }
 0x122   : > { %27439 = vst [vmem:[#allocation15_spill] sm:$0xff] %v23596_v20  ;;  %v23601_v28 = vrot.slane %v2708_v59, 4  ;;  %v2732_v59 = vor.u32 %v2731_v27, %v2728_v44  ;;  %v2774_v10 = vshrl.u32 %v17396_v40, 16  ;;  %v23624_v14 = vcombine.low %v2690_v24, %v2700_v51  ;;  %v17477_v44 = vld [vmem:[%s22752_s26 + $0xc0] sm:$0xe] }
 0x123   : > { %v3505_v55 = vrot.slane %v23621_v62, 5  ;;  %v17399_v16 = vld [vmem:[%s22752_s26 + $0x54] sm:$0xf]  ;;  %v22342_v33 = vld [vmem:[%s22752_s26 + $0xc0] sm:$0xff]   ;;  %v2769_v51 = vshll.u32 %v23627_v48, 16 }
 0x124   : > { %v2733_v20 = vrot.slane %v2732_v59, 4  ;;  %v2801_v59 = vshll.u32 %v17399_v16, 16 }
 0x126   : > { %19555 = vmatmul.mubr.msk.bf16.gmra.mrb[20].mxu0 %vm1280_vm4, %v22338_v3  ;;  %v2750_v3 = vshrl.u32 %v17393_v43, 16  ;;  %v2763_v43 = vshrl.u32 %v23583_v47, 16 }
 0x127   : > { %19558 = vmatprep.mubr.msk.bf16.mxu0 %vm1280_vm4, %v22339_v11  ;;  %v3490_v11 = vrot.slane %v3488_v52, 4 }
 0x128   : > { %v2752_v52 = vrot.slane %v2750_v3, 4  ;;  %v23632_v3 = vrot.slane %v2759_v2, 5 }
 0x129   : > { %v23608_v61 = vsel %vm23094_vm8, %v3490_v11, %v3491_v1  ;;  %v2755_v1 = vrot.slane %v2753_v35, 5  ;;  %v23618_v11 = vld [vmem:[%s22752_s26 + $0xc4] sm:$0xf]  ;;  %v2777_v35 = vshll.u32 %v17396_v40, 16  ;;  %v2787_v40 = vshrl.u32 %v23418_v37, 16 }
 0x12a   : > { %27440 = vst [vmem:[#allocation16_spill] sm:$0xff] %v23608_v61  ;;  %v3502_v27 = vrot.slane %v23618_v11, 5  ;;  %v17493_v61 = vrot.slane %v17477_v44, 9  ;;  %v2724_v37 = vsel %vm22788_vm5, %v2719_v13, %v23603_v36  ;;  %v2793_v13 = vshll.u32 %v23421_v50, 16 }
 0x12b   : > { %v2756_v24 = vor.u32 %v2755_v1, %v2752_v52  ;;  %v2776_v52 = vrot.slane %v2774_v10, 4  ;;  %v2779_v1 = vrot.slane %v2777_v35, 5  ;;  %v2738_v10 = vsel %vm22788_vm5, %v2733_v20, %v23579_v38 }
 0x12c   : > { %v3504_v31 = vrot.slane %v3502_v27, 4  ;;  %v23643_v2 = vsel %vm23094_vm8, %v17493_v61, %v3502_v27  ;;  %v2714_v61 = vsel %vm22788_vm5, %v23601_v28, %v23556_v45  ;;  %v2811_v27 = vshrl.u32 %v23639_v4, 16 }
 0x12d   : > { %27441 = vst [vmem:[#allocation17_spill] sm:$0xff] %v23643_v2  ;;  %v2757_v45 = vrot.slane %v2756_v24, 4  ;;  %v23669_v28 = vrot.slane %v2783_v6, 5  ;;  %v2789_v36 = vrot.slane %v2787_v40, 4  ;;  %v23674_v2 = vld [vmem:[%s22752_s26 + $0x5c] sm:$0x1]  ;;  %v17432_v20 = vcombine.low %v2714_v61, %v2724_v37 }
 0x12e   : > { %19559 = vmatmul.mubr.msk.bf16.gmra.mrb[24].mxu0 %vm1280_vm4, %v22340_v26  ;;  %v2765_v26 = vrot.slane %v2763_v43, 4  ;;  %v2798_v43 = vshrl.u32 %v17399_v16, 16  ;;  %v23648_v54 = vsel %vm23094_vm8, %v3504_v31, %v3505_v55  ;;  %v2807_v16 = vshll.u32 %v23639_v4, 16  ;;  %v17402_v55 = vld [vmem:[%s22752_s26 + $0x60] sm:$0xf] }
 0x12f   : > { %19562 = vmatprep.mubr.msk.bf16.mxu0 %vm1280_vm4, %v22341_v17  ;;  %v2743_v17 = vrot.slane %v2742_v21, 4  ;;  %27442 = vst [vmem:[#allocation18_spill] sm:$0xff] %v23648_v54  ;;  %v2803_v31 = vrot.slane %v2801_v59, 5  ;;  %v2780_v54 = vor.u32 %v2779_v1, %v2776_v52  ;;  %v2822_v38 = vshrl.u32 %v17402_v55, 16  ;;  %v23690_v61 = vld [vmem:[%s22752_s26 + $0x70] sm:$0xf] }
 0x130   : > { %v2766_v21 = vor.u32 %v2765_v26, %v23632_v3  ;;  %v2800_v35 = vrot.slane %v2798_v43, 4  ;;  %v2813_v6 = vrot.slane %v2811_v27, 4  ;;  %v2762_v24 = vsel %vm22788_vm5, %v2757_v45, %v23632_v3  ;;  %v17405_v43 = vld [vmem:[%s22752_s26 + $0x6c] sm:$0xf]  ;;  %v17408_v45 = vld [vmem:[%s22752_s26 + $0x78] sm:$0xf] }
 0x131   : > { %v2748_v26 = vsel %vm22788_vm5, %v2743_v17, %v2747_v56  ;;  %v23676_v56 = vrot.slane %v2807_v16, 5  ;;  %v2825_v17 = vshll.u32 %v17402_v55, 16  ;;  %v2835_v40 = vshrl.u32 %v23441_v22, 16 }
 0x132   : > { %v2767_v44 = vrot.slane %v2766_v21, 4  ;;  %v17433_v50 = vcombine.low %v2738_v10, %v2748_v26  ;;  %v2790_v59 = vor.u32 %v2789_v36, %v23669_v28  ;;  %v2795_v21 = vrot.slane %v2793_v13, 5 }
 0x133   : > { %v2804_v52 = vor.u32 %v2803_v31, %v2800_v35  ;;  %v2817_v1 = vshll.u32 %v23674_v2, 16  ;;  %v2781_v16 = vrot.slane %v2780_v54, 4  ;;  %v2824_v27 = vrot.slane %v2822_v38, 4 }
 0x134   : > { %v2814_v55 = vor.u32 %v2813_v6, %v23676_v56  ;;  %v2846_v10 = vshrl.u32 %v17405_v43, 16  ;;  %v2849_v26 = vshll.u32 %v17405_v43, 16  ;;  %v2837_v13 = vrot.slane %v2835_v40, 4 }
 0x135   : > { %v2855_v35 = vshll.u32 %v23690_v61, 16  ;;  %v2859_v54 = vshrl.u32 %v23690_v61, 16  ;;  %v2805_v31 = vrot.slane %v2804_v52, 4  ;;  %v2841_v38 = vshll.u32 %v23444_v53, 16  ;;  %v23713_v53 = vld [vmem:[%s22752_s26 + $0x74] sm:$0x1] }
 0x136   : > { %19563 = vmatmul.mubr.msk.bf16.gmra.mrb[28].mxu0 %vm1280_vm4, %v22342_v33  ;;  %v2771_v33 = vrot.slane %v2769_v51, 5  ;;  %v2831_v51 = vshll.u32 %v23441_v22, 16  ;;  %v2827_v22 = vrot.slane %v2825_v17, 5  ;;  %v2870_v6 = vshrl.u32 %v17408_v45, 16 }
 0x137   : > { %19568 = vmatprep.mubr.msk.bf16.mxu0 %vm1280_vm4, %v17430_v9  ;;  %v17559_v9 = vld [vmem:[%s27394_s0 + $0xc] sm:$0x3]  ;;  %v2873_v17 = vshll.u32 %v17408_v45, 16  ;;  %v2851_v43 = vrot.slane %v2849_v26, 5  ;;  %v2786_v45 = vsel %vm22788_vm5, %v2781_v16, %v23669_v28 }
 0x138   : > { %v2772_v37 = vsel %vm22788_vm5, %v2767_v44, %v2771_v33  ;;  %v23695_v3 = vand.u32 %v17559_v9, %v27411_v30  ;;  %v23701_v36 = vrot.slane %v2831_v51, 5  ;;  %v2791_v44 = vrot.slane %v2790_v59, 4 }
 0x139   : > { %v2819_v33 = vrot.slane %v2817_v1, 5  ;;  %v2883_v9 = vshrl.u32 %v23474_v46, 16  ;;  %v2815_v51 = vrot.slane %v2814_v55, 4  ;;  %v2828_v40 = vor.u32 %v2827_v22, %v2824_v27 }
 0x13a   : > { %v17434_v59 = vcombine.low %v2762_v24, %v2772_v37  ;;  %v2838_v52 = vor.u32 %v2837_v13, %v23701_v36  ;;  %v2861_v1 = vrot.slane %v2859_v54, 4  ;;  %v2810_v27 = vsel %vm22788_vm5, %v2805_v31, %v23676_v56  ;;  %v17411_v24 = vld [vmem:[%s22752_s26 + $0x84] sm:$0xf]  ;;  %v23731_v13 = vld [vmem:[%s22752_s26 + $0x88] sm:$0xf] }
 0x13b   : > { %v23725_v55 = vrot.slane %v2841_v38, 5  ;;  %v2872_v37 = vrot.slane %v2870_v6, 4  ;;  %v2875_v22 = vrot.slane %v2873_v17, 5  ;;  %v2885_v26 = vrot.slane %v2883_v9, 4 }
 0x13c   : > { %v2820_v28 = vsel %vm22788_vm5, %v2815_v51, %v2819_v33  ;;  %v2829_v16 = vrot.slane %v2828_v40, 4  ;;  %v2839_v56 = vrot.slane %v2838_v52, 4  ;;  %v2897_v31 = vshll.u32 %v17411_v24, 16 }
 0x13d   : > { %v2903_v38 = vshll.u32 %v23731_v13, 16  ;;  %v2907_v33 = vshrl.u32 %v23731_v13, 16  ;;  %v2876_v17 = vor.u32 %v2875_v22, %v2872_v37  ;;  %v2889_v9 = vshll.u32 %v23477_v58, 16 }
 0x13e   : > { %19569 = vmatmul.mubr.msk.bf16.vlgmr.msra.gmra.mrb[0].mxu0 %vm1280_vm4, %v23624_v14  ;;  %v2879_v14 = vshll.u32 %v23474_v46, 16  ;;  %v2796_v46 = vsel %vm22788_vm5, %v2791_v44, %v2795_v21  ;;  %v2894_v44 = vshrl.u32 %v17411_v24, 16  ;;  %v17436_v51 = vcombine.low %v2810_v27, %v2820_v28  ;;  %v17417_v24 = vld [vmem:[%s22752_s26 + $0x9c] sm:$0xf] }
 0x13f   : > { %19572 = vmatprep.mubr.msk.bf16.mxu0 %vm1280_vm4, %v17432_v20  ;;  %19601 = vmatpush3.bf16.msra.mxu0 %v23409_v12  ;;  %v2848_v20 = vrot.slane %v2846_v10, 4  ;;  %v23715_v12 = vrot.slane %v2855_v35, 5  ;;  %v2865_v35 = vshll.u32 %v23713_v53, 16  ;;  %v17435_v6 = vcombine.low %v2786_v45, %v2796_v46 }
 0x140   : > { %19634 = vmatprep.subr.bf16.mxu0 %v23695_v3  ;;  %v23728_v10 = vrot.slane %v2879_v14, 5  ;;  %v2834_v40 = vsel %vm22788_vm5, %v2829_v16, %v23701_v36  ;;  %v2844_v52 = vsel %vm22788_vm5, %v2839_v56, %v23725_v55  ;;  %v2896_v45 = vrot.slane %v2894_v44, 4 }
 0x141   : > { %v2852_v21 = vor.u32 %v2851_v43, %v2848_v20  ;;  %v2862_v54 = vor.u32 %v2861_v1, %v23715_v12  ;;  %v2867_v43 = vrot.slane %v2865_v35, 5  ;;  %v2899_v46 = vrot.slane %v2897_v31, 5 }
 0x142   : > { %v2886_v14 = vor.u32 %v2885_v26, %v23728_v10  ;;  %v23754_v58 = vrot.slane %v2903_v38, 5  ;;  %v2909_v37 = vrot.slane %v2907_v33, 4  ;;  %v23757_v26 = vld [vmem:[%s22752_s26 + $0xa0] sm:$0xf]  ;;  %v2877_v36 = vrot.slane %v2876_v17, 4 }
 0x143   : > { %v2853_v20 = vrot.slane %v2852_v21, 4  ;;  %v2863_v1 = vrot.slane %v2862_v54, 4  ;;  %v2891_v16 = vrot.slane %v2889_v9, 5  ;;  %v2927_v35 = vshll.u32 %v23516_v49, 16 }
 0x144   : > { %v2887_v28 = vrot.slane %v2886_v14, 4  ;;  %v2931_v55 = vshrl.u32 %v23516_v49, 16  ;;  %v2942_v56 = vshrl.u32 %v17417_v24, 16  ;;  %v2945_v54 = vshll.u32 %v17417_v24, 16 }
 0x145   : > { %v2858_v44 = vsel %vm22788_vm5, %v2853_v20, %v23715_v12  ;;  %v2868_v31 = vsel %vm22788_vm5, %v2863_v1, %v2867_v43  ;;  %v2951_v38 = vshll.u32 %v23757_v26, 16  ;;  %v2955_v33 = vshrl.u32 %v23757_v26, 16 }
 0x146   : > { %19573 = vmatmul.mubr.msk.bf16.gmra.mrb[4].mxu0 %vm1280_vm4, %v17433_v50  ;;  %v17414_v50 = vld [vmem:[%s22752_s26 + $0x90] sm:$0xf]  ;;  %v2900_v17 = vor.u32 %v2899_v46, %v2896_v45  ;;  %v2910_v49 = vor.u32 %v2909_v37, %v23754_v58  ;;  %v2882_v12 = vsel %vm22788_vm5, %v2877_v36, %v23728_v10  ;;  %v2892_v9 = vsel %vm22788_vm5, %v2887_v28, %v2891_v16  ;;  %v23780_v46 = vld [vmem:[%s22752_s26 + $0xa4] sm:$0x1] }
 0x147   : > { %19576 = vmatprep.mubr.msk.bf16.mxu0 %vm1280_vm4, %v17434_v59  ;;  %v23748_v59 = vld [vmem:[%s22752_s26 + $0x8c] sm:$0x1]  ;;  %v2918_v27 = vshrl.u32 %v17414_v50, 16  ;;  %v2921_v22 = vshll.u32 %v17414_v50, 16  ;;  %v23777_v20 = vrot.slane %v2927_v35, 5  ;;  %v2933_v43 = vrot.slane %v2931_v55, 4 }
 0x148   : > { %v2913_v21 = vshll.u32 %v23748_v59, 16  ;;  %v2944_v1 = vrot.slane %v2942_v56, 4  ;;  %v2947_v24 = vrot.slane %v2945_v54, 5  ;;  %v17438_v45 = vcombine.low %v2858_v44, %v2868_v31 }
 0x149   : > { %v2920_v14 = vrot.slane %v2918_v27, 4  ;;  %v2953_v37 = vrot.slane %v2951_v38, 5  ;;  %v2957_v27 = vrot.slane %v2955_v33, 4  ;;  %v2901_v25 = vrot.slane %v2900_v17, 4 }
 0x14a   : > { %v2915_v50 = vrot.slane %v2913_v21, 5  ;;  %v2911_v10 = vrot.slane %v2910_v49, 4  ;;  %v2937_v28 = vshll.u32 %v23519_v8, 16  ;;  %v17439_v16 = vcombine.low %v2882_v12, %v2892_v9 }
 0x14b   : > { %v2934_v21 = vor.u32 %v2933_v43, %v23777_v20  ;;  %v2948_v35 = vor.u32 %v2947_v24, %v2944_v1  ;;  %v2961_v55 = vshll.u32 %v23780_v46, 16  ;;  %v2958_v54 = vor.u32 %v2957_v27, %v2953_v37 }
 0x14c   : > { %v2975_v31 = vshll.u32 %v23566_v41, 16  ;;  %v2979_v38 = vshrl.u32 %v23566_v41, 16  ;;  %v2906_v8 = vsel %vm22788_vm5, %v2901_v25, %v23754_v58  ;;  %v2916_v33 = vsel %vm22788_vm5, %v2911_v10, %v2915_v50 }
 0x14d   : > { %v2939_v49 = vrot.slane %v2937_v28, 5  ;;  %v2935_v43 = vrot.slane %v2934_v21, 4  ;;  %v2949_v41 = vrot.slane %v2948_v35, 4  ;;  %v2963_v1 = vrot.slane %v2961_v55, 5  ;;  %v17426_v28 = vld [vmem:[%s22752_s26 + $0xc0] sm:$0xf] }
 0x14e   : > { %19577 = vmatmul.mubr.msk.bf16.gmra.mrb[8].mxu0 %vm1280_vm4, %v17435_v6  ;;  %v2923_v6 = vrot.slane %v2921_v22, 5  ;;  %v17420_v22 = vld [vmem:[%s22752_s26 + $0xa8] sm:$0xf]  ;;  %v2977_v25 = vrot.slane %v2975_v31, 5  ;;  %v2981_v58 = vrot.slane %v2979_v38, 4  ;;  %v17440_v27 = vcombine.low %v2906_v8, %v2916_v33 }
 0x14f   : > { %19580 = vmatprep.mubr.msk.bf16.mxu0 %vm1280_vm4, %v17436_v51  ;;  %v17437_v51 = vcombine.low %v2834_v40, %v2844_v52  ;;  %v2966_v56 = vshrl.u32 %v17420_v22, 16  ;;  %v17423_v40 = vld [vmem:[%s22752_s26 + $0xb4] sm:$0xf]  ;;  %v23788_v52 = vld [vmem:[%s22752_s26 + $0xb8] sm:$0xf]  ;;  %v2969_v44 = vshll.u32 %v17420_v22, 16  ;;  %v2940_v21 = vsel %vm22788_vm5, %v2935_v43, %v2939_v49 }
 0x150   : > { %v2924_v36 = vor.u32 %v2923_v6, %v2920_v14  ;;  %v2990_v14 = vshrl.u32 %v17423_v40, 16  ;;  %v2993_v6 = vshll.u32 %v17423_v40, 16  ;;  %v2999_v12 = vshll.u32 %v23788_v52, 16  ;;  %v23810_v55 = vld [vmem:[%s22752_s26 + $0xbc] sm:$0x1] }
 0x151   : > { %v3003_v9 = vshrl.u32 %v23788_v52, 16  ;;  %v2968_v24 = vrot.slane %v2966_v56, 4  ;;  %v2954_v35 = vsel %vm22788_vm5, %v2949_v41, %v2953_v37  ;;  %v2985_v31 = vshll.u32 %v23569_v23, 16 }
 0x152   : > { %v2925_v17 = vrot.slane %v2924_v36, 4  ;;  %v2992_v50 = vrot.slane %v2990_v14, 4  ;;  %v2995_v22 = vrot.slane %v2993_v6, 5  ;;  %v3001_v10 = vrot.slane %v2999_v12, 5 }
 0x153   : > { %v3005_v36 = vrot.slane %v3003_v9, 4  ;;  %v3017_v38 = vshll.u32 %v17426_v28, 16  ;;  %v3023_v8 = vshll.u32 %v23618_v11, 16  ;;  %v3027_v33 = vshrl.u32 %v23618_v11, 16 }
 0x154   : > { %v2930_v40 = vsel %vm22788_vm5, %v2925_v17, %v23777_v20  ;;  %v3014_v20 = vshrl.u32 %v17426_v28, 16  ;;  %v2996_v37 = vor.u32 %v2995_v22, %v2992_v50  ;;  %v3009_v49 = vshll.u32 %v23810_v55, 16 }
 0x155   : > { %v3006_v17 = vor.u32 %v3005_v36, %v3001_v10  ;;  %v2987_v9 = vrot.slane %v2985_v31, 5  ;;  %v3019_v41 = vrot.slane %v3017_v38, 5  ;;  %v3025_v23 = vrot.slane %v3023_v8, 5 }
 0x156   : > { %19581 = vmatmul.mubr.msk.bf16.gmra.mrb[12].mxu0 %vm1280_vm4, %v17437_v51  ;;  %v2959_v51 = vrot.slane %v2958_v54, 4  ;;  %v3016_v43 = vrot.slane %v3014_v20, 4  ;;  %v3033_v22 = vshll.u32 %v23621_v62, 16  ;;  %v3400_v62 = vrot.slane %v23489_v29, 5 }
 0x157   : > { %19584 = vmatprep.mubr.msk.bf16.mxu0 %vm1280_vm4, %v17438_v45  ;;  %v2971_v45 = vrot.slane %v2969_v44, 5  ;;  %v2982_v44 = vor.u32 %v2981_v58, %v2977_v25  ;;  %v3404_v38 = vrot.slane %v23470_v18, 5  ;;  %v3411_v29 = vrot.slane %v23513_v5, 5 }
 0x158   : > { %v2964_v56 = vsel %vm22788_vm5, %v2959_v51, %v2963_v1  ;;  %v3029_v1 = vrot.slane %v3027_v33, 4  ;;  %v3007_v51 = vrot.slane %v3006_v17, 4  ;;  %v17464_v17 = vld [vmem:[%s22752_s26 + $0x24] sm:$0xe] }
 0x159   : > { %v2972_v54 = vor.u32 %v2971_v45, %v2968_v24  ;;  %v17442_v14 = vcombine.low %v2954_v35, %v2964_v56  ;;  %v2983_v12 = vrot.slane %v2982_v44, 4  ;;  %v2997_v24 = vrot.slane %v2996_v37, 4  ;;  %v17463_v37 = vld [vmem:[%s22752_s26 + $0x18] sm:$0xe] }
 0x15a   : > { %v3011_v45 = vrot.slane %v3009_v49, 5  ;;  %v3030_v50 = vor.u32 %v3029_v1, %v3025_v23  ;;  %v3035_v44 = vrot.slane %v3033_v22, 5  ;;  %v3413_v18 = vrot.slane %v3411_v29, 4 }
 0x15b   : > { %v2973_v6 = vrot.slane %v2972_v54, 4  ;;  %v2988_v58 = vsel %vm22788_vm5, %v2983_v12, %v2987_v9  ;;  %v3002_v36 = vsel %vm22788_vm5, %v2997_v24, %v3001_v10  ;;  %v3407_v12 = vrot.slane %v23492_v60, 5  ;;  %v17465_v24 = vld [vmem:[%s22752_s26 + $0x30] sm:$0xe] }
 0x15c   : > { %v3012_v28 = vsel %vm22788_vm5, %v3007_v51, %v3011_v45  ;;  %v3031_v54 = vrot.slane %v3030_v50, 4  ;;  %v17480_v9 = vrot.slane %v17464_v17, 9  ;;  %v17466_v51 = vld [vmem:[%s22752_s26 + $0x3c] sm:$0xe]  ;;  %v17640_v45 = vld [vmem:[%s27394_s0 + $0xe] sm:$0x3] }
 0x15d   : > { %v2978_v11 = vsel %vm22788_vm5, %v2973_v6, %v2977_v25  ;;  %v17444_v35 = vcombine.low %v3002_v36, %v3012_v28  ;;  %v3406_v6 = vrot.slane %v3404_v38, 4  ;;  %v17482_v22 = vrot.slane %v17466_v51, 9  ;;  %v17472_v17 = vld [vmem:[%s22752_s26 + $0x84] sm:$0xe] }
 0x15e   : > { %19585 = vmatmul.mubr.msk.bf16.gmra.mrb[16].mxu0 %vm1280_vm4, %v17439_v16  ;;  %v17441_v16 = vcombine.low %v2930_v40, %v2940_v21  ;;  %v3397_v40 = vrot.slane %v23452_v15, 5  ;;  %v17462_v21 = vld [vmem:[%s22752_s26 + $0xc] sm:$0xe]  ;;  %v17443_v25 = vcombine.low %v2978_v11, %v2988_v58  ;;  %v3036_v15 = vsel %vm22788_vm5, %v3031_v54, %v3035_v44  ;;  %v27448_v51 = vld [vmem:[#allocation11_spill] sm:$0xff] }
 0x15f   : > { %19588 = vmatprep.mubr.msk.bf16.mxu0 %vm1280_vm4, %v17440_v27  ;;  %v3020_v27 = vor.u32 %v3019_v41, %v3016_v43  ;;  %v17478_v31 = vrot.slane %v17462_v21, 9  ;;  %v3414_v43 = vrot.slane %v23551_v19, 5  ;;  %v3408_v41 = vsel %vm23094_vm8, %v3406_v6, %v3407_v12  ;;  %v17474_v12 = vld [vmem:[%s22752_s26 + $0x9c] sm:$0xe] }
 0x160   : > { %v3399_v20 = vrot.slane %v3397_v40, 4  ;;  %v3412_v1 = vsel %vm23094_vm8, %v17480_v9, %v3411_v29  ;;  %v3425_v19 = vrot.slane %v23583_v47, 5  ;;  %v3428_v28 = vrot.slane %v23627_v48, 5 }
 0x161   : > { %v3021_v56 = vrot.slane %v3020_v27, 4  ;;  %v3398_v8 = vsel %vm23094_vm8, %v17478_v31, %v3397_v40  ;;  %v3415_v60 = vsel %vm23094_vm8, %v3413_v18, %v3414_v43  ;;  %v17481_v27 = vrot.slane %v17465_v24, 9 }
 0x162   : > { %v3401_v33 = vsel %vm23094_vm8, %v3399_v20, %v3400_v62  ;;  %v17497_v58 = vcombine.low %v3412_v1, %v3415_v60  ;;  %v3427_v36 = vrot.slane %v3425_v19, 4  ;;  %v23870_v40 = vand.u32 %v17640_v45, %v27411_v30  ;;  %v17476_v1 = vld [vmem:[%s22752_s26 + $0xb4] sm:$0xe]  ;;  %v27449_v45 = vld [vmem:[#allocation14_spill] sm:$0xff] }
 0x163   : > { %v3026_v10 = vsel %vm22788_vm5, %v3021_v56, %v3025_v23  ;;  %v3418_v23 = vrot.slane %v23532_v39, 5  ;;  %v3421_v39 = vrot.slane %v23577_v57, 5  ;;  %v3426_v57 = vsel %vm23094_vm8, %v17482_v22, %v3425_v19 }
 0x164   : > { %v17445_v49 = vcombine.low %v3026_v10, %v3036_v15  ;;  %v3429_v48 = vsel %vm23094_vm8, %v3427_v36, %v3428_v28  ;;  %v3442_v20 = vrot.slane %v23674_v2, 5  ;;  %v3453_v62 = vrot.slane %v23690_v61, 5  ;;  %v17470_v10 = vld [vmem:[%s22752_s26 + $0x6c] sm:$0xe]  ;;  %v27454_v36 = vld [vmem:[#allocation17_spill] sm:$0xff]  ;;  %v27455_v28 = vld [vmem:[#allocation18_spill] sm:$0xff] }
 0x165   : > { %v3420_v50 = vrot.slane %v3418_v23, 4  ;;  %v3419_v47 = vsel %vm23094_vm8, %v17481_v27, %v3418_v23  ;;  %v17499_v54 = vcombine.low %v3426_v57, %v3429_v48  ;;  %v27443_v2 = vcombine.low %v23430_v34, %v23435_v7  ;;  %v22344_v57 = vld [vmem:[%s22752_s26 + $0x24] sm:$0xff]   ;;  %v22345_v48 = vld [vmem:[%s22752_s26 + $0x30] sm:$0xff]  }
 0x166   : > { %19589 = vmatmul.mubr.msk.bf16.gmra.mrb[20].mxu0 %vm1280_vm4, %v17441_v16  ;;  %v17495_v16 = vcombine.low %v3398_v8, %v3401_v33  ;;  %v3455_v8 = vrot.slane %v3453_v62, 4  ;;  %v3456_v33 = vrot.slane %v23713_v53, 5  ;;  %v3467_v29 = vrot.slane %v23731_v13, 5 }
 0x167   : > { %19592 = vmatprep.mubr.msk.bf16.mxu0 %vm1280_vm4, %v17442_v14  ;;  %v17479_v14 = vrot.slane %v17463_v37, 9  ;;  %v3422_v21 = vsel %vm23094_vm8, %v3420_v50, %v3421_v39  ;;  %v27444_v34 = vcombine.low %v23457_v63, %v23463_v42  ;;  %v3481_v6 = vrot.slane %v23757_v26, 5  ;;  %v27445_v63 = vld [vmem:[#allocation12_spill] sm:$0xff]  ;;  %v27446_v42 = vld [vmem:[#allocation13_spill] sm:$0xff]  ;;  %v27451_v50 = vld [vmem:[#allocation15_spill] sm:$0xff] }
 0x168   : > { %v17498_v56 = vcombine.low %v3419_v47, %v3422_v21  ;;  %v3457_v61 = vsel %vm23094_vm8, %v3455_v8, %v3456_v33  ;;  %v3469_v53 = vrot.slane %v3467_v29, 4  ;;  %v17490_v18 = vrot.slane %v17474_v12, 9  ;;  %v27452_v39 = vld [vmem:[#allocation16_spill] sm:$0xff]  ;;  %v23994_v33 = vld [vmem:[%s22752_s26 + $0x74] sm:$0x1] }
 0x169   : > { %v3405_v5 = vsel %vm23094_vm8, %v17479_v14, %v3404_v38  ;;  %v17486_v38 = vrot.slane %v17470_v10, 9  ;;  %v3470_v14 = vrot.slane %v23748_v59, 5  ;;  %v3483_v59 = vrot.slane %v3481_v6, 4  ;;  %v17705_v21 = vld [vmem:[%s27394_s0 + $0x10] sm:$0x3]  ;;  %v22349_v10 = vld [vmem:[%s22752_s26 + $0x60] sm:$0xff]  }
 0x16a   : > { %v17496_v11 = vcombine.low %v3405_v5, %v3408_v41  ;;  %v3484_v43 = vrot.slane %v23780_v46, 5  ;;  %v27447_v5 = vcombine.low %v27445_v63, %v27446_v42  ;;  %v3482_v41 = vsel %vm23094_vm8, %v17490_v18, %v3481_v6  ;;  %v23991_v8 = vld [vmem:[%s22752_s26 + $0x70] sm:$0xf]  ;;  %v17595_v6 = vld [vmem:[%s22752_s26 + $0x24] sm:$0xf]  ;;  %s701_s0 = sand.u32 1, %s22552_s30  }
 0x16b   : > { %v3454_v37 = vsel %vm23094_vm8, %v17486_v38, %v3453_v62  ;;  %v3471_v13 = vsel %vm23094_vm8, %v3469_v53, %v3470_v14  ;;  %v3495_v23 = vrot.slane %v23788_v52, 5  ;;  %v17492_v46 = vrot.slane %v17476_v1, 9  ;;  %v22351_v53 = vld [vmem:[%s22752_s26 + $0x78] sm:$0xff]   ;;  %v24019_v18 = vld [vmem:[%s22752_s26 + $0x88] sm:$0xf] }
 0x16c   : > { %v3485_v26 = vsel %vm23094_vm8, %v3483_v59, %v3484_v43  ;;  %v3498_v19 = vrot.slane %v23810_v55, 5  ;;  %v27453_v22 = vcombine.low %v27451_v50, %v27452_v39  ;;  %v22343_v55 = vld [vmem:[%s22752_s26 + $0x18] sm:$0xff]   ;;  %v27456_v47 = vcombine.low %v27454_v36, %v27455_v28  ;;  %v24022_v59 = vld [vmem:[%s22752_s26 + $0x8c] sm:$0x1]  ;;  %v17682_v42 = vld [vmem:[%s22752_s26 + $0x84] sm:$0xe] }
 0x16d   : > { %v17507_v60 = vcombine.low %v3482_v41, %v3485_v26  ;;  %v3497_v24 = vrot.slane %v3495_v23, 4  ;;  %v17592_v14 = vld [vmem:[%s22752_s26 + $0x18] sm:$0xf]  ;;  %v5018_v41 = vrot.slane %v24022_v59, 5  ;;  %v4233_v26 = vshrl.u32 %v17595_v6, 16 }
 0x16e   : > { %19593 = vmatmul.mubr.msk.bf16.gmra.mrb[24].mxu0 %vm1280_vm4, %v17443_v25  ;;  %v3439_v25 = vrot.slane %v23639_v4, 5  ;;  %v4209_v12 = vshrl.u32 %v17592_v14, 16  ;;  %v17698_v1 = vrot.slane %v17682_v42, 9  ;;  %v24052_v28 = vld [vmem:[%s22752_s26 + $0x20] sm:$0x1] }
 0x16f   : > { %19596 = vmatprep.mubr.msk.bf16.mxu0 %vm1280_vm4, %v17444_v35  ;;  %v17468_v35 = vld [vmem:[%s22752_s26 + $0x54] sm:$0xe]  ;;  %v3499_v52 = vsel %vm23094_vm8, %v3497_v24, %v3498_v19  ;;  %v4235_v39 = vrot.slane %v4233_v26, 4  ;;  %v17610_v38 = vld [vmem:[%s22752_s26 + $0x60] sm:$0xf] }
 0x170   : > { %v17484_v44 = vrot.slane %v17468_v35, 9  ;;  %v3441_v31 = vrot.slane %v3439_v25, 4  ;;  %v22346_v35 = vld [vmem:[%s22752_s26 + $0x3c] sm:$0xff]   ;;  %v4211_v24 = vrot.slane %v4209_v12, 4 }
 0x172   : > { %v3443_v4 = vsel %vm23094_vm8, %v3441_v31, %v3442_v20 }
 0x176   : > { %19597 = vmatmul.mubr.msk.bf16.gmra.mrb[28].mxu0 %vm1280_vm4, %v17445_v49  ;;  %v17503_v49 = vcombine.low %v3454_v37, %v3457_v61  ;;  %v5001_v37 = vrot.slane %v23991_v8, 5  ;;  %v5004_v61 = vrot.slane %v23994_v33, 5 }
 0x177   : > { %19602 = vmatprep.mubr.msk.bf16.mxu0 %vm1280_vm4, %v17495_v16  ;;  %v17488_v16 = vrot.slane %v17472_v17, 9 }
 0x178   : > { %v5003_v17 = vrot.slane %v5001_v37, 4 }
 0x179   : > { %v3468_v7 = vsel %vm23094_vm8, %v17488_v16, %v3467_v29 }
 0x17a   : > { %v17505_v9 = vcombine.low %v3468_v7, %v3471_v13  ;;  %v24012_v7 = vld [vmem:[%s22752_s26 + $0x1c] sm:$0xf]  ;;  %v17607_v13 = vld [vmem:[%s22752_s26 + $0x54] sm:$0xf] }
 0x17b   : > { %v4218_v43 = vshll.u32 %v24012_v7, 16  ;;  %v4222_v63 = vshrl.u32 %v24012_v7, 16 }
 0x17e   : > { %19603 = vmatmul.mubr.msk.bf16.vlgmr.msra.gmra.mrb[0].mxu0 %vm1280_vm4, %v17496_v11  ;;  %v27450_v11 = vcombine.low %v27448_v51, %v27449_v45  ;;  %v24032_v51 = vld [vmem:[%s22752_s26 + $0x28] sm:$0xf] }
 0x17f   : > { %19606 = vmatprep.mubr.msk.bf16.mxu0 %vm1280_vm4, %v17497_v58  ;;  %19635 = vmatpush3.bf16.msra.mxu0 %v23695_v3  ;;  %v3440_v3 = vsel %vm23094_vm8, %v17484_v44, %v3439_v25  ;;  %v3496_v58 = vsel %vm23094_vm8, %v17492_v46, %v3495_v23  ;;  %v23958_v25 = vand.u32 %v17705_v21, %v27411_v30  ;;  %v23971_v30 = vld [vmem:[%s22752_s26 + $0x5c] sm:$0x1]  ;;  %v17678_v44 = vld [vmem:[%s22752_s26 + $0x54] sm:$0xe]  ;;  %v4236_v23 = vshll.u32 %v17595_v6, 16  ;;  %v22352_v46 = vld [vmem:[%s22752_s26 + $0x84] sm:$0xff]  }
 0x180   : > { %19668 = vmatprep.subr.bf16.mxu0 %v23870_v40  ;;  %v17501_v15 = vcombine.low %v3440_v3, %v3443_v4  ;;  %v17509_v27 = vcombine.low %v3496_v58, %v3499_v52  ;;  %v17694_v20 = vrot.slane %v17678_v44, 9  ;;  %v22348_v4 = vld [vmem:[%s22752_s26 + $0x54] sm:$0xff]   ;;  %v24039_v58 = vrot.slane %v4218_v43, 5  ;;  %v24061_v44 = vld [vmem:[%s22752_s26 + $0xa0] sm:$0xf] }
 0x181   : > { %v4224_v52 = vrot.slane %v4222_v63, 4  ;;  %v4242_v21 = vshll.u32 %v24032_v51, 16  ;;  %v24079_v6 = vld [vmem:[%s22752_s26 + $0x40] sm:$0xf] }
 0x186   : > { %19607 = vmatmul.mubr.msk.bf16.gmra.mrb[4].mxu0 %vm1280_vm4, %v17498_v56  ;;  %v22347_v56 = vld [vmem:[%s22752_s26 + $0x48] sm:$0xff]  }
 0x187   : > { %19610 = vmatprep.mubr.msk.bf16.mxu0 %vm1280_vm4, %v17499_v54  ;;  %v23968_v54 = vld [vmem:[%s22752_s26 + $0x58] sm:$0xf] }
 0x188   : > { %v4987_v31 = vrot.slane %v23968_v54, 5 }
 0x18a   : > { %v4989_v3 = vrot.slane %v4987_v31, 4  ;;  %v23980_v62 = vsel %vm23094_vm8, %v17694_v20, %v4987_v31  ;;  %v24064_v31 = vld [vmem:[%s22752_s26 + $0xa4] sm:$0x1] }
 0x18e   : > { %19611 = vmatmul.mubr.msk.bf16.gmra.mrb[8].mxu0 %vm1280_vm4, %v27443_v2  ;;  %v17680_v2 = vld [vmem:[%s22752_s26 + $0x6c] sm:$0xe] }
 0x18f   : > { %19614 = vmatprep.mubr.msk.bf16.mxu0 %vm1280_vm4, %v17501_v15  ;;  %v17696_v29 = vrot.slane %v17680_v2, 9  ;;  %v4228_v2 = vshll.u32 %v24052_v28, 16 }
 0x191   : > { %v24003_v16 = vsel %vm23094_vm8, %v17696_v29, %v5001_v37  ;;  %v17601_v29 = vld [vmem:[%s22752_s26 + $0x3c] sm:$0xf] }
 0x196   : > { %19615 = vmatmul.mubr.msk.bf16.gmra.mrb[12].mxu0 %vm1280_vm4, %v27444_v34  ;;  %v24009_v34 = vsel %vm23094_vm8, %v5003_v17, %v5004_v61 }
 0x197   : > { %19618 = vmatprep.mubr.msk.bf16.mxu0 %vm1280_vm4, %v17503_v49  ;;  %v22350_v49 = vld [vmem:[%s22752_s26 + $0x6c] sm:$0xff]   ;;  %27457 = vst [vmem:[#allocation12_spill] sm:$0xff] %v24009_v34 }
 0x19e   : > { %19619 = vmatmul.mubr.msk.bf16.gmra.mrb[16].mxu0 %vm1280_vm4, %v27447_v5  ;;  %v5015_v5 = vrot.slane %v24019_v18, 5 }
 0x19f   : > { %19622 = vmatprep.mubr.msk.bf16.mxu0 %vm1280_vm4, %v17505_v9  ;;  %v4212_v9 = vshll.u32 %v17592_v14, 16 }
 0x1a0   : > { %v24036_v45 = vsel %vm23094_vm8, %v17698_v1, %v5015_v5  ;;  %v4281_v1 = vshrl.u32 %v17601_v29, 16 }
 0x1a1   : > { %v4214_v19 = vrot.slane %v4212_v9, 5  ;;  %27458 = vst [vmem:[#allocation13_spill] sm:$0xff] %v24036_v45  ;;  %v22354_v9 = vld [vmem:[%s22752_s26 + $0x9c] sm:$0xff]  }
 0x1a6   : > { %19623 = vmatmul.mubr.msk.bf16.gmra.mrb[20].mxu0 %vm1280_vm4, %v27450_v11  ;;  %v22353_v11 = vld [vmem:[%s22752_s26 + $0x90] sm:$0xff]  }
 0x1a7   : > { %19626 = vmatprep.mubr.msk.bf16.mxu0 %vm1280_vm4, %v17507_v60  ;;  %v5017_v60 = vrot.slane %v5015_v5, 4 }
 0x1a9   : > { %v24044_v50 = vsel %vm23094_vm8, %v5017_v60, %v5018_v41  ;;  %v22355_v41 = vld [vmem:[%s22752_s26 + $0xa8] sm:$0xff]  }
 0x1aa   : > { %27459 = vst [vmem:[#allocation11_spill] sm:$0xff] %v24044_v50  ;;  %v4356_v50 = vshll.u32 %v17610_v38, 16 }
 0x1ae   : > { %19627 = vmatmul.mubr.msk.bf16.gmra.mrb[24].mxu0 %vm1280_vm4, %v27453_v22  ;;  %v4238_v22 = vrot.slane %v4236_v23, 5 }
 0x1af   : > { %19630 = vmatprep.mubr.msk.bf16.mxu0 %vm1280_vm4, %v17509_v27  ;;  %v17598_v27 = vld [vmem:[%s22752_s26 + $0x30] sm:$0xf] }
 0x1b0   : > { %v4239_v37 = vor.u32 %v4238_v22, %v4235_v39 }
 0x1b2   : > { %v24099_v39 = vrot.slane %v4239_v37, 4 }
 0x1b6   : > { %19631 = vmatmul.mubr.msk.bf16.gmra.mrb[28].mxu0 %vm1280_vm4, %v27456_v47  ;;  %v24055_v47 = vld [vmem:[%s22752_s26 + $0x2c] sm:$0x1] }
 0x1b7   : > { %19636 = vmatprep.mubr.msk.bf16.mxu0 %vm1280_vm4, %v22343_v55  ;;  %v24047_v55 = vld [vmem:[%s22752_s26 + $0x34] sm:$0xf]  ;;  %v4252_v14 = vshll.u32 %v24055_v47, 16  ;;  %v4962_v32 = vrot.slane %v24055_v47, 5 }
 0x1b8   : > { %v4266_v20 = vshll.u32 %v24047_v55, 16  ;;  %v4270_v61 = vshrl.u32 %v24047_v55, 16 }
 0x1b9   : > { %v24101_v22 = vrot.slane %v4252_v14, 5 }
 0x1ba   : > { %v24087_v23 = vrot.slane %v4266_v20, 5  ;;  %v24114_v20 = vld [vmem:[%s22752_s26 + $0xbc] sm:$0x1] }
 0x1bb   : > { %v5046_v37 = vrot.slane %v24114_v20, 5 }
 0x1be   : > { %19637 = vmatmul.mubr.msk.bf16.vlgmr.msra.gmra.mrb[0].mxu0 %vm1280_vm4, %v22344_v57  ;;  %v4246_v57 = vshrl.u32 %v24032_v51, 16 }
 0x1bf   : > { %19640 = vmatprep.mubr.msk.bf16.mxu0 %vm1280_vm4, %v22345_v48  ;;  %19669 = vmatpush3.bf16.msra.mxu0 %v23870_v40  ;;  %v4990_v40 = vrot.slane %v23971_v30, 5  ;;  %v4215_v48 = vor.u32 %v4214_v19, %v4211_v24  ;;  %v4272_v24 = vrot.slane %v4270_v61, 4  ;;  %v4284_v19 = vshll.u32 %v17601_v29, 16 }
 0x1c0   : > { %19702 = vmatprep.subr.bf16.mxu0 %v23958_v25 }
 0x1c1   : > { %v23985_v15 = vsel %vm23094_vm8, %v4989_v3, %v4990_v40  ;;  %v4225_v40 = vor.u32 %v4224_v52, %v24039_v58  ;;  %v17684_v3 = vld [vmem:[%s22752_s26 + $0x9c] sm:$0xe]  ;;  %v4216_v43 = vrot.slane %v4215_v48, 4  ;;  %v4273_v61 = vor.u32 %v4272_v24, %v24087_v23 }
 0x1c2   : > { %v17700_v17 = vrot.slane %v17684_v3, 9  ;;  %v4286_v29 = vrot.slane %v4284_v19, 5 }
 0x1c3   : > { %v4226_v26 = vrot.slane %v4225_v40, 4  ;;  %v24111_v40 = vld [vmem:[%s22752_s26 + $0xb8] sm:$0xf] }
 0x1c6   : > { %19641 = vmatmul.mubr.msk.bf16.gmra.mrb[4].mxu0 %vm1280_vm4, %v22346_v35  ;;  %v4257_v35 = vshrl.u32 %v17598_v27, 16 }
 0x1c7   : > { %19644 = vmatprep.mubr.msk.bf16.mxu0 %vm1280_vm4, %v22347_v56  ;;  %v4260_v56 = vshll.u32 %v17598_v27, 16  ;;  %v4230_v27 = vrot.slane %v4228_v2, 5  ;;  %v5043_v2 = vrot.slane %v24111_v40, 5 }
 0x1c8   : > { %v4259_v63 = vrot.slane %v4257_v35, 4 }
 0x1c9   : > { %v4262_v42 = vrot.slane %v4260_v56, 5  ;;  %v17604_v56 = vld [vmem:[%s22752_s26 + $0x48] sm:$0xf]  ;;  %v4231_v24 = vsel %vm22788_vm5, %v4226_v26, %v4230_v27 }
 0x1ca   : > { %v4308_v19 = vshll.u32 %v17604_v56, 16 }
 0x1cb   : > { %v4263_v35 = vor.u32 %v4262_v42, %v4259_v63  ;;  %v4305_v63 = vshrl.u32 %v17604_v56, 16  ;;  %v5045_v42 = vrot.slane %v5043_v2, 4 }
 0x1cd   : > { %v24141_v52 = vrot.slane %v4263_v35, 4  ;;  %v24154_v35 = vrot.slane %v4273_v61, 4  ;;  %v24168_v61 = vld [vmem:[%s22752_s26 + $0xd4] sm:$0x1] }
 0x1ce   : > { %19645 = vmatmul.mubr.msk.bf16.gmra.mrb[8].mxu0 %vm1280_vm4, %v22348_v4  ;;  %v5029_v4 = vrot.slane %v24061_v44, 5 }
 0x1cf   : > { %19648 = vmatprep.mubr.msk.bf16.mxu0 %vm1280_vm4, %v22349_v10  ;;  %v5032_v10 = vrot.slane %v24064_v31, 5 }
 0x1d0   : > { %v5031_v12 = vrot.slane %v5029_v4, 4  ;;  %v24084_v5 = vsel %vm23094_vm8, %v17700_v17, %v5029_v4  ;;  %v4283_v4 = vrot.slane %v4281_v1, 4  ;;  %v4221_v1 = vsel %vm22788_vm5, %v4216_v43, %v24039_v58 }
 0x1d1   : > { %27460 = vst [vmem:[#allocation14_spill] sm:$0xff] %v24084_v5  ;;  %v24148_v58 = vsel %vm23094_vm8, %v5045_v42, %v5046_v37  ;;  %v17641_v37 = vcombine.low %v4221_v1, %v4231_v24  ;;  %v24165_v42 = vld [vmem:[%s22752_s26 + $0xd0] sm:$0xf]  ;;  %v5060_v24 = vrot.slane %v24168_v61, 5 }
 0x1d2   : > { %v24091_v60 = vsel %vm23094_vm8, %v5031_v12, %v5032_v10  ;;  %v17686_v10 = vld [vmem:[%s22752_s26 + $0xb4] sm:$0xe]  ;;  %27463 = vst [vmem:[#allocation17_spill] sm:$0xff] %v24148_v58  ;;  %v4287_v43 = vor.u32 %v4286_v29, %v4283_v4  ;;  %v4310_v29 = vrot.slane %v4308_v19, 5  ;;  %v5057_v1 = vrot.slane %v24165_v42, 5 }
 0x1d3   : > { %27461 = vst [vmem:[#allocation15_spill] sm:$0xff] %v24091_v60  ;;  %v22358_v60 = vld [vmem:[%s22752_s26 + $0xcc] sm:$0xff]  }
 0x1d6   : > { %19649 = vmatmul.mubr.msk.bf16.gmra.mrb[12].mxu0 %vm1280_vm4, %v22350_v49  ;;  %v24075_v49 = vrot.slane %v4242_v21, 5  ;;  %v24104_v21 = vld [vmem:[%s22752_s26 + $0x44] sm:$0x1] }
 0x1d7   : > { %19652 = vmatprep.mubr.msk.bf16.mxu0 %vm1280_vm4, %v22351_v53  ;;  %v4248_v53 = vrot.slane %v4246_v57, 4  ;;  %v4294_v57 = vshrl.u32 %v24079_v6, 16  ;;  %v4300_v12 = vshll.u32 %v24104_v21, 16 }
 0x1d9   : > { %v4249_v48 = vor.u32 %v4248_v53, %v24075_v49  ;;  %v17702_v53 = vrot.slane %v17686_v10, 9  ;;  %v4296_v14 = vrot.slane %v4294_v57, 4  ;;  %v22357_v57 = vld [vmem:[%s22752_s26 + $0xc0] sm:$0xff]  }
 0x1db   : > { %v24139_v10 = vrot.slane %v4249_v48, 4  ;;  %v4332_v48 = vshll.u32 %v17607_v13, 16 }
 0x1dd   : > { %v24217_v45 = vrot.slane %v4332_v48, 5 }
 0x1de   : > { %19653 = vmatmul.mubr.msk.bf16.gmra.mrb[16].mxu0 %vm1280_vm4, %v22352_v46  ;;  %v24094_v46 = vld [vmem:[%s22752_s26 + $0x38] sm:$0x1] }
 0x1df   : > { %19656 = vmatprep.mubr.msk.bf16.mxu0 %vm1280_vm4, %v22353_v11  ;;  %v4290_v11 = vshll.u32 %v24079_v6, 16  ;;  %v4276_v3 = vshll.u32 %v24094_v46, 16 }
 0x1e1   : > { %v24122_v17 = vrot.slane %v4290_v11, 5  ;;  %v24136_v11 = vsel %vm23094_vm8, %v17702_v53, %v5043_v2  ;;  %v24143_v36 = vrot.slane %v4276_v3, 5  ;;  %v24157_v3 = vrot.slane %v4300_v12, 5 }
 0x1e2   : > { %27462 = vst [vmem:[#allocation16_spill] sm:$0xff] %v24136_v11  ;;  %v4307_v2 = vrot.slane %v4305_v63, 4  ;;  %v4329_v53 = vshrl.u32 %v17607_v13, 16  ;;  %v24180_v63 = vld [vmem:[%s22752_s26 + $0x50] sm:$0x1]  ;;  %v5059_v11 = vrot.slane %v5057_v1, 4 }
 0x1e3   : > { %v4297_v56 = vor.u32 %v4296_v14, %v24122_v17  ;;  %v24194_v14 = vrot.slane %v4287_v43, 4  ;;  %v24202_v13 = vld [vmem:[%s22752_s26 + $0x64] sm:$0xf]  ;;  %v4342_v12 = vshrl.u32 %v23968_v54, 16  ;;  %v4353_v43 = vshrl.u32 %v17610_v38, 16 }
 0x1e4   : > { %v4311_v5 = vor.u32 %v4310_v29, %v4307_v2  ;;  %v24215_v29 = vrot.slane %v4329_v53, 4  ;;  %v24232_v53 = vld [vmem:[%s22752_s26 + $0x6c] sm:$0xf] }
 0x1e5   : > { %v24196_v58 = vrot.slane %v4297_v56, 4  ;;  %v24211_v56 = vsel %vm23094_vm8, %v5059_v11, %v5060_v24  ;;  %v4362_v11 = vshll.u32 %v24202_v13, 16  ;;  %v27308_v24 = vmov 0.0  }
 0x1e6   : > { %19657 = vmatmul.mubr.msk.bf16.gmra.mrb[20].mxu0 %vm1280_vm4, %v22354_v9  ;;  %v24126_v9 = vld [vmem:[%s22752_s26 + $0x4c] sm:$0xf]  ;;  %v24235_v48 = vrot.slane %v4311_v5, 4  ;;  %717 = vst.msk [vmem:[#allocation2 + $0x30] sm:$0xff] %vm709_vm9, %v27308_v24  ;;  %718 = vst.msk [vmem:[#allocation2 + $0x38] sm:$0xff] %vm709_vm9, %v27308_v24  ;;  %v4335_v5 = vor.u32 %v24217_v45, %v24215_v29 }
 0x1e7   : > { %19660 = vmatprep.mubr.msk.bf16.mxu0 %vm1280_vm4, %v22355_v41  ;;  %v22356_v41 = vld [vmem:[%s22752_s26 + $0xb4] sm:$0xff]   ;;  %v4314_v26 = vshll.u32 %v24126_v9, 16  ;;  %v4318_v27 = vshrl.u32 %v24126_v9, 16  ;;  %v4303_v38 = vsel %vm22788_vm5, %v24196_v58, %v24157_v3  ;;  %v24244_v58 = vrot.slane %v4353_v43, 4  ;;  %710 = vst.msk [vmem:[#allocation2] sm:$0xff] %vm709_vm9, %v27308_v24  ;;  %711 = vst.msk [vmem:[#allocation2 + $0x8] sm:$0xff] %vm709_vm9, %v27308_v24 }
 0x1e8   : > { %v24246_v3 = vrot.slane %v4356_v50, 5  ;;  %714 = vst.msk [vmem:[#allocation2 + $0x18] sm:$0xff] %vm709_vm9, %v27308_v24  ;;  %715 = vst.msk [vmem:[#allocation2 + $0x20] sm:$0xff] %vm709_vm9, %v27308_v24  ;;  %v24337_v43 = vrot.slane %v4362_v11, 5  ;;  %v17616_v11 = vld [vmem:[%s22752_s26 + $0x78] sm:$0xf] }
 0x1e9   : > { %v24185_v19 = vrot.slane %v4314_v26, 5  ;;  %v4324_v26 = vshll.u32 %v24180_v63, 16  ;;  %720 = vst.msk [vmem:[#allocation2 + $0x48] sm:$0xff] %vm709_vm9, %v27308_v24  ;;  %721 = vst.msk [vmem:[#allocation2 + $0x50] sm:$0xff] %vm709_vm9, %v27308_v24 }
 0x1ea   : > { %723 = vst.msk [vmem:[#allocation2 + $0x60] sm:$0xff] %vm709_vm9, %v27308_v24  ;;  %724 = vst.msk [vmem:[#allocation2 + $0x68] sm:$0xff] %vm709_vm9, %v27308_v24 }
 0x1eb   : > { %726 = vst.msk [vmem:[#allocation2 + $0x78] sm:$0xff] %vm709_vm9, %v27308_v24  ;;  %727 = vst.msk [vmem:[#allocation2 + $0x80] sm:$0xff] %vm709_vm9, %v27308_v24 }
 0x1ec   : > { %729 = vst.msk [vmem:[#allocation2 + $0x90] sm:$0xff] %vm709_vm9, %v27308_v24  ;;  %730 = vst.msk [vmem:[#allocation2 + $0x98] sm:$0xff] %vm709_vm9, %v27308_v24 }
 0x1ed   : > { %732 = vst.msk [vmem:[#allocation2 + $0xa8] sm:$0xff] %vm709_vm9, %v27308_v24  ;;  %733 = vst.msk [vmem:[#allocation2 + $0xb0] sm:$0xff] %vm709_vm9, %v27308_v24 }
 0x1ee   : > { %19661 = vmatmul.mubr.msk.bf16.gmra.mrb[24].mxu0 %vm1280_vm4, %v22356_v41  ;;  %v17688_v41 = vld [vmem:[%s22752_s26 + $0xcc] sm:$0xe]  ;;  %735 = vst.msk [vmem:[#allocation2 + $0xc0] sm:$0xff] %vm709_vm9, %v27308_v24  ;;  %736 = vst.msk [vmem:[#allocation2 + $0xc8] sm:$0xff] %vm709_vm9, %v27308_v24 }
 0x1ef   : > { %19664 = vmatprep.mubr.msk.bf16.mxu0 %vm1280_vm4, %v22357_v57  ;;  %v24187_v57 = vrot.slane %v4318_v27, 4  ;;  %v17704_v4 = vrot.slane %v17688_v41, 9  ;;  %v4338_v27 = vshll.u32 %v23968_v54, 16  ;;  %v4293_v54 = vsel %vm22788_vm5, %v24194_v14, %v24122_v17  ;;  %738 = vst.msk [vmem:[#allocation2 + $0xd8] sm:$0xff] %vm709_vm9, %v27308_v24  ;;  %739 = vst.msk [vmem:[#allocation2 + $0xe0] sm:$0xff] %vm709_vm9, %v27308_v24 }
 0x1f0   : > { %v24242_v14 = vrot.slane %v4342_v12, 4  ;;  %741 = vst.msk [vmem:[#allocation2 + $0xf0] sm:$0xff] %vm709_vm9, %v27308_v24  ;;  %742 = vst.msk [vmem:[#allocation2 + $0xf8] sm:$0xff] %vm709_vm9, %v27308_v24  ;;  %v4377_v12 = vshrl.u32 %v24232_v53, 16  ;;  %v17644_v29 = vcombine.low %v4293_v54, %v4303_v38  ;;  %v4336_v54 = vrot.slane %v4335_v5, 4 }
 0x1f1   : > { %v24206_v41 = vsel %vm23094_vm8, %v17704_v4, %v5057_v1  ;;  %v4321_v2 = vor.u32 %v24187_v57, %v24185_v19  ;;  %v4366_v4 = vshrl.u32 %v24202_v13, 16  ;;  %v24237_v1 = vrot.slane %v4324_v26, 5  ;;  %744 = vst.msk [vmem:[#allocation2 + $0x108] sm:$0xff] %vm709_vm9, %v27308_v24  ;;  %745 = vst.msk [vmem:[#allocation2 + $0x110] sm:$0xff] %vm709_vm9, %v27308_v24 }
 0x1f2   : > { %v17721_v34 = vcombine.low %v24206_v41, %v24211_v56  ;;  %v24240_v17 = vrot.slane %v4338_v27, 5  ;;  %747 = vst.msk [vmem:[#allocation2 + $0x120] sm:$0xff] %vm709_vm9, %v27308_v24  ;;  %748 = vst.msk [vmem:[#allocation2 + $0x128] sm:$0xff] %vm709_vm9, %v27308_v24  ;;  %v27464_v57 = vsel %vm22788_vm5, %v24139_v10, %v24101_v22  ;;  %v27465_v26 = vsel %vm22788_vm5, %v24099_v39, %v24075_v49  ;;  %v5510_v41 = vld [vmem:[#allocation2 + $0x1] sm:$0xff] }
 0x1f3   : > { %750 = vst.msk [vmem:[#allocation2 + $0x138] sm:$0xff] %vm709_vm9, %v27308_v24  ;;  %751 = vst.msk [vmem:[#allocation2 + $0x140] sm:$0xff] %vm709_vm9, %v27308_v24  ;;  %v4322_v50 = vrot.slane %v4321_v2, 4  ;;  %v17642_v27 = vcombine.low %v27465_v26, %v27464_v57  ;;  %v4368_v45 = vrot.slane %v4366_v4, 4  ;;  %v27466_v2 = vsel %vm22788_vm5, %v24154_v35, %v24143_v36 }
 0x1f4   : > { %753 = vst.msk [vmem:[#allocation2 + $0x150] sm:$0xff] %vm709_vm9, %v27308_v24  ;;  %754 = vst.msk [vmem:[#allocation2 + $0x158] sm:$0xff] %vm709_vm9, %v27308_v24  ;;  %v27467_v22 = vsel %vm22788_vm5, %v24141_v52, %v24087_v23  ;;  %v4386_v49 = vshll.u32 %v23991_v8, 16  ;;  %v4390_v39 = vshrl.u32 %v23991_v8, 16  ;;  %v4317_v4 = vsel %vm22788_vm5, %v24235_v48, %v24185_v19  ;;  %v24363_v52 = vld [vmem:[%s22752_s26 + $0x7c] sm:$0xf] }
 0x1f5   : > { %756 = vst.msk [vmem:[#allocation2 + $0x168] sm:$0xff] %vm709_vm9, %v27308_v24  ;;  %757 = vst.msk [vmem:[#allocation2 + $0x170] sm:$0xff] %vm709_vm9, %v27308_v24  ;;  %v17643_v10 = vcombine.low %v27467_v22, %v27466_v2  ;;  %v4345_v36 = vor.u32 %v24242_v14, %v24240_v17  ;;  %v4359_v35 = vor.u32 %v24246_v3, %v24244_v58  ;;  %v4401_v48 = vshrl.u32 %v17616_v11, 16  ;;  %v17619_v14 = vld [vmem:[%s22752_s26 + $0x84] sm:$0xf] }
 0x1f6   : > { %19665 = vmatmul.mubr.msk.bf16.gmra.mrb[28].mxu0 %vm1280_vm4, %v22358_v60  ;;  %759 = vst.msk [vmem:[#allocation2 + $0x180] sm:$0xff] %vm709_vm9, %v27308_v24  ;;  %760 = vst.msk [vmem:[#allocation2 + $0x188] sm:$0xff] %vm709_vm9, %v27308_v24  ;;  %v4348_v60 = vshll.u32 %v23971_v30, 16  ;;  %v4380_v30 = vshll.u32 %v24232_v53, 16  ;;  %v4327_v8 = vsel %vm22788_vm5, %v4322_v50, %v24237_v1  ;;  %v4379_v53 = vrot.slane %v4377_v12, 4 }
 0x1f7   : > { %19670 = vmatprep.mubr.msk.bf16.mxu0 %vm1280_vm4, %v17641_v37  ;;  %762 = vst.msk [vmem:[#allocation2 + $0x198] sm:$0xff] %vm709_vm9, %v27308_v24  ;;  %763 = vst.msk [vmem:[#allocation2 + $0x1a0] sm:$0xff] %vm709_vm9, %v27308_v24  ;;  %v24324_v37 = vld [vmem:[%s22752_s26 + $0x68] sm:$0x1]  ;;  %v4369_v57 = vor.u32 %v4368_v45, %v24337_v43  ;;  %v4404_v26 = vshll.u32 %v17616_v11, 16  ;;  %v24371_v58 = vrot.slane %v4386_v49, 5  ;;  %v17645_v24 = vcombine.low %v4317_v4, %v4327_v8 }
 0x1f8   : > { %v4372_v23 = vshll.u32 %v24324_v37, 16  ;;  %v4350_v38 = vrot.slane %v4348_v60, 5  ;;  %v4382_v19 = vrot.slane %v4380_v30, 5  ;;  %v4392_v3 = vrot.slane %v4390_v39, 4  ;;  %v17622_v4 = vld [vmem:[%s22752_s26 + $0x90] sm:$0xf] }
 0x1f9   : > { %v4410_v2 = vshll.u32 %v24363_v52, 16  ;;  %v4414_v22 = vshrl.u32 %v24363_v52, 16  ;;  %v4346_v1 = vrot.slane %v4345_v36, 4  ;;  %v4360_v50 = vrot.slane %v4359_v35, 4  ;;  %v24382_v35 = vld [vmem:[%s22752_s26 + $0x80] sm:$0x1] }
 0x1fa   : > { %v4374_v5 = vrot.slane %v4372_v23, 5  ;;  %v4396_v60 = vshll.u32 %v23994_v33, 16  ;;  %v4425_v12 = vshrl.u32 %v17619_v14, 16  ;;  %v4428_v45 = vshll.u32 %v17619_v14, 16  ;;  %v24400_v14 = vld [vmem:[%s22752_s26 + $0x94] sm:$0xf] }
 0x1fb   : > { %v4438_v30 = vshrl.u32 %v24019_v18, 16  ;;  %v4370_v49 = vrot.slane %v4369_v57, 4  ;;  %v4383_v39 = vor.u32 %v4382_v19, %v4379_v53  ;;  %v4403_v11 = vrot.slane %v4401_v48, 4 }
 0x1fc   : > { %v4393_v36 = vor.u32 %v4392_v3, %v24371_v58  ;;  %v24384_v33 = vrot.slane %v4410_v2, 5  ;;  %v4341_v23 = vsel %vm22788_vm5, %v4336_v54, %v24240_v17  ;;  %v4365_v53 = vsel %vm22788_vm5, %v4360_v50, %v24337_v43 }
 0x1fd   : > { %v24394_v57 = vrot.slane %v4396_v60, 5  ;;  %v4427_v8 = vrot.slane %v4425_v12, 4  ;;  %v4430_v19 = vrot.slane %v4428_v45, 5  ;;  %v4375_v17 = vsel %vm22788_vm5, %v4370_v49, %v4374_v5 }
 0x1fe   : > { %19671 = vmatmul.mubr.msk.bf16.vlgmr.msra.gmra.mrb[0].mxu0 %vm1280_vm4, %v17642_v27  ;;  %v4434_v27 = vshll.u32 %v24019_v18, 16  ;;  %v4351_v18 = vsel %vm22788_vm5, %v4346_v1, %v4350_v38  ;;  %v4384_v54 = vrot.slane %v4383_v39, 4  ;;  %v4420_v3 = vshll.u32 %v24382_v35, 16 }
 0x1ff   : > { %19674 = vmatprep.mubr.msk.bf16.mxu0 %vm1280_vm4, %v17643_v10  ;;  %19703 = vmatpush3.bf16.msra.mxu0 %v23958_v25  ;;  %v4406_v10 = vrot.slane %v4404_v26, 5  ;;  %v4416_v25 = vrot.slane %v4414_v22, 4  ;;  %v4440_v26 = vrot.slane %v4438_v30, 4  ;;  %v4394_v43 = vrot.slane %v4393_v36, 4 }
 0x200   : > { %v24397_v48 = vrot.slane %v4434_v27, 5  ;;  %v4449_v22 = vshrl.u32 %v17622_v4, 16  ;;  %v4452_v1 = vshll.u32 %v17622_v4, 16  ;;  %v4458_v50 = vshll.u32 %v24400_v14, 16  ;;  %19736 = vmatprep.subr.bf16.mxu0 %v22359_v0 }
 0x201   : > { %v4407_v38 = vor.u32 %v4406_v10, %v4403_v11  ;;  %v4417_v2 = vor.u32 %v4416_v25, %v24384_v33  ;;  %v4462_v5 = vshrl.u32 %v24400_v14, 16  ;;  %v17646_v60 = vcombine.low %v4341_v23, %v4351_v18  ;;  %v24417_v11 = vld [vmem:[%s22752_s26 + $0x98] sm:$0x1]  ;;  %v17628_v18 = vld [vmem:[%s22752_s26 + $0xa8] sm:$0xf] }
 0x202   : > { %v4431_v12 = vor.u32 %v4430_v19, %v4427_v8  ;;  %v4441_v45 = vor.u32 %v4440_v26, %v24397_v48  ;;  %v4444_v27 = vshll.u32 %v24022_v59, 16  ;;  %v17647_v30 = vcombine.low %v4365_v53, %v4375_v17  ;;  %v24426_v19 = vld [vmem:[%s22752_s26 + $0xac] sm:$0xf] }
 0x203   : > { %v4389_v49 = vsel %vm22788_vm5, %v4384_v54, %v24371_v58  ;;  %v4408_v39 = vrot.slane %v4407_v38, 4  ;;  %v4399_v10 = vsel %vm22788_vm5, %v4394_v43, %v24394_v57  ;;  %v4418_v36 = vrot.slane %v4417_v2, 4 }
 0x204   : > { %v4451_v25 = vrot.slane %v4449_v22, 4  ;;  %v4454_v23 = vrot.slane %v4452_v1, 5  ;;  %v24423_v59 = vrot.slane %v4458_v50, 5  ;;  %v4464_v4 = vrot.slane %v4462_v5, 4 }
 0x205   : > { %v4432_v58 = vrot.slane %v4431_v12, 4  ;;  %v4442_v26 = vrot.slane %v4441_v45, 4  ;;  %v4446_v17 = vrot.slane %v4444_v27, 5  ;;  %v4468_v54 = vshll.u32 %v24417_v11, 16 }
 0x206   : > { %19675 = vmatmul.mubr.msk.bf16.gmra.mrb[4].mxu0 %vm1280_vm4, %v17644_v29  ;;  %v17625_v29 = vld [vmem:[%s22752_s26 + $0x9c] sm:$0xf]  ;;  %v4482_v38 = vshll.u32 %v24061_v44, 16  ;;  %v4486_v57 = vshrl.u32 %v24061_v44, 16  ;;  %v4500_v43 = vshll.u32 %v17628_v18, 16  ;;  %v4413_v2 = vsel %vm22788_vm5, %v4408_v39, %v24384_v33 }
 0x207   : > { %19678 = vmatprep.mubr.msk.bf16.mxu0 %vm1280_vm4, %v17645_v24  ;;  %v4422_v24 = vrot.slane %v4420_v3, 5  ;;  %v4473_v53 = vshrl.u32 %v17625_v29, 16  ;;  %v4476_v8 = vshll.u32 %v17625_v29, 16  ;;  %v4497_v3 = vshrl.u32 %v17628_v18, 16 }
 0x208   : > { %v4506_v1 = vshll.u32 %v24426_v19, 16  ;;  %v4510_v50 = vshrl.u32 %v24426_v19, 16  ;;  %v4455_v5 = vor.u32 %v4454_v23, %v4451_v25  ;;  %v4465_v44 = vor.u32 %v4464_v4, %v24423_v59  ;;  %v24449_v23 = vld [vmem:[%s22752_s26 + $0xb0] sm:$0x1] }
 0x209   : > { %v4423_v22 = vsel %vm22788_vm5, %v4418_v36, %v4422_v24  ;;  %v4475_v12 = vrot.slane %v4473_v53, 4  ;;  %v4437_v33 = vsel %vm22788_vm5, %v4432_v58, %v24397_v48  ;;  %v4447_v45 = vsel %vm22788_vm5, %v4442_v26, %v4446_v17  ;;  %v17631_v53 = vld [vmem:[%s22752_s26 + $0xb4] sm:$0xf] }
 0x20a   : > { %v4470_v27 = vrot.slane %v4468_v54, 5  ;;  %v24446_v29 = vrot.slane %v4482_v38, 5  ;;  %v4488_v39 = vrot.slane %v4486_v57, 4  ;;  %v4499_v24 = vrot.slane %v4497_v3, 4 }
 0x20b   : > { %v4502_v36 = vrot.slane %v4500_v43, 5  ;;  %v17649_v25 = vcombine.low %v4413_v2, %v4423_v22  ;;  %v4508_v18 = vrot.slane %v4506_v1, 5  ;;  %v4512_v4 = vrot.slane %v4510_v50, 4 }
 0x20c   : > { %v4466_v48 = vrot.slane %v4465_v44, 4  ;;  %v4492_v26 = vshll.u32 %v24064_v31, 16  ;;  %v17650_v17 = vcombine.low %v4437_v33, %v4447_v45  ;;  %v4489_v54 = vor.u32 %v4488_v39, %v24446_v29 }
 0x20d   : > { %v4503_v38 = vor.u32 %v4502_v36, %v4499_v24  ;;  %v4516_v57 = vshll.u32 %v24449_v23, 16  ;;  %v4521_v3 = vshrl.u32 %v17631_v53, 16  ;;  %v4513_v43 = vor.u32 %v4512_v4, %v4508_v18 }
 0x20e   : > { %19679 = vmatmul.mubr.msk.bf16.gmra.mrb[8].mxu0 %vm1280_vm4, %v17646_v60  ;;  %v4478_v60 = vrot.slane %v4476_v8, 5  ;;  %v4456_v8 = vrot.slane %v4455_v5, 4  ;;  %v4524_v2 = vshll.u32 %v17631_v53, 16  ;;  %v4530_v22 = vshll.u32 %v24111_v40, 16 }
 0x20f   : > { %19682 = vmatprep.mubr.msk.bf16.mxu0 %vm1280_vm4, %v17647_v30  ;;  %v17648_v30 = vcombine.low %v4389_v49, %v4399_v10  ;;  %v17634_v49 = vld [vmem:[%s22752_s26 + $0xc0] sm:$0xf]  ;;  %v24457_v10 = vld [vmem:[%s22752_s26 + $0xc4] sm:$0xf]  ;;  %v4534_v1 = vshrl.u32 %v24111_v40, 16  ;;  %v4471_v50 = vsel %vm22788_vm5, %v4466_v48, %v4470_v27  ;;  %v4494_v44 = vrot.slane %v4492_v26, 5 }
 0x210   : > { %v4479_v58 = vor.u32 %v4478_v60, %v4475_v12  ;;  %v4461_v31 = vsel %vm22788_vm5, %v4456_v8, %v24423_v59  ;;  %v4545_v12 = vshrl.u32 %v17634_v49, 16  ;;  %v4548_v60 = vshll.u32 %v17634_v49, 16  ;;  %v17637_v26 = vld [vmem:[%s22752_s26 + $0xcc] sm:$0xf] }
 0x211   : > { %v4554_v33 = vshll.u32 %v24457_v10, 16  ;;  %v4558_v45 = vshrl.u32 %v24457_v10, 16  ;;  %v4490_v39 = vrot.slane %v4489_v54, 4  ;;  %v4504_v40 = vrot.slane %v4503_v38, 4 }
 0x212   : > { %v4480_v5 = vrot.slane %v4479_v58, 4  ;;  %v4518_v24 = vrot.slane %v4516_v57, 5  ;;  %v4523_v36 = vrot.slane %v4521_v3, 4  ;;  %v4532_v59 = vrot.slane %v4530_v22, 5  ;;  %v24479_v57 = vld [vmem:[%s22752_s26 + $0xc8] sm:$0x1] }
 0x213   : > { %v4536_v4 = vrot.slane %v4534_v1, 4  ;;  %v17651_v53 = vcombine.low %v4461_v31, %v4471_v50  ;;  %v4547_v27 = vrot.slane %v4545_v12, 4  ;;  %v4550_v8 = vrot.slane %v4548_v60, 5 }
 0x214   : > { %v4556_v48 = vrot.slane %v4554_v33, 5  ;;  %v4560_v58 = vrot.slane %v4558_v45, 4  ;;  %v4485_v49 = vsel %vm22788_vm5, %v4480_v5, %v24446_v29  ;;  %v4495_v54 = vsel %vm22788_vm5, %v4490_v39, %v4494_v44 }
 0x215   : > { %v4509_v38 = vsel %vm22788_vm5, %v4504_v40, %v4508_v18  ;;  %v4540_v22 = vshll.u32 %v24114_v20, 16  ;;  %v4569_v29 = vshrl.u32 %v17637_v26, 16  ;;  %v4572_v1 = vshll.u32 %v17637_v26, 16 }
 0x216   : > { %19683 = vmatmul.mubr.msk.bf16.gmra.mrb[12].mxu0 %vm1280_vm4, %v17648_v30  ;;  %v4514_v30 = vrot.slane %v4513_v43, 4  ;;  %v4578_v31 = vshll.u32 %v24165_v42, 16  ;;  %v4582_v50 = vshrl.u32 %v24165_v42, 16  ;;  %v4551_v18 = vor.u32 %v4550_v8, %v4547_v27 }
 0x217   : > { %19686 = vmatprep.mubr.msk.bf16.mxu0 %vm1280_vm4, %v17649_v25  ;;  %v4526_v25 = vrot.slane %v4524_v2, 5  ;;  %v4537_v2 = vor.u32 %v4536_v4, %v4532_v59  ;;  %v4561_v5 = vor.u32 %v4560_v58, %v4556_v48  ;;  %v4564_v44 = vshll.u32 %v24479_v57, 16 }
 0x218   : > { %v4519_v3 = vsel %vm22788_vm5, %v4514_v30, %v4518_v24  ;;  %v4542_v45 = vrot.slane %v4540_v22, 5  ;;  %v4571_v39 = vrot.slane %v4569_v29, 4  ;;  %v4574_v40 = vrot.slane %v4572_v1, 5 }
 0x219   : > { %v4527_v43 = vor.u32 %v4526_v25, %v4523_v36  ;;  %v17653_v12 = vcombine.low %v4509_v38, %v4519_v3  ;;  %v4538_v33 = vrot.slane %v4537_v2, 4  ;;  %v4580_v20 = vrot.slane %v4578_v31, 5 }
 0x21a   : > { %v4584_v24 = vrot.slane %v4582_v50, 4  ;;  %v4552_v36 = vrot.slane %v4551_v18, 4  ;;  %v4562_v30 = vrot.slane %v4561_v5, 4  ;;  %v4566_v25 = vrot.slane %v4564_v44, 5  ;;  %v17674_v18 = vld [vmem:[%s22752_s26 + $0x24] sm:$0xe] }
 0x21b   : > { %v4528_v60 = vrot.slane %v4527_v43, 4  ;;  %v4543_v4 = vsel %vm22788_vm5, %v4538_v33, %v4542_v45  ;;  %v4588_v8 = vshll.u32 %v24168_v61, 16  ;;  %v4955_v61 = vrot.slane %v24052_v28, 5  ;;  %v17675_v5 = vld [vmem:[%s22752_s26 + $0x30] sm:$0xe] }
 0x21c   : > { %v4585_v27 = vor.u32 %v4584_v24, %v4580_v20  ;;  %v4557_v58 = vsel %vm22788_vm5, %v4552_v36, %v4556_v48  ;;  %v4567_v26 = vsel %vm22788_vm5, %v4562_v30, %v4566_v25  ;;  %v4959_v1 = vrot.slane %v24032_v51, 5  ;;  %v17676_v24 = vld [vmem:[%s22752_s26 + $0x3c] sm:$0xe]  ;;  %v17677_v36 = vld [vmem:[%s22752_s26 + $0x48] sm:$0xe] }
 0x21d   : > { %v4533_v42 = vsel %vm22788_vm5, %v4528_v60, %v4532_v59  ;;  %v17655_v38 = vcombine.low %v4557_v58, %v4567_v26  ;;  %v4590_v2 = vrot.slane %v4588_v8, 5  ;;  %v4966_v28 = vrot.slane %v24047_v55, 5 }
 0x21e   : > { %19687 = vmatmul.mubr.msk.bf16.gmra.mrb[16].mxu0 %vm1280_vm4, %v17650_v17  ;;  %v17652_v17 = vcombine.low %v4485_v49, %v4495_v54  ;;  %v4952_v49 = vrot.slane %v24012_v7, 5  ;;  %v17673_v54 = vld [vmem:[%s22752_s26 + $0x18] sm:$0xe]  ;;  %v17654_v59 = vcombine.low %v4533_v42, %v4543_v4  ;;  %v4586_v43 = vrot.slane %v4585_v27, 4 }
 0x21f   : > { %19690 = vmatprep.mubr.msk.bf16.mxu0 %vm1280_vm4, %v17651_v53  ;;  %v4575_v53 = vor.u32 %v4574_v40, %v4571_v39  ;;  %v17689_v22 = vrot.slane %v17673_v54, 9  ;;  %v4961_v60 = vrot.slane %v4959_v1, 4  ;;  %v17691_v33 = vrot.slane %v17675_v5, 9 }
 0x220   : > { %v4954_v29 = vrot.slane %v4952_v49, 4  ;;  %v4591_v7 = vsel %vm22788_vm5, %v4586_v43, %v4590_v2  ;;  %v4968_v51 = vrot.slane %v4966_v28, 4  ;;  %v4969_v45 = vrot.slane %v24094_v46, 5 }
 0x221   : > { %v4576_v3 = vrot.slane %v4575_v53, 4  ;;  %v4953_v31 = vsel %vm23094_vm8, %v17689_v22, %v4952_v49  ;;  %v4963_v39 = vsel %vm23094_vm8, %v4961_v60, %v4962_v32  ;;  %v4973_v40 = vrot.slane %v24079_v6, 5  ;;  %v17685_v60 = vld [vmem:[%s22752_s26 + $0xa8] sm:$0xe] }
 0x222   : > { %v4956_v50 = vsel %vm23094_vm8, %v4954_v29, %v4955_v61  ;;  %v4970_v47 = vsel %vm23094_vm8, %v4968_v51, %v4969_v45  ;;  %v4980_v46 = vrot.slane %v24126_v9, 5  ;;  %v17692_v42 = vrot.slane %v17676_v24, 9  ;;  %v17681_v29 = vld [vmem:[%s22752_s26 + $0x78] sm:$0xe]  ;;  %v27472_v45 = vld [vmem:[#allocation11_spill] sm:$0xff] }
 0x223   : > { %v4581_v48 = vsel %vm22788_vm5, %v4576_v3, %v4580_v20  ;;  %v4967_v20 = vsel %vm23094_vm8, %v17691_v33, %v4966_v28  ;;  %v4975_v4 = vrot.slane %v4973_v40, 4  ;;  %v4976_v53 = vrot.slane %v24104_v21, 5 }
 0x224   : > { %v17656_v44 = vcombine.low %v4581_v48, %v4591_v7  ;;  %v17708_v25 = vcombine.low %v4967_v20, %v4970_v47  ;;  %v17693_v27 = vrot.slane %v17677_v36, 9  ;;  %v4982_v8 = vrot.slane %v4980_v46, 4  ;;  %v17687_v20 = vld [vmem:[%s22752_s26 + $0xc0] sm:$0xe] }
 0x225   : > { %v4983_v6 = vrot.slane %v24180_v63, 5  ;;  %v4974_v58 = vsel %vm23094_vm8, %v17692_v42, %v4973_v40  ;;  %v4977_v9 = vsel %vm23094_vm8, %v4975_v4, %v4976_v53  ;;  %v4994_v49 = vrot.slane %v24202_v13, 5  ;;  %v17679_v63 = vld [vmem:[%s22752_s26 + $0x60] sm:$0xe]  ;;  %v27477_v53 = vld [vmem:[#allocation16_spill] sm:$0xff] }
 0x226   : > { %19691 = vmatmul.mubr.msk.bf16.gmra.mrb[20].mxu0 %vm1280_vm4, %v17652_v17  ;;  %v17706_v17 = vcombine.low %v4953_v31, %v4956_v50  ;;  %v4981_v26 = vsel %vm23094_vm8, %v17693_v27, %v4980_v46  ;;  %v17709_v54 = vcombine.low %v4974_v58, %v4977_v9  ;;  %v4997_v43 = vrot.slane %v24324_v37, 5  ;;  %v27474_v36 = vld [vmem:[#allocation14_spill] sm:$0xff]  ;;  %v27478_v27 = vld [vmem:[#allocation17_spill] sm:$0xff]  ;;  %v5461_v9 = vld [vmem:[#allocation2 + $0x8] sm:$0xff] }
 0x227   : > { %19694 = vmatprep.mubr.msk.bf16.mxu0 %vm1280_vm4, %v17653_v12  ;;  %v17690_v12 = vrot.slane %v17674_v18, 9  ;;  %v4984_v21 = vsel %vm23094_vm8, %v4982_v8, %v4983_v6  ;;  %v4996_v3 = vrot.slane %v4994_v49, 4  ;;  %v5008_v13 = vrot.slane %v24363_v52, 5  ;;  %v17683_v18 = vld [vmem:[%s22752_s26 + $0x90] sm:$0xe]  ;;  %v5460_v6 = vld [vmem:[#allocation2] sm:$0xff] }
 0x228   : > { %v17697_v48 = vrot.slane %v17681_v29, 9  ;;  %v27468_v37 = vcombine.low %v23980_v62, %v23985_v15  ;;  %v5022_v50 = vrot.slane %v24400_v14, 5  ;;  %v17699_v5 = vrot.slane %v17683_v18, 9  ;;  %v27469_v62 = vld [vmem:[#allocation12_spill] sm:$0xff]  ;;  %s27528_s26 = sld [smem:[#allocation59_spill]] }
 0x229   : > { %v4960_v55 = vsel %vm23094_vm8, %v17690_v12, %v4959_v1  ;;  %v4998_v22 = vsel %vm23094_vm8, %v4996_v3, %v4997_v43  ;;  %v5010_v7 = vrot.slane %v5008_v13, 4  ;;  %v5011_v1 = vrot.slane %v24382_v35, 5 }
 0x22a   : > { %v17707_v30 = vcombine.low %v4960_v55, %v4963_v39  ;;  %v5009_v31 = vsel %vm23094_vm8, %v17697_v48, %v5008_v13  ;;  %v5024_v35 = vrot.slane %v5022_v50, 4  ;;  %v27470_v15 = vcombine.low %v24003_v16, %v27469_v62  ;;  %v27471_v16 = vld [vmem:[#allocation13_spill] sm:$0xff] }
 0x22b   : > { %v5012_v52 = vsel %vm23094_vm8, %v5010_v7, %v5011_v1  ;;  %v5036_v12 = vrot.slane %v24426_v19, 5  ;;  %v17701_v33 = vrot.slane %v17685_v60, 9  ;;  %v5039_v51 = vrot.slane %v24449_v23, 5 }
 0x22c   : > { %v17714_v28 = vcombine.low %v5009_v31, %v5012_v52  ;;  %v27473_v55 = vcombine.low %v27471_v16, %v27472_v45  ;;  %v5050_v19 = vrot.slane %v24457_v10, 5  ;;  %v17703_v24 = vrot.slane %v17687_v20, 9  ;;  %v24733_v20 = vld [vmem:[%s27481_s27 + $0x18] sm:$0xff]  }
 0x22d   : > { %v5037_v39 = vsel %vm23094_vm8, %v17701_v33, %v5036_v12  ;;  %v5053_v23 = vrot.slane %v24479_v57, 5  ;;  %v27479_v8 = vcombine.low %v27477_v53, %v27478_v27  ;;  %v27480_v57 = vmov 0.0  }
 0x22e   : > { %19695 = vmatmul.mubr.msk.bf16.gmra.mrb[24].mxu0 %vm1280_vm4, %v17654_v59  ;;  %v17710_v59 = vcombine.low %v4981_v26, %v4984_v21  ;;  %v5052_v46 = vrot.slane %v5050_v19, 4  ;;  %v5051_v42 = vsel %vm23094_vm8, %v17703_v24, %v5050_v19  ;;  %719 = vst.msk [vmem:[#allocation2 + $0x40] sm:$0x3] %vm712_vm10, %v27480_v57  ;;  %713 = vst.msk [vmem:[#allocation2 + $0x10] sm:$0x3] %vm712_vm10, %v27480_v57  ;;  %v22361_v21 = vld [vmem:[%s27481_s27 + $0x10] sm:$0xff]  }
 0x22f   : > { %19698 = vmatprep.mubr.msk.bf16.mxu0 %vm1280_vm4, %v17655_v38  ;;  %v17695_v38 = vrot.slane %v17679_v63, 9  ;;  %716 = vst.msk [vmem:[#allocation2 + $0x28] sm:$0x3] %vm712_vm10, %v27480_v57  ;;  %722 = vst.msk [vmem:[#allocation2 + $0x58] sm:$0x3] %vm712_vm10, %v27480_v57  ;;  %v5492_v26 = vpack.c.bf16 %v5461_v9, %v5460_v6 }
 0x230   : > { %v5054_v4 = vsel %vm23094_vm8, %v5052_v46, %v5053_v23  ;;  %725 = vst.msk [vmem:[#allocation2 + $0x70] sm:$0x3] %vm712_vm10, %v27480_v57  ;;  %728 = vst.msk [vmem:[#allocation2 + $0x88] sm:$0x3] %vm712_vm10, %v27480_v57 }
 0x231   : > { %v4995_v2 = vsel %vm23094_vm8, %v17695_v38, %v4994_v49  ;;  %v17720_v10 = vcombine.low %v5051_v42, %v5054_v4  ;;  %731 = vst.msk [vmem:[#allocation2 + $0xa0] sm:$0x3] %vm712_vm10, %v27480_v57  ;;  %734 = vst.msk [vmem:[#allocation2 + $0xb8] sm:$0x3] %vm712_vm10, %v27480_v57  ;;  %19772 = vmatprep.mubr.msk.bf16.mxu1 %vm709_vm9, %v5492_v26  ;;  %v24661_v49 = vld [vmem:[%s27482_s24] ss:$0 sm:$0xff] }
 0x232   : > { %v17712_v61 = vcombine.low %v4995_v2, %v4998_v22  ;;  %737 = vst.msk [vmem:[#allocation2 + $0xd0] sm:$0x3] %vm712_vm10, %v27480_v57  ;;  %740 = vst.msk [vmem:[#allocation2 + $0xe8] sm:$0x3] %vm712_vm10, %v27480_v57 }
 0x233   : > { %743 = vst.msk [vmem:[#allocation2 + $0x100] sm:$0x3] %vm712_vm10, %v27480_v57  ;;  %746 = vst.msk [vmem:[#allocation2 + $0x118] sm:$0x3] %vm712_vm10, %v27480_v57 }
 0x234   : > { %749 = vst.msk [vmem:[#allocation2 + $0x130] sm:$0x3] %vm712_vm10, %v27480_v57  ;;  %752 = vst.msk [vmem:[#allocation2 + $0x148] sm:$0x3] %vm712_vm10, %v27480_v57 }
 0x235   : > { %755 = vst.msk [vmem:[#allocation2 + $0x160] sm:$0x3] %vm712_vm10, %v27480_v57  ;;  %758 = vst.msk [vmem:[#allocation2 + $0x178] sm:$0x3] %vm712_vm10, %v27480_v57  ;;  %v5511_v56 = vld [vmem:[#allocation2 + $0x9] sm:$0xff] }
 0x236   : > { %19699 = vmatmul.mubr.msk.bf16.gmra.mrb[28].mxu0 %vm1280_vm4, %v17656_v44  ;;  %v5025_v44 = vrot.slane %v24417_v11, 5  ;;  %v5038_v11 = vrot.slane %v5036_v12, 4  ;;  %761 = vst.msk [vmem:[#allocation2 + $0x190] sm:$0x3] %vm712_vm10, %v27480_v57  ;;  %764 = vst.msk [vmem:[#allocation2 + $0x1a8] sm:$0x3] %vm712_vm10, %v27480_v57  ;;  %v5542_v58 = vpack.c.bf16 %v5511_v56, %v5510_v41 }
 0x237   : > { %19704 = vmatprep.mubr.msk.bf16.mxu0 %vm1280_vm4, %v17706_v17  ;;  %v5023_v17 = vsel %vm23094_vm8, %v17699_v5, %v5022_v50 }
 0x238   : > { %v5026_v14 = vsel %vm23094_vm8, %v5024_v35, %v5025_v44  ;;  %v5040_v40 = vsel %vm23094_vm8, %v5038_v11, %v5039_v51 }
 0x239   : > { %v17716_v32 = vcombine.low %v5023_v17, %v5026_v14  ;;  %v17718_v47 = vcombine.low %v5037_v39, %v5040_v40 }
 0x23e   : > { %19705 = vmatmul.mubr.msk.bf16.vlgmr.msra.gmra.mrb[0].mxu0 %vm1280_vm4, %v17707_v30  ;;  %v27475_v30 = vld [vmem:[#allocation15_spill] sm:$0xff] }
 0x23f   : > { %19708 = vmatprep.mubr.msk.bf16.mxu0 %vm1280_vm4, %v17708_v25  ;;  %v27476_v25 = vcombine.low %v27474_v36, %v27475_v30  ;;  %19737 = vmatpush3.bf16.msra.mxu0 %v22359_v0 }
 0x246   : > { %19709 = vmatmul.mubr.msk.bf16.gmra.mrb[4].mxu0 %vm1280_vm4, %v17709_v54 }
 0x247   : > { %19712 = vmatprep.mubr.msk.bf16.mxu0 %vm1280_vm4, %v17710_v59 }
 0x24e   : > { %19713 = vmatmul.mubr.msk.bf16.gmra.mrb[8].mxu0 %vm1280_vm4, %v27468_v37 }
 0x24f   : > { %19716 = vmatprep.mubr.msk.bf16.mxu0 %vm1280_vm4, %v17712_v61 }
 0x256   : > { %19717 = vmatmul.mubr.msk.bf16.gmra.mrb[12].mxu0 %vm1280_vm4, %v27470_v15 }
 0x257   : > { %19720 = vmatprep.mubr.msk.bf16.mxu0 %vm1280_vm4, %v17714_v28 }
 0x25e   : > { %19721 = vmatmul.mubr.msk.bf16.gmra.mrb[16].mxu0 %vm1280_vm4, %v27473_v55 }
 0x25f   : > { %19724 = vmatprep.mubr.msk.bf16.mxu0 %vm1280_vm4, %v17716_v32 }
 0x266   : > { %19725 = vmatmul.mubr.msk.bf16.gmra.mrb[20].mxu0 %vm1280_vm4, %v27476_v25 }
 0x267   : > { %19728 = vmatprep.mubr.msk.bf16.mxu0 %vm1280_vm4, %v17718_v47 }
 0x26e   : > { %19729 = vmatmul.mubr.msk.bf16.gmra.mrb[24].mxu0 %vm1280_vm4, %v27479_v8 }
 0x26f   : > { %19732 = vmatprep.mubr.msk.bf16.mxu0 %vm1280_vm4, %v17720_v10 }
 0x276   : > { %19733 = vmatmul.mubr.msk.bf16.gmra.mrb[28].mxu0 %vm1280_vm4, %v17721_v34  ;;  %v22360_v34 = vld [vmem:[%s27481_s27] sm:$0xff]  }
 0x277   : > { %19770 = vmatprep.subr.bf16.mxu1 %v22360_v34  ;;  %19738 = vmatprep.mubr.msk.bf16.mxu0 %vm709_vm9, %v5542_v58 }
 0x278   : > { %19771 = vmatpush3.bf16.msra.mxu1 %v22360_v34 }
 0x279   : > { %19804 = vmatprep.subr.bf16.mxu1 %v22361_v21 }
 0x311   : > { %v19706_v63 = vpop.f32.mrb[0].mxu0 }
 0x312   : > { %v24664_v54 = vadd.f32 %v19706_v63, %v24661_v49  ;;  %v5197_v59 = vpop.f32.mrb[1].mxu0 }
 0x313   : > { %v24667_v38 = vadd.f32 %v24661_v49, %v5197_v59  ;;  %v19707_v3 = vpop.f32.mrb[2].mxu0 }
 0x314   : > { %27483 = vst [vmem:[#allocation18_spill] sm:$0xff] %v24664_v54  ;;  %v27335_v43 = vmax.f32 %v24664_v54, 0.0  ;;  %v24671_v2 = vadd.f32 %v19707_v3, %v24661_v49  ;;  %v5200_v22 = vpop.f32.mrb[3].mxu0 }
 0x315   : > { %27484 = vst [vmem:[#allocation12_spill] sm:$0xff] %v24667_v38  ;;  %v27334_v13 = vmax.f32 %v24667_v38, 0.0  ;;  %v24675_v29 = vadd.f32 %v24661_v49, %v5200_v22 }
 0x316   : > { %27485 = vst [vmem:[#allocation13_spill] sm:$0xff] %v24671_v2  ;;  %5430 = vst.msk [vmem:[#allocation2 + $0x31] sm:$0xff] %vm709_vm9, %v27335_v43  ;;  %v27332_v61 = vmax.f32 %v24671_v2, 0.0 }
 0x317   : > { %27486 = vst [vmem:[#allocation11_spill] sm:$0xff] %v24675_v29  ;;  %5428 = vst.msk [vmem:[#allocation2 + $0x19] sm:$0xff] %vm709_vm9, %v27334_v13  ;;  %v27329_v48 = vmax.f32 %v24675_v29, 0.0 }
 0x318   : > { %5431 = vst.msk [vmem:[#allocation2 + $0x39] sm:$0xff] %vm709_vm9, %v27332_v61 }
 0x319   : > { %5429 = vst.msk [vmem:[#allocation2 + $0x21] sm:$0xff] %vm709_vm9, %v27329_v48  ;;  %v19710_v7 = vpop.f32.mrb[4].mxu0 }
 0x31a   : > { %v24692_v1 = vadd.f32 %v19710_v7, %v24661_v49  ;;  %v5213_v37 = vpop.f32.mrb[5].mxu0 }
 0x31b   : > { %v24695_v31 = vadd.f32 %v24661_v49, %v5213_v37  ;;  %v19711_v52 = vpop.f32.mrb[6].mxu0 }
 0x31c   : > { %27487 = vst [vmem:[#allocation14_spill] sm:$0xff] %v24692_v1  ;;  %v27328_v50 = vmax.f32 %v24692_v1, 0.0  ;;  %v24699_v18 = vadd.f32 %v19711_v52, %v24661_v49  ;;  %v5216_v28 = vpop.f32.mrb[7].mxu0 }
 0x31d   : > { %27488 = vst [vmem:[#allocation15_spill] sm:$0xff] %v24695_v31  ;;  %v27326_v5 = vmax.f32 %v24695_v31, 0.0  ;;  %v24703_v35 = vadd.f32 %v24661_v49, %v5216_v28  ;;  %v5514_v16 = vld [vmem:[#allocation2 + $0x31] sm:$0xff] }
 0x31e   : > { %27489 = vst [vmem:[#allocation16_spill] sm:$0xff] %v24699_v18  ;;  %5434 = vst.msk [vmem:[#allocation2 + $0x61] sm:$0xff] %vm709_vm9, %v27328_v50  ;;  %v27325_v44 = vmax.f32 %v24699_v18, 0.0  ;;  %v5512_v15 = vld [vmem:[#allocation2 + $0x19] sm:$0xff]  ;;  %v5464_v45 = vld [vmem:[#allocation2 + $0x30] sm:$0xff] }
 0x31f   : > { %27490 = vst [vmem:[#allocation17_spill] sm:$0xff] %v24703_v35  ;;  %5432 = vst.msk [vmem:[#allocation2 + $0x49] sm:$0xff] %vm709_vm9, %v27326_v5  ;;  %v27324_v62 = vmax.f32 %v24703_v35, 0.0  ;;  %v5515_v17 = vld [vmem:[#allocation2 + $0x39] sm:$0xff] }
 0x320   : > { %v5465_v14 = vld [vmem:[#allocation2 + $0x38] sm:$0xff]  ;;  %5435 = vst.msk [vmem:[#allocation2 + $0x69] sm:$0xff] %vm709_vm9, %v27325_v44  ;;  %v5513_v12 = vld [vmem:[#allocation2 + $0x21] sm:$0xff]  ;;  %v24726_v40 = vpack.c.bf16 %v5515_v17, %v5514_v16 }
 0x321   : > { %v5462_v60 = vld [vmem:[#allocation2 + $0x18] sm:$0xff]  ;;  %v5463_v32 = vld [vmem:[#allocation2 + $0x20] sm:$0xff]  ;;  %5433 = vst.msk [vmem:[#allocation2 + $0x51] sm:$0xff] %vm709_vm9, %v27324_v62  ;;  %v19714_v33 = vpop.f32.mrb[8].mxu0  ;;  %v24719_v11 = vpack.c.bf16 %v5513_v12, %v5512_v15  ;;  %v24728_v19 = vpack.c.bf16 %v5465_v14, %v5464_v45 }
 0x322   : > { %v24721_v51 = vpack.c.bf16 %v5463_v32, %v5462_v60  ;;  %v24724_v55 = vadd.f32 %v19714_v33, %v24661_v49  ;;  %v5229_v39 = vpop.f32.mrb[9].mxu0 }
 0x323   : > { %v24736_v47 = vadd.f32 %v24661_v49, %v5229_v39  ;;  %v19715_v24 = vpop.f32.mrb[10].mxu0  ;;  %19739 = vmatmul.mubr.msk.bf16.vlgmr.msra.gmra.mrb[32].mxu0 %vm709_vm9, %v24719_v11 }
 0x324   : > { %27491 = vst [vmem:[#allocation19_spill] sm:$0xff] %v24724_v55  ;;  %19773 = vmatmul.mubr.msk.bf16.vlgmr.msra.gmra.mrb[0].mxu1 %vm709_vm9, %v24721_v51  ;;  %v27323_v46 = vmax.f32 %v24724_v55, 0.0  ;;  %v24744_v23 = vadd.f32 %v19715_v24, %v24661_v49  ;;  %v5232_v36 = vpop.f32.mrb[11].mxu0  ;;  %19742 = vmatprep.mubr.msk.bf16.mxu0 %vm709_vm9, %v24726_v40 }
 0x325   : > { %27492 = vst [vmem:[#allocation20_spill] sm:$0xff] %v24736_v47  ;;  %19776 = vmatprep.mubr.msk.bf16.mxu1 %vm709_vm9, %v24728_v19  ;;  %v27322_v30 = vmax.f32 %v24736_v47, 0.0  ;;  %v24752_v25 = vadd.f32 %v24661_v49, %v5232_v36  ;;  %19805 = vmatpush3.bf16.msra.mxu1 %v22361_v21  ;;  %v5518_v58 = vld [vmem:[#allocation2 + $0x61] sm:$0xff] }
 0x326   : > { %27493 = vst [vmem:[#allocation21_spill] sm:$0xff] %v24744_v23  ;;  %5438 = vst.msk [vmem:[#allocation2 + $0x91] sm:$0xff] %vm709_vm9, %v27323_v46  ;;  %v27320_v42 = vmax.f32 %v24744_v23, 0.0  ;;  %19838 = vmatprep.subr.bf16.mxu1 %v24733_v20  ;;  %v5516_v10 = vld [vmem:[#allocation2 + $0x49] sm:$0xff]  ;;  %v5468_v9 = vld [vmem:[#allocation2 + $0x60] sm:$0xff] }
 0x327   : > { %27494 = vst [vmem:[#allocation22_spill] sm:$0xff] %v24752_v25  ;;  %5436 = vst.msk [vmem:[#allocation2 + $0x79] sm:$0xff] %vm709_vm9, %v27322_v30  ;;  %v27317_v4 = vmax.f32 %v24752_v25, 0.0  ;;  %v5519_v53 = vld [vmem:[#allocation2 + $0x69] sm:$0xff] }
 0x328   : > { %v5469_v27 = vld [vmem:[#allocation2 + $0x68] sm:$0xff]  ;;  %5439 = vst.msk [vmem:[#allocation2 + $0x99] sm:$0xff] %vm709_vm9, %v27320_v42  ;;  %v5517_v8 = vld [vmem:[#allocation2 + $0x51] sm:$0xff]  ;;  %v24776_v63 = vpack.c.bf16 %v5519_v53, %v5518_v58 }
 0x329   : > { %v5466_v0 = vld [vmem:[#allocation2 + $0x48] sm:$0xff]  ;;  %v5467_v34 = vld [vmem:[#allocation2 + $0x50] sm:$0xff]  ;;  %5437 = vst.msk [vmem:[#allocation2 + $0x81] sm:$0xff] %vm709_vm9, %v27317_v4  ;;  %v19718_v41 = vpop.f32.mrb[12].mxu0  ;;  %v24769_v56 = vpack.c.bf16 %v5517_v8, %v5516_v10  ;;  %v24778_v59 = vpack.c.bf16 %v5469_v27, %v5468_v9 }
 0x32a   : > { %v24771_v6 = vpack.c.bf16 %v5467_v34, %v5466_v0  ;;  %v24774_v26 = vadd.f32 %v19718_v41, %v24661_v49  ;;  %v5245_v21 = vpop.f32.mrb[13].mxu0 }
 0x32b   : > { %v24781_v3 = vadd.f32 %v24661_v49, %v5245_v21  ;;  %v19719_v22 = vpop.f32.mrb[14].mxu0  ;;  %19743 = vmatmul.mubr.msk.bf16.gmra.mrb[36].mxu0 %vm709_vm9, %v24769_v56 }
 0x32c   : > { %27495 = vst [vmem:[#allocation23_spill] sm:$0xff] %v24774_v26  ;;  %19777 = vmatmul.mubr.msk.bf16.gmra.mrb[4].mxu1 %vm709_vm9, %v24771_v6  ;;  %v27316_v7 = vmax.f32 %v24774_v26, 0.0  ;;  %v24789_v37 = vadd.f32 %v19719_v22, %v24661_v49  ;;  %v5248_v52 = vpop.f32.mrb[15].mxu0  ;;  %19746 = vmatprep.mubr.msk.bf16.mxu0 %vm709_vm9, %v24776_v63 }
 0x32d   : > { %27496 = vst [vmem:[#allocation24_spill] sm:$0xff] %v24781_v3  ;;  %19780 = vmatprep.mubr.msk.bf16.mxu1 %vm709_vm9, %v24778_v59  ;;  %v27314_v28 = vmax.f32 %v24781_v3, 0.0  ;;  %v24797_v15 = vadd.f32 %v24661_v49, %v5248_v52  ;;  %v5522_v10 = vld [vmem:[#allocation2 + $0x91] sm:$0xff] }
 0x32e   : > { %27497 = vst [vmem:[#allocation25_spill] sm:$0xff] %v24789_v37  ;;  %5442 = vst.msk [vmem:[#allocation2 + $0xc1] sm:$0xff] %vm709_vm9, %v27316_v7  ;;  %v27313_v17 = vmax.f32 %v24789_v37, 0.0  ;;  %v5520_v12 = vld [vmem:[#allocation2 + $0x79] sm:$0xff]  ;;  %v5472_v53 = vld [vmem:[#allocation2 + $0x90] sm:$0xff] }
 0x32f   : > { %27498 = vst [vmem:[#allocation26_spill] sm:$0xff] %v24797_v15  ;;  %5440 = vst.msk [vmem:[#allocation2 + $0xa9] sm:$0xff] %vm709_vm9, %v27314_v28  ;;  %v27312_v14 = vmax.f32 %v24797_v15, 0.0  ;;  %v5523_v60 = vld [vmem:[#allocation2 + $0x99] sm:$0xff] }
 0x330   : > { %v5473_v32 = vld [vmem:[#allocation2 + $0x98] sm:$0xff]  ;;  %5443 = vst.msk [vmem:[#allocation2 + $0xc9] sm:$0xff] %vm709_vm9, %v27313_v17  ;;  %v5521_v33 = vld [vmem:[#allocation2 + $0x81] sm:$0xff]  ;;  %v24820_v0 = vpack.c.bf16 %v5523_v60, %v5522_v10 }
 0x331   : > { %v5470_v16 = vld [vmem:[#allocation2 + $0x78] sm:$0xff]  ;;  %v5471_v45 = vld [vmem:[#allocation2 + $0x80] sm:$0xff]  ;;  %5441 = vst.msk [vmem:[#allocation2 + $0xb1] sm:$0xff] %vm709_vm9, %v27312_v14  ;;  %v19722_v39 = vpop.f32.mrb[16].mxu0  ;;  %v24813_v24 = vpack.c.bf16 %v5521_v33, %v5520_v12  ;;  %v24822_v34 = vpack.c.bf16 %v5473_v32, %v5472_v53 }
 0x332   : > { %v24815_v36 = vpack.c.bf16 %v5471_v45, %v5470_v16  ;;  %v24818_v27 = vadd.f32 %v19722_v39, %v24661_v49  ;;  %v5261_v8 = vpop.f32.mrb[17].mxu0 }
 0x333   : > { %v24825_v41 = vadd.f32 %v24661_v49, %v5261_v8  ;;  %v19723_v58 = vpop.f32.mrb[18].mxu0  ;;  %19747 = vmatmul.mubr.msk.bf16.gmra.mrb[40].mxu0 %vm709_vm9, %v24813_v24 }
 0x334   : > { %27499 = vst [vmem:[#allocation27_spill] sm:$0xff] %v24818_v27  ;;  %19781 = vmatmul.mubr.msk.bf16.gmra.mrb[8].mxu1 %vm709_vm9, %v24815_v36  ;;  %v27311_v9 = vmax.f32 %v24818_v27, 0.0  ;;  %v24833_v21 = vadd.f32 %v19723_v58, %v24661_v49  ;;  %v5264_v22 = vpop.f32.mrb[19].mxu0  ;;  %19750 = vmatprep.mubr.msk.bf16.mxu0 %vm709_vm9, %v24820_v0 }
 0x335   : > { %27500 = vst [vmem:[#allocation28_spill] sm:$0xff] %v24825_v41  ;;  %19784 = vmatprep.mubr.msk.bf16.mxu1 %vm709_vm9, %v24822_v34  ;;  %v27310_v52 = vmax.f32 %v24825_v41, 0.0  ;;  %v24841_v12 = vadd.f32 %v24661_v49, %v5264_v22 }
 0x336   : > { %27501 = vst [vmem:[#allocation29_spill] sm:$0xff] %v24833_v21  ;;  %5446 = vst.msk [vmem:[#allocation2 + $0xf1] sm:$0xff] %vm709_vm9, %v27311_v9  ;;  %v27315_v60 = vmax.f32 %v24833_v21, 0.0  ;;  %v5524_v33 = vld [vmem:[#allocation2 + $0xa9] sm:$0xff]  ;;  %v5476_v9 = vld [vmem:[#allocation2 + $0xc0] sm:$0xff] }
 0x337   : > { %27502 = vst [vmem:[#allocation30_spill] sm:$0xff] %v24841_v12  ;;  %5444 = vst.msk [vmem:[#allocation2 + $0xd9] sm:$0xff] %vm709_vm9, %v27310_v52  ;;  %v27318_v32 = vmax.f32 %v24841_v12, 0.0  ;;  %v5527_v16 = vld [vmem:[#allocation2 + $0xc9] sm:$0xff]  ;;  %v5526_v52 = vld [vmem:[#allocation2 + $0xc1] sm:$0xff] }
 0x338   : > { %v5477_v45 = vld [vmem:[#allocation2 + $0xc8] sm:$0xff]  ;;  %5447 = vst.msk [vmem:[#allocation2 + $0xf9] sm:$0xff] %vm709_vm9, %v27315_v60  ;;  %v5525_v39 = vld [vmem:[#allocation2 + $0xb1] sm:$0xff]  ;;  %v24864_v28 = vpack.c.bf16 %v5527_v16, %v5526_v52 }
 0x339   : > { %v5474_v10 = vld [vmem:[#allocation2 + $0xa8] sm:$0xff]  ;;  %v5475_v53 = vld [vmem:[#allocation2 + $0xb0] sm:$0xff]  ;;  %5445 = vst.msk [vmem:[#allocation2 + $0xe1] sm:$0xff] %vm709_vm9, %v27318_v32  ;;  %v19726_v8 = vpop.f32.mrb[20].mxu0  ;;  %v24857_v58 = vpack.c.bf16 %v5525_v39, %v5524_v33  ;;  %v24866_v60 = vpack.c.bf16 %v5477_v45, %v5476_v9 }
 0x33a   : > { %v24859_v22 = vpack.c.bf16 %v5475_v53, %v5474_v10  ;;  %v24862_v14 = vadd.f32 %v19726_v8, %v24661_v49  ;;  %v5277_v17 = vpop.f32.mrb[21].mxu0 }
 0x33b   : > { %v24869_v7 = vadd.f32 %v24661_v49, %v5277_v17  ;;  %v19727_v4 = vpop.f32.mrb[22].mxu0  ;;  %19751 = vmatmul.mubr.msk.bf16.gmra.mrb[44].mxu0 %vm709_vm9, %v24857_v58 }
 0x33c   : > { %27503 = vst [vmem:[#allocation31_spill] sm:$0xff] %v24862_v14  ;;  %19785 = vmatmul.mubr.msk.bf16.gmra.mrb[12].mxu1 %vm709_vm9, %v24859_v22  ;;  %v27319_v33 = vmax.f32 %v24862_v14, 0.0  ;;  %v24877_v39 = vadd.f32 %v19727_v4, %v24661_v49  ;;  %v5280_v10 = vpop.f32.mrb[23].mxu0  ;;  %19754 = vmatprep.mubr.msk.bf16.mxu0 %vm709_vm9, %v24864_v28  ;;  %v6004_v14 = vld [vmem:[#allocation2 + $0x9a] sm:$0xff] }
 0x33d   : > { %27504 = vst [vmem:[#allocation32_spill] sm:$0xff] %v24869_v7  ;;  %19788 = vmatprep.mubr.msk.bf16.mxu1 %vm709_vm9, %v24866_v60  ;;  %v27321_v17 = vmax.f32 %v24869_v7, 0.0  ;;  %v24885_v9 = vadd.f32 %v24661_v49, %v5280_v10  ;;  %v5530_v30 = vld [vmem:[#allocation2 + $0xf1] sm:$0xff] }
 0x33e   : > { %27505 = vst [vmem:[#allocation33_spill] sm:$0xff] %v24877_v39  ;;  %5450 = vst.msk [vmem:[#allocation2 + $0x121] sm:$0xff] %vm709_vm9, %v27319_v33  ;;  %v27327_v52 = vmax.f32 %v24877_v39, 0.0  ;;  %v5528_v16 = vld [vmem:[#allocation2 + $0xd9] sm:$0xff]  ;;  %v5480_v46 = vld [vmem:[#allocation2 + $0xf0] sm:$0xff] }
 0x33f   : > { %27506 = vst [vmem:[#allocation34_spill] sm:$0xff] %v24885_v9  ;;  %5448 = vst.msk [vmem:[#allocation2 + $0x109] sm:$0xff] %vm709_vm9, %v27321_v17  ;;  %v27330_v4 = vmax.f32 %v24885_v9, 0.0  ;;  %v5531_v45 = vld [vmem:[#allocation2 + $0xf9] sm:$0xff] }
 0x340   : > { %v5481_v53 = vld [vmem:[#allocation2 + $0xf8] sm:$0xff]  ;;  %5451 = vst.msk [vmem:[#allocation2 + $0x129] sm:$0xff] %vm709_vm9, %v27327_v52  ;;  %v5529_v8 = vld [vmem:[#allocation2 + $0xe1] sm:$0xff]  ;;  %v24908_v5 = vpack.c.bf16 %v5531_v45, %v5530_v30 }
 0x341   : > { %v5478_v10 = vld [vmem:[#allocation2 + $0xd8] sm:$0xff]  ;;  %v5479_v32 = vld [vmem:[#allocation2 + $0xe0] sm:$0xff]  ;;  %5449 = vst.msk [vmem:[#allocation2 + $0x111] sm:$0xff] %vm709_vm9, %v27330_v4  ;;  %v19730_v33 = vpop.f32.mrb[24].mxu0  ;;  %v24901_v42 = vpack.c.bf16 %v5529_v8, %v5528_v16  ;;  %v24910_v52 = vpack.c.bf16 %v5481_v53, %v5480_v46 }
 0x342   : > { %v24903_v17 = vpack.c.bf16 %v5479_v32, %v5478_v10  ;;  %v24906_v62 = vadd.f32 %v19730_v33, %v24661_v49  ;;  %v5293_v44 = vpop.f32.mrb[25].mxu0  ;;  %v5996_v39 = vld [vmem:[#allocation2 + $0x3a] sm:$0xff] }
 0x343   : > { %v24913_v50 = vadd.f32 %v24661_v49, %v5293_v44  ;;  %v19731_v48 = vpop.f32.mrb[26].mxu0  ;;  %19755 = vmatmul.mubr.msk.bf16.gmra.mrb[48].mxu0 %vm709_vm9, %v24901_v42 }
 0x344   : > { %27507 = vst [vmem:[#allocation35_spill] sm:$0xff] %v24906_v62  ;;  %19789 = vmatmul.mubr.msk.bf16.gmra.mrb[16].mxu1 %vm709_vm9, %v24903_v17  ;;  %v27331_v32 = vmax.f32 %v24906_v62, 0.0  ;;  %v24921_v33 = vadd.f32 %v19731_v48, %v24661_v49  ;;  %v5296_v16 = vpop.f32.mrb[27].mxu0  ;;  %19758 = vmatprep.mubr.msk.bf16.mxu0 %vm709_vm9, %v24908_v5 }
 0x345   : > { %27508 = vst [vmem:[#allocation36_spill] sm:$0xff] %v24913_v50  ;;  %19792 = vmatprep.mubr.msk.bf16.mxu1 %vm709_vm9, %v24910_v52  ;;  %v27333_v44 = vmax.f32 %v24913_v50, 0.0  ;;  %v24929_v46 = vadd.f32 %v24661_v49, %v5296_v16  ;;  %v5534_v13 = vld [vmem:[#allocation2 + $0x121] sm:$0xff] }
 0x346   : > { %27509 = vst [vmem:[#allocation37_spill] sm:$0xff] %v24921_v33  ;;  %5454 = vst.msk [vmem:[#allocation2 + $0x151] sm:$0xff] %vm709_vm9, %v27331_v32  ;;  %v27339_v30 = vmax.f32 %v24921_v33, 0.0  ;;  %v5532_v45 = vld [vmem:[#allocation2 + $0x109] sm:$0xff]  ;;  %v5484_v43 = vld [vmem:[#allocation2 + $0x120] sm:$0xff] }
 0x347   : > { %27510 = vst [vmem:[#allocation38_spill] sm:$0xff] %v24929_v46  ;;  %5452 = vst.msk [vmem:[#allocation2 + $0x139] sm:$0xff] %vm709_vm9, %v27333_v44  ;;  %v27343_v48 = vmax.f32 %v24929_v46, 0.0  ;;  %v5535_v53 = vld [vmem:[#allocation2 + $0x129] sm:$0xff] }
 0x348   : > { %v5485_v8 = vld [vmem:[#allocation2 + $0x128] sm:$0xff]  ;;  %5455 = vst.msk [vmem:[#allocation2 + $0x159] sm:$0xff] %vm709_vm9, %v27339_v30  ;;  %v5533_v10 = vld [vmem:[#allocation2 + $0x111] sm:$0xff]  ;;  %v24952_v50 = vpack.c.bf16 %v5535_v53, %v5534_v13 }
 0x349   : > { %v5482_v16 = vld [vmem:[#allocation2 + $0x108] sm:$0xff]  ;;  %v5483_v4 = vld [vmem:[#allocation2 + $0x110] sm:$0xff]  ;;  %5453 = vst.msk [vmem:[#allocation2 + $0x141] sm:$0xff] %vm709_vm9, %v27343_v48  ;;  %v19734_v32 = vpop.f32.mrb[28].mxu0  ;;  %v24945_v61 = vpack.c.bf16 %v5533_v10, %v5532_v45  ;;  %v24954_v30 = vpack.c.bf16 %v5485_v8, %v5484_v43 }
 0x34a   : > { %v24947_v44 = vpack.c.bf16 %v5483_v4, %v5482_v16  ;;  %v24950_v57 = vadd.f32 %v19734_v32, %v24661_v49  ;;  %v5309_v33 = vpop.f32.mrb[29].mxu0 }
 0x34b   : > { %v24957_v62 = vadd.f32 %v24661_v49, %v5309_v33  ;;  %v19735_v46 = vpop.f32.mrb[30].mxu0  ;;  %19759 = vmatmul.mubr.msk.bf16.gmra.mrb[52].mxu0 %vm709_vm9, %v24945_v61 }
 0x34c   : > { %27511 = vst [vmem:[#allocation39_spill] sm:$0xff] %v24950_v57  ;;  %19793 = vmatmul.mubr.msk.bf16.gmra.mrb[20].mxu1 %vm709_vm9, %v24947_v44  ;;  %v27342_v4 = vmax.f32 %v24950_v57, 0.0  ;;  %v24965_v32 = vadd.f32 %v19735_v46, %v24661_v49  ;;  %v5312_v45 = vpop.f32.mrb[31].mxu0  ;;  %19762 = vmatprep.mubr.msk.bf16.mxu0 %vm709_vm9, %v24952_v50 }
 0x34d   : > { %27512 = vst [vmem:[#allocation40_spill] sm:$0xff] %v24957_v62  ;;  %19796 = vmatprep.mubr.msk.bf16.mxu1 %vm709_vm9, %v24954_v30  ;;  %v27344_v43 = vmax.f32 %v24957_v62, 0.0  ;;  %v24973_v13 = vadd.f32 %v24661_v49, %v5312_v45  ;;  %v5488_v62 = vld [vmem:[#allocation2 + $0x150] sm:$0xff] }
 0x34e   : > { %27513 = vst [vmem:[#allocation41_spill] sm:$0xff] %v24965_v32  ;;  %5458 = vst.msk [vmem:[#allocation2 + $0x181] sm:$0xff] %vm709_vm9, %v27342_v4  ;;  %v27349_v33 = vmax.f32 %v24965_v32, 0.0  ;;  %v5536_v53 = vld [vmem:[#allocation2 + $0x139] sm:$0xff] }
 0x34f   : > { %27514 = vst [vmem:[#allocation42_spill] sm:$0xff] %v24973_v13  ;;  %5456 = vst.msk [vmem:[#allocation2 + $0x169] sm:$0xff] %vm709_vm9, %v27344_v43  ;;  %v27348_v46 = vmax.f32 %v24973_v13, 0.0  ;;  %v5539_v8 = vld [vmem:[#allocation2 + $0x159] sm:$0xff]  ;;  %v5538_v43 = vld [vmem:[#allocation2 + $0x151] sm:$0xff] }
 0x350   : > { %v5489_v10 = vld [vmem:[#allocation2 + $0x158] sm:$0xff]  ;;  %5459 = vst.msk [vmem:[#allocation2 + $0x189] sm:$0xff] %vm709_vm9, %v27349_v33  ;;  %v5537_v49 = vld [vmem:[#allocation2 + $0x141] sm:$0xff]  ;;  %v24993_v57 = vpack.c.bf16 %v5539_v8, %v5538_v43 }
 0x351   : > { %v5486_v16 = vld [vmem:[#allocation2 + $0x138] sm:$0xff]  ;;  %v5487_v45 = vld [vmem:[#allocation2 + $0x140] sm:$0xff]  ;;  %5457 = vst.msk [vmem:[#allocation2 + $0x171] sm:$0xff] %vm709_vm9, %v27348_v46  ;;  %v24989_v4 = vpack.c.bf16 %v5537_v49, %v5536_v53  ;;  %v24995_v9 = vpack.c.bf16 %v5489_v10, %v5488_v62  ;;  %v5992_v49 = vld [vmem:[#allocation2 + $0xa] sm:$0xff] }
 0x352   : > { %v24991_v48 = vpack.c.bf16 %v5487_v45, %v5486_v16  ;;  %v5991_v53 = vld [vmem:[#allocation2 + $0x2] sm:$0xff]  ;;  %v5993_v33 = vld [vmem:[#allocation2 + $0x1a] sm:$0xff]  ;;  %v5995_v32 = vld [vmem:[#allocation2 + $0x32] sm:$0xff] }
 0x353   : > { %19763 = vmatmul.mubr.msk.bf16.gmra.mrb[56].mxu0 %vm709_vm9, %v24989_v4  ;;  %v6023_v62 = vpack.c.bf16 %v5992_v49, %v5991_v53  ;;  %v5994_v13 = vld [vmem:[#allocation2 + $0x22] sm:$0xff]  ;;  %v25019_v49 = vpack.c.bf16 %v5996_v39, %v5995_v32  ;;  %v6001_v39 = vld [vmem:[#allocation2 + $0x7a] sm:$0xff] }
 0x354   : > { %19797 = vmatmul.mubr.msk.bf16.gmra.mrb[24].mxu1 %vm709_vm9, %v24991_v48  ;;  %19766 = vmatprep.mubr.msk.bf16.mxu0 %vm709_vm9, %v24993_v57  ;;  %v25014_v7 = vpack.c.bf16 %v5994_v13, %v5993_v33  ;;  %v22363_v53 = vld [vmem:[%s27481_s27 + $0x20] sm:$0xff]   ;;  %v6000_v13 = vld [vmem:[#allocation2 + $0x6a] sm:$0xff] }
 0x355   : > { %19800 = vmatprep.mubr.msk.bf16.mxu1 %vm709_vm9, %v24995_v9  ;;  %v6002_v32 = vld [vmem:[#allocation2 + $0x82] sm:$0xff] }
 0x356   : > { %v5540_v16 = vld [vmem:[#allocation2 + $0x169] sm:$0xff]  ;;  %v6617_v29 = vld [vmem:[#allocation2 + $0x181] sm:$0xff] }
 0x357   : > { %v5490_v43 = vld [vmem:[#allocation2 + $0x168] sm:$0xff] }
 0x358   : > { %v5541_v45 = vld [vmem:[#allocation2 + $0x171] sm:$0xff]  ;;  %v6618_v18 = vld [vmem:[#allocation2 + $0x189] sm:$0xff] }
 0x359   : > { %v5491_v8 = vld [vmem:[#allocation2 + $0x170] sm:$0xff]  ;;  %v25005_v10 = vpack.c.bf16 %v5541_v45, %v5540_v16  ;;  %v25188_v38 = vpack.c.bf16 %v6618_v18, %v6617_v29 }
 0x35a   : > { %v25007_v46 = vpack.c.bf16 %v5491_v8, %v5490_v43  ;;  %v5997_v16 = vld [vmem:[#allocation2 + $0x4a] sm:$0xff]  ;;  %v5998_v45 = vld [vmem:[#allocation2 + $0x52] sm:$0xff]  ;;  %v5999_v43 = vld [vmem:[#allocation2 + $0x62] sm:$0xff] }
 0x35b   : > { %19767 = vmatmul.mubr.msk.bf16.gmra.mrb[60].mxu0 %vm709_vm9, %v25005_v10  ;;  %v25026_v33 = vpack.c.bf16 %v5998_v45, %v5997_v16  ;;  %v25028_v8 = vpack.c.bf16 %v6000_v13, %v5999_v43  ;;  %v6005_v16 = vld [vmem:[#allocation2 + $0xaa] sm:$0xff]  ;;  %v6006_v45 = vld [vmem:[#allocation2 + $0xb2] sm:$0xff]  ;;  %v6007_v43 = vld [vmem:[#allocation2 + $0xc2] sm:$0xff] }
 0x35c   : > { %19801 = vmatmul.mubr.msk.bf16.gmra.mrb[28].mxu1 %vm709_vm9, %v25007_v46  ;;  %v6008_v13 = vld [vmem:[#allocation2 + $0xca] sm:$0xff]  ;;  %v25042_v21 = vpack.c.bf16 %v6006_v45, %v6005_v16  ;;  %v6014_v45 = vld [vmem:[#allocation2 + $0x112] sm:$0xff] }
 0x35d   : > { %19806 = vmatprep.mubr.msk.bf16.mxu1 %vm709_vm9, %v6023_v62  ;;  %v6003_v62 = vld [vmem:[#allocation2 + $0x92] sm:$0xff]  ;;  %v25044_v41 = vpack.c.bf16 %v6008_v13, %v6007_v43  ;;  %v6013_v16 = vld [vmem:[#allocation2 + $0x10a] sm:$0xff]  ;;  %v6015_v43 = vld [vmem:[#allocation2 + $0x122] sm:$0xff] }
 0x35e   : > { %v25036_v12 = vpack.c.bf16 %v6004_v14, %v6003_v62  ;;  %v6009_v14 = vld [vmem:[#allocation2 + $0xda] sm:$0xff]  ;;  %v6016_v13 = vld [vmem:[#allocation2 + $0x12a] sm:$0xff]  ;;  %v25058_v37 = vpack.c.bf16 %v6014_v45, %v6013_v16  ;;  %v6022_v45 = vld [vmem:[#allocation2 + $0x172] sm:$0xff] }
 0x35f   : > { %v6012_v62 = vld [vmem:[#allocation2 + $0xfa] sm:$0xff]  ;;  %v25060_v3 = vpack.c.bf16 %v6016_v13, %v6015_v43  ;;  %v6021_v16 = vld [vmem:[#allocation2 + $0x16a] sm:$0xff] }
 0x360   : > { %v25074_v43 = vpack.c.bf16 %v6022_v45, %v6021_v16  ;;  %v22364_v13 = vld [vmem:[%s27481_s27 + $0x28] sm:$0xff]  }
 0x364   : > { %19807 = vmatmul.mubr.msk.bf16.vlgmr.msra.gmra.mrb[0].mxu1 %vm709_vm9, %v25014_v7 }
 0x365   : > { %19810 = vmatprep.mubr.msk.bf16.mxu1 %vm709_vm9, %v25019_v49  ;;  %19839 = vmatpush3.bf16.msra.mxu1 %v24733_v20  ;;  %v25034_v20 = vpack.c.bf16 %v6002_v32, %v6001_v39  ;;  %v6010_v39 = vld [vmem:[#allocation2 + $0xe2] sm:$0xff]  ;;  %v6011_v32 = vld [vmem:[#allocation2 + $0xf2] sm:$0xff] }
 0x366   : > { %19872 = vmatprep.subr.bf16.mxu1 %v22363_v53  ;;  %v25050_v27 = vpack.c.bf16 %v6010_v39, %v6009_v14  ;;  %v25052_v15 = vpack.c.bf16 %v6012_v62, %v6011_v32  ;;  %v6017_v14 = vld [vmem:[#allocation2 + $0x13a] sm:$0xff]  ;;  %v6018_v39 = vld [vmem:[#allocation2 + $0x142] sm:$0xff]  ;;  %v6019_v32 = vld [vmem:[#allocation2 + $0x152] sm:$0xff] }
 0x367   : > { %v6020_v62 = vld [vmem:[#allocation2 + $0x15a] sm:$0xff]  ;;  %v25066_v26 = vpack.c.bf16 %v6018_v39, %v6017_v14  ;;  %v22365_v39 = vld [vmem:[%s27481_s27 + $0x30] sm:$0xff]  }
 0x368   : > { %v25068_v25 = vpack.c.bf16 %v6020_v62, %v6019_v32 }
 0x36c   : > { %19811 = vmatmul.mubr.msk.bf16.gmra.mrb[4].mxu1 %vm709_vm9, %v25026_v33 }
 0x36d   : > { %19814 = vmatprep.mubr.msk.bf16.mxu1 %vm709_vm9, %v25028_v8 }
 0x374   : > { %19815 = vmatmul.mubr.msk.bf16.gmra.mrb[8].mxu1 %vm709_vm9, %v25034_v20 }
 0x375   : > { %19818 = vmatprep.mubr.msk.bf16.mxu1 %vm709_vm9, %v25036_v12 }
 0x37c   : > { %19819 = vmatmul.mubr.msk.bf16.gmra.mrb[12].mxu1 %vm709_vm9, %v25042_v21 }
 0x37d   : > { %19822 = vmatprep.mubr.msk.bf16.mxu1 %vm709_vm9, %v25044_v41 }
 0x384   : > { %19823 = vmatmul.mubr.msk.bf16.gmra.mrb[16].mxu1 %vm709_vm9, %v25050_v27 }
 0x385   : > { %19826 = vmatprep.mubr.msk.bf16.mxu1 %vm709_vm9, %v25052_v15 }
 0x38c   : > { %19827 = vmatmul.mubr.msk.bf16.gmra.mrb[20].mxu1 %vm709_vm9, %v25058_v37 }
 0x38d   : > { %19830 = vmatprep.mubr.msk.bf16.mxu1 %vm709_vm9, %v25060_v3 }
 0x394   : > { %19831 = vmatmul.mubr.msk.bf16.gmra.mrb[24].mxu1 %vm709_vm9, %v25066_v26 }
 0x395   : > { %19834 = vmatprep.mubr.msk.bf16.mxu1 %vm709_vm9, %v25068_v25 }
 0x39c   : > { %19835 = vmatmul.mubr.msk.bf16.gmra.mrb[28].mxu1 %vm709_vm9, %v25074_v43 }
 0x39d   : > { %19840 = vmatprep.mubr.msk.bf16.mxu1 %vm709_vm9, %v24721_v51  ;;  %v6320_v51 = vld [vmem:[#allocation2 + $0x188] sm:$0xff] }
 0x3a4   : > { %19841 = vmatmul.mubr.msk.bf16.vlgmr.msra.gmra.mrb[0].mxu1 %vm709_vm9, %v24728_v19 }
 0x3a5   : > { %19844 = vmatprep.mubr.msk.bf16.mxu1 %vm709_vm9, %v24771_v6  ;;  %19873 = vmatpush3.bf16.msra.mxu1 %v22363_v53  ;;  %v6319_v53 = vld [vmem:[#allocation2 + $0x180] sm:$0xff] }
 0x3a6   : > { %19906 = vmatprep.subr.bf16.mxu1 %v22364_v13  ;;  %v25111_v14 = vpack.c.bf16 %v6320_v51, %v6319_v53 }
 0x3ac   : > { %19845 = vmatmul.mubr.msk.bf16.gmra.mrb[4].mxu1 %vm709_vm9, %v24778_v59 }
 0x3ad   : > { %19848 = vmatprep.mubr.msk.bf16.mxu1 %vm709_vm9, %v24815_v36 }
 0x3b4   : > { %19849 = vmatmul.mubr.msk.bf16.gmra.mrb[8].mxu1 %vm709_vm9, %v24822_v34 }
 0x3b5   : > { %19852 = vmatprep.mubr.msk.bf16.mxu1 %vm709_vm9, %v24859_v22 }
 0x3bc   : > { %19853 = vmatmul.mubr.msk.bf16.gmra.mrb[12].mxu1 %vm709_vm9, %v24866_v60 }
 0x3bd   : > { %19856 = vmatprep.mubr.msk.bf16.mxu1 %vm709_vm9, %v24903_v17 }
 0x3c4   : > { %19857 = vmatmul.mubr.msk.bf16.gmra.mrb[16].mxu1 %vm709_vm9, %v24910_v52 }
 0x3c5   : > { %19860 = vmatprep.mubr.msk.bf16.mxu1 %vm709_vm9, %v24947_v44 }
 0x3cc   : > { %19861 = vmatmul.mubr.msk.bf16.gmra.mrb[20].mxu1 %vm709_vm9, %v24954_v30 }
 0x3cd   : > { %19864 = vmatprep.mubr.msk.bf16.mxu1 %vm709_vm9, %v24991_v48 }
 0x3d4   : > { %19865 = vmatmul.mubr.msk.bf16.gmra.mrb[24].mxu1 %vm709_vm9, %v24995_v9 }
 0x3d5   : > { %19868 = vmatprep.mubr.msk.bf16.mxu1 %vm709_vm9, %v25007_v46 }
 0x3dc   : > { %19869 = vmatmul.mubr.msk.bf16.gmra.mrb[28].mxu1 %vm709_vm9, %v25111_v14 }
 0x3dd   : > { %19874 = vmatprep.mubr.msk.bf16.mxu1 %vm709_vm9, %v24719_v11 }
 0x3e4   : > { %19875 = vmatmul.mubr.msk.bf16.vlgmr.msra.gmra.mrb[0].mxu1 %vm709_vm9, %v24726_v40 }
 0x3e5   : > { %19878 = vmatprep.mubr.msk.bf16.mxu1 %vm709_vm9, %v24769_v56  ;;  %19907 = vmatpush3.bf16.msra.mxu1 %v22364_v13 }
 0x3e6   : > { %19940 = vmatprep.subr.bf16.mxu1 %v22365_v39 }
 0x3ec   : > { %19879 = vmatmul.mubr.msk.bf16.gmra.mrb[4].mxu1 %vm709_vm9, %v24776_v63 }
 0x3ed   : > { %19882 = vmatprep.mubr.msk.bf16.mxu1 %vm709_vm9, %v24813_v24 }
 0x3f4   : > { %19883 = vmatmul.mubr.msk.bf16.gmra.mrb[8].mxu1 %vm709_vm9, %v24820_v0 }
 0x3f5   : > { %19886 = vmatprep.mubr.msk.bf16.mxu1 %vm709_vm9, %v24857_v58 }
 0x3f6   : > { %v25132_v11 = vpop.f32.mrb[32].mxu0 }
 0x3f7   : > { %v25134_v40 = vpop.f32.mrb[33].mxu0 }
 0x3f8   : > { %v25136_v32 = vpop.f32.mrb[34].mxu0 }
 0x3f9   : > { %v25138_v56 = vpop.f32.mrb[35].mxu0 }
 0x3fc   : > { %19887 = vmatmul.mubr.msk.bf16.gmra.mrb[12].mxu1 %vm709_vm9, %v24864_v28 }
 0x3fd   : > { %19890 = vmatprep.mubr.msk.bf16.mxu1 %vm709_vm9, %v24901_v42 }
 0x3fe   : > { %v25144_v63 = vpop.f32.mrb[36].mxu0 }
 0x3ff   : > { %v25146_v24 = vpop.f32.mrb[37].mxu0 }
 0x400   : > { %v25148_v0 = vpop.f32.mrb[38].mxu0 }
 0x401   : > { %v25150_v62 = vpop.f32.mrb[39].mxu0 }
 0x404   : > { %19891 = vmatmul.mubr.msk.bf16.gmra.mrb[16].mxu1 %vm709_vm9, %v24908_v5 }
 0x405   : > { %19894 = vmatprep.mubr.msk.bf16.mxu1 %vm709_vm9, %v24945_v61 }
 0x406   : > { %v25156_v16 = vpop.f32.mrb[40].mxu0 }
 0x407   : > { %v25158_v45 = vpop.f32.mrb[41].mxu0 }
 0x408   : > { %v25160_v13 = vpop.f32.mrb[42].mxu0 }
 0x409   : > { %v25162_v51 = vpop.f32.mrb[43].mxu0 }
 0x40c   : > { %19895 = vmatmul.mubr.msk.bf16.gmra.mrb[20].mxu1 %vm709_vm9, %v24952_v50 }
 0x40d   : > { %19898 = vmatprep.mubr.msk.bf16.mxu1 %vm709_vm9, %v24989_v4 }
 0x40e   : > { %v25168_v53 = vpop.f32.mrb[44].mxu0 }
 0x40f   : > { %v25170_v23 = vpop.f32.mrb[45].mxu0 }
 0x410   : > { %v25172_v47 = vpop.f32.mrb[46].mxu0 }
 0x411   : > { %v25174_v55 = vpop.f32.mrb[47].mxu0 }
 0x412   : > { %27515 = vst [vmem:[#allocation43_spill] sm:$0xff] %v25174_v55 }
 0x414   : > { %19899 = vmatmul.mubr.msk.bf16.gmra.mrb[24].mxu1 %vm709_vm9, %v24993_v57 }
 0x415   : > { %19902 = vmatprep.mubr.msk.bf16.mxu1 %vm709_vm9, %v25005_v10 }
 0x416   : > { %v25180_v35 = vpop.f32.mrb[48].mxu0 }
 0x417   : > { %27516 = vst [vmem:[#allocation44_spill] sm:$0xff] %v25180_v35  ;;  %v25182_v31 = vpop.f32.mrb[49].mxu0 }
 0x418   : > { %27517 = vst [vmem:[#allocation45_spill] sm:$0xff] %v25182_v31  ;;  %v25184_v1 = vpop.f32.mrb[50].mxu0 }
 0x419   : > { %v25186_v2 = vpop.f32.mrb[51].mxu0 }
 0x41a   : > { %27518 = vst [vmem:[#allocation46_spill] sm:$0xff] %v25186_v2  ;;  %v22366_v2 = vld [vmem:[%s27481_s27 + $0x38] sm:$0xff]  }
 0x41c   : > { %19903 = vmatmul.mubr.msk.bf16.gmra.mrb[28].mxu1 %vm709_vm9, %v25188_v38 }
 0x41d   : > { %19908 = vmatprep.mubr.msk.bf16.mxu1 %vm709_vm9, %v25014_v7 }
 0x41e   : > { %v25194_v54 = vpop.f32.mrb[52].mxu0 }
 0x41f   : > { %27519 = vst [vmem:[#allocation47_spill] sm:$0xff] %v25194_v54  ;;  %v25196_v55 = vpop.f32.mrb[53].mxu0 }
 0x420   : > { %27520 = vst [vmem:[#allocation48_spill] sm:$0xff] %v25196_v55  ;;  %v25198_v35 = vpop.f32.mrb[54].mxu0 }
 0x421   : > { %27521 = vst [vmem:[#allocation49_spill] sm:$0xff] %v25198_v35  ;;  %v25200_v31 = vpop.f32.mrb[55].mxu0 }
 0x422   : > { %27522 = vst [vmem:[#allocation50_spill] sm:$0xff] %v25200_v31 }
 0x424   : > { %19909 = vmatmul.mubr.msk.bf16.vlgmr.msra.gmra.mrb[0].mxu1 %vm709_vm9, %v25019_v49 }
 0x425   : > { %19912 = vmatprep.mubr.msk.bf16.mxu1 %vm709_vm9, %v25026_v33  ;;  %19941 = vmatpush3.bf16.msra.mxu1 %v22365_v39 }
 0x426   : > { %19974 = vmatprep.subr.bf16.mxu1 %v22366_v2  ;;  %v25209_v29 = vpop.f32.mrb[56].mxu0 }
 0x427   : > { %v25211_v18 = vpop.f32.mrb[57].mxu0 }
 0x428   : > { %v25213_v7 = vpop.f32.mrb[58].mxu0 }
 0x429   : > { %v25215_v35 = vpop.f32.mrb[59].mxu0 }
 0x42c   : > { %19913 = vmatmul.mubr.msk.bf16.gmra.mrb[4].mxu1 %vm709_vm9, %v25028_v8 }
 0x42d   : > { %19916 = vmatprep.mubr.msk.bf16.mxu1 %vm709_vm9, %v25034_v20 }
 0x42e   : > { %v25221_v31 = vpop.f32.mrb[60].mxu0 }
 0x42f   : > { %27523 = vst [vmem:[#allocation51_spill] sm:$0xff] %v25221_v31  ;;  %v25223_v55 = vpop.f32.mrb[61].mxu0  ;;  %v22367_v31 = vld [vmem:[%s27481_s27 + $0x40] sm:$0xff]  }
 0x430   : > { %27524 = vst [vmem:[#allocation52_spill] sm:$0xff] %v25223_v55  ;;  %v25225_v39 = vpop.f32.mrb[62].mxu0 }
 0x431   : > { %27525 = vst [vmem:[#allocation53_spill] sm:$0xff] %v25225_v39  ;;  %v25227_v54 = vpop.f32.mrb[63].mxu0  ;;  %v6916_v39 = vld [vmem:[#allocation2 + $0x18a] sm:$0xff] }
 0x432   : > { %27526 = vst [vmem:[#allocation54_spill] sm:$0xff] %v25227_v54  ;;  %v6915_v54 = vld [vmem:[#allocation2 + $0x182] sm:$0xff] }
 0x433   : > { %v25249_v55 = vpack.c.bf16 %v6916_v39, %v6915_v54  ;;  %v7214_v54 = vld [vmem:[#allocation2 + $0x198] sm:$0xff] }
 0x434   : > { %19917 = vmatmul.mubr.msk.bf16.gmra.mrb[8].mxu1 %vm709_vm9, %v25036_v12  ;;  %v7490_v39 = vld [vmem:[#allocation2 + $0x91] sm:$0xff] }
 0x435   : > { %19920 = vmatprep.mubr.msk.bf16.mxu1 %vm709_vm9, %v25042_v21 }
 0x43c   : > { %19921 = vmatmul.mubr.msk.bf16.gmra.mrb[12].mxu1 %vm709_vm9, %v25044_v41 }
 0x43d   : > { %19924 = vmatprep.mubr.msk.bf16.mxu1 %vm709_vm9, %v25050_v27 }
 0x444   : > { %19925 = vmatmul.mubr.msk.bf16.gmra.mrb[16].mxu1 %vm709_vm9, %v25052_v15 }
 0x445   : > { %19928 = vmatprep.mubr.msk.bf16.mxu1 %vm709_vm9, %v25058_v37 }
 0x44c   : > { %19929 = vmatmul.mubr.msk.bf16.gmra.mrb[20].mxu1 %vm709_vm9, %v25060_v3 }
 0x44d   : > { %19932 = vmatprep.mubr.msk.bf16.mxu1 %vm709_vm9, %v25066_v26 }
 0x454   : > { %19933 = vmatmul.mubr.msk.bf16.gmra.mrb[24].mxu1 %vm709_vm9, %v25068_v25 }
 0x455   : > { %19936 = vmatprep.mubr.msk.bf16.mxu1 %vm709_vm9, %v25074_v43 }
 0x45c   : > { %19937 = vmatmul.mubr.msk.bf16.gmra.mrb[28].mxu1 %vm709_vm9, %v25249_v55 }
 0x45d   : > { %19942 = vmatprep.mubr.msk.bf16.mxu1 %vm709_vm9, %v24728_v19 }
 0x464   : > { %19943 = vmatmul.mubr.msk.bf16.vlgmr.msra.gmra.mrb[0].mxu1 %vm709_vm9, %v24771_v6  ;;  %v7483_v6 = vld [vmem:[#allocation2 + $0x39] sm:$0xff] }
 0x465   : > { %19946 = vmatprep.mubr.msk.bf16.mxu1 %vm709_vm9, %v24778_v59  ;;  %19975 = vmatpush3.bf16.msra.mxu1 %v22366_v2  ;;  %v7215_v2 = vld [vmem:[#allocation2 + $0x1a0] sm:$0xff]  ;;  %v7482_v59 = vld [vmem:[#allocation2 + $0x31] sm:$0xff] }
 0x466   : > { %20008 = vmatprep.subr.bf16.mxu1 %v22367_v31  ;;  %v7231_v19 = vpack.c.bf16 %v7215_v2, %v7214_v54 }
 0x46c   : > { %19947 = vmatmul.mubr.msk.bf16.gmra.mrb[4].mxu1 %vm709_vm9, %v24815_v36  ;;  %v7514_v36 = vpack.c.bf16 %v7483_v6, %v7482_v59 }
 0x46d   : > { %19950 = vmatprep.mubr.msk.bf16.mxu1 %vm709_vm9, %v24822_v34  ;;  %v22368_v34 = vld [vmem:[%s27527_s1 + $0x8] sm:$0xff]  }
 0x46e   : > { %20042 = vmatprep.subr.bf16.mxu0 %v22368_v34 }
 0x46f   : > { %20043 = vmatpush3.bf16.msra.mxu0 %v22368_v34 }
 0x474   : > { %19951 = vmatmul.mubr.msk.bf16.gmra.mrb[8].mxu1 %vm709_vm9, %v24859_v22  ;;  %v7487_v22 = vld [vmem:[#allocation2 + $0x69] sm:$0xff] }
 0x475   : > { %19954 = vmatprep.mubr.msk.bf16.mxu1 %vm709_vm9, %v24866_v60  ;;  %v7485_v60 = vld [vmem:[#allocation2 + $0x51] sm:$0xff] }
 0x47c   : > { %19955 = vmatmul.mubr.msk.bf16.gmra.mrb[12].mxu1 %vm709_vm9, %v24903_v17  ;;  %v7484_v17 = vld [vmem:[#allocation2 + $0x49] sm:$0xff] }
 0x47d   : > { %19958 = vmatprep.mubr.msk.bf16.mxu1 %vm709_vm9, %v24910_v52  ;;  %v7486_v52 = vld [vmem:[#allocation2 + $0x61] sm:$0xff] }
 0x484   : > { %19959 = vmatmul.mubr.msk.bf16.gmra.mrb[16].mxu1 %vm709_vm9, %v24947_v44  ;;  %v7516_v44 = vpack.c.bf16 %v7487_v22, %v7486_v52 }
 0x485   : > { %19962 = vmatprep.mubr.msk.bf16.mxu1 %vm709_vm9, %v24954_v30  ;;  %v7489_v30 = vld [vmem:[#allocation2 + $0x81] sm:$0xff] }
 0x48c   : > { %19963 = vmatmul.mubr.msk.bf16.gmra.mrb[20].mxu1 %vm709_vm9, %v24991_v48  ;;  %v7491_v48 = vld [vmem:[#allocation2 + $0x99] sm:$0xff] }
 0x48d   : > { %19966 = vmatprep.mubr.msk.bf16.mxu1 %vm709_vm9, %v24995_v9  ;;  %v7515_v9 = vpack.c.bf16 %v7485_v60, %v7484_v17  ;;  %v7518_v54 = vpack.c.bf16 %v7491_v48, %v7490_v39 }
 0x494   : > { %19967 = vmatmul.mubr.msk.bf16.gmra.mrb[24].mxu1 %vm709_vm9, %v25007_v46  ;;  %v7488_v46 = vld [vmem:[#allocation2 + $0x79] sm:$0xff] }
 0x495   : > { %19970 = vmatprep.mubr.msk.bf16.mxu1 %vm709_vm9, %v25111_v14  ;;  %v7517_v14 = vpack.c.bf16 %v7489_v30, %v7488_v46 }
 0x49c   : > { %19971 = vmatmul.mubr.msk.bf16.gmra.mrb[28].mxu1 %vm709_vm9, %v7231_v19 }
 0x49d   : > { %19976 = vmatprep.mubr.msk.bf16.mxu1 %vm709_vm9, %v7514_v36 }
 0x4a4   : > { %19977 = vmatmul.mubr.msk.bf16.vlgmr.msra.gmra.mrb[0].mxu1 %vm709_vm9, %v7515_v9 }
 0x4a5   : > { %19980 = vmatprep.mubr.msk.bf16.mxu1 %vm709_vm9, %v7516_v44  ;;  %20009 = vmatpush3.bf16.msra.mxu1 %v22367_v31  ;;  %v7512_v31 = vld [vmem:[#allocation2 + $0x199] sm:$0xff] }
 0x4ac   : > { %19981 = vmatmul.mubr.msk.bf16.gmra.mrb[4].mxu1 %vm709_vm9, %v7517_v14 }
 0x4ad   : > { %19984 = vmatprep.mubr.msk.bf16.mxu1 %vm709_vm9, %v7518_v54 }
 0x4b4   : > { %19985 = vmatmul.mubr.msk.bf16.gmra.mrb[8].mxu1 %vm709_vm9, %v24857_v58 }
 0x4b5   : > { %19988 = vmatprep.mubr.msk.bf16.mxu1 %vm709_vm9, %v24864_v28 }
 0x4bc   : > { %19989 = vmatmul.mubr.msk.bf16.gmra.mrb[12].mxu1 %vm709_vm9, %v24901_v42 }
 0x4bd   : > { %19992 = vmatprep.mubr.msk.bf16.mxu1 %vm709_vm9, %v24908_v5  ;;  %v7513_v5 = vld [vmem:[#allocation2 + $0x1a1] sm:$0xff] }
 0x4be   : > { %v7529_v42 = vpack.c.bf16 %v7513_v5, %v7512_v31  ;;  %v25390_v5 = vld [vmem:[%s27527_s1 + $0x10] sm:$0xff]  }
 0x4c4   : > { %19993 = vmatmul.mubr.msk.bf16.gmra.mrb[16].mxu1 %vm709_vm9, %v24945_v61 }
 0x4c5   : > { %19996 = vmatprep.mubr.msk.bf16.mxu1 %vm709_vm9, %v24952_v50  ;;  %v8231_v50 = vld [vmem:[#allocation2 + $0x1] sm:$0xff] }
 0x4cc   : > { %19997 = vmatmul.mubr.msk.bf16.gmra.mrb[20].mxu1 %vm709_vm9, %v24989_v4 }
 0x4cd   : > { %20000 = vmatprep.mubr.msk.bf16.mxu1 %vm709_vm9, %v24993_v57  ;;  %v7810_v57 = vld [vmem:[#allocation2 + $0x19a] sm:$0xff] }
 0x4d4   : > { %20001 = vmatmul.mubr.msk.bf16.gmra.mrb[24].mxu1 %vm709_vm9, %v25005_v10 }
 0x4d5   : > { %20004 = vmatprep.mubr.msk.bf16.mxu1 %vm709_vm9, %v25188_v38  ;;  %v7811_v38 = vld [vmem:[#allocation2 + $0x1a2] sm:$0xff] }
 0x4d6   : > { %v7827_v61 = vpack.c.bf16 %v7811_v38, %v7810_v57 }
 0x4dc   : > { %20005 = vmatmul.mubr.msk.bf16.gmra.mrb[28].mxu1 %vm709_vm9, %v7529_v42 }
 0x4dd   : > { %20010 = vmatprep.mubr.msk.bf16.mxu1 %vm709_vm9, %v25019_v49 }
 0x4e4   : > { %20011 = vmatmul.mubr.msk.bf16.vlgmr.msra.gmra.mrb[0].mxu1 %vm709_vm9, %v25026_v33 }
 0x4e5   : > { %20014 = vmatprep.mubr.msk.bf16.mxu1 %vm709_vm9, %v25028_v8 }
 0x4ec   : > { %20015 = vmatmul.mubr.msk.bf16.gmra.mrb[4].mxu1 %vm709_vm9, %v25034_v20 }
 0x4ed   : > { %20018 = vmatprep.mubr.msk.bf16.mxu1 %vm709_vm9, %v25036_v12 }
 0x4f4   : > { %20019 = vmatmul.mubr.msk.bf16.gmra.mrb[8].mxu1 %vm709_vm9, %v25042_v21 }
 0x4f5   : > { %20022 = vmatprep.mubr.msk.bf16.mxu1 %vm709_vm9, %v25044_v41 }
 0x4fc   : > { %20023 = vmatmul.mubr.msk.bf16.gmra.mrb[12].mxu1 %vm709_vm9, %v25050_v27 }
 0x4fd   : > { %20026 = vmatprep.mubr.msk.bf16.mxu1 %vm709_vm9, %v25052_v15 }
 0x504   : > { %20027 = vmatmul.mubr.msk.bf16.gmra.mrb[16].mxu1 %vm709_vm9, %v25058_v37  ;;  %v8232_v37 = vld [vmem:[#allocation2 + $0x9] sm:$0xff] }
 0x505   : > { %20030 = vmatprep.mubr.msk.bf16.mxu1 %vm709_vm9, %v25060_v3  ;;  %v8263_v3 = vpack.c.bf16 %v8232_v37, %v8231_v50 }
 0x507   : > { %20044 = vmatprep.mubr.msk.bf16.mxu0 %vm709_vm9, %v8263_v3 }
 0x50c   : > { %20031 = vmatmul.mubr.msk.bf16.gmra.mrb[20].mxu1 %vm709_vm9, %v25066_v26 }
 0x50d   : > { %20034 = vmatprep.mubr.msk.bf16.mxu1 %vm709_vm9, %v25068_v25  ;;  %v25351_v25 = vld [vmem:[%s27527_s1] sm:$0xff]  }
 0x50e   : > { %20076 = vmatprep.subr.bf16.mxu0 %v25351_v25 }
 0x514   : > { %20035 = vmatmul.mubr.msk.bf16.gmra.mrb[24].mxu1 %vm709_vm9, %v25074_v43 }
 0x515   : > { %20038 = vmatprep.mubr.msk.bf16.mxu1 %vm709_vm9, %v25249_v55  ;;  %v25357_v55 = vld [vmem:[%s27528_s26] ss:$0 sm:$0xff] }
 0x51c   : > { %20039 = vmatmul.mubr.msk.bf16.gmra.mrb[28].mxu1 %vm709_vm9, %v7827_v61 }
 0x5b7   : > { %v20012_v26 = vpop.f32.mrb[0].mxu1 }
 0x5b8   : > { %v21051_v28 = vadd.f32 %v20012_v26, %v25132_v11  ;;  %v7919_v15 = vpop.f32.mrb[1].mxu1 }
 0x5b9   : > { %v21052_v27 = vadd.f32 %v7919_v15, %v25134_v40  ;;  %v20013_v41 = vpop.f32.mrb[2].mxu1 }
 0x5ba   : > { %v8087_v21 = vadd.f32 %v21051_v28, %v25357_v55  ;;  %v21053_v12 = vadd.f32 %v20013_v41, %v25136_v32  ;;  %v7922_v58 = vpop.f32.mrb[3].mxu1 }
 0x5bb   : > { %v8085_v4 = vadd.f32 %v21052_v27, %v25357_v55  ;;  %v21054_v10 = vadd.f32 %v7922_v58, %v25138_v56 }
 0x5bc   : > { %v8119_v49 = vmax.f32 %v8087_v21, 0.0  ;;  %v8088_v33 = vadd.f32 %v21053_v12, %v25357_v55 }
 0x5bd   : > { %v8117_v8 = vmax.f32 %v8085_v4, 0.0  ;;  %v8086_v20 = vadd.f32 %v21054_v10, %v25357_v55 }
 0x5be   : > { %8151 = vst.msk [vmem:[#allocation2 + $0x31] sm:$0xff] %vm709_vm9, %v8119_v49  ;;  %v8120_v43 = vmax.f32 %v8088_v33, 0.0 }
 0x5bf   : > { %8149 = vst.msk [vmem:[#allocation2 + $0x19] sm:$0xff] %vm709_vm9, %v8117_v8  ;;  %v8118_v11 = vmax.f32 %v8086_v20, 0.0  ;;  %v20016_v40 = vpop.f32.mrb[4].mxu1 }
 0x5c0   : > { %8152 = vst.msk [vmem:[#allocation2 + $0x39] sm:$0xff] %vm709_vm9, %v8120_v43  ;;  %v21055_v32 = vadd.f32 %v20016_v40, %v25144_v63  ;;  %v7935_v2 = vpop.f32.mrb[5].mxu1  ;;  %v27529_v43 = vld [vmem:[#allocation43_spill] sm:$0xff] }
 0x5c1   : > { %8150 = vst.msk [vmem:[#allocation2 + $0x21] sm:$0xff] %vm709_vm9, %v8118_v11  ;;  %v21056_v56 = vadd.f32 %v7935_v2, %v25146_v24  ;;  %v20017_v19 = vpop.f32.mrb[6].mxu1 }
 0x5c2   : > { %v8091_v6 = vadd.f32 %v21055_v32, %v25357_v55  ;;  %v21057_v59 = vadd.f32 %v20017_v19, %v25148_v0  ;;  %v7938_v36 = vpop.f32.mrb[7].mxu1 }
 0x5c3   : > { %v8089_v34 = vadd.f32 %v21056_v56, %v25357_v55  ;;  %v21058_v60 = vadd.f32 %v7938_v36, %v25150_v62 }
 0x5c4   : > { %v8123_v22 = vmax.f32 %v8091_v6, 0.0  ;;  %v8092_v17 = vadd.f32 %v21057_v59, %v25357_v55  ;;  %v27530_v59 = vld [vmem:[#allocation44_spill] sm:$0xff] }
 0x5c5   : > { %v8121_v9 = vmax.f32 %v8089_v34, 0.0  ;;  %v8090_v63 = vadd.f32 %v21058_v60, %v25357_v55  ;;  %v8235_v31 = vld [vmem:[#allocation2 + $0x31] sm:$0xff] }
 0x5c6   : > { %8155 = vst.msk [vmem:[#allocation2 + $0x61] sm:$0xff] %vm709_vm9, %v8123_v22  ;;  %v8124_v52 = vmax.f32 %v8092_v17, 0.0  ;;  %v8233_v62 = vld [vmem:[#allocation2 + $0x19] sm:$0xff] }
 0x5c7   : > { %8153 = vst.msk [vmem:[#allocation2 + $0x49] sm:$0xff] %vm709_vm9, %v8121_v9  ;;  %v8122_v24 = vmax.f32 %v8090_v63, 0.0  ;;  %v20020_v44 = vpop.f32.mrb[8].mxu1  ;;  %v8236_v30 = vld [vmem:[#allocation2 + $0x39] sm:$0xff] }
 0x5c8   : > { %8156 = vst.msk [vmem:[#allocation2 + $0x69] sm:$0xff] %vm709_vm9, %v8124_v52  ;;  %v21059_v0 = vadd.f32 %v20020_v44, %v25156_v16  ;;  %v7951_v48 = vpop.f32.mrb[9].mxu1  ;;  %v8234_v46 = vld [vmem:[#allocation2 + $0x21] sm:$0xff]  ;;  %v25394_v38 = vpack.c.bf16 %v8236_v30, %v8235_v31  ;;  %v27531_v17 = vld [vmem:[#allocation45_spill] sm:$0xff] }
 0x5c9   : > { %8154 = vst.msk [vmem:[#allocation2 + $0x51] sm:$0xff] %vm709_vm9, %v8122_v24  ;;  %v21060_v14 = vadd.f32 %v7951_v48, %v25158_v45  ;;  %v20021_v39 = vpop.f32.mrb[10].mxu1  ;;  %v25385_v54 = vpack.c.bf16 %v8234_v46, %v8233_v62  ;;  %v27532_v46 = vld [vmem:[#allocation46_spill] sm:$0xff] }
 0x5ca   : > { %v8095_v42 = vadd.f32 %v21059_v0, %v25357_v55  ;;  %v21061_v16 = vadd.f32 %v20021_v39, %v25160_v13  ;;  %v7954_v57 = vpop.f32.mrb[11].mxu1 }
 0x5cb   : > { %v8093_v61 = vadd.f32 %v21060_v14, %v25357_v55  ;;  %v21062_v45 = vadd.f32 %v7954_v57, %v25162_v51  ;;  %20045 = vmatmul.mubr.msk.bf16.vlgmr.msra.gmra.mrb[64].mxu0 %vm709_vm9, %v25385_v54 }
 0x5cc   : > { %v8127_v50 = vmax.f32 %v8095_v42, 0.0  ;;  %v8096_v37 = vadd.f32 %v21061_v16, %v25357_v55  ;;  %20048 = vmatprep.mubr.msk.bf16.mxu0 %vm709_vm9, %v25394_v38  ;;  %20077 = vmatpush3.bf16.msra.mxu0 %v25351_v25 }
 0x5cd   : > { %v8125_v3 = vmax.f32 %v8093_v61, 0.0  ;;  %v8094_v13 = vadd.f32 %v21062_v45, %v25357_v55  ;;  %20110 = vmatprep.subr.bf16.mxu0 %v25390_v5  ;;  %v8239_v10 = vld [vmem:[#allocation2 + $0x61] sm:$0xff] }
 0x5ce   : > { %8159 = vst.msk [vmem:[#allocation2 + $0x91] sm:$0xff] %vm709_vm9, %v8127_v50  ;;  %v8128_v26 = vmax.f32 %v8096_v37, 0.0  ;;  %v8237_v21 = vld [vmem:[#allocation2 + $0x49] sm:$0xff] }
 0x5cf   : > { %8157 = vst.msk [vmem:[#allocation2 + $0x79] sm:$0xff] %vm709_vm9, %v8125_v3  ;;  %v8126_v51 = vmax.f32 %v8094_v13, 0.0  ;;  %v20024_v28 = vpop.f32.mrb[12].mxu1  ;;  %v8240_v15 = vld [vmem:[#allocation2 + $0x69] sm:$0xff] }
 0x5d0   : > { %8160 = vst.msk [vmem:[#allocation2 + $0x99] sm:$0xff] %vm709_vm9, %v8128_v26  ;;  %v21063_v27 = vadd.f32 %v20024_v28, %v25168_v53  ;;  %v7967_v41 = vpop.f32.mrb[13].mxu1  ;;  %v8238_v25 = vld [vmem:[#allocation2 + $0x51] sm:$0xff]  ;;  %v25416_v20 = vpack.c.bf16 %v8240_v15, %v8239_v10  ;;  %v27533_v50 = vld [vmem:[#allocation47_spill] sm:$0xff] }
 0x5d1   : > { %8158 = vst.msk [vmem:[#allocation2 + $0x81] sm:$0xff] %vm709_vm9, %v8126_v51  ;;  %v21064_v12 = vadd.f32 %v7967_v41, %v25170_v23  ;;  %v20025_v58 = vpop.f32.mrb[14].mxu1  ;;  %v25412_v4 = vpack.c.bf16 %v8238_v25, %v8237_v21  ;;  %v27534_v51 = vld [vmem:[#allocation48_spill] sm:$0xff]  ;;  %v27535_v25 = vld [vmem:[#allocation49_spill] sm:$0xff] }
 0x5d2   : > { %v8099_v49 = vadd.f32 %v21063_v27, %v25357_v55  ;;  %v21065_v33 = vadd.f32 %v20025_v58, %v25172_v47  ;;  %v7970_v8 = vpop.f32.mrb[15].mxu1 }
 0x5d3   : > { %v8097_v53 = vadd.f32 %v21064_v12, %v25357_v55  ;;  %v21066_v11 = vadd.f32 %v7970_v8, %v27529_v43  ;;  %20049 = vmatmul.mubr.msk.bf16.gmra.mrb[68].mxu0 %vm709_vm9, %v25412_v4 }
 0x5d4   : > { %v8131_v40 = vmax.f32 %v8099_v49, 0.0  ;;  %v8100_v23 = vadd.f32 %v21065_v33, %v25357_v55  ;;  %20052 = vmatprep.mubr.msk.bf16.mxu0 %vm709_vm9, %v25416_v20  ;;  %v27536_v33 = vld [vmem:[#allocation50_spill] sm:$0xff] }
 0x5d5   : > { %v8129_v32 = vmax.f32 %v8097_v53, 0.0  ;;  %v8098_v2 = vadd.f32 %v21066_v11, %v25357_v55  ;;  %v8243_v24 = vld [vmem:[#allocation2 + $0x91] sm:$0xff] }
 0x5d6   : > { %8163 = vst.msk [vmem:[#allocation2 + $0xc1] sm:$0xff] %vm709_vm9, %v8131_v40  ;;  %v8132_v47 = vmax.f32 %v8100_v23, 0.0  ;;  %v8241_v60 = vld [vmem:[#allocation2 + $0x79] sm:$0xff] }
 0x5d7   : > { %8161 = vst.msk [vmem:[#allocation2 + $0xa9] sm:$0xff] %vm709_vm9, %v8129_v32  ;;  %v8130_v56 = vmax.f32 %v8098_v2, 0.0  ;;  %v20028_v19 = vpop.f32.mrb[16].mxu1  ;;  %v8244_v6 = vld [vmem:[#allocation2 + $0x99] sm:$0xff] }
 0x5d8   : > { %8164 = vst.msk [vmem:[#allocation2 + $0xc9] sm:$0xff] %vm709_vm9, %v8132_v47  ;;  %v21067_v36 = vadd.f32 %v20028_v19, %v27530_v59  ;;  %v7983_v34 = vpop.f32.mrb[17].mxu1  ;;  %v8242_v22 = vld [vmem:[#allocation2 + $0x81] sm:$0xff]  ;;  %v25436_v48 = vpack.c.bf16 %v8244_v6, %v8243_v24 }
 0x5d9   : > { %8162 = vst.msk [vmem:[#allocation2 + $0xb1] sm:$0xff] %vm709_vm9, %v8130_v56  ;;  %v21068_v9 = vadd.f32 %v7983_v34, %v27531_v17  ;;  %v20029_v63 = vpop.f32.mrb[18].mxu1  ;;  %v25432_v52 = vpack.c.bf16 %v8242_v22, %v8241_v60 }
 0x5da   : > { %v8103_v44 = vadd.f32 %v21067_v36, %v25357_v55  ;;  %v21069_v30 = vadd.f32 %v20029_v63, %v25184_v1  ;;  %v7986_v0 = vpop.f32.mrb[19].mxu1 }
 0x5db   : > { %v8101_v62 = vadd.f32 %v21068_v9, %v25357_v55  ;;  %v21070_v14 = vadd.f32 %v7986_v0, %v27532_v46  ;;  %20053 = vmatmul.mubr.msk.bf16.gmra.mrb[72].mxu0 %vm709_vm9, %v25432_v52 }
 0x5dc   : > { %v8135_v39 = vmax.f32 %v8103_v44, 0.0  ;;  %v8104_v31 = vadd.f32 %v21069_v30, %v25357_v55  ;;  %20056 = vmatprep.mubr.msk.bf16.mxu0 %vm709_vm9, %v25436_v48 }
 0x5dd   : > { %v8133_v42 = vmax.f32 %v8101_v62, 0.0  ;;  %v8102_v16 = vadd.f32 %v21070_v14, %v25357_v55  ;;  %v8247_v41 = vld [vmem:[#allocation2 + $0xc1] sm:$0xff] }
 0x5de   : > { %8167 = vst.msk [vmem:[#allocation2 + $0xf1] sm:$0xff] %vm709_vm9, %v8135_v39  ;;  %v8136_v1 = vmax.f32 %v8104_v31, 0.0  ;;  %v8245_v13 = vld [vmem:[#allocation2 + $0xa9] sm:$0xff] }
 0x5df   : > { %8165 = vst.msk [vmem:[#allocation2 + $0xd9] sm:$0xff] %vm709_vm9, %v8133_v42  ;;  %v8134_v57 = vmax.f32 %v8102_v16, 0.0  ;;  %v20032_v61 = vpop.f32.mrb[20].mxu1  ;;  %v8248_v45 = vld [vmem:[#allocation2 + $0xc9] sm:$0xff] }
 0x5e0   : > { %8168 = vst.msk [vmem:[#allocation2 + $0xf9] sm:$0xff] %vm709_vm9, %v8136_v1  ;;  %v21071_v37 = vadd.f32 %v20032_v61, %v27533_v50  ;;  %v7999_v3 = vpop.f32.mrb[21].mxu1  ;;  %v8246_v26 = vld [vmem:[#allocation2 + $0xb1] sm:$0xff]  ;;  %v25456_v10 = vpack.c.bf16 %v8248_v45, %v8247_v41  ;;  %v27537_v39 = vld [vmem:[#allocation51_spill] sm:$0xff]  ;;  %v27540_v41 = vld [vmem:[#allocation54_spill] sm:$0xff] }
 0x5e1   : > { %8166 = vst.msk [vmem:[#allocation2 + $0xe1] sm:$0xff] %vm709_vm9, %v8134_v57  ;;  %v21072_v28 = vadd.f32 %v7999_v3, %v27534_v51  ;;  %v20033_v15 = vpop.f32.mrb[22].mxu1  ;;  %v25452_v27 = vpack.c.bf16 %v8246_v26, %v8245_v13  ;;  %v27538_v57 = vld [vmem:[#allocation52_spill] sm:$0xff]  ;;  %v27539_v13 = vld [vmem:[#allocation53_spill] sm:$0xff] }
 0x5e2   : > { %v8107_v21 = vadd.f32 %v21071_v37, %v25357_v55  ;;  %v21073_v12 = vadd.f32 %v20033_v15, %v27535_v25  ;;  %v8002_v58 = vpop.f32.mrb[23].mxu1 }
 0x5e3   : > { %v8105_v49 = vadd.f32 %v21072_v28, %v25357_v55  ;;  %v21074_v8 = vadd.f32 %v8002_v58, %v27536_v33  ;;  %20057 = vmatmul.mubr.msk.bf16.gmra.mrb[76].mxu0 %vm709_vm9, %v25452_v27 }
 0x5e4   : > { %v8139_v53 = vmax.f32 %v8107_v21, 0.0  ;;  %v8108_v43 = vadd.f32 %v21073_v12, %v25357_v55  ;;  %20060 = vmatprep.mubr.msk.bf16.mxu0 %vm709_vm9, %v25456_v10 }
 0x5e5   : > { %v8137_v11 = vmax.f32 %v8105_v49, 0.0  ;;  %v8106_v40 = vadd.f32 %v21074_v8, %v25357_v55  ;;  %v8251_v22 = vld [vmem:[#allocation2 + $0xf1] sm:$0xff] }
 0x5e6   : > { %8171 = vst.msk [vmem:[#allocation2 + $0x121] sm:$0xff] %vm709_vm9, %v8139_v53  ;;  %v8140_v23 = vmax.f32 %v8108_v43, 0.0  ;;  %v8249_v6 = vld [vmem:[#allocation2 + $0xd9] sm:$0xff] }
 0x5e7   : > { %8169 = vst.msk [vmem:[#allocation2 + $0x109] sm:$0xff] %vm709_vm9, %v8137_v11  ;;  %v8138_v32 = vmax.f32 %v8106_v40, 0.0  ;;  %v20036_v2 = vpop.f32.mrb[24].mxu1  ;;  %v8252_v47 = vld [vmem:[#allocation2 + $0xf9] sm:$0xff] }
 0x5e8   : > { %8172 = vst.msk [vmem:[#allocation2 + $0x129] sm:$0xff] %vm709_vm9, %v8140_v23  ;;  %v21075_v56 = vadd.f32 %v20036_v2, %v25209_v29  ;;  %v8015_v19 = vpop.f32.mrb[25].mxu1  ;;  %v8250_v59 = vld [vmem:[#allocation2 + $0xe1] sm:$0xff]  ;;  %v25476_v24 = vpack.c.bf16 %v8252_v47, %v8251_v22 }
 0x5e9   : > { %8170 = vst.msk [vmem:[#allocation2 + $0x111] sm:$0xff] %vm709_vm9, %v8138_v32  ;;  %v21076_v36 = vadd.f32 %v8015_v19, %v25211_v18  ;;  %v20037_v34 = vpop.f32.mrb[26].mxu1  ;;  %v25472_v60 = vpack.c.bf16 %v8250_v59, %v8249_v6  ;;  %v8182_v2 = vld [vmem:[#allocation2 + $0x8] sm:$0xff]  ;;  %v8184_v59 = vld [vmem:[#allocation2 + $0x20] sm:$0xff] }
 0x5ea   : > { %v8111_v17 = vadd.f32 %v21075_v56, %v25357_v55  ;;  %v21077_v9 = vadd.f32 %v20037_v34, %v25213_v7  ;;  %v8018_v63 = vpop.f32.mrb[27].mxu1  ;;  %v8183_v34 = vld [vmem:[#allocation2 + $0x18] sm:$0xff] }
 0x5eb   : > { %v8109_v29 = vadd.f32 %v21076_v36, %v25357_v55  ;;  %v21078_v44 = vadd.f32 %v8018_v63, %v25215_v35  ;;  %20061 = vmatmul.mubr.msk.bf16.gmra.mrb[80].mxu0 %vm709_vm9, %v25472_v60  ;;  %v8186_v36 = vld [vmem:[#allocation2 + $0x38] sm:$0xff]  ;;  %v25523_v22 = vpack.c.bf16 %v8184_v59, %v8183_v34 }
 0x5ec   : > { %v8143_v30 = vmax.f32 %v8111_v17, 0.0  ;;  %v8112_v18 = vadd.f32 %v21077_v9, %v25357_v55  ;;  %20064 = vmatprep.mubr.msk.bf16.mxu0 %vm709_vm9, %v25476_v24  ;;  %v8185_v17 = vld [vmem:[#allocation2 + $0x30] sm:$0xff]  ;;  %v25528_v9 = vld [vmem:[%s27527_s1 + $0x18] sm:$0xff]  }
 0x5ed   : > { %v8141_v0 = vmax.f32 %v8109_v29, 0.0  ;;  %v8110_v62 = vadd.f32 %v21078_v44, %v25357_v55  ;;  %v8255_v37 = vld [vmem:[#allocation2 + $0x121] sm:$0xff]  ;;  %v25530_v63 = vpack.c.bf16 %v8186_v36, %v8185_v17  ;;  %v8188_v29 = vld [vmem:[#allocation2 + $0x50] sm:$0xff] }
 0x5ee   : > { %8175 = vst.msk [vmem:[#allocation2 + $0x151] sm:$0xff] %vm709_vm9, %v8143_v30  ;;  %v8144_v7 = vmax.f32 %v8112_v18, 0.0  ;;  %v8253_v16 = vld [vmem:[#allocation2 + $0x109] sm:$0xff]  ;;  %v8714_v59 = vld [vmem:[#allocation2 + $0x1a] sm:$0xff]  ;;  %v8716_v34 = vld [vmem:[#allocation2 + $0x32] sm:$0xff] }
 0x5ef   : > { %8173 = vst.msk [vmem:[#allocation2 + $0x139] sm:$0xff] %vm709_vm9, %v8141_v0  ;;  %v8142_v46 = vmax.f32 %v8110_v62, 0.0  ;;  %v20040_v14 = vpop.f32.mrb[28].mxu1  ;;  %v8256_v35 = vld [vmem:[#allocation2 + $0x129] sm:$0xff]  ;;  %v8189_v0 = vld [vmem:[#allocation2 + $0x60] sm:$0xff] }
 0x5f0   : > { %8176 = vst.msk [vmem:[#allocation2 + $0x159] sm:$0xff] %vm709_vm9, %v8144_v7  ;;  %v21079_v31 = vadd.f32 %v20040_v14, %v27537_v39  ;;  %v8031_v42 = vpop.f32.mrb[29].mxu1  ;;  %v8254_v1 = vld [vmem:[#allocation2 + $0x111] sm:$0xff]  ;;  %v25496_v28 = vpack.c.bf16 %v8256_v35, %v8255_v37  ;;  %v8190_v44 = vld [vmem:[#allocation2 + $0x68] sm:$0xff]  ;;  %v8192_v7 = vld [vmem:[#allocation2 + $0x80] sm:$0xff] }
 0x5f1   : > { %8174 = vst.msk [vmem:[#allocation2 + $0x141] sm:$0xff] %vm709_vm9, %v8142_v46  ;;  %v21080_v61 = vadd.f32 %v8031_v42, %v27538_v57  ;;  %v20041_v45 = vpop.f32.mrb[30].mxu1  ;;  %v25492_v50 = vpack.c.bf16 %v8254_v1, %v8253_v16  ;;  %v8187_v30 = vld [vmem:[#allocation2 + $0x48] sm:$0xff]  ;;  %v25540_v62 = vpack.c.bf16 %v8190_v44, %v8189_v0  ;;  %v8194_v46 = vld [vmem:[#allocation2 + $0x98] sm:$0xff]  ;;  %v8193_v35 = vld [vmem:[#allocation2 + $0x90] sm:$0xff] }
 0x5f2   : > { %v8115_v3 = vadd.f32 %v21079_v31, %v25357_v55  ;;  %v21081_v26 = vadd.f32 %v20041_v45, %v27539_v13  ;;  %v8034_v51 = vpop.f32.mrb[31].mxu1  ;;  %v25538_v18 = vpack.c.bf16 %v8188_v29, %v8187_v30  ;;  %v8191_v14 = vld [vmem:[#allocation2 + $0x78] sm:$0xff]  ;;  %v25548_v39 = vpack.c.bf16 %v8194_v46, %v8193_v35  ;;  %v8196_v31 = vld [vmem:[#allocation2 + $0xb0] sm:$0xff]  ;;  %v8198_v42 = vld [vmem:[#allocation2 + $0xc8] sm:$0xff] }
 0x5f3   : > { %v8113_v15 = vadd.f32 %v21080_v61, %v25357_v55  ;;  %v21082_v21 = vadd.f32 %v8034_v51, %v27540_v41  ;;  %20065 = vmatmul.mubr.msk.bf16.gmra.mrb[84].mxu0 %vm709_vm9, %v25492_v50  ;;  %v8195_v16 = vld [vmem:[#allocation2 + $0xa8] sm:$0xff]  ;;  %v8197_v57 = vld [vmem:[#allocation2 + $0xc0] sm:$0xff]  ;;  %v8202_v37 = vld [vmem:[#allocation2 + $0xf8] sm:$0xff] }
 0x5f4   : > { %v8147_v25 = vmax.f32 %v8115_v3, 0.0  ;;  %v8116_v12 = vadd.f32 %v21081_v26, %v25357_v55  ;;  %20068 = vmatprep.mubr.msk.bf16.mxu0 %vm709_vm9, %v25496_v28  ;;  %v25554_v1 = vpack.c.bf16 %v8196_v31, %v8195_v16  ;;  %v25556_v61 = vpack.c.bf16 %v8198_v42, %v8197_v57  ;;  %v8200_v45 = vld [vmem:[#allocation2 + $0xe0] sm:$0xff]  ;;  %v8199_v3 = vld [vmem:[#allocation2 + $0xd8] sm:$0xff]  ;;  %v8201_v26 = vld [vmem:[#allocation2 + $0xf0] sm:$0xff] }
 0x5f5   : > { %v8145_v58 = vmax.f32 %v8113_v15, 0.0  ;;  %v8114_v49 = vadd.f32 %v21082_v21, %v25357_v55  ;;  %v8259_v23 = vld [vmem:[#allocation2 + $0x151] sm:$0xff]  ;;  %v8181_v55 = vld [vmem:[#allocation2] sm:$0xff]  ;;  %v25562_v13 = vpack.c.bf16 %v8200_v45, %v8199_v3  ;;  %v25564_v51 = vpack.c.bf16 %v8202_v37, %v8201_v26  ;;  %v8206_v41 = vld [vmem:[#allocation2 + $0x128] sm:$0xff] }
 0x5f6   : > { %8179 = vst.msk [vmem:[#allocation2 + $0x181] sm:$0xff] %vm709_vm9, %v8147_v25  ;;  %v8148_v33 = vmax.f32 %v8116_v12, 0.0  ;;  %v8257_v43 = vld [vmem:[#allocation2 + $0x139] sm:$0xff]  ;;  %v8213_v19 = vpack.c.bf16 %v8182_v2, %v8181_v55  ;;  %v8204_v15 = vld [vmem:[#allocation2 + $0x110] sm:$0xff]  ;;  %v8203_v21 = vld [vmem:[#allocation2 + $0x108] sm:$0xff] }
 0x5f7   : > { %8177 = vst.msk [vmem:[#allocation2 + $0x169] sm:$0xff] %vm709_vm9, %v8145_v58  ;;  %v8146_v8 = vmax.f32 %v8114_v49, 0.0  ;;  %v8260_v53 = vld [vmem:[#allocation2 + $0x159] sm:$0xff]  ;;  %v25570_v25 = vpack.c.bf16 %v8204_v15, %v8203_v21  ;;  %v8713_v55 = vld [vmem:[#allocation2 + $0xa] sm:$0xff]  ;;  %v8715_v36 = vld [vmem:[#allocation2 + $0x22] sm:$0xff] }
 0x5f8   : > { %8180 = vst.msk [vmem:[#allocation2 + $0x189] sm:$0xff] %vm709_vm9, %v8148_v33  ;;  %v8258_v11 = vld [vmem:[#allocation2 + $0x141] sm:$0xff]  ;;  %v25512_v32 = vpack.c.bf16 %v8260_v53, %v8259_v23  ;;  %v8210_v33 = vld [vmem:[#allocation2 + $0x158] sm:$0xff]  ;;  %v25591_v29 = vpack.c.bf16 %v8715_v36, %v8714_v59  ;;  %v8718_v0 = vld [vmem:[#allocation2 + $0x4a] sm:$0xff] }
 0x5f9   : > { %8178 = vst.msk [vmem:[#allocation2 + $0x171] sm:$0xff] %vm709_vm9, %v8146_v8  ;;  %v25510_v40 = vpack.c.bf16 %v8258_v11, %v8257_v43  ;;  %v8205_v12 = vld [vmem:[#allocation2 + $0x120] sm:$0xff]  ;;  %v8207_v8 = vld [vmem:[#allocation2 + $0x138] sm:$0xff]  ;;  %v8209_v43 = vld [vmem:[#allocation2 + $0x150] sm:$0xff] }
 0x5fa   : > { %v25572_v58 = vpack.c.bf16 %v8206_v41, %v8205_v12  ;;  %v8208_v49 = vld [vmem:[#allocation2 + $0x140] sm:$0xff]  ;;  %v25580_v11 = vpack.c.bf16 %v8210_v33, %v8209_v43  ;;  %v8724_v57 = vld [vmem:[#allocation2 + $0x92] sm:$0xff]  ;;  %v8726_v3 = vld [vmem:[#allocation2 + $0xaa] sm:$0xff] }
 0x5fb   : > { %20069 = vmatmul.mubr.msk.bf16.gmra.mrb[88].mxu0 %vm709_vm9, %v25510_v40  ;;  %v25578_v53 = vpack.c.bf16 %v8208_v49, %v8207_v8  ;;  %v8712_v23 = vld [vmem:[#allocation2 + $0x2] sm:$0xff]  ;;  %v8717_v17 = vld [vmem:[#allocation2 + $0x3a] sm:$0xff]  ;;  %v8727_v26 = vld [vmem:[#allocation2 + $0xb2] sm:$0xff] }
 0x5fc   : > { %20072 = vmatprep.mubr.msk.bf16.mxu0 %vm709_vm9, %v25512_v32  ;;  %v22372_v44 = vld [vmem:[%s27527_s1 + $0x20] sm:$0xff]   ;;  %v25596_v30 = vpack.c.bf16 %v8717_v17, %v8716_v34  ;;  %v8729_v41 = vld [vmem:[#allocation2 + $0xca] sm:$0xff]  ;;  %v25619_v21 = vpack.c.bf16 %v8727_v26, %v8726_v3  ;;  %v8732_v8 = vld [vmem:[#allocation2 + $0xf2] sm:$0xff] }
 0x5fd   : > { %v8720_v46 = vld [vmem:[#allocation2 + $0x62] sm:$0xff]  ;;  %v8722_v42 = vld [vmem:[#allocation2 + $0x7a] sm:$0xff]  ;;  %v8737_v59 = vld [vmem:[#allocation2 + $0x12a] sm:$0xff] }
 0x5fe   : > { %v8261_v47 = vld [vmem:[#allocation2 + $0x169] sm:$0xff]  ;;  %v8725_v45 = vld [vmem:[#allocation2 + $0x9a] sm:$0xff] }
 0x5ff   : > { %v8723_v16 = vld [vmem:[#allocation2 + $0x82] sm:$0xff]  ;;  %v25613_v37 = vpack.c.bf16 %v8725_v45, %v8724_v57  ;;  %v8730_v49 = vld [vmem:[#allocation2 + $0xda] sm:$0xff] }
 0x600   : > { %v8262_v56 = vld [vmem:[#allocation2 + $0x171] sm:$0xff]  ;;  %v8728_v15 = vld [vmem:[#allocation2 + $0xc2] sm:$0xff]  ;;  %v8733_v43 = vld [vmem:[#allocation2 + $0xfa] sm:$0xff] }
 0x601   : > { %v25518_v6 = vpack.c.bf16 %v8262_v56, %v8261_v47  ;;  %v8212_v2 = vld [vmem:[#allocation2 + $0x170] sm:$0xff]  ;;  %v8211_v47 = vld [vmem:[#allocation2 + $0x168] sm:$0xff]  ;;  %v8744_v56 = vpack.c.bf16 %v8713_v55, %v8712_v23  ;;  %v25621_v12 = vpack.c.bf16 %v8729_v41, %v8728_v15  ;;  %v25629_v55 = vpack.c.bf16 %v8733_v43, %v8732_v8  ;;  %v8738_v17 = vld [vmem:[#allocation2 + $0x13a] sm:$0xff] }
 0x602   : > { %v8731_v33 = vld [vmem:[#allocation2 + $0xe2] sm:$0xff]  ;;  %v8743_v57 = vld [vmem:[#allocation2 + $0x172] sm:$0xff] }
 0x603   : > { %20073 = vmatmul.mubr.msk.bf16.gmra.mrb[92].mxu0 %vm709_vm9, %v25518_v6  ;;  %v25627_v23 = vpack.c.bf16 %v8731_v33, %v8730_v49  ;;  %v22373_v3 = vld [vmem:[%s27527_s1 + $0x28] sm:$0xff]   ;;  %v22374_v15 = vld [vmem:[%s27527_s1 + $0x30] sm:$0xff]   ;;  %v10208_v41 = vld [vmem:[#allocation2 + $0x79] sm:$0xff] }
 0x604   : > { %20078 = vmatprep.mubr.msk.bf16.mxu0 %vm709_vm9, %v8213_v19  ;;  %v25586_v19 = vpack.c.bf16 %v8212_v2, %v8211_v47  ;;  %v8734_v2 = vld [vmem:[#allocation2 + $0x10a] sm:$0xff]  ;;  %v8735_v47 = vld [vmem:[#allocation2 + $0x112] sm:$0xff] }
 0x605   : > { %v25635_v36 = vpack.c.bf16 %v8735_v47, %v8734_v2  ;;  %v10210_v33 = vld [vmem:[#allocation2 + $0x91] sm:$0xff]  ;;  %v10215_v2 = vld [vmem:[#allocation2 + $0xc9] sm:$0xff] }
 0x606   : > { %v10213_v43 = vld [vmem:[#allocation2 + $0xb1] sm:$0xff]  ;;  %v10212_v47 = vld [vmem:[#allocation2 + $0xa9] sm:$0xff] }
 0x60b   : > { %20079 = vmatmul.mubr.msk.bf16.vlgmr.msra.gmra.mrb[64].mxu0 %vm709_vm9, %v25523_v22 }
 0x60c   : > { %20082 = vmatprep.mubr.msk.bf16.mxu0 %vm709_vm9, %v25530_v63  ;;  %20111 = vmatpush3.bf16.msra.mxu0 %v25390_v5  ;;  %v25546_v5 = vpack.c.bf16 %v8192_v7, %v8191_v14  ;;  %v8719_v7 = vld [vmem:[#allocation2 + $0x52] sm:$0xff]  ;;  %v8721_v14 = vld [vmem:[#allocation2 + $0x6a] sm:$0xff] }
 0x60d   : > { %20144 = vmatprep.subr.bf16.mxu0 %v25528_v9  ;;  %v25603_v35 = vpack.c.bf16 %v8719_v7, %v8718_v0  ;;  %v25605_v31 = vpack.c.bf16 %v8721_v14, %v8720_v46  ;;  %v8739_v0 = vld [vmem:[#allocation2 + $0x142] sm:$0xff]  ;;  %v8740_v7 = vld [vmem:[#allocation2 + $0x152] sm:$0xff]  ;;  %v8741_v46 = vld [vmem:[#allocation2 + $0x15a] sm:$0xff] }
 0x60e   : > { %v25643_v14 = vpack.c.bf16 %v8739_v0, %v8738_v17 }
 0x613   : > { %20083 = vmatmul.mubr.msk.bf16.gmra.mrb[68].mxu0 %vm709_vm9, %v25538_v18 }
 0x614   : > { %20086 = vmatprep.mubr.msk.bf16.mxu0 %vm709_vm9, %v25540_v62 }
 0x61b   : > { %20087 = vmatmul.mubr.msk.bf16.gmra.mrb[72].mxu0 %vm709_vm9, %v25546_v5 }
 0x61c   : > { %20090 = vmatprep.mubr.msk.bf16.mxu0 %vm709_vm9, %v25548_v39 }
 0x623   : > { %20091 = vmatmul.mubr.msk.bf16.gmra.mrb[76].mxu0 %vm709_vm9, %v25554_v1 }
 0x624   : > { %20094 = vmatprep.mubr.msk.bf16.mxu0 %vm709_vm9, %v25556_v61 }
 0x62b   : > { %20095 = vmatmul.mubr.msk.bf16.gmra.mrb[80].mxu0 %vm709_vm9, %v25562_v13 }
 0x62c   : > { %20098 = vmatprep.mubr.msk.bf16.mxu0 %vm709_vm9, %v25564_v51 }
 0x633   : > { %20099 = vmatmul.mubr.msk.bf16.gmra.mrb[84].mxu0 %vm709_vm9, %v25570_v25 }
 0x634   : > { %20102 = vmatprep.mubr.msk.bf16.mxu0 %vm709_vm9, %v25572_v58 }
 0x63b   : > { %20103 = vmatmul.mubr.msk.bf16.gmra.mrb[88].mxu0 %vm709_vm9, %v25578_v53 }
 0x63c   : > { %20106 = vmatprep.mubr.msk.bf16.mxu0 %vm709_vm9, %v25580_v11 }
 0x643   : > { %20107 = vmatmul.mubr.msk.bf16.gmra.mrb[92].mxu0 %vm709_vm9, %v25586_v19 }
 0x644   : > { %20112 = vmatprep.mubr.msk.bf16.mxu0 %vm709_vm9, %v8744_v56  ;;  %v8736_v56 = vld [vmem:[#allocation2 + $0x122] sm:$0xff] }
 0x645   : > { %v25637_v34 = vpack.c.bf16 %v8737_v59, %v8736_v56  ;;  %v10239_v56 = vpack.c.bf16 %v10213_v43, %v10212_v47  ;;  %v10214_v59 = vld [vmem:[#allocation2 + $0xc1] sm:$0xff] }
 0x646   : > { %v10240_v17 = vpack.c.bf16 %v10215_v2, %v10214_v59 }
 0x64b   : > { %20113 = vmatmul.mubr.msk.bf16.vlgmr.msra.gmra.mrb[64].mxu0 %vm709_vm9, %v25591_v29 }
 0x64c   : > { %20116 = vmatprep.mubr.msk.bf16.mxu0 %vm709_vm9, %v25596_v30  ;;  %20145 = vmatpush3.bf16.msra.mxu0 %v25528_v9  ;;  %v25611_v9 = vpack.c.bf16 %v8723_v16, %v8722_v42  ;;  %v25645_v42 = vpack.c.bf16 %v8741_v46, %v8740_v7  ;;  %v8742_v16 = vld [vmem:[#allocation2 + $0x16a] sm:$0xff] }
 0x64d   : > { %20178 = vmatprep.subr.bf16.mxu0 %v22372_v44  ;;  %v25651_v45 = vpack.c.bf16 %v8743_v57, %v8742_v16 }
 0x653   : > { %20117 = vmatmul.mubr.msk.bf16.gmra.mrb[68].mxu0 %vm709_vm9, %v25603_v35 }
 0x654   : > { %20120 = vmatprep.mubr.msk.bf16.mxu0 %vm709_vm9, %v25605_v31 }
 0x65b   : > { %20121 = vmatmul.mubr.msk.bf16.gmra.mrb[72].mxu0 %vm709_vm9, %v25611_v9 }
 0x65c   : > { %20124 = vmatprep.mubr.msk.bf16.mxu0 %vm709_vm9, %v25613_v37 }
 0x663   : > { %20125 = vmatmul.mubr.msk.bf16.gmra.mrb[76].mxu0 %vm709_vm9, %v25619_v21 }
 0x664   : > { %20128 = vmatprep.mubr.msk.bf16.mxu0 %vm709_vm9, %v25621_v12 }
 0x66b   : > { %20129 = vmatmul.mubr.msk.bf16.gmra.mrb[80].mxu0 %vm709_vm9, %v25627_v23 }
 0x66c   : > { %20132 = vmatprep.mubr.msk.bf16.mxu0 %vm709_vm9, %v25629_v55 }
 0x673   : > { %20133 = vmatmul.mubr.msk.bf16.gmra.mrb[84].mxu0 %vm709_vm9, %v25635_v36 }
 0x674   : > { %20136 = vmatprep.mubr.msk.bf16.mxu0 %vm709_vm9, %v25637_v34 }
 0x67b   : > { %20137 = vmatmul.mubr.msk.bf16.gmra.mrb[88].mxu0 %vm709_vm9, %v25643_v14 }
 0x67c   : > { %20140 = vmatprep.mubr.msk.bf16.mxu0 %vm709_vm9, %v25645_v42 }
 0x683   : > { %20141 = vmatmul.mubr.msk.bf16.gmra.mrb[92].mxu0 %vm709_vm9, %v25651_v45 }
 0x684   : > { %20146 = vmatprep.mubr.msk.bf16.mxu0 %vm709_vm9, %v25523_v22  ;;  %v9041_v22 = vld [vmem:[#allocation2 + $0x188] sm:$0xff] }
 0x68b   : > { %20147 = vmatmul.mubr.msk.bf16.vlgmr.msra.gmra.mrb[64].mxu0 %vm709_vm9, %v25530_v63 }
 0x68c   : > { %20150 = vmatprep.mubr.msk.bf16.mxu0 %vm709_vm9, %v25538_v18  ;;  %20179 = vmatpush3.bf16.msra.mxu0 %v22372_v44  ;;  %v9040_v44 = vld [vmem:[#allocation2 + $0x180] sm:$0xff] }
 0x68d   : > { %20212 = vmatprep.subr.bf16.mxu0 %v22373_v3  ;;  %v25688_v26 = vpack.c.bf16 %v9041_v22, %v9040_v44 }
 0x693   : > { %20151 = vmatmul.mubr.msk.bf16.gmra.mrb[68].mxu0 %vm709_vm9, %v25540_v62 }
 0x694   : > { %20154 = vmatprep.mubr.msk.bf16.mxu0 %vm709_vm9, %v25546_v5 }
 0x69b   : > { %20155 = vmatmul.mubr.msk.bf16.gmra.mrb[72].mxu0 %vm709_vm9, %v25548_v39 }
 0x69c   : > { %20158 = vmatprep.mubr.msk.bf16.mxu0 %vm709_vm9, %v25554_v1 }
 0x6a3   : > { %20159 = vmatmul.mubr.msk.bf16.gmra.mrb[76].mxu0 %vm709_vm9, %v25556_v61 }
 0x6a4   : > { %20162 = vmatprep.mubr.msk.bf16.mxu0 %vm709_vm9, %v25562_v13 }
 0x6ab   : > { %20163 = vmatmul.mubr.msk.bf16.gmra.mrb[80].mxu0 %vm709_vm9, %v25564_v51 }
 0x6ac   : > { %20166 = vmatprep.mubr.msk.bf16.mxu0 %vm709_vm9, %v25570_v25 }
 0x6b3   : > { %20167 = vmatmul.mubr.msk.bf16.gmra.mrb[84].mxu0 %vm709_vm9, %v25572_v58 }
 0x6b4   : > { %20170 = vmatprep.mubr.msk.bf16.mxu0 %vm709_vm9, %v25578_v53 }
 0x6bb   : > { %20171 = vmatmul.mubr.msk.bf16.gmra.mrb[88].mxu0 %vm709_vm9, %v25580_v11 }
 0x6bc   : > { %20174 = vmatprep.mubr.msk.bf16.mxu0 %vm709_vm9, %v25586_v19 }
 0x6c3   : > { %20175 = vmatmul.mubr.msk.bf16.gmra.mrb[92].mxu0 %vm709_vm9, %v25688_v26 }
 0x6c4   : > { %20180 = vmatprep.mubr.msk.bf16.mxu0 %vm709_vm9, %v25385_v54  ;;  %v9339_v54 = vld [vmem:[#allocation2 + $0x189] sm:$0xff] }
 0x6cb   : > { %20181 = vmatmul.mubr.msk.bf16.vlgmr.msra.gmra.mrb[64].mxu0 %vm709_vm9, %v25394_v38  ;;  %v9338_v38 = vld [vmem:[#allocation2 + $0x181] sm:$0xff] }
 0x6cc   : > { %20184 = vmatprep.mubr.msk.bf16.mxu0 %vm709_vm9, %v25412_v4  ;;  %20213 = vmatpush3.bf16.msra.mxu0 %v22373_v3  ;;  %v25725_v4 = vpack.c.bf16 %v9339_v54, %v9338_v38  ;;  %v27547_v3 = vld [vmem:[#allocation13_spill] sm:$0xff] }
 0x6cd   : > { %20246 = vmatprep.subr.bf16.mxu0 %v22374_v15  ;;  %v27548_v22 = vmax.f32 %v27547_v3, 0.0 }
 0x6d3   : > { %20185 = vmatmul.mubr.msk.bf16.gmra.mrb[68].mxu0 %vm709_vm9, %v25416_v20  ;;  %v22375_v20 = vld [vmem:[%s27527_s1 + $0x38] sm:$0xff]  }
 0x6d4   : > { %20188 = vmatprep.mubr.msk.bf16.mxu0 %vm709_vm9, %v25432_v52  ;;  %v9636_v52 = vld [vmem:[#allocation2 + $0x182] sm:$0xff] }
 0x6db   : > { %20189 = vmatmul.mubr.msk.bf16.gmra.mrb[72].mxu0 %vm709_vm9, %v25436_v48  ;;  %v9637_v48 = vld [vmem:[#allocation2 + $0x18a] sm:$0xff] }
 0x6dc   : > { %20192 = vmatprep.mubr.msk.bf16.mxu0 %vm709_vm9, %v25452_v27  ;;  %v25762_v27 = vpack.c.bf16 %v9637_v48, %v9636_v52 }
 0x6e3   : > { %20193 = vmatmul.mubr.msk.bf16.gmra.mrb[76].mxu0 %vm709_vm9, %v25456_v10  ;;  %v22376_v10 = vld [vmem:[%s27527_s1 + $0x40] sm:$0xff]   ;;  %s17130_s1 = scalar_lea.sflag [#allocation6], %s701_s0 }
 0x6e4   : > { %20196 = vmatprep.mubr.msk.bf16.mxu0 %vm709_vm9, %v25472_v60 }
 0x6eb   : > { %20197 = vmatmul.mubr.msk.bf16.gmra.mrb[80].mxu0 %vm709_vm9, %v25476_v24 }
 0x6ec   : > { %20200 = vmatprep.mubr.msk.bf16.mxu0 %vm709_vm9, %v25492_v50 }
 0x6f3   : > { %20201 = vmatmul.mubr.msk.bf16.gmra.mrb[84].mxu0 %vm709_vm9, %v25496_v28 }
 0x6f4   : > { %20204 = vmatprep.mubr.msk.bf16.mxu0 %vm709_vm9, %v25510_v40 }
 0x6fb   : > { %20205 = vmatmul.mubr.msk.bf16.gmra.mrb[88].mxu0 %vm709_vm9, %v25512_v32 }
 0x6fc   : > { %20208 = vmatprep.mubr.msk.bf16.mxu0 %vm709_vm9, %v25518_v6 }
 0x703   : > { %20209 = vmatmul.mubr.msk.bf16.gmra.mrb[92].mxu0 %vm709_vm9, %v25725_v4 }
 0x704   : > { %20214 = vmatprep.mubr.msk.bf16.mxu0 %vm709_vm9, %v25591_v29  ;;  %v10211_v29 = vld [vmem:[#allocation2 + $0x99] sm:$0xff] }
 0x705   : > { %v10238_v8 = vpack.c.bf16 %v10211_v29, %v10210_v33  ;;  %v27557_v33 = vld [vmem:[#allocation17_spill] sm:$0xff] }
 0x70b   : > { %20215 = vmatmul.mubr.msk.bf16.vlgmr.msra.gmra.mrb[64].mxu0 %vm709_vm9, %v25596_v30 }
 0x70c   : > { %20218 = vmatprep.mubr.msk.bf16.mxu0 %vm709_vm9, %v25603_v35  ;;  %20247 = vmatpush3.bf16.msra.mxu0 %v22374_v15  ;;  %v27549_v15 = vld [vmem:[#allocation11_spill] sm:$0xff] }
 0x70d   : > { %20280 = vmatprep.subr.bf16.mxu0 %v22375_v20  ;;  %v27550_v54 = vmax.f32 %v27549_v15, 0.0 }
 0x713   : > { %20219 = vmatmul.mubr.msk.bf16.gmra.mrb[68].mxu0 %vm709_vm9, %v25605_v31 }
 0x714   : > { %20222 = vmatprep.mubr.msk.bf16.mxu0 %vm709_vm9, %v25611_v9 }
 0x71b   : > { %20223 = vmatmul.mubr.msk.bf16.gmra.mrb[72].mxu0 %vm709_vm9, %v25613_v37 }
 0x71c   : > { %20226 = vmatprep.mubr.msk.bf16.mxu0 %vm709_vm9, %v25619_v21 }
 0x723   : > { %20227 = vmatmul.mubr.msk.bf16.gmra.mrb[76].mxu0 %vm709_vm9, %v25621_v12 }
 0x724   : > { %20230 = vmatprep.mubr.msk.bf16.mxu0 %vm709_vm9, %v25627_v23 }
 0x72b   : > { %20231 = vmatmul.mubr.msk.bf16.gmra.mrb[80].mxu0 %vm709_vm9, %v25629_v55 }
 0x72c   : > { %20234 = vmatprep.mubr.msk.bf16.mxu0 %vm709_vm9, %v25635_v36 }
 0x733   : > { %20235 = vmatmul.mubr.msk.bf16.gmra.mrb[84].mxu0 %vm709_vm9, %v25637_v34 }
 0x734   : > { %20238 = vmatprep.mubr.msk.bf16.mxu0 %vm709_vm9, %v25643_v14 }
 0x73b   : > { %20239 = vmatmul.mubr.msk.bf16.gmra.mrb[88].mxu0 %vm709_vm9, %v25645_v42 }
 0x73c   : > { %20242 = vmatprep.mubr.msk.bf16.mxu0 %vm709_vm9, %v25651_v45 }
 0x743   : > { %20243 = vmatmul.mubr.msk.bf16.gmra.mrb[92].mxu0 %vm709_vm9, %v25762_v27 }
 0x744   : > { %20248 = vmatprep.mubr.msk.bf16.mxu0 %vm709_vm9, %v25530_v63  ;;  %v9934_v63 = vld [vmem:[#allocation2 + $0x198] sm:$0xff] }
 0x74b   : > { %20249 = vmatmul.mubr.msk.bf16.vlgmr.msra.gmra.mrb[64].mxu0 %vm709_vm9, %v25538_v18  ;;  %v9935_v18 = vld [vmem:[#allocation2 + $0x1a0] sm:$0xff] }
 0x74c   : > { %20252 = vmatprep.mubr.msk.bf16.mxu0 %vm709_vm9, %v25540_v62  ;;  %20281 = vmatpush3.bf16.msra.mxu0 %v22375_v20  ;;  %v9951_v62 = vpack.c.bf16 %v9935_v18, %v9934_v63 }
 0x74d   : > { %20314 = vmatprep.subr.bf16.mxu0 %v22376_v10 }
 0x753   : > { %20253 = vmatmul.mubr.msk.bf16.gmra.mrb[68].mxu0 %vm709_vm9, %v25546_v5  ;;  %v10203_v5 = vld [vmem:[#allocation2 + $0x39] sm:$0xff] }
 0x754   : > { %20256 = vmatprep.mubr.msk.bf16.mxu0 %vm709_vm9, %v25548_v39  ;;  %v10202_v39 = vld [vmem:[#allocation2 + $0x31] sm:$0xff] }
 0x75b   : > { %20257 = vmatmul.mubr.msk.bf16.gmra.mrb[72].mxu0 %vm709_vm9, %v25554_v1  ;;  %v10234_v1 = vpack.c.bf16 %v10203_v5, %v10202_v39  ;;  %v27551_v5 = vld [vmem:[#allocation14_spill] sm:$0xff] }
 0x75c   : > { %20260 = vmatprep.mubr.msk.bf16.mxu0 %vm709_vm9, %v25556_v61  ;;  %v22377_v61 = vld [vmem:[%s27541_s3 + $0x8] sm:$0xff]   ;;  %v27552_v39 = vmax.f32 %v27551_v5, 0.0 }
 0x75d   : > { %20348 = vmatprep.subr.bf16.mxu1 %v22377_v61 }
 0x75e   : > { %20349 = vmatpush3.bf16.msra.mxu1 %v22377_v61 }
 0x763   : > { %20261 = vmatmul.mubr.msk.bf16.gmra.mrb[76].mxu0 %vm709_vm9, %v25562_v13  ;;  %v10205_v13 = vld [vmem:[#allocation2 + $0x51] sm:$0xff] }
 0x764   : > { %20264 = vmatprep.mubr.msk.bf16.mxu0 %vm709_vm9, %v25564_v51  ;;  %v10207_v51 = vld [vmem:[#allocation2 + $0x69] sm:$0xff] }
 0x76b   : > { %20265 = vmatmul.mubr.msk.bf16.gmra.mrb[80].mxu0 %vm709_vm9, %v25570_v25  ;;  %v10204_v25 = vld [vmem:[#allocation2 + $0x49] sm:$0xff] }
 0x76c   : > { %20268 = vmatprep.mubr.msk.bf16.mxu0 %vm709_vm9, %v25572_v58  ;;  %v10235_v58 = vpack.c.bf16 %v10205_v13, %v10204_v25 }
 0x773   : > { %20269 = vmatmul.mubr.msk.bf16.gmra.mrb[84].mxu0 %vm709_vm9, %v25578_v53  ;;  %v10206_v53 = vld [vmem:[#allocation2 + $0x61] sm:$0xff] }
 0x774   : > { %20272 = vmatprep.mubr.msk.bf16.mxu0 %vm709_vm9, %v25580_v11  ;;  %v10236_v11 = vpack.c.bf16 %v10207_v51, %v10206_v53  ;;  %v27553_v51 = vld [vmem:[#allocation15_spill] sm:$0xff] }
 0x775   : > { %v27554_v25 = vmax.f32 %v27553_v51, 0.0 }
 0x77b   : > { %20273 = vmatmul.mubr.msk.bf16.gmra.mrb[88].mxu0 %vm709_vm9, %v25586_v19  ;;  %v10209_v19 = vld [vmem:[#allocation2 + $0x81] sm:$0xff] }
 0x77c   : > { %20276 = vmatprep.mubr.msk.bf16.mxu0 %vm709_vm9, %v25688_v26  ;;  %v10237_v49 = vpack.c.bf16 %v10209_v19, %v10208_v41  ;;  %v27555_v19 = vld [vmem:[#allocation16_spill] sm:$0xff] }
 0x77d   : > { %v27556_v29 = vmax.f32 %v27555_v19, 0.0 }
 0x783   : > { %20277 = vmatmul.mubr.msk.bf16.gmra.mrb[92].mxu0 %vm709_vm9, %v9951_v62 }
 0x784   : > { %20282 = vmatprep.mubr.msk.bf16.mxu0 %vm709_vm9, %v10234_v1 }
 0x78b   : > { %20283 = vmatmul.mubr.msk.bf16.vlgmr.msra.gmra.mrb[64].mxu0 %vm709_vm9, %v10235_v58 }
 0x78c   : > { %20286 = vmatprep.mubr.msk.bf16.mxu0 %vm709_vm9, %v10236_v11  ;;  %20315 = vmatpush3.bf16.msra.mxu0 %v22376_v10 }
 0x793   : > { %20287 = vmatmul.mubr.msk.bf16.gmra.mrb[68].mxu0 %vm709_vm9, %v10237_v49 }
 0x794   : > { %20290 = vmatprep.mubr.msk.bf16.mxu0 %vm709_vm9, %v10238_v8  ;;  %v27558_v8 = vmax.f32 %v27557_v33, 0.0  ;;  %v27572_v33 = vld [vmem:[#allocation25_spill] sm:$0xff] }
 0x79b   : > { %20291 = vmatmul.mubr.msk.bf16.gmra.mrb[72].mxu0 %vm709_vm9, %v10239_v56 }
 0x79c   : > { %20294 = vmatprep.mubr.msk.bf16.mxu0 %vm709_vm9, %v10240_v17 }
 0x7a3   : > { %20295 = vmatmul.mubr.msk.bf16.gmra.mrb[76].mxu0 %vm709_vm9, %v25472_v60  ;;  %v10232_v60 = vld [vmem:[#allocation2 + $0x199] sm:$0xff] }
 0x7a4   : > { %20298 = vmatprep.mubr.msk.bf16.mxu0 %vm709_vm9, %v25476_v24  ;;  %v10233_v24 = vld [vmem:[#allocation2 + $0x1a1] sm:$0xff] }
 0x7a5   : > { %v10249_v0 = vpack.c.bf16 %v10233_v24, %v10232_v60 }
 0x7ab   : > { %20299 = vmatmul.mubr.msk.bf16.gmra.mrb[80].mxu0 %vm709_vm9, %v25492_v50  ;;  %v10530_v50 = vld [vmem:[#allocation2 + $0x19a] sm:$0xff] }
 0x7ac   : > { %20302 = vmatprep.mubr.msk.bf16.mxu0 %vm709_vm9, %v25496_v28  ;;  %v10531_v28 = vld [vmem:[#allocation2 + $0x1a2] sm:$0xff] }
 0x7b3   : > { %20303 = vmatmul.mubr.msk.bf16.gmra.mrb[84].mxu0 %vm709_vm9, %v25510_v40  ;;  %v10547_v40 = vpack.c.bf16 %v10531_v28, %v10530_v50 }
 0x7b4   : > { %20306 = vmatprep.mubr.msk.bf16.mxu0 %vm709_vm9, %v25512_v32  ;;  %v10983_v32 = vld [vmem:[#allocation2 + $0x1] sm:$0xff] }
 0x7bb   : > { %20307 = vmatmul.mubr.msk.bf16.gmra.mrb[88].mxu0 %vm709_vm9, %v25518_v6  ;;  %v10984_v6 = vld [vmem:[#allocation2 + $0x9] sm:$0xff] }
 0x7bc   : > { %20310 = vmatprep.mubr.msk.bf16.mxu0 %vm709_vm9, %v25725_v4 }
 0x7c3   : > { %20311 = vmatmul.mubr.msk.bf16.gmra.mrb[92].mxu0 %vm709_vm9, %v10249_v0 }
 0x7c4   : > { %20316 = vmatprep.mubr.msk.bf16.mxu0 %vm709_vm9, %v25596_v30  ;;  %v11015_v30 = vpack.c.bf16 %v10984_v6, %v10983_v32 }
 0x7c6   : > { %20350 = vmatprep.mubr.msk.bf16.mxu1 %vm709_vm9, %v11015_v30 }
 0x7cb   : > { %20317 = vmatmul.mubr.msk.bf16.vlgmr.msra.gmra.mrb[64].mxu0 %vm709_vm9, %v25603_v35  ;;  %v25862_v35 = vld [vmem:[%s27541_s3] sm:$0xff]  }
 0x7cc   : > { %20320 = vmatprep.mubr.msk.bf16.mxu0 %vm709_vm9, %v25605_v31  ;;  %20382 = vmatprep.subr.bf16.mxu1 %v25862_v35  ;;  %v25868_v31 = vld [vmem:[%s27542_s29] ss:$0 sm:$0xff]  ;;  %s702_s29 = scalar_lea.vmem [#allocation5], %s701_s0 }
 0x7cd   : > { %s17142_s26 = sshll.u32 %s702_s29, 4  ;;  %s27213_s26 = int_to_ptr.vmem [resolvable:$true] %s17142_s26 }
 0x7d3   : > { %20321 = vmatmul.mubr.msk.bf16.gmra.mrb[68].mxu0 %vm709_vm9, %v25611_v9 }
 0x7d4   : > { %20324 = vmatprep.mubr.msk.bf16.mxu0 %vm709_vm9, %v25613_v37 }
 0x7db   : > { %20325 = vmatmul.mubr.msk.bf16.gmra.mrb[72].mxu0 %vm709_vm9, %v25619_v21 }
 0x7dc   : > { %20328 = vmatprep.mubr.msk.bf16.mxu0 %vm709_vm9, %v25621_v12 }
 0x7e3   : > { %20329 = vmatmul.mubr.msk.bf16.gmra.mrb[76].mxu0 %vm709_vm9, %v25627_v23 }
 0x7e4   : > { %20332 = vmatprep.mubr.msk.bf16.mxu0 %vm709_vm9, %v25629_v55  ;;  %v27543_v55 = vld [vmem:[#allocation18_spill] sm:$0xff] }
 0x7eb   : > { %20333 = vmatmul.mubr.msk.bf16.gmra.mrb[80].mxu0 %vm709_vm9, %v25635_v36  ;;  %v27544_v36 = vmax.f32 %v27543_v55, 0.0 }
 0x7ec   : > { %20336 = vmatprep.mubr.msk.bf16.mxu0 %vm709_vm9, %v25637_v34 }
 0x7f3   : > { %20337 = vmatmul.mubr.msk.bf16.gmra.mrb[84].mxu0 %vm709_vm9, %v25643_v14  ;;  %v27545_v14 = vld [vmem:[#allocation12_spill] sm:$0xff] }
 0x7f4   : > { %20340 = vmatprep.mubr.msk.bf16.mxu0 %vm709_vm9, %v25645_v42  ;;  %v27546_v42 = vmax.f32 %v27545_v14, 0.0 }
 0x7fb   : > { %20341 = vmatmul.mubr.msk.bf16.gmra.mrb[88].mxu0 %vm709_vm9, %v25651_v45 }
 0x7fc   : > { %20344 = vmatprep.mubr.msk.bf16.mxu0 %vm709_vm9, %v25762_v27 }
 0x803   : > { %20345 = vmatmul.mubr.msk.bf16.gmra.mrb[92].mxu0 %vm709_vm9, %v10547_v40 }
 0x89e   : > { %v20318_v9 = vpop.f32.mrb[64].mxu0 }
 0x89f   : > { %v10807_v37 = vadd.f32 %v20318_v9, %v25868_v31  ;;  %v10639_v21 = vpop.f32.mrb[65].mxu0  ;;  %v25917_v9 = vld [vmem:[%s27541_s3 + $0x10] sm:$0xff]  }
 0x8a0   : > { %v10805_v12 = vadd.f32 %v25868_v31, %v10639_v21  ;;  %v20319_v23 = vpop.f32.mrb[66].mxu0 }
 0x8a1   : > { %v10839_v34 = vadd.f32 %v10807_v37, %v27544_v36  ;;  %v10808_v7 = vadd.f32 %v20319_v23, %v25868_v31  ;;  %v10642_v46 = vpop.f32.mrb[67].mxu0  ;;  %v27559_v37 = vld [vmem:[#allocation19_spill] sm:$0xff] }
 0x8a2   : > { %v10837_v16 = vadd.f32 %v10805_v12, %v27546_v42  ;;  %v10806_v57 = vadd.f32 %v25868_v31, %v10642_v46  ;;  %v27560_v21 = vmax.f32 %v27559_v37, 0.0 }
 0x8a3   : > { %v10871_v45 = vmax.f32 %v10839_v34, 0.0  ;;  %v10840_v44 = vadd.f32 %v10808_v7, %v27548_v22  ;;  %v27561_v34 = vld [vmem:[#allocation20_spill] sm:$0xff]  ;;  %v27565_v22 = vld [vmem:[#allocation22_spill] sm:$0xff] }
 0x8a4   : > { %v10869_v26 = vmax.f32 %v10837_v16, 0.0  ;;  %v10838_v38 = vadd.f32 %v10806_v57, %v27550_v54  ;;  %v27562_v7 = vmax.f32 %v27561_v34, 0.0  ;;  %v27563_v16 = vld [vmem:[#allocation21_spill] sm:$0xff] }
 0x8a5   : > { %10903 = vst.msk [vmem:[#allocation2 + $0x31] sm:$0xff] %vm709_vm9, %v10871_v45  ;;  %v10872_v4 = vmax.f32 %v10840_v44, 0.0  ;;  %v27564_v57 = vmax.f32 %v27563_v16, 0.0  ;;  %v27566_v44 = vmax.f32 %v27565_v22, 0.0 }
 0x8a6   : > { %10901 = vst.msk [vmem:[#allocation2 + $0x19] sm:$0xff] %vm709_vm9, %v10869_v26  ;;  %v10870_v20 = vmax.f32 %v10838_v38, 0.0  ;;  %v20322_v52 = vpop.f32.mrb[68].mxu0 }
 0x8a7   : > { %v25884_v48 = vpack.c.bf16 %v10872_v4, %v10871_v45  ;;  %10904 = vst.msk [vmem:[#allocation2 + $0x39] sm:$0xff] %vm709_vm9, %v10872_v4  ;;  %v10811_v27 = vadd.f32 %v20322_v52, %v25868_v31  ;;  %v10655_v10 = vpop.f32.mrb[69].mxu0 }
 0x8a8   : > { %v25888_v63 = vpack.c.bf16 %v10870_v20, %v10869_v26  ;;  %10902 = vst.msk [vmem:[#allocation2 + $0x21] sm:$0xff] %vm709_vm9, %v10870_v20  ;;  %v10809_v18 = vadd.f32 %v25868_v31, %v10655_v10  ;;  %v20323_v62 = vpop.f32.mrb[70].mxu0 }
 0x8a9   : > { %v10843_v1 = vadd.f32 %v10811_v27, %v27552_v39  ;;  %v10812_v61 = vadd.f32 %v20323_v62, %v25868_v31  ;;  %v10658_v13 = vpop.f32.mrb[71].mxu0 }
 0x8aa   : > { %v10841_v58 = vadd.f32 %v10809_v18, %v27554_v25  ;;  %v10810_v53 = vadd.f32 %v25868_v31, %v10658_v13 }
 0x8ab   : > { %v10875_v11 = vmax.f32 %v10843_v1, 0.0  ;;  %v10844_v41 = vadd.f32 %v10812_v61, %v27556_v29  ;;  %v27568_v61 = vld [vmem:[#allocation23_spill] sm:$0xff] }
 0x8ac   : > { %v10873_v49 = vmax.f32 %v10841_v58, 0.0  ;;  %v10842_v43 = vadd.f32 %v10810_v53, %v27558_v8  ;;  %v10987_v30 = vld [vmem:[#allocation2 + $0x31] sm:$0xff]  ;;  %v27569_v13 = vmax.f32 %v27568_v61, 0.0  ;;  %v27573_v8 = vmax.f32 %v27572_v33, 0.0 }
 0x8ad   : > { %10907 = vst.msk [vmem:[#allocation2 + $0x61] sm:$0xff] %vm709_vm9, %v10875_v11  ;;  %v10876_v2 = vmax.f32 %v10844_v41, 0.0  ;;  %v10985_v0 = vld [vmem:[#allocation2 + $0x19] sm:$0xff] }
 0x8ae   : > { %10905 = vst.msk [vmem:[#allocation2 + $0x49] sm:$0xff] %vm709_vm9, %v10873_v49  ;;  %v10874_v47 = vmax.f32 %v10842_v43, 0.0  ;;  %v20326_v56 = vpop.f32.mrb[72].mxu0  ;;  %v10988_v59 = vld [vmem:[#allocation2 + $0x39] sm:$0xff] }
 0x8af   : > { %v25904_v17 = vpack.c.bf16 %v10876_v2, %v10875_v11  ;;  %10908 = vst.msk [vmem:[#allocation2 + $0x69] sm:$0xff] %vm709_vm9, %v10876_v2  ;;  %v10815_v60 = vadd.f32 %v20326_v56, %v25868_v31  ;;  %v10671_v24 = vpop.f32.mrb[73].mxu0  ;;  %v10986_v50 = vld [vmem:[#allocation2 + $0x21] sm:$0xff]  ;;  %v25922_v36 = vpack.c.bf16 %v10988_v59, %v10987_v30  ;;  %v27570_v11 = vld [vmem:[#allocation24_spill] sm:$0xff] }
 0x8b0   : > { %v25908_v28 = vpack.c.bf16 %v10874_v47, %v10873_v49  ;;  %10906 = vst.msk [vmem:[#allocation2 + $0x51] sm:$0xff] %vm709_vm9, %v10874_v47  ;;  %v10813_v40 = vadd.f32 %v25868_v31, %v10671_v24  ;;  %v20327_v32 = vpop.f32.mrb[74].mxu0  ;;  %v25912_v6 = vpack.c.bf16 %v10986_v50, %v10985_v0  ;;  %v27571_v19 = vmax.f32 %v27570_v11, 0.0  ;;  %v27574_v47 = vld [vmem:[#allocation26_spill] sm:$0xff] }
 0x8b1   : > { %v10847_v12 = vadd.f32 %v10815_v60, %v27560_v21  ;;  %v10816_v23 = vadd.f32 %v20327_v32, %v25868_v31  ;;  %v10674_v55 = vpop.f32.mrb[75].mxu0  ;;  %v27575_v56 = vmax.f32 %v27574_v47, 0.0 }
 0x8b2   : > { %v10845_v46 = vadd.f32 %v10813_v40, %v27562_v7  ;;  %v10814_v14 = vadd.f32 %v25868_v31, %v10674_v55  ;;  %20351 = vmatmul.mubr.msk.bf16.vlgmr.msra.gmra.mrb[32].mxu1 %vm709_vm9, %v25912_v6 }
 0x8b3   : > { %v10879_v42 = vmax.f32 %v10847_v12, 0.0  ;;  %v10848_v45 = vadd.f32 %v10816_v23, %v27564_v57  ;;  %20354 = vmatprep.mubr.msk.bf16.mxu1 %vm709_vm9, %v25922_v36  ;;  %20383 = vmatpush3.bf16.msra.mxu1 %v25862_v35 }
 0x8b4   : > { %v10877_v3 = vmax.f32 %v10845_v46, 0.0  ;;  %v10846_v26 = vadd.f32 %v10814_v14, %v27566_v44  ;;  %20416 = vmatprep.subr.bf16.mxu1 %v25917_v9  ;;  %v10991_v1 = vld [vmem:[#allocation2 + $0x61] sm:$0xff] }
 0x8b5   : > { %10911 = vst.msk [vmem:[#allocation2 + $0x91] sm:$0xff] %vm709_vm9, %v10879_v42  ;;  %v10880_v15 = vmax.f32 %v10848_v45, 0.0  ;;  %v10989_v27 = vld [vmem:[#allocation2 + $0x49] sm:$0xff] }
 0x8b6   : > { %10909 = vst.msk [vmem:[#allocation2 + $0x79] sm:$0xff] %vm709_vm9, %v10877_v3  ;;  %v10878_v54 = vmax.f32 %v10846_v26, 0.0  ;;  %v20330_v38 = vpop.f32.mrb[76].mxu0  ;;  %v10992_v4 = vld [vmem:[#allocation2 + $0x69] sm:$0xff] }
 0x8b7   : > { %v25939_v20 = vpack.c.bf16 %v10880_v15, %v10879_v42  ;;  %10912 = vst.msk [vmem:[#allocation2 + $0x99] sm:$0xff] %vm709_vm9, %v10880_v15  ;;  %v10819_v35 = vadd.f32 %v20330_v38, %v25868_v31  ;;  %v10687_v52 = vpop.f32.mrb[77].mxu0  ;;  %v10990_v10 = vld [vmem:[#allocation2 + $0x51] sm:$0xff]  ;;  %v25952_v53 = vpack.c.bf16 %v10992_v4, %v10991_v1  ;;  %v27578_v46 = vld [vmem:[#allocation27_spill] sm:$0xff] }
 0x8b8   : > { %v25943_v18 = vpack.c.bf16 %v10878_v54, %v10877_v3  ;;  %10910 = vst.msk [vmem:[#allocation2 + $0x81] sm:$0xff] %vm709_vm9, %v10878_v54  ;;  %v10817_v62 = vadd.f32 %v25868_v31, %v10687_v52  ;;  %v20331_v5 = vpop.f32.mrb[78].mxu0  ;;  %v25947_v39 = vpack.c.bf16 %v10990_v10, %v10989_v27  ;;  %v27579_v14 = vmax.f32 %v27578_v46, 0.0  ;;  %v27580_v3 = vld [vmem:[#allocation28_spill] sm:$0xff]  ;;  %v27582_v54 = vld [vmem:[#allocation29_spill] sm:$0xff]  ;;  %v27584_v52 = vld [vmem:[#allocation30_spill] sm:$0xff] }
 0x8b9   : > { %27567 = vst [vmem:[#allocation43_spill] sm:$0xff] %v25939_v20  ;;  %v10851_v51 = vadd.f32 %v10819_v35, %v27569_v13  ;;  %v10820_v25 = vadd.f32 %v20331_v5, %v25868_v31  ;;  %v10690_v58 = vpop.f32.mrb[79].mxu0  ;;  %v27581_v22 = vmax.f32 %v27580_v3, 0.0  ;;  %v27583_v38 = vmax.f32 %v27582_v54, 0.0 }
 0x8ba   : > { %v10849_v29 = vadd.f32 %v10817_v62, %v27571_v19  ;;  %v10818_v41 = vadd.f32 %v25868_v31, %v10690_v58  ;;  %20355 = vmatmul.mubr.msk.bf16.gmra.mrb[36].mxu1 %vm709_vm9, %v25947_v39  ;;  %v27585_v27 = vmax.f32 %v27584_v52, 0.0 }
 0x8bb   : > { %v10883_v49 = vmax.f32 %v10851_v51, 0.0  ;;  %v10852_v43 = vadd.f32 %v10820_v25, %v27573_v8  ;;  %20358 = vmatprep.mubr.msk.bf16.mxu1 %vm709_vm9, %v25952_v53  ;;  %v27586_v8 = vld [vmem:[#allocation31_spill] sm:$0xff] }
 0x8bc   : > { %v10881_v2 = vmax.f32 %v10849_v29, 0.0  ;;  %v10850_v59 = vadd.f32 %v10818_v41, %v27575_v56  ;;  %v10995_v7 = vld [vmem:[#allocation2 + $0x91] sm:$0xff] }
 0x8bd   : > { %10915 = vst.msk [vmem:[#allocation2 + $0xc1] sm:$0xff] %vm709_vm9, %v10883_v49  ;;  %v10884_v60 = vmax.f32 %v10852_v43, 0.0  ;;  %v10993_v37 = vld [vmem:[#allocation2 + $0x79] sm:$0xff]  ;;  %v27587_v43 = vmax.f32 %v27586_v8, 0.0 }
 0x8be   : > { %10913 = vst.msk [vmem:[#allocation2 + $0xa9] sm:$0xff] %vm709_vm9, %v10881_v2  ;;  %v10882_v24 = vmax.f32 %v10850_v59, 0.0  ;;  %v20334_v0 = vpop.f32.mrb[80].mxu0  ;;  %v10996_v50 = vld [vmem:[#allocation2 + $0x99] sm:$0xff] }
 0x8bf   : > { %v25967_v40 = vpack.c.bf16 %v10884_v60, %v10883_v49  ;;  %10916 = vst.msk [vmem:[#allocation2 + $0xc9] sm:$0xff] %vm709_vm9, %v10884_v60  ;;  %v10823_v32 = vadd.f32 %v20334_v0, %v25868_v31  ;;  %v10703_v30 = vpop.f32.mrb[81].mxu0  ;;  %v10994_v21 = vld [vmem:[#allocation2 + $0x81] sm:$0xff]  ;;  %v25980_v45 = vpack.c.bf16 %v10996_v50, %v10995_v7  ;;  %v27588_v60 = vld [vmem:[#allocation32_spill] sm:$0xff] }
 0x8c0   : > { %v25971_v12 = vpack.c.bf16 %v10882_v24, %v10881_v2  ;;  %10914 = vst.msk [vmem:[#allocation2 + $0xb1] sm:$0xff] %vm709_vm9, %v10882_v24  ;;  %v10821_v23 = vadd.f32 %v25868_v31, %v10703_v30  ;;  %v20335_v55 = vpop.f32.mrb[82].mxu0  ;;  %v25975_v34 = vpack.c.bf16 %v10994_v21, %v10993_v37  ;;  %v27589_v24 = vmax.f32 %v27588_v60, 0.0  ;;  %v27590_v30 = vld [vmem:[#allocation33_spill] sm:$0xff] }
 0x8c1   : > { %27576 = vst [vmem:[#allocation44_spill] sm:$0xff] %v25967_v40  ;;  %v10855_v42 = vadd.f32 %v10823_v32, %v27579_v14  ;;  %v10824_v16 = vadd.f32 %v20335_v55, %v25868_v31  ;;  %v10706_v57 = vpop.f32.mrb[83].mxu0  ;;  %v27591_v37 = vmax.f32 %v27590_v30, 0.0  ;;  %v27592_v55 = vld [vmem:[#allocation34_spill] sm:$0xff] }
 0x8c2   : > { %27577 = vst [vmem:[#allocation45_spill] sm:$0xff] %v25971_v12  ;;  %v10853_v44 = vadd.f32 %v10821_v23, %v27581_v22  ;;  %v10822_v26 = vadd.f32 %v25868_v31, %v10706_v57  ;;  %20359 = vmatmul.mubr.msk.bf16.gmra.mrb[40].mxu1 %vm709_vm9, %v25975_v34  ;;  %v27593_v7 = vmax.f32 %v27592_v55, 0.0 }
 0x8c3   : > { %v10887_v15 = vmax.f32 %v10855_v42, 0.0  ;;  %v10856_v4 = vadd.f32 %v10824_v16, %v27583_v38  ;;  %20362 = vmatprep.mubr.msk.bf16.mxu1 %vm709_vm9, %v25980_v45 }
 0x8c4   : > { %v10885_v35 = vmax.f32 %v10853_v44, 0.0  ;;  %v10854_v10 = vadd.f32 %v10822_v26, %v27585_v27  ;;  %v10999_v49 = vld [vmem:[#allocation2 + $0xc1] sm:$0xff] }
 0x8c5   : > { %10919 = vst.msk [vmem:[#allocation2 + $0xf1] sm:$0xff] %vm709_vm9, %v10887_v15  ;;  %v10888_v62 = vmax.f32 %v10856_v4, 0.0  ;;  %v10997_v25 = vld [vmem:[#allocation2 + $0xa9] sm:$0xff] }
 0x8c6   : > { %10917 = vst.msk [vmem:[#allocation2 + $0xd9] sm:$0xff] %vm709_vm9, %v10885_v35  ;;  %v10886_v5 = vmax.f32 %v10854_v10, 0.0  ;;  %v20338_v1 = vpop.f32.mrb[84].mxu0  ;;  %v11000_v61 = vld [vmem:[#allocation2 + $0xc9] sm:$0xff] }
 0x8c7   : > { %10920 = vst.msk [vmem:[#allocation2 + $0xf9] sm:$0xff] %vm709_vm9, %v10888_v62  ;;  %v10827_v13 = vadd.f32 %v20338_v1, %v25868_v31  ;;  %v10719_v51 = vpop.f32.mrb[85].mxu0  ;;  %v10998_v58 = vld [vmem:[#allocation2 + $0xb1] sm:$0xff]  ;;  %v25997_v11 = vpack.c.bf16 %v10888_v62, %v10887_v15  ;;  %v26008_v59 = vpack.c.bf16 %v11000_v61, %v10999_v49  ;;  %v27594_v27 = vld [vmem:[#allocation35_spill] sm:$0xff] }
 0x8c8   : > { %10918 = vst.msk [vmem:[#allocation2 + $0xe1] sm:$0xff] %vm709_vm9, %v10886_v5  ;;  %v10825_v19 = vadd.f32 %v25868_v31, %v10719_v51  ;;  %v20339_v29 = vpop.f32.mrb[86].mxu0  ;;  %v26001_v41 = vpack.c.bf16 %v10998_v58, %v10997_v25  ;;  %v26003_v33 = vpack.c.bf16 %v10886_v5, %v10885_v35  ;;  %v27595_v10 = vmax.f32 %v27594_v27, 0.0 }
 0x8c9   : > { %v10859_v2 = vadd.f32 %v10827_v13, %v27587_v43  ;;  %v10828_v47 = vadd.f32 %v20339_v29, %v25868_v31  ;;  %v10722_v56 = vpop.f32.mrb[87].mxu0  ;;  %v27596_v13 = vld [vmem:[#allocation36_spill] sm:$0xff]  ;;  %v27598_v29 = vld [vmem:[#allocation37_spill] sm:$0xff] }
 0x8ca   : > { %v10857_v0 = vadd.f32 %v10825_v19, %v27589_v24  ;;  %v10826_v50 = vadd.f32 %v25868_v31, %v10722_v56  ;;  %20363 = vmatmul.mubr.msk.bf16.gmra.mrb[44].mxu1 %vm709_vm9, %v26001_v41  ;;  %v27597_v51 = vmax.f32 %v27596_v13, 0.0  ;;  %v27599_v49 = vmax.f32 %v27598_v29, 0.0 }
 0x8cb   : > { %v10891_v32 = vmax.f32 %v10859_v2, 0.0  ;;  %v10860_v21 = vadd.f32 %v10828_v47, %v27591_v37  ;;  %20366 = vmatprep.mubr.msk.bf16.mxu1 %vm709_vm9, %v26008_v59  ;;  %v27600_v2 = vld [vmem:[#allocation38_spill] sm:$0xff] }
 0x8cc   : > { %v10889_v23 = vmax.f32 %v10857_v0, 0.0  ;;  %v10858_v46 = vadd.f32 %v10826_v50, %v27593_v7  ;;  %v11003_v35 = vld [vmem:[#allocation2 + $0xf1] sm:$0xff]  ;;  %v27601_v47 = vmax.f32 %v27600_v2, 0.0 }
 0x8cd   : > { %10923 = vst.msk [vmem:[#allocation2 + $0x121] sm:$0xff] %vm709_vm9, %v10891_v32  ;;  %v10892_v14 = vmax.f32 %v10860_v21, 0.0  ;;  %v11001_v44 = vld [vmem:[#allocation2 + $0xd9] sm:$0xff] }
 0x8ce   : > { %10921 = vst.msk [vmem:[#allocation2 + $0x109] sm:$0xff] %vm709_vm9, %v10889_v23  ;;  %v10890_v42 = vmax.f32 %v10858_v46, 0.0  ;;  %v20342_v16 = vpop.f32.mrb[88].mxu0  ;;  %v11004_v57 = vld [vmem:[#allocation2 + $0xf9] sm:$0xff] }
 0x8cf   : > { %10924 = vst.msk [vmem:[#allocation2 + $0x129] sm:$0xff] %vm709_vm9, %v10892_v14  ;;  %v10831_v3 = vadd.f32 %v20342_v16, %v25868_v31  ;;  %v10735_v22 = vpop.f32.mrb[89].mxu0  ;;  %v11002_v26 = vld [vmem:[#allocation2 + $0xe1] sm:$0xff]  ;;  %v26025_v15 = vpack.c.bf16 %v10892_v14, %v10891_v32  ;;  %v26036_v61 = vpack.c.bf16 %v11004_v57, %v11003_v35 }
 0x8d0   : > { %10922 = vst.msk [vmem:[#allocation2 + $0x111] sm:$0xff] %vm709_vm9, %v10890_v42  ;;  %v10829_v54 = vadd.f32 %v25868_v31, %v10735_v22  ;;  %v20343_v38 = vpop.f32.mrb[90].mxu0  ;;  %v26029_v4 = vpack.c.bf16 %v11002_v26, %v11001_v44  ;;  %v26031_v52 = vpack.c.bf16 %v10890_v42, %v10889_v23  ;;  %v27602_v16 = vld [vmem:[#allocation39_spill] sm:$0xff] }
 0x8d1   : > { %v10863_v62 = vadd.f32 %v10831_v3, %v27595_v10  ;;  %v10832_v5 = vadd.f32 %v20343_v38, %v25868_v31  ;;  %v10738_v1 = vpop.f32.mrb[91].mxu0  ;;  %v27603_v57 = vmax.f32 %v27602_v16, 0.0  ;;  %v10937_v16 = vld [vmem:[#allocation2 + $0x30] sm:$0xff] }
 0x8d2   : > { %v10861_v25 = vadd.f32 %v10829_v54, %v27597_v51  ;;  %v10830_v58 = vadd.f32 %v25868_v31, %v10738_v1  ;;  %20367 = vmatmul.mubr.msk.bf16.gmra.mrb[48].mxu1 %vm709_vm9, %v26029_v4  ;;  %v27604_v54 = vld [vmem:[#allocation40_spill] sm:$0xff]  ;;  %v27608_v51 = vld [vmem:[#allocation42_spill] sm:$0xff] }
 0x8d3   : > { %v10895_v19 = vmax.f32 %v10863_v62, 0.0  ;;  %v10864_v8 = vadd.f32 %v10832_v5, %v27599_v49  ;;  %20370 = vmatprep.mubr.msk.bf16.mxu1 %vm709_vm9, %v26036_v61  ;;  %v27605_v38 = vmax.f32 %v27604_v54, 0.0  ;;  %v27606_v62 = vld [vmem:[#allocation41_spill] sm:$0xff]  ;;  %v10939_v54 = vld [vmem:[#allocation2 + $0x48] sm:$0xff] }
 0x8d4   : > { %v10893_v43 = vmax.f32 %v10861_v25, 0.0  ;;  %v10862_v56 = vadd.f32 %v10830_v58, %v27601_v47  ;;  %v11007_v14 = vld [vmem:[#allocation2 + $0x121] sm:$0xff]  ;;  %v27607_v5 = vmax.f32 %v27606_v62, 0.0  ;;  %v27609_v25 = vmax.f32 %v27608_v51, 0.0  ;;  %v10946_v62 = vld [vmem:[#allocation2 + $0x98] sm:$0xff]  ;;  %v10948_v51 = vld [vmem:[#allocation2 + $0xb0] sm:$0xff] }
 0x8d5   : > { %10927 = vst.msk [vmem:[#allocation2 + $0x151] sm:$0xff] %vm709_vm9, %v10895_v19  ;;  %v10896_v60 = vmax.f32 %v10864_v8, 0.0  ;;  %v11005_v37 = vld [vmem:[#allocation2 + $0x109] sm:$0xff] }
 0x8d6   : > { %10925 = vst.msk [vmem:[#allocation2 + $0x139] sm:$0xff] %vm709_vm9, %v10893_v43  ;;  %v10894_v24 = vmax.f32 %v10862_v56, 0.0  ;;  %v20346_v0 = vpop.f32.mrb[92].mxu0  ;;  %v11008_v50 = vld [vmem:[#allocation2 + $0x129] sm:$0xff] }
 0x8d7   : > { %10928 = vst.msk [vmem:[#allocation2 + $0x159] sm:$0xff] %vm709_vm9, %v10896_v60  ;;  %v10835_v32 = vadd.f32 %v20346_v0, %v25868_v31  ;;  %v10751_v30 = vpop.f32.mrb[93].mxu0  ;;  %v11006_v21 = vld [vmem:[#allocation2 + $0x111] sm:$0xff]  ;;  %v26053_v23 = vpack.c.bf16 %v10896_v60, %v10895_v19  ;;  %v26064_v26 = vpack.c.bf16 %v11008_v50, %v11007_v14  ;;  %v10934_v0 = vld [vmem:[#allocation2 + $0x8] sm:$0xff] }
 0x8d8   : > { %10926 = vst.msk [vmem:[#allocation2 + $0x141] sm:$0xff] %vm709_vm9, %v10894_v24  ;;  %v10833_v55 = vadd.f32 %v25868_v31, %v10751_v30  ;;  %v20347_v7 = vpop.f32.mrb[94].mxu0  ;;  %v26057_v46 = vpack.c.bf16 %v11006_v21, %v11005_v37  ;;  %v26059_v42 = vpack.c.bf16 %v10894_v24, %v10893_v43  ;;  %v10933_v24 = vld [vmem:[#allocation2] sm:$0xff] }
 0x8d9   : > { %v10867_v3 = vadd.f32 %v10835_v32, %v27603_v57  ;;  %v10836_v22 = vadd.f32 %v20347_v7, %v25868_v31  ;;  %v10754_v44 = vpop.f32.mrb[95].mxu0  ;;  %v10965_v30 = vpack.c.bf16 %v10934_v0, %v10933_v24  ;;  %v10936_v21 = vld [vmem:[#allocation2 + $0x20] sm:$0xff]  ;;  %v10935_v7 = vld [vmem:[#allocation2 + $0x18] sm:$0xff]  ;;  %v10953_v0 = vld [vmem:[#allocation2 + $0xf0] sm:$0xff] }
 0x8da   : > { %v10865_v35 = vadd.f32 %v10833_v55, %v27605_v38  ;;  %v10834_v27 = vadd.f32 %v25868_v31, %v10754_v44  ;;  %20371 = vmatmul.mubr.msk.bf16.gmra.mrb[52].mxu1 %vm709_vm9, %v26057_v46  ;;  %v10938_v55 = vld [vmem:[#allocation2 + $0x38] sm:$0xff]  ;;  %v26098_v14 = vpack.c.bf16 %v10936_v21, %v10935_v7  ;;  %v10942_v44 = vld [vmem:[#allocation2 + $0x68] sm:$0xff]  ;;  %v10957_v7 = vld [vmem:[#allocation2 + $0x120] sm:$0xff] }
 0x8db   : > { %v10899_v10 = vmax.f32 %v10867_v3, 0.0  ;;  %v10868_v1 = vadd.f32 %v10836_v22, %v27607_v5  ;;  %20374 = vmatprep.mubr.msk.bf16.mxu1 %vm709_vm9, %v26064_v26  ;;  %v26103_v57 = vld [vmem:[%s27541_s3 + $0x18] sm:$0xff]   ;;  %v26105_v3 = vpack.c.bf16 %v10938_v55, %v10937_v16  ;;  %v10940_v22 = vld [vmem:[#allocation2 + $0x50] sm:$0xff]  ;;  %v10955_v21 = vld [vmem:[#allocation2 + $0x108] sm:$0xff] }
 0x8dc   : > { %v10897_v13 = vmax.f32 %v10865_v35, 0.0  ;;  %v10866_v58 = vadd.f32 %v10834_v27, %v27609_v25  ;;  %v11011_v47 = vld [vmem:[#allocation2 + $0x151] sm:$0xff]  ;;  %v26113_v38 = vpack.c.bf16 %v10940_v22, %v10939_v54  ;;  %v10941_v35 = vld [vmem:[#allocation2 + $0x60] sm:$0xff]  ;;  %v10950_v25 = vld [vmem:[#allocation2 + $0xc8] sm:$0xff] }
 0x8dd   : > { %10931 = vst.msk [vmem:[#allocation2 + $0x181] sm:$0xff] %vm709_vm9, %v10899_v10  ;;  %v10900_v19 = vmax.f32 %v10868_v1, 0.0  ;;  %v11009_v49 = vld [vmem:[#allocation2 + $0x139] sm:$0xff]  ;;  %v26115_v27 = vpack.c.bf16 %v10942_v44, %v10941_v35  ;;  %v10945_v1 = vld [vmem:[#allocation2 + $0x90] sm:$0xff] }
 0x8de   : > { %10929 = vst.msk [vmem:[#allocation2 + $0x169] sm:$0xff] %vm709_vm9, %v10897_v13  ;;  %v10898_v31 = vmax.f32 %v10866_v58, 0.0  ;;  %v11012_v29 = vld [vmem:[#allocation2 + $0x159] sm:$0xff]  ;;  %v10947_v58 = vld [vmem:[#allocation2 + $0xa8] sm:$0xff] }
 0x8df   : > { %10932 = vst.msk [vmem:[#allocation2 + $0x189] sm:$0xff] %vm709_vm9, %v10900_v19  ;;  %v11010_v8 = vld [vmem:[#allocation2 + $0x141] sm:$0xff]  ;;  %v26080_v43 = vpack.c.bf16 %v10900_v19, %v10899_v10  ;;  %v26087_v60 = vpack.c.bf16 %v11012_v29, %v11011_v47  ;;  %v10943_v5 = vld [vmem:[#allocation2 + $0x78] sm:$0xff]  ;;  %v26129_v19 = vpack.c.bf16 %v10948_v51, %v10947_v58 }
 0x8e0   : > { %10930 = vst.msk [vmem:[#allocation2 + $0x171] sm:$0xff] %vm709_vm9, %v10898_v31  ;;  %v26083_v2 = vpack.c.bf16 %v11010_v8, %v11009_v49  ;;  %v26085_v56 = vpack.c.bf16 %v10898_v31, %v10897_v13  ;;  %v10944_v10 = vld [vmem:[#allocation2 + $0x80] sm:$0xff]  ;;  %v26123_v13 = vpack.c.bf16 %v10946_v62, %v10945_v1  ;;  %v10954_v8 = vld [vmem:[#allocation2 + $0xf8] sm:$0xff]  ;;  %v11465_v1 = vld [vmem:[#allocation2 + $0xa] sm:$0xff] }
 0x8e1   : > { %27610 = vst [vmem:[#allocation46_spill] sm:$0xff] %v26080_v43  ;;  %v10949_v31 = vld [vmem:[#allocation2 + $0xc0] sm:$0xff]  ;;  %v10951_v47 = vld [vmem:[#allocation2 + $0xd8] sm:$0xff] }
 0x8e2   : > { %27611 = vst [vmem:[#allocation47_spill] sm:$0xff] %v26085_v56  ;;  %20375 = vmatmul.mubr.msk.bf16.gmra.mrb[56].mxu1 %vm709_vm9, %v26083_v2  ;;  %v26131_v29 = vpack.c.bf16 %v10950_v25, %v10949_v31  ;;  %v10952_v49 = vld [vmem:[#allocation2 + $0xe0] sm:$0xff]  ;;  %v10962_v44 = vld [vmem:[#allocation2 + $0x158] sm:$0xff] }
 0x8e3   : > { %20378 = vmatprep.mubr.msk.bf16.mxu1 %vm709_vm9, %v26087_v60  ;;  %v26137_v24 = vpack.c.bf16 %v10952_v49, %v10951_v47  ;;  %v10960_v22 = vld [vmem:[#allocation2 + $0x140] sm:$0xff]  ;;  %v10959_v54 = vld [vmem:[#allocation2 + $0x138] sm:$0xff] }
 0x8e4   : > { %v26153_v35 = vpack.c.bf16 %v10960_v22, %v10959_v54  ;;  %v11466_v49 = vld [vmem:[#allocation2 + $0x1a] sm:$0xff]  ;;  %v11468_v47 = vld [vmem:[#allocation2 + $0x32] sm:$0xff]  ;;  %v11473_v54 = vld [vmem:[#allocation2 + $0x6a] sm:$0xff] }
 0x8e5   : > { %v11013_v50 = vld [vmem:[#allocation2 + $0x169] sm:$0xff]  ;;  %v11471_v22 = vld [vmem:[#allocation2 + $0x52] sm:$0xff] }
 0x8e6   : > { %v10963_v25 = vld [vmem:[#allocation2 + $0x168] sm:$0xff] }
 0x8e7   : > { %v11014_v32 = vld [vmem:[#allocation2 + $0x171] sm:$0xff] }
 0x8e8   : > { %v26093_v37 = vpack.c.bf16 %v11014_v32, %v11013_v50  ;;  %v26139_v50 = vpack.c.bf16 %v10954_v8, %v10953_v0  ;;  %v10956_v32 = vld [vmem:[#allocation2 + $0x110] sm:$0xff]  ;;  %v11467_v8 = vld [vmem:[#allocation2 + $0x22] sm:$0xff]  ;;  %v11469_v0 = vld [vmem:[#allocation2 + $0x3a] sm:$0xff] }
 0x8e9   : > { %v26145_v55 = vpack.c.bf16 %v10956_v32, %v10955_v21  ;;  %v10964_v51 = vld [vmem:[#allocation2 + $0x170] sm:$0xff]  ;;  %v26166_v32 = vpack.c.bf16 %v11467_v8, %v11466_v49  ;;  %v26171_v21 = vpack.c.bf16 %v11469_v0, %v11468_v47  ;;  %v11480_v0 = vld [vmem:[#allocation2 + $0xc2] sm:$0xff] }
 0x8ea   : > { %20379 = vmatmul.mubr.msk.bf16.gmra.mrb[60].mxu1 %vm709_vm9, %v26093_v37  ;;  %v26161_v31 = vpack.c.bf16 %v10964_v51, %v10963_v25  ;;  %v11475_v51 = vld [vmem:[#allocation2 + $0x82] sm:$0xff]  ;;  %v11476_v25 = vld [vmem:[#allocation2 + $0x92] sm:$0xff]  ;;  %v11478_v8 = vld [vmem:[#allocation2 + $0xaa] sm:$0xff] }
 0x8eb   : > { %20384 = vmatprep.mubr.msk.bf16.mxu1 %vm709_vm9, %v10965_v30  ;;  %v10958_v30 = vld [vmem:[#allocation2 + $0x128] sm:$0xff]  ;;  %v11479_v47 = vld [vmem:[#allocation2 + $0xb2] sm:$0xff] }
 0x8ec   : > { %v26147_v16 = vpack.c.bf16 %v10958_v30, %v10957_v7  ;;  %v22381_v30 = vld [vmem:[%s27541_s3 + $0x20] sm:$0xff]   ;;  %v11470_v7 = vld [vmem:[#allocation2 + $0x4a] sm:$0xff] }
 0x8f2   : > { %20385 = vmatmul.mubr.msk.bf16.vlgmr.msra.gmra.mrb[32].mxu1 %vm709_vm9, %v26098_v14 }
 0x8f3   : > { %20388 = vmatprep.mubr.msk.bf16.mxu1 %vm709_vm9, %v26105_v3  ;;  %20417 = vmatpush3.bf16.msra.mxu1 %v25917_v9  ;;  %v26121_v9 = vpack.c.bf16 %v10944_v10, %v10943_v5  ;;  %v10961_v10 = vld [vmem:[#allocation2 + $0x150] sm:$0xff]  ;;  %v11464_v5 = vld [vmem:[#allocation2 + $0x2] sm:$0xff] }
 0x8f4   : > { %20450 = vmatprep.subr.bf16.mxu1 %v26103_v57  ;;  %v26155_v62 = vpack.c.bf16 %v10962_v44, %v10961_v10  ;;  %v11496_v58 = vpack.c.bf16 %v11465_v1, %v11464_v5  ;;  %v11472_v44 = vld [vmem:[#allocation2 + $0x62] sm:$0xff]  ;;  %v26178_v10 = vpack.c.bf16 %v11471_v22, %v11470_v7  ;;  %v11474_v1 = vld [vmem:[#allocation2 + $0x7a] sm:$0xff]  ;;  %v11481_v7 = vld [vmem:[#allocation2 + $0xca] sm:$0xff]  ;;  %v26194_v22 = vpack.c.bf16 %v11479_v47, %v11478_v8 }
 0x8f5   : > { %v26180_v5 = vpack.c.bf16 %v11473_v54, %v11472_v44  ;;  %v26196_v44 = vpack.c.bf16 %v11481_v7, %v11480_v0  ;;  %v11482_v54 = vld [vmem:[#allocation2 + $0xda] sm:$0xff]  ;;  %v11486_v8 = vld [vmem:[#allocation2 + $0x10a] sm:$0xff]  ;;  %v11487_v47 = vld [vmem:[#allocation2 + $0x112] sm:$0xff] }
 0x8f6   : > { %v11488_v0 = vld [vmem:[#allocation2 + $0x122] sm:$0xff]  ;;  %v11489_v7 = vld [vmem:[#allocation2 + $0x12a] sm:$0xff]  ;;  %v26210_v43 = vpack.c.bf16 %v11487_v47, %v11486_v8  ;;  %v11495_v47 = vld [vmem:[#allocation2 + $0x172] sm:$0xff] }
 0x8f7   : > { %v26212_v12 = vpack.c.bf16 %v11489_v7, %v11488_v0  ;;  %v11494_v8 = vld [vmem:[#allocation2 + $0x16a] sm:$0xff] }
 0x8f8   : > { %v26226_v0 = vpack.c.bf16 %v11495_v47, %v11494_v8  ;;  %v22382_v7 = vld [vmem:[%s27541_s3 + $0x28] sm:$0xff]   ;;  %v12965_v47 = vld [vmem:[#allocation2 + $0xb1] sm:$0xff] }
 0x8fa   : > { %20389 = vmatmul.mubr.msk.bf16.gmra.mrb[36].mxu1 %vm709_vm9, %v26113_v38 }
 0x8fb   : > { %20392 = vmatprep.mubr.msk.bf16.mxu1 %vm709_vm9, %v26115_v27 }
 0x902   : > { %20393 = vmatmul.mubr.msk.bf16.gmra.mrb[40].mxu1 %vm709_vm9, %v26121_v9 }
 0x903   : > { %20396 = vmatprep.mubr.msk.bf16.mxu1 %vm709_vm9, %v26123_v13 }
 0x90a   : > { %20397 = vmatmul.mubr.msk.bf16.gmra.mrb[44].mxu1 %vm709_vm9, %v26129_v19 }
 0x90b   : > { %20400 = vmatprep.mubr.msk.bf16.mxu1 %vm709_vm9, %v26131_v29 }
 0x912   : > { %20401 = vmatmul.mubr.msk.bf16.gmra.mrb[48].mxu1 %vm709_vm9, %v26137_v24 }
 0x913   : > { %20404 = vmatprep.mubr.msk.bf16.mxu1 %vm709_vm9, %v26139_v50 }
 0x91a   : > { %20405 = vmatmul.mubr.msk.bf16.gmra.mrb[52].mxu1 %vm709_vm9, %v26145_v55 }
 0x91b   : > { %20408 = vmatprep.mubr.msk.bf16.mxu1 %vm709_vm9, %v26147_v16 }
 0x922   : > { %20409 = vmatmul.mubr.msk.bf16.gmra.mrb[56].mxu1 %vm709_vm9, %v26153_v35 }
 0x923   : > { %20412 = vmatprep.mubr.msk.bf16.mxu1 %vm709_vm9, %v26155_v62 }
 0x92a   : > { %20413 = vmatmul.mubr.msk.bf16.gmra.mrb[60].mxu1 %vm709_vm9, %v26161_v31 }
 0x92b   : > { %20418 = vmatprep.mubr.msk.bf16.mxu1 %vm709_vm9, %v11496_v58  ;;  %v11477_v58 = vld [vmem:[#allocation2 + $0x9a] sm:$0xff] }
 0x92c   : > { %v26188_v49 = vpack.c.bf16 %v11477_v58, %v11476_v25  ;;  %v11485_v25 = vld [vmem:[#allocation2 + $0xfa] sm:$0xff] }
 0x932   : > { %20419 = vmatmul.mubr.msk.bf16.vlgmr.msra.gmra.mrb[32].mxu1 %vm709_vm9, %v26166_v32 }
 0x933   : > { %20422 = vmatprep.mubr.msk.bf16.mxu1 %vm709_vm9, %v26171_v21  ;;  %20451 = vmatpush3.bf16.msra.mxu1 %v26103_v57  ;;  %v26186_v57 = vpack.c.bf16 %v11475_v51, %v11474_v1  ;;  %v11483_v1 = vld [vmem:[#allocation2 + $0xe2] sm:$0xff]  ;;  %v11484_v51 = vld [vmem:[#allocation2 + $0xf2] sm:$0xff] }
 0x934   : > { %20484 = vmatprep.subr.bf16.mxu1 %v22381_v30  ;;  %v26202_v58 = vpack.c.bf16 %v11483_v1, %v11482_v54  ;;  %v26204_v40 = vpack.c.bf16 %v11485_v25, %v11484_v51  ;;  %v11490_v54 = vld [vmem:[#allocation2 + $0x13a] sm:$0xff]  ;;  %v11491_v1 = vld [vmem:[#allocation2 + $0x142] sm:$0xff]  ;;  %v11492_v51 = vld [vmem:[#allocation2 + $0x152] sm:$0xff] }
 0x935   : > { %v11493_v25 = vld [vmem:[#allocation2 + $0x15a] sm:$0xff]  ;;  %v26218_v56 = vpack.c.bf16 %v11491_v1, %v11490_v54  ;;  %v22383_v1 = vld [vmem:[%s27541_s3 + $0x30] sm:$0xff]  }
 0x936   : > { %v26220_v20 = vpack.c.bf16 %v11493_v25, %v11492_v51  ;;  %v12962_v25 = vld [vmem:[#allocation2 + $0x91] sm:$0xff] }
 0x93a   : > { %20423 = vmatmul.mubr.msk.bf16.gmra.mrb[36].mxu1 %vm709_vm9, %v26178_v10 }
 0x93b   : > { %20426 = vmatprep.mubr.msk.bf16.mxu1 %vm709_vm9, %v26180_v5 }
 0x942   : > { %20427 = vmatmul.mubr.msk.bf16.gmra.mrb[40].mxu1 %vm709_vm9, %v26186_v57 }
 0x943   : > { %20430 = vmatprep.mubr.msk.bf16.mxu1 %vm709_vm9, %v26188_v49 }
 0x94a   : > { %20431 = vmatmul.mubr.msk.bf16.gmra.mrb[44].mxu1 %vm709_vm9, %v26194_v22 }
 0x94b   : > { %20434 = vmatprep.mubr.msk.bf16.mxu1 %vm709_vm9, %v26196_v44 }
 0x952   : > { %20435 = vmatmul.mubr.msk.bf16.gmra.mrb[48].mxu1 %vm709_vm9, %v26202_v58 }
 0x953   : > { %20438 = vmatprep.mubr.msk.bf16.mxu1 %vm709_vm9, %v26204_v40 }
 0x95a   : > { %20439 = vmatmul.mubr.msk.bf16.gmra.mrb[52].mxu1 %vm709_vm9, %v26210_v43 }
 0x95b   : > { %20442 = vmatprep.mubr.msk.bf16.mxu1 %vm709_vm9, %v26212_v12 }
 0x962   : > { %20443 = vmatmul.mubr.msk.bf16.gmra.mrb[56].mxu1 %vm709_vm9, %v26218_v56 }
 0x963   : > { %20446 = vmatprep.mubr.msk.bf16.mxu1 %vm709_vm9, %v26220_v20 }
 0x96a   : > { %20447 = vmatmul.mubr.msk.bf16.gmra.mrb[60].mxu1 %vm709_vm9, %v26226_v0 }
 0x96b   : > { %20452 = vmatprep.mubr.msk.bf16.mxu1 %vm709_vm9, %v26098_v14  ;;  %v11793_v14 = vld [vmem:[#allocation2 + $0x188] sm:$0xff] }
 0x972   : > { %20453 = vmatmul.mubr.msk.bf16.vlgmr.msra.gmra.mrb[32].mxu1 %vm709_vm9, %v26105_v3 }
 0x973   : > { %20456 = vmatprep.mubr.msk.bf16.mxu1 %vm709_vm9, %v26113_v38  ;;  %20485 = vmatpush3.bf16.msra.mxu1 %v22381_v30  ;;  %v11792_v30 = vld [vmem:[#allocation2 + $0x180] sm:$0xff] }
 0x974   : > { %20518 = vmatprep.subr.bf16.mxu1 %v22382_v7  ;;  %v26263_v54 = vpack.c.bf16 %v11793_v14, %v11792_v30  ;;  %v12964_v14 = vld [vmem:[#allocation2 + $0xa9] sm:$0xff] }
 0x975   : > { %v12991_v30 = vpack.c.bf16 %v12965_v47, %v12964_v14 }
 0x97a   : > { %20457 = vmatmul.mubr.msk.bf16.gmra.mrb[36].mxu1 %vm709_vm9, %v26115_v27 }
 0x97b   : > { %20460 = vmatprep.mubr.msk.bf16.mxu1 %vm709_vm9, %v26121_v9 }
 0x982   : > { %20461 = vmatmul.mubr.msk.bf16.gmra.mrb[40].mxu1 %vm709_vm9, %v26123_v13 }
 0x983   : > { %20464 = vmatprep.mubr.msk.bf16.mxu1 %vm709_vm9, %v26129_v19 }
 0x98a   : > { %20465 = vmatmul.mubr.msk.bf16.gmra.mrb[44].mxu1 %vm709_vm9, %v26131_v29 }
 0x98b   : > { %20468 = vmatprep.mubr.msk.bf16.mxu1 %vm709_vm9, %v26137_v24 }
 0x992   : > { %20469 = vmatmul.mubr.msk.bf16.gmra.mrb[48].mxu1 %vm709_vm9, %v26139_v50 }
 0x993   : > { %20472 = vmatprep.mubr.msk.bf16.mxu1 %vm709_vm9, %v26145_v55 }
 0x99a   : > { %20473 = vmatmul.mubr.msk.bf16.gmra.mrb[52].mxu1 %vm709_vm9, %v26147_v16 }
 0x99b   : > { %20476 = vmatprep.mubr.msk.bf16.mxu1 %vm709_vm9, %v26153_v35 }
 0x9a2   : > { %20477 = vmatmul.mubr.msk.bf16.gmra.mrb[56].mxu1 %vm709_vm9, %v26155_v62 }
 0x9a3   : > { %20480 = vmatprep.mubr.msk.bf16.mxu1 %vm709_vm9, %v26161_v31 }
 0x9aa   : > { %20481 = vmatmul.mubr.msk.bf16.gmra.mrb[60].mxu1 %vm709_vm9, %v26263_v54 }
 0x9ab   : > { %20486 = vmatprep.mubr.msk.bf16.mxu1 %vm709_vm9, %v25912_v6  ;;  %v12091_v6 = vld [vmem:[#allocation2 + $0x189] sm:$0xff] }
 0x9b2   : > { %20487 = vmatmul.mubr.msk.bf16.vlgmr.msra.gmra.mrb[32].mxu1 %vm709_vm9, %v25922_v36  ;;  %v12090_v36 = vld [vmem:[#allocation2 + $0x181] sm:$0xff] }
 0x9b3   : > { %20490 = vmatprep.mubr.msk.bf16.mxu1 %vm709_vm9, %v25947_v39  ;;  %20519 = vmatpush3.bf16.msra.mxu1 %v22382_v7  ;;  %v26300_v39 = vpack.c.bf16 %v12091_v6, %v12090_v36  ;;  %v12967_v7 = vld [vmem:[#allocation2 + $0xc9] sm:$0xff] }
 0x9b4   : > { %20552 = vmatprep.subr.bf16.mxu1 %v22383_v1 }
 0x9ba   : > { %20491 = vmatmul.mubr.msk.bf16.gmra.mrb[36].mxu1 %vm709_vm9, %v25952_v53  ;;  %v22384_v53 = vld [vmem:[%s27541_s3 + $0x38] sm:$0xff]  }
 0x9bb   : > { %20494 = vmatprep.mubr.msk.bf16.mxu1 %vm709_vm9, %v25975_v34  ;;  %v12388_v34 = vld [vmem:[#allocation2 + $0x182] sm:$0xff] }
 0x9c2   : > { %20495 = vmatmul.mubr.msk.bf16.gmra.mrb[40].mxu1 %vm709_vm9, %v25980_v45  ;;  %v12389_v45 = vld [vmem:[#allocation2 + $0x18a] sm:$0xff] }
 0x9c3   : > { %20498 = vmatprep.mubr.msk.bf16.mxu1 %vm709_vm9, %v26001_v41  ;;  %v26337_v41 = vpack.c.bf16 %v12389_v45, %v12388_v34 }
 0x9ca   : > { %20499 = vmatmul.mubr.msk.bf16.gmra.mrb[44].mxu1 %vm709_vm9, %v26008_v59  ;;  %v22385_v59 = vld [vmem:[%s27541_s3 + $0x40] sm:$0xff]   ;;  %s22498_s3 = scalar_lea.vmem %s27213_s26, 16 }
 0x9cb   : > { %20502 = vmatprep.mubr.msk.bf16.mxu1 %vm709_vm9, %v26029_v4  ;;  %p22499_p11 = scmp.ne.s32.totalorder %s27213_s26, %s22498_s3 }
 0x9cd   : > { %p22500_p12 = pnand %p22499_p11, %p22725_p5 }
 0x9cf   : > { %p22501_p13 = pneg %p22500_p12 }
 0x9d2   : > { %20503 = vmatmul.mubr.msk.bf16.gmra.mrb[48].mxu1 %vm709_vm9, %v26036_v61 }
 0x9d3   : > { %20506 = vmatprep.mubr.msk.bf16.mxu1 %vm709_vm9, %v26057_v46 }
 0x9da   : > { %20507 = vmatmul.mubr.msk.bf16.gmra.mrb[52].mxu1 %vm709_vm9, %v26064_v26 }
 0x9db   : > { %20510 = vmatprep.mubr.msk.bf16.mxu1 %vm709_vm9, %v26083_v2 }
 0x9e2   : > { %20511 = vmatmul.mubr.msk.bf16.gmra.mrb[56].mxu1 %vm709_vm9, %v26087_v60 }
 0x9e3   : > { %20514 = vmatprep.mubr.msk.bf16.mxu1 %vm709_vm9, %v26093_v37 }
 0x9ea   : > { %20515 = vmatmul.mubr.msk.bf16.gmra.mrb[60].mxu1 %vm709_vm9, %v26300_v39 }
 0x9eb   : > { %20520 = vmatprep.mubr.msk.bf16.mxu1 %vm709_vm9, %v26166_v32  ;;  %v12960_v32 = vld [vmem:[#allocation2 + $0x79] sm:$0xff] }
 0x9f2   : > { %20521 = vmatmul.mubr.msk.bf16.vlgmr.msra.gmra.mrb[32].mxu1 %vm709_vm9, %v26171_v21 }
 0x9f3   : > { %20524 = vmatprep.mubr.msk.bf16.mxu1 %vm709_vm9, %v26178_v10  ;;  %20553 = vmatpush3.bf16.msra.mxu1 %v22383_v1 }
 0x9f4   : > { %20586 = vmatprep.subr.bf16.mxu1 %v22384_v53 }
 0x9fa   : > { %20525 = vmatmul.mubr.msk.bf16.gmra.mrb[36].mxu1 %vm709_vm9, %v26180_v5 }
 0x9fb   : > { %20528 = vmatprep.mubr.msk.bf16.mxu1 %vm709_vm9, %v26186_v57 }
 0xa02   : > { %20529 = vmatmul.mubr.msk.bf16.gmra.mrb[40].mxu1 %vm709_vm9, %v26188_v49 }
 0xa03   : > { %20532 = vmatprep.mubr.msk.bf16.mxu1 %vm709_vm9, %v26194_v22 }
 0xa0a   : > { %20533 = vmatmul.mubr.msk.bf16.gmra.mrb[44].mxu1 %vm709_vm9, %v26196_v44 }
 0xa0b   : > { %20536 = vmatprep.mubr.msk.bf16.mxu1 %vm709_vm9, %v26202_v58 }
 0xa12   : > { %20537 = vmatmul.mubr.msk.bf16.gmra.mrb[48].mxu1 %vm709_vm9, %v26204_v40 }
 0xa13   : > { %20540 = vmatprep.mubr.msk.bf16.mxu1 %vm709_vm9, %v26210_v43 }
 0xa1a   : > { %20541 = vmatmul.mubr.msk.bf16.gmra.mrb[52].mxu1 %vm709_vm9, %v26212_v12 }
 0xa1b   : > { %20544 = vmatprep.mubr.msk.bf16.mxu1 %vm709_vm9, %v26218_v56 }
 0xa22   : > { %20545 = vmatmul.mubr.msk.bf16.gmra.mrb[56].mxu1 %vm709_vm9, %v26220_v20 }
 0xa23   : > { %20548 = vmatprep.mubr.msk.bf16.mxu1 %vm709_vm9, %v26226_v0 }
 0xa2a   : > { %20549 = vmatmul.mubr.msk.bf16.gmra.mrb[60].mxu1 %vm709_vm9, %v26337_v41 }
 0xa2b   : > { %20554 = vmatprep.mubr.msk.bf16.mxu1 %vm709_vm9, %v26105_v3  ;;  %v12686_v3 = vld [vmem:[#allocation2 + $0x198] sm:$0xff] }
 0xa32   : > { %20555 = vmatmul.mubr.msk.bf16.vlgmr.msra.gmra.mrb[32].mxu1 %vm709_vm9, %v26113_v38  ;;  %v12687_v38 = vld [vmem:[#allocation2 + $0x1a0] sm:$0xff] }
 0xa33   : > { %20558 = vmatprep.mubr.msk.bf16.mxu1 %vm709_vm9, %v26115_v27  ;;  %20587 = vmatpush3.bf16.msra.mxu1 %v22384_v53  ;;  %v12703_v27 = vpack.c.bf16 %v12687_v38, %v12686_v3 }
 0xa34   : > { %20620 = vmatprep.subr.bf16.mxu1 %v22385_v59 }
 0xa3a   : > { %20559 = vmatmul.mubr.msk.bf16.gmra.mrb[36].mxu1 %vm709_vm9, %v26121_v9  ;;  %v12955_v9 = vld [vmem:[#allocation2 + $0x39] sm:$0xff] }
 0xa3b   : > { %20562 = vmatprep.mubr.msk.bf16.mxu1 %vm709_vm9, %v26123_v13  ;;  %v12954_v13 = vld [vmem:[#allocation2 + $0x31] sm:$0xff] }
 0xa42   : > { %20563 = vmatmul.mubr.msk.bf16.gmra.mrb[40].mxu1 %vm709_vm9, %v26129_v19  ;;  %v12986_v19 = vpack.c.bf16 %v12955_v9, %v12954_v13 }
 0xa43   : > { %20566 = vmatprep.mubr.msk.bf16.mxu1 %vm709_vm9, %v26131_v29  ;;  %v12957_v29 = vld [vmem:[#allocation2 + $0x51] sm:$0xff] }
 0xa4a   : > { %20567 = vmatmul.mubr.msk.bf16.gmra.mrb[44].mxu1 %vm709_vm9, %v26137_v24  ;;  %v12959_v24 = vld [vmem:[#allocation2 + $0x69] sm:$0xff] }
 0xa4b   : > { %20570 = vmatprep.mubr.msk.bf16.mxu1 %vm709_vm9, %v26139_v50  ;;  %v12956_v50 = vld [vmem:[#allocation2 + $0x49] sm:$0xff] }
 0xa52   : > { %20571 = vmatmul.mubr.msk.bf16.gmra.mrb[48].mxu1 %vm709_vm9, %v26145_v55  ;;  %v12987_v55 = vpack.c.bf16 %v12957_v29, %v12956_v50 }
 0xa53   : > { %20574 = vmatprep.mubr.msk.bf16.mxu1 %vm709_vm9, %v26147_v16  ;;  %v12958_v16 = vld [vmem:[#allocation2 + $0x61] sm:$0xff] }
 0xa5a   : > { %20575 = vmatmul.mubr.msk.bf16.gmra.mrb[52].mxu1 %vm709_vm9, %v26153_v35  ;;  %v12988_v35 = vpack.c.bf16 %v12959_v24, %v12958_v16 }
 0xa5b   : > { %20578 = vmatprep.mubr.msk.bf16.mxu1 %vm709_vm9, %v26155_v62  ;;  %v12961_v62 = vld [vmem:[#allocation2 + $0x81] sm:$0xff] }
 0xa5c   : > { %v12989_v51 = vpack.c.bf16 %v12961_v62, %v12960_v32 }
 0xa62   : > { %20579 = vmatmul.mubr.msk.bf16.gmra.mrb[56].mxu1 %vm709_vm9, %v26161_v31  ;;  %v12963_v31 = vld [vmem:[#allocation2 + $0x99] sm:$0xff] }
 0xa63   : > { %20582 = vmatprep.mubr.msk.bf16.mxu1 %vm709_vm9, %v26263_v54  ;;  %v12990_v8 = vpack.c.bf16 %v12963_v31, %v12962_v25  ;;  %v12966_v54 = vld [vmem:[#allocation2 + $0xc1] sm:$0xff] }
 0xa64   : > { %v12992_v1 = vpack.c.bf16 %v12967_v7, %v12966_v54 }
 0xa6a   : > { %20583 = vmatmul.mubr.msk.bf16.gmra.mrb[60].mxu1 %vm709_vm9, %v12703_v27 }
 0xa6b   : > { %20588 = vmatprep.mubr.msk.bf16.mxu1 %vm709_vm9, %v12986_v19 }
 0xa72   : > { %20589 = vmatmul.mubr.msk.bf16.vlgmr.msra.gmra.mrb[32].mxu1 %vm709_vm9, %v12987_v55 }
 0xa73   : > { %20621 = vmatpush3.bf16.msra.mxu1 %v22385_v59  ;;  %20592 = vmatprep.mubr.msk.bf16.mxu1 %vm709_vm9, %v12988_v35 }
 0xa74   : > { %19210 = vmatprep.subr.bf16.mxu1 %v26003_v33  ;;  %v12984_v33 = vld [vmem:[#allocation2 + $0x199] sm:$0xff] }
 0xa7a   : > { %20593 = vmatmul.mubr.msk.bf16.gmra.mrb[36].mxu1 %vm709_vm9, %v12989_v51 }
 0xa7b   : > { %20596 = vmatprep.mubr.msk.bf16.mxu1 %vm709_vm9, %v12990_v8 }
 0xa82   : > { %20597 = vmatmul.mubr.msk.bf16.gmra.mrb[40].mxu1 %vm709_vm9, %v12991_v30 }
 0xa83   : > { %20600 = vmatprep.mubr.msk.bf16.mxu1 %vm709_vm9, %v12992_v1 }
 0xa8a   : > { %20601 = vmatmul.mubr.msk.bf16.gmra.mrb[44].mxu1 %vm709_vm9, %v26029_v4  ;;  %v12985_v4 = vld [vmem:[#allocation2 + $0x1a1] sm:$0xff] }
 0xa8b   : > { %20604 = vmatprep.mubr.msk.bf16.mxu1 %vm709_vm9, %v26036_v61  ;;  %v13001_v61 = vpack.c.bf16 %v12985_v4, %v12984_v33 }
 0xa92   : > { %20605 = vmatmul.mubr.msk.bf16.gmra.mrb[48].mxu1 %vm709_vm9, %v26057_v46  ;;  %v26470_v46 = vld [vmem:[%s27264_s11 + $0x24] ss:$8 sps:$4 sm:$0xff]  }
 0xa93   : > { %20608 = vmatprep.mubr.msk.bf16.mxu1 %vm709_vm9, %v26064_v26  ;;  %v26482_v26 = vld [vmem:[%s27264_s11 + $0x34] ss:$8 sps:$4 sm:$0xff]  }
 0xa9a   : > { %20609 = vmatmul.mubr.msk.bf16.gmra.mrb[52].mxu1 %vm709_vm9, %v26083_v2  ;;  %v26494_v2 = vld [vmem:[%s27617_s8] ss:$0 sm:$0xff]  ;;  %s27211_s8 = scalar_lea.hbm %s27276_s23, %s18555_s6 }
 0xa9b   : > { %20612 = vmatprep.mubr.msk.bf16.mxu1 %vm709_vm9, %v26087_v60 }
 0xaa2   : > { %20613 = vmatmul.mubr.msk.bf16.gmra.mrb[56].mxu1 %vm709_vm9, %v26093_v37 }
 0xaa3   : > { %20616 = vmatprep.mubr.msk.bf16.mxu1 %vm709_vm9, %v26300_v39 }
 0xaaa   : > { %20617 = vmatmul.mubr.msk.bf16.gmra.mrb[60].mxu1 %vm709_vm9, %v13001_v61 }
 0xaab   : > { %20622 = vmatprep.mubr.msk.bf16.mxu1 %vm709_vm9, %v26171_v21 }
 0xab2   : > { %20623 = vmatmul.mubr.msk.bf16.vlgmr.msra.gmra.mrb[32].mxu1 %vm709_vm9, %v26178_v10 }
 0xab3   : > { %19211 = vmatpush3.bf16.msra.mxu1 %v25888_v63  ;;  %20626 = vmatprep.mubr.msk.bf16.mxu1 %vm709_vm9, %v26180_v5  ;;  %v27613_v63 = vld [vmem:[#allocation47_spill] sm:$0xff] }
 0xab4   : > { %19212 = vmatprep.subr.bf16.mxu1 %v25997_v11  ;;  %v13283_v11 = vld [vmem:[#allocation2 + $0x1a2] sm:$0xff] }
 0xab7   : > { %19213 = vmatpush3.bf16.msra.mxu1 %v25884_v48  ;;  %v27612_v48 = vld [vmem:[#allocation43_spill] sm:$0xff] }
 0xab8   : > { %19214 = vmatprep.subr.bf16.mxu1 %v26031_v52  ;;  %v26452_v52 = vld [vmem:[%s27264_s11] ss:$8 sps:$4 sm:$0xff]  }
 0xaba   : > { %20627 = vmatmul.mubr.msk.bf16.gmra.mrb[36].mxu1 %vm709_vm9, %v26186_v57 }
 0xabb   : > { %19215 = vmatpush3.bf16.msra.mxu1 %v25908_v28  ;;  %20630 = vmatprep.mubr.msk.bf16.mxu1 %vm709_vm9, %v26188_v49  ;;  %v27615_v28 = vld [vmem:[#allocation46_spill] sm:$0xff] }
 0xabc   : > { %19216 = vmatprep.subr.bf16.mxu1 %v26025_v15 }
 0xabf   : > { %19217 = vmatpush3.bf16.msra.mxu1 %v25904_v17  ;;  %v27614_v17 = vld [vmem:[#allocation45_spill] sm:$0xff] }
 0xac0   : > { %19218 = vmatprep.subr.bf16.mxu1 %v26059_v42  ;;  %v26475_v42 = vld [vmem:[%s27264_s11 + $0x20] ss:$8 sps:$4 sm:$0xff]  }
 0xac2   : > { %20631 = vmatmul.mubr.msk.bf16.gmra.mrb[40].mxu1 %vm709_vm9, %v26194_v22 }
 0xac3   : > { %19219 = vmatpush3.bf16.msra.mxu1 %v25943_v18  ;;  %20634 = vmatprep.mubr.msk.bf16.mxu1 %vm709_vm9, %v26196_v44  ;;  %v27616_v18 = vld [vmem:[#allocation44_spill] sm:$0xff] }
 0xac4   : > { %19220 = vmatprep.subr.bf16.mxu1 %v26053_v23  ;;  %v26463_v23 = vld [vmem:[%s27264_s11 + $0x10] ss:$8 sps:$4 sm:$0xff]  }
 0xac7   : > { %19221 = vmatpush3.bf16.msra.mxu1 %v27612_v48 }
 0xac8   : > { %19222 = vmatprep.subr.bf16.mxu1 %v27613_v63 }
 0xaca   : > { %20635 = vmatmul.mubr.msk.bf16.gmra.mrb[44].mxu1 %vm709_vm9, %v26202_v58 }
 0xacb   : > { %19223 = vmatpush3.bf16.msra.mxu1 %v27614_v17  ;;  %20638 = vmatprep.mubr.msk.bf16.mxu1 %vm709_vm9, %v26204_v40  ;;  %v13282_v40 = vld [vmem:[#allocation2 + $0x19a] sm:$0xff] }
 0xacc   : > { %19224 = vmatprep.subr.bf16.mxu1 %v27615_v28  ;;  %v13299_v15 = vpack.c.bf16 %v13283_v11, %v13282_v40 }
 0xacf   : > { %19225 = vmatpush3.bf16.msra.mxu1 %v27616_v18 }
 0xad2   : > { %20639 = vmatmul.mubr.msk.bf16.gmra.mrb[48].mxu1 %vm709_vm9, %v26210_v43  ;;  %v26487_v43 = vld [vmem:[%s27264_s11 + $0x30] ss:$8 sps:$4 sm:$0xff]  }
 0xad3   : > { %20642 = vmatprep.mubr.msk.bf16.mxu1 %vm709_vm9, %v26212_v12  ;;  %v22388_v12 = vld [vmem:[%s27264_s11 + $0x4] ss:$8 sps:$4 sm:$0xff]  }
 0xad4   : > { %13717 = vmatprep.mubr.bf16.mxu0 %v22388_v12 }
 0xada   : > { %20643 = vmatmul.mubr.msk.bf16.gmra.mrb[52].mxu1 %vm709_vm9, %v26218_v56 }
 0xadb   : > { %20646 = vmatprep.mubr.msk.bf16.mxu1 %vm709_vm9, %v26220_v20  ;;  %v26458_v20 = vld [vmem:[%s27264_s11 + $0x14] ss:$8 sps:$4 sm:$0xff]  }
 0xae2   : > { %20647 = vmatmul.mubr.msk.bf16.gmra.mrb[56].mxu1 %vm709_vm9, %v26226_v0 }
 0xae3   : > { %20650 = vmatprep.mubr.msk.bf16.mxu1 %vm709_vm9, %v26337_v41 }
 0xaea   : > { %20651 = vmatmul.mubr.msk.bf16.gmra.mrb[60].mxu1 %vm709_vm9, %v13299_v15 }
 0xaeb   : > { %13798 = vmatprep.mubr.bf16.mxu1 %v22388_v12 }
 0xaf2   : > { %13799 = vmatmul.mubr.bf16.vlgmr.msra.gmra.mrb[64].mxu1 %v26452_v52 }
 0xaf3   : > { %13806 = vmatprep.mubr.bf16.mxu1 %v26458_v20 }
 0xafa   : > { %13807 = vmatmul.mubr.bf16.gmra.mrb[68].mxu1 %v26463_v23 }
 0xafb   : > { %13814 = vmatprep.mubr.bf16.mxu1 %v26470_v46 }
 0xb02   : > { %13815 = vmatmul.mubr.bf16.gmra.mrb[72].mxu1 %v26475_v42 }
 0xb03   : > { %13822 = vmatprep.mubr.bf16.mxu1 %v26482_v26 }
 0xb0a   : > { %13823 = vmatmul.mubr.bf16.gmra.mrb[76].mxu1 %v26487_v43 }
 0xb85   : > { %v20624_v56 = vpop.f32.mrb[32].mxu1 }
 0xb86   : > { %v13559_v60 = vadd.f32 %v20624_v56, %v26494_v2  ;;  %v13391_v37 = vpop.f32.mrb[33].mxu1 }
 0xb87   : > { %v13557_v21 = vadd.f32 %v26494_v2, %v13391_v37  ;;  %v20625_v10 = vpop.f32.mrb[34].mxu1 }
 0xb88   : > { %v13560_v5 = vadd.f32 %v20625_v10, %v26494_v2  ;;  %v13394_v57 = vpop.f32.mrb[35].mxu1  ;;  %v13591_v22 = vmax.f32 %v13559_v60, 0.0 }
 0xb89   : > { %v13558_v49 = vadd.f32 %v26494_v2, %v13394_v57  ;;  %v13589_v58 = vmax.f32 %v13557_v21, 0.0 }
 0xb8a   : > { %v13592_v44 = vmax.f32 %v13560_v5, 0.0 }
 0xb8b   : > { %v13590_v0 = vmax.f32 %v13558_v49, 0.0 }
 0xb8c   : > { %v26500_v6 = vpack.c.bf16 %v13592_v44, %v13591_v22 }
 0xb8d   : > { %v26502_v36 = vpack.c.bf16 %v13590_v0, %v13589_v58  ;;  %v20628_v39 = vpop.f32.mrb[36].mxu1 }
 0xb8e   : > { %v13563_v53 = vadd.f32 %v20628_v39, %v26494_v2  ;;  %v13407_v34 = vpop.f32.mrb[37].mxu1 }
 0xb8f   : > { %v13561_v45 = vadd.f32 %v26494_v2, %v13407_v34  ;;  %v20629_v41 = vpop.f32.mrb[38].mxu1 }
 0xb90   : > { %v13564_v59 = vadd.f32 %v20629_v41, %v26494_v2  ;;  %v13410_v3 = vpop.f32.mrb[39].mxu1  ;;  %v13595_v27 = vmax.f32 %v13563_v53, 0.0 }
 0xb91   : > { %v13562_v38 = vadd.f32 %v26494_v2, %v13410_v3  ;;  %v13593_v13 = vmax.f32 %v13561_v45, 0.0 }
 0xb92   : > { %v13596_v9 = vmax.f32 %v13564_v59, 0.0 }
 0xb93   : > { %v13594_v19 = vmax.f32 %v13562_v38, 0.0 }
 0xb94   : > { %v26508_v29 = vpack.c.bf16 %v13596_v9, %v13595_v27 }
 0xb95   : > { %v26510_v24 = vpack.c.bf16 %v13594_v19, %v13593_v13  ;;  %v20632_v50 = vpop.f32.mrb[40].mxu1 }
 0xb96   : > { %v13567_v55 = vadd.f32 %v20632_v50, %v26494_v2  ;;  %v13423_v16 = vpop.f32.mrb[41].mxu1 }
 0xb97   : > { %v13565_v35 = vadd.f32 %v26494_v2, %v13423_v16  ;;  %v20633_v62 = vpop.f32.mrb[42].mxu1 }
 0xb98   : > { %v13568_v31 = vadd.f32 %v20633_v62, %v26494_v2  ;;  %v13426_v32 = vpop.f32.mrb[43].mxu1  ;;  %v13599_v25 = vmax.f32 %v13567_v55, 0.0 }
 0xb99   : > { %v13566_v51 = vadd.f32 %v26494_v2, %v13426_v32  ;;  %v13597_v47 = vmax.f32 %v13565_v35, 0.0 }
 0xb9a   : > { %v13600_v8 = vmax.f32 %v13568_v31, 0.0 }
 0xb9b   : > { %v13598_v7 = vmax.f32 %v13566_v51, 0.0 }
 0xb9c   : > { %v26516_v14 = vpack.c.bf16 %v13600_v8, %v13599_v25 }
 0xb9d   : > { %v26518_v30 = vpack.c.bf16 %v13598_v7, %v13597_v47  ;;  %v20636_v54 = vpop.f32.mrb[44].mxu1 }
 0xb9e   : > { %v13571_v1 = vadd.f32 %v20636_v54, %v26494_v2  ;;  %v13439_v33 = vpop.f32.mrb[45].mxu1 }
 0xb9f   : > { %v13569_v4 = vadd.f32 %v26494_v2, %v13439_v33  ;;  %v20637_v61 = vpop.f32.mrb[46].mxu1 }
 0xba0   : > { %v13572_v48 = vadd.f32 %v20637_v61, %v26494_v2  ;;  %v13442_v63 = vpop.f32.mrb[47].mxu1  ;;  %v13603_v28 = vmax.f32 %v13571_v1, 0.0 }
 0xba1   : > { %v13570_v17 = vadd.f32 %v26494_v2, %v13442_v63  ;;  %v13601_v40 = vmax.f32 %v13569_v4, 0.0 }
 0xba2   : > { %v13604_v18 = vmax.f32 %v13572_v48, 0.0 }
 0xba3   : > { %v13602_v11 = vmax.f32 %v13570_v17, 0.0 }
 0xba4   : > { %v26524_v15 = vpack.c.bf16 %v13604_v18, %v13603_v28 }
 0xba5   : > { %v26526_v12 = vpack.c.bf16 %v13602_v11, %v13601_v40  ;;  %v20640_v56 = vpop.f32.mrb[48].mxu1 }
 0xba6   : > { %v13575_v60 = vadd.f32 %v20640_v56, %v26494_v2  ;;  %v13455_v37 = vpop.f32.mrb[49].mxu1 }
 0xba7   : > { %v13573_v21 = vadd.f32 %v26494_v2, %v13455_v37  ;;  %v20641_v10 = vpop.f32.mrb[50].mxu1 }
 0xba8   : > { %v13576_v5 = vadd.f32 %v20641_v10, %v26494_v2  ;;  %v13458_v57 = vpop.f32.mrb[51].mxu1  ;;  %v13607_v22 = vmax.f32 %v13575_v60, 0.0  ;;  %v22398_v10 = vld [vmem:[%s27265_s12] sm:$0xff]  }
 0xba9   : > { %v13574_v49 = vadd.f32 %v26494_v2, %v13458_v57  ;;  %v13605_v58 = vmax.f32 %v13573_v21, 0.0 }
 0xbaa   : > { %v13608_v44 = vmax.f32 %v13576_v5, 0.0 }
 0xbab   : > { %v13606_v0 = vmax.f32 %v13574_v49, 0.0 }
 0xbac   : > { %v13638_v39 = vpack.c.bf16 %v13608_v44, %v13607_v22 }
 0xbad   : > { %v13637_v53 = vpack.c.bf16 %v13606_v0, %v13605_v58  ;;  %v20644_v34 = vpop.f32.mrb[52].mxu1 }
 0xbae   : > { %v13579_v45 = vadd.f32 %v20644_v34, %v26494_v2  ;;  %v13471_v41 = vpop.f32.mrb[53].mxu1 }
 0xbaf   : > { %v13577_v59 = vadd.f32 %v26494_v2, %v13471_v41  ;;  %v20645_v3 = vpop.f32.mrb[54].mxu1  ;;  %19170 = vmatprep.subr.bf16.mxu0 %v13637_v53 }
 0xbb0   : > { %v13580_v38 = vadd.f32 %v20645_v3, %v26494_v2  ;;  %v13474_v27 = vpop.f32.mrb[55].mxu1  ;;  %19171 = vmatpush3.bf16.msra.mxu0 %v26502_v36  ;;  %v13611_v13 = vmax.f32 %v13579_v45, 0.0 }
 0xbb1   : > { %v13578_v9 = vadd.f32 %v26494_v2, %v13474_v27  ;;  %19172 = vmatprep.subr.bf16.mxu0 %v13638_v39  ;;  %v13609_v50 = vmax.f32 %v13577_v59, 0.0 }
 0xbb2   : > { %v13612_v19 = vmax.f32 %v13580_v38, 0.0 }
 0xbb3   : > { %v13610_v55 = vmax.f32 %v13578_v9, 0.0 }
 0xbb4   : > { %v13640_v16 = vpack.c.bf16 %v13612_v19, %v13611_v13  ;;  %19173 = vmatpush3.bf16.msra.mxu0 %v26500_v6  ;;  %v22399_v13 = vld [vmem:[%s27619_s9 + $0x10] sm:$0xff]   ;;  %v22400_v19 = vld [vmem:[%s27619_s9 + $0x18] sm:$0xff]  }
 0xbb5   : > { %v13639_v35 = vpack.c.bf16 %v13610_v55, %v13609_v50  ;;  %v20648_v62 = vpop.f32.mrb[56].mxu1  ;;  %v22401_v50 = vld [vmem:[%s27619_s9] sm:$0xff]  }
 0xbb6   : > { %v13583_v31 = vadd.f32 %v20648_v62, %v26494_v2  ;;  %v13487_v32 = vpop.f32.mrb[57].mxu1 }
 0xbb7   : > { %v13581_v51 = vadd.f32 %v26494_v2, %v13487_v32  ;;  %v20649_v25 = vpop.f32.mrb[58].mxu1  ;;  %19174 = vmatprep.subr.bf16.mxu0 %v13639_v35 }
 0xbb8   : > { %v13584_v36 = vadd.f32 %v20649_v25, %v26494_v2  ;;  %v13490_v8 = vpop.f32.mrb[59].mxu1  ;;  %19175 = vmatpush3.bf16.msra.mxu0 %v26510_v24  ;;  %v13615_v7 = vmax.f32 %v13583_v31, 0.0 }
 0xbb9   : > { %v13582_v47 = vadd.f32 %v26494_v2, %v13490_v8  ;;  %19176 = vmatprep.subr.bf16.mxu0 %v13640_v16  ;;  %v13613_v6 = vmax.f32 %v13581_v51, 0.0 }
 0xbba   : > { %v13616_v54 = vmax.f32 %v13584_v36, 0.0 }
 0xbbb   : > { %v13614_v1 = vmax.f32 %v13582_v47, 0.0 }
 0xbbc   : > { %v13642_v33 = vpack.c.bf16 %v13616_v54, %v13615_v7  ;;  %19177 = vmatpush3.bf16.msra.mxu0 %v26508_v29 }
 0xbbd   : > { %v13641_v4 = vpack.c.bf16 %v13614_v1, %v13613_v6  ;;  %v20652_v61 = vpop.f32.mrb[60].mxu1 }
 0xbbe   : > { %v13587_v48 = vadd.f32 %v20652_v61, %v26494_v2  ;;  %v13503_v63 = vpop.f32.mrb[61].mxu1 }
 0xbbf   : > { %v13585_v17 = vadd.f32 %v26494_v2, %v13503_v63  ;;  %v20653_v28 = vpop.f32.mrb[62].mxu1  ;;  %19178 = vmatprep.subr.bf16.mxu0 %v13641_v4 }
 0xbc0   : > { %v13588_v24 = vadd.f32 %v20653_v28, %v26494_v2  ;;  %v13506_v18 = vpop.f32.mrb[63].mxu1  ;;  %19179 = vmatpush3.bf16.msra.mxu0 %v26518_v30  ;;  %v13619_v11 = vmax.f32 %v13587_v48, 0.0 }
 0xbc1   : > { %v13586_v40 = vadd.f32 %v26494_v2, %v13506_v18  ;;  %19180 = vmatprep.subr.bf16.mxu0 %v13642_v33  ;;  %v13617_v29 = vmax.f32 %v13585_v17, 0.0 }
 0xbc2   : > { %v13620_v56 = vmax.f32 %v13588_v24, 0.0 }
 0xbc3   : > { %v13618_v60 = vmax.f32 %v13586_v40, 0.0  ;;  %v22402_v40 = vld [vmem:[%s27619_s9 + $0x8] sm:$0xff]  }
 0xbc4   : > { %v13644_v37 = vpack.c.bf16 %v13620_v56, %v13619_v11  ;;  %19181 = vmatpush3.bf16.msra.mxu0 %v26516_v14  ;;  %v22403_v56 = vld [vmem:[%s27619_s9 + $0x20] sm:$0xff]  }
 0xbc5   : > { %v13643_v21 = vpack.c.bf16 %v13618_v60, %v13617_v29  ;;  %v19226_v2 = vpop.f32.mrb[64].mxu1 }
 0xbc6   : > { %v19227_v14 = vpop.f32.mrb[65].mxu1 }
 0xbc7   : > { %19182 = vmatprep.subr.bf16.mxu0 %v13643_v21  ;;  %v19228_v30 = vadd.f32 %v19227_v14, %v19226_v2 }
 0xbc8   : > { %19183 = vmatpush3.bf16.msra.mxu0 %v26526_v12 }
 0xbc9   : > { %19184 = vmatprep.subr.bf16.mxu0 %v13644_v37 }
 0xbcc   : > { %19185 = vmatpush3.bf16.msra.mxu0 %v26524_v15  ;;  %v19229_v15 = vpop.f32.mrb[66].mxu1 }
 0xbcd   : > { %20654 = vmatprep.subr.bf16.mxu0 %v22398_v10  ;;  %v19230_v12 = vpop.f32.mrb[67].mxu1 }
 0xbce   : > { %v19231_v5 = vadd.f32 %v19230_v12, %v19229_v15  ;;  %v19232_v57 = vpop.f32.mrb[68].mxu1 }
 0xbcf   : > { %13718 = vmatmul.mubr.bf16.vlgmr.msra.gmra.mrb[96].mxu0 %v26452_v52 }
 0xbd0   : > { %13725 = vmatprep.mubr.bf16.mxu0 %v26458_v20  ;;  %20655 = vmatpush3.bf16.msra.mxu0 %v22398_v10  ;;  %v13831_v52 = vpack.c.bf16 %v19231_v5, %v19228_v30  ;;  %v19233_v20 = vpop.f32.mrb[69].mxu1 }
 0xbd1   : > { %v19235_v49 = vpop.f32.mrb[70].mxu1  ;;  %20664 = vmatprep.subr.bf16.mxu0 %v22399_v13 }
 0xbd7   : > { %13726 = vmatmul.mubr.bf16.gmra.mrb[100].mxu0 %v26463_v23  ;;  %v19234_v23 = vadd.f32 %v19233_v20, %v19232_v57 }
 0xbd8   : > { %13733 = vmatprep.mubr.bf16.mxu0 %v26470_v46  ;;  %v19236_v46 = vpop.f32.mrb[71].mxu1 }
 0xbd9   : > { %v19237_v22 = vadd.f32 %v19236_v46, %v19235_v49  ;;  %v19238_v44 = vpop.f32.mrb[72].mxu1 }
 0xbdf   : > { %13734 = vmatmul.mubr.bf16.gmra.mrb[104].mxu0 %v26475_v42  ;;  %v13832_v42 = vpack.c.bf16 %v19237_v22, %v19234_v23 }
 0xbe0   : > { %13741 = vmatprep.mubr.bf16.mxu0 %v26482_v26  ;;  %v19239_v26 = vpop.f32.mrb[73].mxu1 }
 0xbe1   : > { %v19240_v58 = vadd.f32 %v19239_v26, %v19238_v44  ;;  %v19241_v0 = vpop.f32.mrb[74].mxu1  ;;  %v22404_v44 = vld [vmem:[%s27619_s9 + $0x28] sm:$0xff]  }
 0xbe2   : > { %v19242_v39 = vpop.f32.mrb[75].mxu1 }
 0xbe3   : > { %v19243_v53 = vadd.f32 %v19242_v39, %v19241_v0  ;;  %v19244_v45 = vpop.f32.mrb[76].mxu1 }
 0xbe4   : > { %v19245_v41 = vpop.f32.mrb[77].mxu1 }
 0xbe5   : > { %v13833_v34 = vpack.c.bf16 %v19243_v53, %v19240_v58  ;;  %v19246_v59 = vadd.f32 %v19245_v41, %v19244_v45  ;;  %v19247_v3 = vpop.f32.mrb[78].mxu1  ;;  %v22405_v58 = vld [vmem:[%s27619_s9 + $0x30] sm:$0xff]  }
 0xbe6   : > { %v19248_v38 = vpop.f32.mrb[79].mxu1 }
 0xbe7   : > { %13742 = vmatmul.mubr.bf16.gmra.mrb[108].mxu0 %v26487_v43  ;;  %v27618_v43 = vmov 0.0   ;;  %v19249_v27 = vadd.f32 %v19248_v38, %v19247_v3 }
 0xbe8   : > { %20656 = vmatprep.mubr.msk.bf16.mxu0 %vm709_vm9, %v13831_v52  ;;  %769 = vst.msk [vmem:[#allocation3 + $0x10] sm:$0xff] %vm765_vm11, %v27618_v43  ;;  %766 = vst.msk [vmem:[#allocation3] sm:$0xff] %vm765_vm11, %v27618_v43 }
 0xbe9   : > { %770 = vst.msk [vmem:[#allocation3 + $0x18] sm:$0x3] %vm767_vm12, %v27618_v43  ;;  %768 = vst.msk [vmem:[#allocation3 + $0x8] sm:$0x3] %vm767_vm12, %v27618_v43  ;;  %v13834_v9 = vpack.c.bf16 %v19249_v27, %v19246_v59 }
 0xbea   : > { %771 = vst.msk [vmem:[#allocation3 + $0x20] sm:$0xff] %vm765_vm11, %v27618_v43  ;;  %773 = vst.msk [vmem:[#allocation3 + $0x30] sm:$0xff] %vm765_vm11, %v27618_v43 }
 0xbeb   : > { %772 = vst.msk [vmem:[#allocation3 + $0x28] sm:$0x3] %vm767_vm12, %v27618_v43  ;;  %774 = vst.msk [vmem:[#allocation3 + $0x38] sm:$0x3] %vm767_vm12, %v27618_v43 }
 0xbec   : > { %775 = vst.msk [vmem:[#allocation3 + $0x40] sm:$0xff] %vm765_vm11, %v27618_v43  ;;  %777 = vst.msk [vmem:[#allocation3 + $0x50] sm:$0xff] %vm765_vm11, %v27618_v43 }
 0xbed   : > { %776 = vst.msk [vmem:[#allocation3 + $0x48] sm:$0x3] %vm767_vm12, %v27618_v43  ;;  %778 = vst.msk [vmem:[#allocation3 + $0x58] sm:$0x3] %vm767_vm12, %v27618_v43 }
 0xbee   : > { %779 = vst.msk [vmem:[#allocation3 + $0x60] sm:$0xff] %vm765_vm11, %v27618_v43  ;;  %781 = vst.msk [vmem:[#allocation3 + $0x70] sm:$0xff] %vm765_vm11, %v27618_v43 }
 0xbef   : > { %20657 = vmatmul.mubr.msk.bf16.vlgmr.msra.gmra.mrb[112].mxu0 %vm709_vm9, %v13832_v42  ;;  %780 = vst.msk [vmem:[#allocation3 + $0x68] sm:$0x3] %vm767_vm12, %v27618_v43  ;;  %782 = vst.msk [vmem:[#allocation3 + $0x78] sm:$0x3] %vm767_vm12, %v27618_v43  ;;  %v26656_v15 = vld [vmem:[#allocation3] sm:$0xff] }
 0xbf0   : > { %783 = vst.msk [vmem:[#allocation3 + $0x80] sm:$0xff] %vm765_vm11, %v27618_v43  ;;  %785 = vst.msk [vmem:[#allocation3 + $0x90] sm:$0xff] %vm765_vm11, %v27618_v43  ;;  %20660 = vmatprep.mubr.msk.bf16.mxu0 %vm709_vm9, %v13833_v34  ;;  %20665 = vmatpush3.bf16.msra.mxu0 %v22399_v13  ;;  %v26617_v36 = vld [vmem:[#allocation3 + $0x1] sm:$0xff] }
 0xbf1   : > { %784 = vst.msk [vmem:[#allocation3 + $0x88] sm:$0x3] %vm767_vm12, %v27618_v43  ;;  %786 = vst.msk [vmem:[#allocation3 + $0x98] sm:$0x3] %vm767_vm12, %v27618_v43  ;;  %20666 = vmatprep.subr.bf16.mxu0 %v22400_v19  ;;  %v26684_v39 = vld [vmem:[#allocation3 + $0x2] sm:$0xff] }
 0xbf2   : > { %v22406_v13 = vld [vmem:[%s27619_s9 + $0x38] sm:$0xff]   ;;  %788 = vst.msk [vmem:[#allocation4] sm:$0x3f] %vm787_vm15, %v27618_v43  ;;  %789 = vst.msk [vmem:[#allocation4 + $0x8] sm:$0x3f] %vm787_vm15, %v27618_v43 }
 0xbf3   : > { %790 = vst.msk [vmem:[#allocation4 + $0x10] sm:$0x3f] %vm787_vm15, %v27618_v43  ;;  %793 = vst.msk [vmem:[#allocation4 + $0x28] sm:$0x3f] %vm787_vm15, %v27618_v43 }
 0xbf4   : > { %20667 = vmatpush3.bf16.msra.mxu0 %v22400_v19  ;;  %791 = vst.msk [vmem:[#allocation4 + $0x18] sm:$0x3f] %vm787_vm15, %v27618_v43  ;;  %792 = vst.msk [vmem:[#allocation4 + $0x20] sm:$0x3f] %vm787_vm15, %v27618_v43 }
 0xbf5   : > { %20676 = vmatprep.subr.bf16.mxu0 %v22401_v50 }
 0xbf7   : > { %20661 = vmatmul.mubr.msk.bf16.gmra.mrb[116].mxu0 %vm709_vm9, %v13834_v9 }
 0xca2   : > { %v19186_v55 = vpop.f32.mrb[96].mxu0 }
 0xca3   : > { %v19187_v16 = vpop.f32.mrb[97].mxu0 }
 0xca4   : > { %v19188_v35 = vadd.f32 %v19187_v16, %v19186_v55  ;;  %v19189_v62 = vpop.f32.mrb[98].mxu0 }
 0xca5   : > { %v19190_v31 = vpop.f32.mrb[99].mxu0 }
 0xca6   : > { %13928 = vst.msk [vmem:[#allocation3 + $0x11] sm:$0xff] %vm765_vm11, %v19188_v35  ;;  %v19191_v32 = vadd.f32 %v19190_v31, %v19189_v62 }
 0xca8   : > { %13929 = vst.msk [vmem:[#allocation3 + $0x21] sm:$0xff] %vm765_vm11, %v19191_v32  ;;  %v22408_v32 = vld [vmem:[%s27619_s9 + $0x48] sm:$0xff]  }
 0xcaa   : > { %v19192_v51 = vpop.f32.mrb[100].mxu0 }
 0xcab   : > { %v19193_v25 = vpop.f32.mrb[101].mxu0 }
 0xcac   : > { %v19194_v8 = vadd.f32 %v19193_v25, %v19192_v51  ;;  %v19195_v47 = vpop.f32.mrb[102].mxu0  ;;  %v22409_v25 = vld [vmem:[%s27619_s9 + $0x50] sm:$0xff]  }
 0xcad   : > { %v19196_v7 = vpop.f32.mrb[103].mxu0  ;;  %v26619_v54 = vld [vmem:[#allocation3 + $0x11] sm:$0xff] }
 0xcae   : > { %13930 = vst.msk [vmem:[#allocation3 + $0x31] sm:$0xff] %vm765_vm11, %v19194_v8  ;;  %v19197_v6 = vadd.f32 %v19196_v7, %v19195_v47  ;;  %v13960_v1 = vpack.c.bf16 %v26619_v54, %v26617_v36  ;;  %v13937_v12 = vld [vmem:[#allocation3 + $0x10] sm:$0xff] }
 0xcaf   : > { %v26626_v17 = vld [vmem:[#allocation3 + $0x21] sm:$0xff]  ;;  %v13944_v20 = vpack.c.bf16 %v13937_v12, %v26656_v15  ;;  %v14148_v53 = vld [vmem:[#allocation3 + $0x12] sm:$0xff] }
 0xcb0   : > { %13931 = vst.msk [vmem:[#allocation3 + $0x41] sm:$0xff] %vm765_vm11, %v19197_v6  ;;  %20668 = vmatprep.mubr.msk.bf16.mxu0 %vm765_vm11, %v13960_v1  ;;  %v13938_v46 = vld [vmem:[#allocation3 + $0x20] sm:$0xff]  ;;  %v14155_v41 = vpack.c.bf16 %v14148_v53, %v26684_v39  ;;  %v14383_v7 = vpack.c.bf16 %v26626_v17, %v26619_v54  ;;  %v22410_v1 = vld [vmem:[%s27619_s9 + $0x58] sm:$0xff]   ;;  %v22411_v54 = vld [vmem:[%s27619_s9 + $0x60] sm:$0xff]  }
 0xcb1   : > { %v14149_v38 = vld [vmem:[#allocation3 + $0x22] sm:$0xff]  ;;  %v14269_v62 = vpack.c.bf16 %v13938_v46, %v13937_v12 }
 0xcb2   : > { %v19198_v33 = vpop.f32.mrb[104].mxu0  ;;  %v22418_v12 = vld [vmem:[%s27267_s14 + $0x18] sm:$0xff]  }
 0xcb3   : > { %v19199_v4 = vpop.f32.mrb[105].mxu0 }
 0xcb4   : > { %v19200_v61 = vadd.f32 %v19199_v4, %v19198_v33  ;;  %v19201_v48 = vpop.f32.mrb[106].mxu0 }
 0xcb5   : > { %v19202_v63 = vpop.f32.mrb[107].mxu0  ;;  %v26628_v28 = vld [vmem:[#allocation3 + $0x31] sm:$0xff] }
 0xcb6   : > { %13932 = vst.msk [vmem:[#allocation3 + $0x51] sm:$0xff] %vm765_vm11, %v19200_v61  ;;  %v19203_v24 = vadd.f32 %v19202_v63, %v19201_v48  ;;  %v26633_v18 = vpack.c.bf16 %v26628_v28, %v26626_v17  ;;  %v13939_v23 = vld [vmem:[#allocation3 + $0x30] sm:$0xff]  ;;  %v14497_v48 = vpack.c.bf16 %v14149_v38, %v14148_v53  ;;  %v22412_v17 = vld [vmem:[%s27619_s9 + $0x68] sm:$0xff]  }
 0xcb7   : > { %v26644_v21 = vld [vmem:[#allocation3 + $0x41] sm:$0xff]  ;;  %v26670_v22 = vpack.c.bf16 %v13939_v23, %v13938_v46  ;;  %v14150_v59 = vld [vmem:[#allocation3 + $0x32] sm:$0xff] }
 0xcb8   : > { %13933 = vst.msk [vmem:[#allocation3 + $0x61] sm:$0xff] %vm765_vm11, %v19203_v24  ;;  %20669 = vmatmul.mubr.msk.bf16.vlgmr.msra.gmra.mrb[112].mxu0 %vm765_vm11, %v26633_v18  ;;  %v13940_v42 = vld [vmem:[#allocation3 + $0x40] sm:$0xff]  ;;  %v26692_v27 = vpack.c.bf16 %v14150_v59, %v14149_v38  ;;  %v14384_v6 = vpack.c.bf16 %v26644_v21, %v26628_v28 }
 0xcb9   : > { %20677 = vmatpush3.bf16.msra.mxu0 %v22401_v50  ;;  %v14151_v9 = vld [vmem:[#allocation3 + $0x42] sm:$0xff]  ;;  %v22407_v50 = vld [vmem:[%s27619_s9 + $0x40] sm:$0xff]   ;;  %v14270_v31 = vpack.c.bf16 %v13940_v42, %v13939_v23 }
 0xcba   : > { %v19204_v11 = vpop.f32.mrb[108].mxu0  ;;  %20678 = vmatprep.subr.bf16.mxu0 %v22402_v40  ;;  %v14498_v63 = vpack.c.bf16 %v14151_v9, %v14150_v59  ;;  %v22413_v24 = vld [vmem:[%s27619_s9 + $0x70] sm:$0xff]  }
 0xcbb   : > { %v19205_v29 = vpop.f32.mrb[109].mxu0 }
 0xcbc   : > { %v19206_v60 = vadd.f32 %v19205_v29, %v19204_v11  ;;  %v19207_v37 = vpop.f32.mrb[110].mxu0  ;;  %v22415_v29 = vld [vmem:[%s27619_s9 + $0x80] sm:$0xff]  }
 0xcbd   : > { %v26646_v10 = vld [vmem:[#allocation3 + $0x51] sm:$0xff]  ;;  %20679 = vmatpush3.bf16.msra.mxu0 %v22402_v40  ;;  %v19208_v2 = vpop.f32.mrb[111].mxu0 }
 0xcbe   : > { %13934 = vst.msk [vmem:[#allocation3 + $0x71] sm:$0xff] %vm765_vm11, %v19206_v60  ;;  %v26651_v14 = vpack.c.bf16 %v26646_v10, %v26644_v21  ;;  %20688 = vmatprep.subr.bf16.mxu0 %v22403_v56  ;;  %v19209_v30 = vadd.f32 %v19208_v2, %v19207_v37  ;;  %v13941_v49 = vld [vmem:[#allocation3 + $0x50] sm:$0xff]  ;;  %v22416_v21 = vld [vmem:[%s27619_s9 + $0x88] sm:$0xff]  }
 0xcbf   : > { %v26658_v5 = vld [vmem:[#allocation3 + $0x61] sm:$0xff]  ;;  %v26675_v26 = vpack.c.bf16 %v13941_v49, %v13940_v42  ;;  %v14152_v3 = vld [vmem:[#allocation3 + $0x52] sm:$0xff] }
 0xcc0   : > { %20672 = vmatprep.mubr.msk.bf16.mxu0 %vm765_vm11, %v26651_v14  ;;  %13935 = vst.msk [vmem:[#allocation3 + $0x81] sm:$0xff] %vm765_vm11, %v19209_v30  ;;  %v13942_v34 = vld [vmem:[#allocation3 + $0x60] sm:$0xff]  ;;  %v26697_v19 = vpack.c.bf16 %v14152_v3, %v14151_v9  ;;  %v14385_v33 = vpack.c.bf16 %v26658_v5, %v26646_v10  ;;  %v26759_v60 = vld [vmem:[#allocation3 + $0x90] sm:$0xff] }
 0xcc1   : > { %v14153_v16 = vld [vmem:[#allocation3 + $0x62] sm:$0xff]  ;;  %v14271_v51 = vpack.c.bf16 %v13942_v34, %v13941_v49  ;;  %v26772_v10 = vld [vmem:[#allocation3 + $0x91] sm:$0xff] }
 0xcc2   : > { %v14499_v28 = vpack.c.bf16 %v14153_v16, %v14152_v3  ;;  %v22417_v30 = vld [vmem:[%s27267_s14 + $0x10] sm:$0xff]  }
 0xcc3   : > { %20772 = vmatprep.subr.bf16.mxu1 %v22417_v30 }
 0xcc4   : > { %20773 = vmatpush3.bf16.msra.mxu1 %v22417_v30 }
 0xcc5   : > { %v26660_v52 = vld [vmem:[#allocation3 + $0x71] sm:$0xff]  ;;  %20774 = vmatprep.subr.bf16.mxu1 %v22418_v12 }
 0xcc6   : > { %v26664_v57 = vpack.c.bf16 %v26660_v52, %v26658_v5  ;;  %v13943_v0 = vld [vmem:[#allocation3 + $0x70] sm:$0xff] }
 0xcc7   : > { %v26686_v45 = vpack.c.bf16 %v13943_v0, %v13942_v34  ;;  %v14154_v55 = vld [vmem:[#allocation3 + $0x72] sm:$0xff]  ;;  %v14268_v8 = vld [vmem:[#allocation3 + $0x80] sm:$0xff] }
 0xcc8   : > { %20673 = vmatmul.mubr.msk.bf16.gmra.mrb[116].mxu0 %vm765_vm11, %v26664_v57  ;;  %v26706_v35 = vpack.c.bf16 %v14154_v55, %v14153_v16  ;;  %v14272_v47 = vpack.c.bf16 %v14268_v8, %v13943_v0  ;;  %v14382_v4 = vld [vmem:[#allocation3 + $0x81] sm:$0xff]  ;;  %v14615_v37 = vpack.c.bf16 %v26759_v60, %v14268_v8  ;;  %20775 = vmatpush3.bf16.msra.mxu1 %v22418_v12  ;;  %v22419_v5 = vld [vmem:[%s27267_s14] sm:$0xff]  }
 0xcc9   : > { %20680 = vmatprep.mubr.msk.bf16.mxu0 %vm765_vm11, %v13944_v20  ;;  %v14386_v61 = vpack.c.bf16 %v14382_v4, %v26660_v52  ;;  %v14496_v40 = vld [vmem:[#allocation3 + $0x82] sm:$0xff]  ;;  %v14729_v2 = vpack.c.bf16 %v26772_v10, %v14382_v4  ;;  %20784 = vmatprep.subr.bf16.mxu1 %v22419_v5  ;;  %v18257_v52 = vld [vmem:[%s27266_s13] ss:$0 sm:$0xff] }
 0xcca   : > { %v14500_v11 = vpack.c.bf16 %v14496_v40, %v14154_v55  ;;  %v18349_v20 = vld [vmem:[%s27620_s10] ss:$0 sm:$0xff] }
 0xcd0   : > { %20681 = vmatmul.mubr.msk.bf16.vlgmr.msra.gmra.mrb[112].mxu0 %vm765_vm11, %v26670_v22 }
 0xcd1   : > { %20684 = vmatprep.mubr.msk.bf16.mxu0 %vm765_vm11, %v26675_v26  ;;  %20689 = vmatpush3.bf16.msra.mxu0 %v22403_v56  ;;  %v22414_v56 = vld [vmem:[%s27619_s9 + $0x78] sm:$0xff]   ;;  %s22502_s9 = sshll.u32 %s22566_s5, 4  ;;  %s22503_s9 = int_to_ptr.vmem [resolvable:$false] %s22502_s9 }
 0xcd2   : > { %20690 = vmatprep.subr.bf16.mxu0 %v22404_v44  ;;  %s22504_s10 = scalar_lea.vmem %s22503_s9, 32  ;;  %p22505_p0 = scmp.lt.s32.totalorder %s27213_s26, %s22503_s9 }
 0xcd3   : > { %p22506_p1 = scmp.lt.s32.totalorder %s22504_s10, %s22498_s3 }
 0xcd5   : > { %20691 = vmatpush3.bf16.msra.mxu0 %v22404_v44  ;;  %p22507_p2 = por %p22506_p1, %p22505_p0 }
 0xcd6   : > { %20700 = vmatprep.subr.bf16.mxu0 %v22405_v58 }
 0xcd7   : > { %p22508_p3 = pnand %p22507_p2, %p22501_p13 }
 0xcd8   : > { %20685 = vmatmul.mubr.msk.bf16.gmra.mrb[116].mxu0 %vm765_vm11, %v26686_v45 }
 0xcd9   : > { %20692 = vmatprep.mubr.msk.bf16.mxu0 %vm765_vm11, %v14155_v41 }
 0xce0   : > { %20693 = vmatmul.mubr.msk.bf16.vlgmr.msra.gmra.mrb[112].mxu0 %vm765_vm11, %v26692_v27 }
 0xce1   : > { %20696 = vmatprep.mubr.msk.bf16.mxu0 %vm765_vm11, %v26697_v19  ;;  %20701 = vmatpush3.bf16.msra.mxu0 %v22405_v58 }
 0xce2   : > { %20702 = vmatprep.subr.bf16.mxu0 %v22406_v13 }
 0xce5   : > { %20703 = vmatpush3.bf16.msra.mxu0 %v22406_v13 }
 0xce6   : > { %20712 = vmatprep.subr.bf16.mxu0 %v22407_v50 }
 0xce8   : > { %20697 = vmatmul.mubr.msk.bf16.gmra.mrb[116].mxu0 %vm765_vm11, %v26706_v35 }
 0xce9   : > { %20704 = vmatprep.mubr.msk.bf16.mxu0 %vm765_vm11, %v14269_v62 }
 0xcf0   : > { %20705 = vmatmul.mubr.msk.bf16.vlgmr.msra.gmra.mrb[112].mxu0 %vm765_vm11, %v14270_v31 }
 0xcf1   : > { %20708 = vmatprep.mubr.msk.bf16.mxu0 %vm765_vm11, %v14271_v51  ;;  %20713 = vmatpush3.bf16.msra.mxu0 %v22407_v50 }
 0xcf2   : > { %20714 = vmatprep.subr.bf16.mxu0 %v22408_v32 }
 0xcf5   : > { %20715 = vmatpush3.bf16.msra.mxu0 %v22408_v32 }
 0xcf6   : > { %20724 = vmatprep.subr.bf16.mxu0 %v22409_v25 }
 0xcf8   : > { %20709 = vmatmul.mubr.msk.bf16.gmra.mrb[116].mxu0 %vm765_vm11, %v14272_v47 }
 0xcf9   : > { %20716 = vmatprep.mubr.msk.bf16.mxu0 %vm765_vm11, %v14383_v7 }
 0xd00   : > { %20717 = vmatmul.mubr.msk.bf16.vlgmr.msra.gmra.mrb[112].mxu0 %vm765_vm11, %v14384_v6 }
 0xd01   : > { %20720 = vmatprep.mubr.msk.bf16.mxu0 %vm765_vm11, %v14385_v33  ;;  %20725 = vmatpush3.bf16.msra.mxu0 %v22409_v25 }
 0xd02   : > { %20726 = vmatprep.subr.bf16.mxu0 %v22410_v1 }
 0xd05   : > { %20727 = vmatpush3.bf16.msra.mxu0 %v22410_v1 }
 0xd06   : > { %20736 = vmatprep.subr.bf16.mxu0 %v22411_v54 }
 0xd08   : > { %20721 = vmatmul.mubr.msk.bf16.gmra.mrb[116].mxu0 %vm765_vm11, %v14386_v61 }
 0xd09   : > { %20728 = vmatprep.mubr.msk.bf16.mxu0 %vm765_vm11, %v14497_v48 }
 0xd10   : > { %20729 = vmatmul.mubr.msk.bf16.vlgmr.msra.gmra.mrb[112].mxu0 %vm765_vm11, %v14498_v63 }
 0xd11   : > { %20732 = vmatprep.mubr.msk.bf16.mxu0 %vm765_vm11, %v14499_v28  ;;  %20737 = vmatpush3.bf16.msra.mxu0 %v22411_v54 }
 0xd12   : > { %20738 = vmatprep.subr.bf16.mxu0 %v22412_v17 }
 0xd15   : > { %20739 = vmatpush3.bf16.msra.mxu0 %v22412_v17  ;;  %v22421_v17 = vld [vmem:[%s27267_s14 + $0x20] sm:$0xff]  }
 0xd16   : > { %20748 = vmatprep.subr.bf16.mxu0 %v22413_v24 }
 0xd18   : > { %20733 = vmatmul.mubr.msk.bf16.gmra.mrb[116].mxu0 %vm765_vm11, %v14500_v11 }
 0xd19   : > { %20740 = vmatprep.mubr.msk.bf16.mxu0 %vm765_vm11, %v26670_v22 }
 0xd20   : > { %20741 = vmatmul.mubr.msk.bf16.vlgmr.msra.gmra.mrb[112].mxu0 %vm765_vm11, %v26675_v26 }
 0xd21   : > { %20744 = vmatprep.mubr.msk.bf16.mxu0 %vm765_vm11, %v26686_v45  ;;  %20749 = vmatpush3.bf16.msra.mxu0 %v22413_v24 }
 0xd22   : > { %20750 = vmatprep.subr.bf16.mxu0 %v22414_v56 }
 0xd25   : > { %20751 = vmatpush3.bf16.msra.mxu0 %v22414_v56 }
 0xd26   : > { %20760 = vmatprep.subr.bf16.mxu0 %v22415_v29 }
 0xd28   : > { %20745 = vmatmul.mubr.msk.bf16.gmra.mrb[116].mxu0 %vm765_vm11, %v14615_v37 }
 0xd29   : > { %20752 = vmatprep.mubr.msk.bf16.mxu0 %vm765_vm11, %v26633_v18  ;;  %v26783_v18 = vld [vmem:[#allocation3 + $0x92] sm:$0xff] }
 0xd30   : > { %20753 = vmatmul.mubr.msk.bf16.vlgmr.msra.gmra.mrb[112].mxu0 %vm765_vm11, %v26651_v14  ;;  %v14843_v14 = vpack.c.bf16 %v26783_v18, %v14496_v40 }
 0xd31   : > { %20756 = vmatprep.mubr.msk.bf16.mxu0 %vm765_vm11, %v26664_v57  ;;  %20761 = vmatpush3.bf16.msra.mxu0 %v22415_v29 }
 0xd32   : > { %20762 = vmatprep.subr.bf16.mxu0 %v22416_v21 }
 0xd35   : > { %20763 = vmatpush3.bf16.msra.mxu0 %v22416_v21 }
 0xd36   : > { %20892 = vmatprep.subr.bf16.mxu0 %v27618_v43 }
 0xd38   : > { %20757 = vmatmul.mubr.msk.bf16.gmra.mrb[116].mxu0 %vm765_vm11, %v14729_v2 }
 0xd39   : > { %20764 = vmatprep.mubr.msk.bf16.mxu0 %vm765_vm11, %v26692_v27 }
 0xd40   : > { %20765 = vmatmul.mubr.msk.bf16.vlgmr.msra.gmra.mrb[112].mxu0 %vm765_vm11, %v26697_v19 }
 0xd41   : > { %20768 = vmatprep.mubr.msk.bf16.mxu0 %vm765_vm11, %v26706_v35 }
 0xd48   : > { %20769 = vmatmul.mubr.msk.bf16.gmra.mrb[116].mxu0 %vm765_vm11, %v14843_v14 }
 0xd49   : > { %20900 = vmatprep.mubr.msk.bf16.mxu0 %vm22564_vm13, %v27618_v43 }
 0xe13   : > { %v20766_v57 = vpop.f32.mrb[112].mxu0 }
 0xe14   : > { %v21083_v23 = vadd.f32 %v20766_v57, %v18257_v52  ;;  %v14907_v49 = vpop.f32.mrb[113].mxu0 }
 0xe15   : > { %v21085_v46 = vadd.f32 %v18257_v52, %v14907_v49  ;;  %v20767_v22 = vpop.f32.mrb[114].mxu0 }
 0xe16   : > { %v21084_v42 = vadd.f32 %v21083_v23, %v18349_v20  ;;  %v21087_v44 = vadd.f32 %v20767_v22, %v18257_v52  ;;  %v14910_v26 = vpop.f32.mrb[115].mxu0 }
 0xe17   : > { %v21086_v58 = vadd.f32 %v21085_v46, %v18349_v20  ;;  %v21089_v0 = vadd.f32 %v18257_v52, %v14910_v26 }
 0xe18   : > { %v14971_v53 = vmax.f32 %v21084_v42, 0.0  ;;  %v21088_v34 = vadd.f32 %v21087_v44, %v18349_v20 }
 0xe19   : > { %v14969_v45 = vmax.f32 %v21086_v58, 0.0  ;;  %v21090_v41 = vadd.f32 %v21089_v0, %v18349_v20 }
 0xe1a   : > { %14979 = vst.msk [vmem:[#allocation3 + $0x31] sm:$0xff] %vm765_vm11, %v14971_v53  ;;  %v14972_v59 = vmax.f32 %v21088_v34, 0.0 }
 0xe1b   : > { %14977 = vst.msk [vmem:[#allocation3 + $0x11] sm:$0xff] %vm765_vm11, %v14969_v45  ;;  %v14970_v3 = vmax.f32 %v21090_v41, 0.0  ;;  %v20770_v38 = vpop.f32.mrb[116].mxu0 }
 0xe1c   : > { %v16074_v27 = vpack.c.bf16 %v14972_v59, %v14971_v53  ;;  %14980 = vst.msk [vmem:[#allocation3 + $0x41] sm:$0xff] %vm765_vm11, %v14972_v59  ;;  %v21091_v9 = vadd.f32 %v20770_v38, %v18257_v52  ;;  %v14923_v13 = vpop.f32.mrb[117].mxu0  ;;  %v22424_v53 = vld [vmem:[%s27267_s14 + $0x38] sm:$0xff]  }
 0xe1d   : > { %v16073_v19 = vpack.c.bf16 %v14970_v3, %v14969_v45  ;;  %14978 = vst.msk [vmem:[#allocation3 + $0x21] sm:$0xff] %vm765_vm11, %v14970_v3  ;;  %v21093_v50 = vadd.f32 %v18257_v52, %v14923_v13  ;;  %v20771_v55 = vpop.f32.mrb[118].mxu0  ;;  %v22427_v13 = vld [vmem:[%s27267_s14 + $0x50] sm:$0xff]  }
 0xe1e   : > { %v21092_v16 = vadd.f32 %v21091_v9, %v18349_v20  ;;  %v21095_v35 = vadd.f32 %v20771_v55, %v18257_v52  ;;  %v14926_v62 = vpop.f32.mrb[119].mxu0 }
 0xe1f   : > { %v21094_v31 = vadd.f32 %v21093_v50, %v18349_v20  ;;  %v21097_v32 = vadd.f32 %v18257_v52, %v14926_v62  ;;  %20893 = vmatpush3.bf16.msra.mxu0 %v16073_v19  ;;  %v22422_v52 = vld [vmem:[%s27267_s14 + $0x28] sm:$0xff]  }
 0xe20   : > { %v14975_v51 = vmax.f32 %v21092_v16, 0.0  ;;  %v21096_v25 = vadd.f32 %v21095_v35, %v18349_v20  ;;  %20894 = vmatprep.subr.bf16.mxu0 %v27618_v43  ;;  %v22428_v35 = vld [vmem:[%s27267_s14 + $0x58] sm:$0xff]  }
 0xe21   : > { %v14973_v8 = vmax.f32 %v21094_v31, 0.0  ;;  %v21098_v47 = vadd.f32 %v21097_v32, %v18349_v20  ;;  %v26817_v61 = vld [vmem:[#allocation3 + $0x31] sm:$0xff] }
 0xe22   : > { %14983 = vst.msk [vmem:[#allocation3 + $0x71] sm:$0xff] %vm765_vm11, %v14975_v51  ;;  %v14976_v7 = vmax.f32 %v21096_v25, 0.0  ;;  %v26808_v6 = vld [vmem:[#allocation3 + $0x11] sm:$0xff] }
 0xe23   : > { %14981 = vst.msk [vmem:[#allocation3 + $0x51] sm:$0xff] %vm765_vm11, %v14973_v8  ;;  %v14974_v1 = vmax.f32 %v21098_v47, 0.0  ;;  %20895 = vmatpush3.bf16.msra.mxu0 %v16074_v27  ;;  %v15009_v33 = vpack.c.bf16 %v26808_v6, %v26617_v36  ;;  %v22420_v36 = vld [vmem:[%s27267_s14 + $0x8] sm:$0xff]   ;;  %v26834_v28 = vld [vmem:[#allocation3 + $0x41] sm:$0xff]  ;;  %v14986_v11 = vld [vmem:[#allocation3 + $0x10] sm:$0xff] }
 0xe24   : > { %v16076_v54 = vpack.c.bf16 %v14976_v7, %v14975_v51  ;;  %14984 = vst.msk [vmem:[#allocation3 + $0x81] sm:$0xff] %vm765_vm11, %v14976_v7  ;;  %20896 = vmatprep.subr.bf16.mxu0 %v27618_v43  ;;  %v26815_v4 = vld [vmem:[#allocation3 + $0x21] sm:$0xff]  ;;  %v14993_v21 = vpack.c.bf16 %v14986_v11, %v26656_v15  ;;  %v14988_v30 = vld [vmem:[#allocation3 + $0x30] sm:$0xff]  ;;  %v22426_v27 = vld [vmem:[%s27267_s14 + $0x48] sm:$0xff]   ;;  %v15433_v16 = vpack.c.bf16 %v26834_v28, %v26817_v61 }
 0xe25   : > { %v16075_v48 = vpack.c.bf16 %v14974_v1, %v14973_v8  ;;  %14982 = vst.msk [vmem:[#allocation3 + $0x61] sm:$0xff] %vm765_vm11, %v14974_v1  ;;  %20776 = vmatprep.mubr.msk.bf16.mxu1 %vm765_vm11, %v15009_v33  ;;  %v26823_v63 = vpack.c.bf16 %v26817_v61, %v26815_v4  ;;  %v14987_v2 = vld [vmem:[#allocation3 + $0x20] sm:$0xff]  ;;  %v15197_v23 = vld [vmem:[#allocation3 + $0x12] sm:$0xff]  ;;  %v15432_v55 = vpack.c.bf16 %v26815_v4, %v26808_v6 }
 0xe26   : > { %v26856_v12 = vpack.c.bf16 %v14988_v30, %v14987_v2  ;;  %v22423_v15 = vld [vmem:[%s27267_s14 + $0x30] sm:$0xff]   ;;  %v15204_v22 = vpack.c.bf16 %v15197_v23, %v26684_v39  ;;  %v15199_v26 = vld [vmem:[#allocation3 + $0x32] sm:$0xff]  ;;  %v15318_v3 = vpack.c.bf16 %v14987_v2, %v14986_v11 }
 0xe27   : > { %20777 = vmatmul.mubr.msk.bf16.vlgmr.msra.gmra.mrb[80].mxu1 %vm765_vm11, %v26823_v63  ;;  %20897 = vmatpush3.bf16.msra.mxu0 %v16075_v48  ;;  %v15198_v42 = vld [vmem:[#allocation3 + $0x22] sm:$0xff]  ;;  %v22425_v39 = vld [vmem:[%s27267_s14 + $0x40] sm:$0xff]   ;;  %v22430_v47 = vld [vmem:[%s27267_s14 + $0x68] sm:$0xff]  }
 0xe28   : > { %20898 = vmatprep.subr.bf16.mxu0 %v27618_v43  ;;  %20785 = vmatpush3.bf16.msra.mxu1 %v22419_v5  ;;  %v14989_v5 = vld [vmem:[#allocation3 + $0x40] sm:$0xff]  ;;  %v26876_v58 = vpack.c.bf16 %v15199_v26, %v15198_v42  ;;  %v22429_v31 = vld [vmem:[%s27267_s14 + $0x60] sm:$0xff]   ;;  %v15546_v25 = vpack.c.bf16 %v15198_v42, %v15197_v23  ;;  %v22434_v48 = vld [vmem:[%s27267_s14 + $0x88] sm:$0xff]  }
 0xe29   : > { %20786 = vmatprep.subr.bf16.mxu1 %v22420_v36  ;;  %v26844_v29 = vld [vmem:[#allocation3 + $0x71] sm:$0xff]  ;;  %v15200_v0 = vld [vmem:[#allocation3 + $0x42] sm:$0xff]  ;;  %v15319_v38 = vpack.c.bf16 %v14989_v5, %v14988_v30 }
 0xe2a   : > { %v26836_v24 = vld [vmem:[#allocation3 + $0x51] sm:$0xff]  ;;  %v15547_v8 = vpack.c.bf16 %v15200_v0, %v15199_v26  ;;  %v22431_v6 = vld [vmem:[%s27267_s14 + $0x70] sm:$0xff]  }
 0xe2b   : > { %20899 = vmatpush3.bf16.msra.mxu0 %v16076_v54  ;;  %v26840_v40 = vpack.c.bf16 %v26836_v24, %v26834_v28  ;;  %v14990_v14 = vld [vmem:[#allocation3 + $0x50] sm:$0xff]  ;;  %v15317_v19 = vld [vmem:[#allocation3 + $0x80] sm:$0xff]  ;;  %v22432_v54 = vld [vmem:[%s27267_s14 + $0x78] sm:$0xff]  }
 0xe2c   : > { %v26842_v56 = vld [vmem:[#allocation3 + $0x61] sm:$0xff]  ;;  %20787 = vmatpush3.bf16.msra.mxu1 %v22420_v36  ;;  %v26861_v57 = vpack.c.bf16 %v14990_v14, %v14989_v5  ;;  %v14992_v49 = vld [vmem:[#allocation3 + $0x70] sm:$0xff]  ;;  %v15663_v61 = vpack.c.bf16 %v26759_v60, %v15317_v19 }
 0xe2d   : > { %20780 = vmatprep.mubr.msk.bf16.mxu1 %vm765_vm11, %v26840_v40  ;;  %v26850_v37 = vpack.c.bf16 %v26844_v29, %v26842_v56  ;;  %20796 = vmatprep.subr.bf16.mxu1 %v22421_v17  ;;  %v14991_v20 = vld [vmem:[#allocation3 + $0x60] sm:$0xff]  ;;  %v15201_v44 = vld [vmem:[#allocation3 + $0x52] sm:$0xff]  ;;  %v15321_v50 = vpack.c.bf16 %v15317_v19, %v14992_v49  ;;  %v15434_v62 = vpack.c.bf16 %v26842_v56, %v26836_v24 }
 0xe2e   : > { %v26870_v46 = vpack.c.bf16 %v14992_v49, %v14991_v20  ;;  %v26881_v34 = vpack.c.bf16 %v15201_v44, %v15200_v0  ;;  %v15202_v45 = vld [vmem:[#allocation3 + $0x62] sm:$0xff]  ;;  %v15203_v41 = vld [vmem:[#allocation3 + $0x72] sm:$0xff]  ;;  %v15320_v9 = vpack.c.bf16 %v14991_v20, %v14990_v14 }
 0xe2f   : > { %20781 = vmatmul.mubr.msk.bf16.gmra.mrb[84].mxu1 %vm765_vm11, %v26850_v37  ;;  %v26890_v59 = vpack.c.bf16 %v15203_v41, %v15202_v45  ;;  %v15431_v32 = vld [vmem:[#allocation3 + $0x81] sm:$0xff]  ;;  %v15548_v7 = vpack.c.bf16 %v15202_v45, %v15201_v44  ;;  %v22433_v4 = vld [vmem:[%s27267_s14 + $0x80] sm:$0xff]  }
 0xe30   : > { %20788 = vmatprep.mubr.msk.bf16.mxu1 %vm765_vm11, %v14993_v21  ;;  %v15435_v51 = vpack.c.bf16 %v15431_v32, %v26844_v29  ;;  %v15545_v1 = vld [vmem:[#allocation3 + $0x82] sm:$0xff]  ;;  %v15777_v60 = vpack.c.bf16 %v26772_v10, %v15431_v32  ;;  %v22435_v10 = vld [vmem:[%s27271_s18] sm:$0xff]  }
 0xe31   : > { %v15549_v33 = vpack.c.bf16 %v15545_v1, %v15203_v41  ;;  %20901 = vmatmul.mubr.msk.bf16.vlgmr.msra.gmra.mrb[120].mxu0 %vm16028_vm14, %v22435_v10 }
 0xe32   : > { %21036 = vmatprep.mubr.msk.f32.mxu0 %vm22564_vm13, %v27618_v43 }
 0xe37   : > { %20789 = vmatmul.mubr.msk.bf16.vlgmr.msra.gmra.mrb[80].mxu1 %vm765_vm11, %v26856_v12 }
 0xe38   : > { %20792 = vmatprep.mubr.msk.bf16.mxu1 %vm765_vm11, %v26861_v57  ;;  %20797 = vmatpush3.bf16.msra.mxu1 %v22421_v17 }
 0xe39   : > { %20798 = vmatprep.subr.bf16.mxu1 %v22422_v52 }
 0xe3c   : > { %20799 = vmatpush3.bf16.msra.mxu1 %v22422_v52 }
 0xe3d   : > { %20808 = vmatprep.subr.bf16.mxu1 %v22423_v15 }
 0xe3f   : > { %20793 = vmatmul.mubr.msk.bf16.gmra.mrb[84].mxu1 %vm765_vm11, %v26870_v46 }
 0xe40   : > { %20800 = vmatprep.mubr.msk.bf16.mxu1 %vm765_vm11, %v15204_v22 }
 0xe47   : > { %20801 = vmatmul.mubr.msk.bf16.vlgmr.msra.gmra.mrb[80].mxu1 %vm765_vm11, %v26876_v58 }
 0xe48   : > { %20804 = vmatprep.mubr.msk.bf16.mxu1 %vm765_vm11, %v26881_v34  ;;  %20809 = vmatpush3.bf16.msra.mxu1 %v22423_v15 }
 0xe49   : > { %20810 = vmatprep.subr.bf16.mxu1 %v22424_v53 }
 0xe4c   : > { %20811 = vmatpush3.bf16.msra.mxu1 %v22424_v53  ;;  %v22436_v53 = vld [vmem:[%s27272_s19] sm:$0xff]  }
 0xe4d   : > { %20820 = vmatprep.subr.bf16.mxu1 %v22425_v39 }
 0xe4f   : > { %20805 = vmatmul.mubr.msk.bf16.gmra.mrb[84].mxu1 %vm765_vm11, %v26890_v59 }
 0xe50   : > { %20812 = vmatprep.mubr.msk.bf16.mxu1 %vm765_vm11, %v15318_v3 }
 0xe57   : > { %20813 = vmatmul.mubr.msk.bf16.vlgmr.msra.gmra.mrb[80].mxu1 %vm765_vm11, %v15319_v38 }
 0xe58   : > { %20816 = vmatprep.mubr.msk.bf16.mxu1 %vm765_vm11, %v15320_v9  ;;  %20821 = vmatpush3.bf16.msra.mxu1 %v22425_v39  ;;  %v22440_v9 = vld [vmem:[%s27269_s16 + $0x30] sm:$0xff]  }
 0xe59   : > { %20822 = vmatprep.subr.bf16.mxu1 %v22426_v27 }
 0xe5c   : > { %20823 = vmatpush3.bf16.msra.mxu1 %v22426_v27  ;;  %v22439_v27 = vld [vmem:[%s27269_s16 + $0x28] sm:$0xff]  }
 0xe5d   : > { %20832 = vmatprep.subr.bf16.mxu1 %v22427_v13 }
 0xe5f   : > { %20817 = vmatmul.mubr.msk.bf16.gmra.mrb[84].mxu1 %vm765_vm11, %v15321_v50 }
 0xe60   : > { %20824 = vmatprep.mubr.msk.bf16.mxu1 %vm765_vm11, %v15432_v55 }
 0xe67   : > { %20825 = vmatmul.mubr.msk.bf16.vlgmr.msra.gmra.mrb[80].mxu1 %vm765_vm11, %v15433_v16 }
 0xe68   : > { %20828 = vmatprep.mubr.msk.bf16.mxu1 %vm765_vm11, %v15434_v62  ;;  %20833 = vmatpush3.bf16.msra.mxu1 %v22427_v13  ;;  %v22441_v13 = vld [vmem:[%s27269_s16 + $0x38] sm:$0xff]  }
 0xe69   : > { %20834 = vmatprep.subr.bf16.mxu1 %v22428_v35 }
 0xe6c   : > { %20835 = vmatpush3.bf16.msra.mxu1 %v22428_v35 }
 0xe6d   : > { %20844 = vmatprep.subr.bf16.mxu1 %v22429_v31 }
 0xe6f   : > { %20829 = vmatmul.mubr.msk.bf16.gmra.mrb[84].mxu1 %vm765_vm11, %v15435_v51  ;;  %v22444_v51 = vld [vmem:[%s27269_s16] sm:$0xff]  }
 0xe70   : > { %20836 = vmatprep.mubr.msk.bf16.mxu1 %vm765_vm11, %v15546_v25 }
 0xe77   : > { %20837 = vmatmul.mubr.msk.bf16.vlgmr.msra.gmra.mrb[80].mxu1 %vm765_vm11, %v15547_v8  ;;  %v22445_v8 = vld [vmem:[%s27269_s16 + $0x8] sm:$0xff]  }
 0xe78   : > { %20840 = vmatprep.mubr.msk.bf16.mxu1 %vm765_vm11, %v15548_v7  ;;  %20845 = vmatpush3.bf16.msra.mxu1 %v22429_v31  ;;  %v22447_v7 = vld [vmem:[%s27269_s16 + $0x18] sm:$0xff]  }
 0xe79   : > { %20846 = vmatprep.subr.bf16.mxu1 %v22430_v47 }
 0xe7c   : > { %20847 = vmatpush3.bf16.msra.mxu1 %v22430_v47  ;;  %v22446_v47 = vld [vmem:[%s27269_s16 + $0x10] sm:$0xff]  }
 0xe7d   : > { %20856 = vmatprep.subr.bf16.mxu1 %v22431_v6 }
 0xe7f   : > { %20841 = vmatmul.mubr.msk.bf16.gmra.mrb[84].mxu1 %vm765_vm11, %v15549_v33  ;;  %v22450_v33 = vld [vmem:[%s27269_s16 + $0x40] sm:$0xff]  }
 0xe80   : > { %20848 = vmatprep.mubr.msk.bf16.mxu1 %vm765_vm11, %v26856_v12 }
 0xe87   : > { %20849 = vmatmul.mubr.msk.bf16.vlgmr.msra.gmra.mrb[80].mxu1 %vm765_vm11, %v26861_v57 }
 0xe88   : > { %20852 = vmatprep.mubr.msk.bf16.mxu1 %vm765_vm11, %v26870_v46  ;;  %20857 = vmatpush3.bf16.msra.mxu1 %v22431_v6 }
 0xe89   : > { %20858 = vmatprep.subr.bf16.mxu1 %v22432_v54 }
 0xe8c   : > { %20859 = vmatpush3.bf16.msra.mxu1 %v22432_v54 }
 0xe8d   : > { %20868 = vmatprep.subr.bf16.mxu1 %v22433_v4 }
 0xe8f   : > { %20853 = vmatmul.mubr.msk.bf16.gmra.mrb[84].mxu1 %vm765_vm11, %v15663_v61  ;;  %v22452_v61 = vld [vmem:[%s27269_s16 + $0x50] sm:$0xff]  }
 0xe90   : > { %20860 = vmatprep.mubr.msk.bf16.mxu1 %vm765_vm11, %v26823_v63  ;;  %v15891_v63 = vpack.c.bf16 %v26783_v18, %v15545_v1  ;;  %v18436_v18 = vld [vmem:[%s27268_s15] ss:$0 sm:$0xff] }
 0xe97   : > { %20861 = vmatmul.mubr.msk.bf16.vlgmr.msra.gmra.mrb[80].mxu1 %vm765_vm11, %v26840_v40 }
 0xe98   : > { %20864 = vmatprep.mubr.msk.bf16.mxu1 %vm765_vm11, %v26850_v37  ;;  %20869 = vmatpush3.bf16.msra.mxu1 %v22433_v4  ;;  %v22451_v4 = vld [vmem:[%s27269_s16 + $0x48] sm:$0xff]  }
 0xe99   : > { %20870 = vmatprep.subr.bf16.mxu1 %v22434_v48 }
 0xe9c   : > { %20871 = vmatpush3.bf16.msra.mxu1 %v22434_v48  ;;  %v22453_v48 = vld [vmem:[%s27269_s16 + $0x58] sm:$0xff]  }
 0xe9d   : > { %20880 = vmatprep.subr.bf16.mxu1 %v27618_v43 }
 0xe9f   : > { %20865 = vmatmul.mubr.msk.bf16.gmra.mrb[84].mxu1 %vm765_vm11, %v15777_v60 }
 0xea0   : > { %20872 = vmatprep.mubr.msk.bf16.mxu1 %vm765_vm11, %v26876_v58 }
 0xea7   : > { %20873 = vmatmul.mubr.msk.bf16.vlgmr.msra.gmra.mrb[80].mxu1 %vm765_vm11, %v26881_v34  ;;  %v22437_v34 = vld [vmem:[%s27272_s19 + $0x8] sm:$0xff]  }
 0xea8   : > { %20876 = vmatprep.mubr.msk.bf16.mxu1 %vm765_vm11, %v26890_v59  ;;  %v22438_v59 = vld [vmem:[%s27269_s16 + $0x20] sm:$0xff]  }
 0xeaf   : > { %20877 = vmatmul.mubr.msk.bf16.gmra.mrb[84].mxu1 %vm765_vm11, %v15891_v63 }
 0xeb0   : > { %20888 = vmatprep.mubr.msk.bf16.mxu1 %vm22564_vm13, %v27618_v43 }
 0xf04   : > { %v16111_v39 = vpop.f32.mrb[120].mxu0 }
 0xf05   : > { %v20902_v45 = vpop.f32.mrb[121].mxu0 }
 0xf06   : > { %v16114_v41 = vpop.f32.mrb[122].mxu0 }
 0xf07   : > { %v16118_v3 = vpack.c.bf16 %v16114_v41, %v16111_v39  ;;  %v20903_v38 = vpop.f32.mrb[123].mxu0  ;;  %v22483_v39 = vld [vmem:[%s27269_s16 + $0xf8] sm:$0xff]  }
 0xf08   : > { %v22487_v38 = vld [vmem:[%s27269_s16 + $0x108] sm:$0xff]  }
 0xf7a   : > { %v20874_v36 = vpop.f32.mrb[80].mxu1 }
 0xf7b   : > { %v16003_v17 = vadd.f32 %v20874_v36, %v18436_v18  ;;  %v15955_v28 = vpop.f32.mrb[81].mxu1  ;;  %v22457_v36 = vld [vmem:[%s27269_s16 + $0x68] sm:$0xff]  }
 0xf7c   : > { %v16001_v24 = vadd.f32 %v18436_v18, %v15955_v28  ;;  %v20875_v40 = vpop.f32.mrb[82].mxu1  ;;  %v22459_v28 = vld [vmem:[%s27269_s16 + $0x78] sm:$0xff]  }
 0xf7d   : > { %v16004_v11 = vadd.f32 %v20875_v40, %v18436_v18  ;;  %v15958_v56 = vpop.f32.mrb[83].mxu1  ;;  %v16011_v37 = vmax.f32 %v16003_v17, 0.0  ;;  %v22458_v17 = vld [vmem:[%s27269_s16 + $0x70] sm:$0xff]  }
 0xf7e   : > { %v16002_v29 = vadd.f32 %v18436_v18, %v15958_v56  ;;  %v16009_v2 = vmax.f32 %v16001_v24, 0.0 }
 0xf7f   : > { %v16012_v21 = vmax.f32 %v16004_v11, 0.0  ;;  %v22462_v11 = vld [vmem:[%s27269_s16 + $0x80] sm:$0xff]  }
 0xf80   : > { %v16010_v14 = vmax.f32 %v16002_v29, 0.0  ;;  %v22463_v29 = vld [vmem:[%s27269_s16 + $0x88] sm:$0xff]  }
 0xf81   : > { %v16020_v30 = vpack.c.bf16 %v16012_v21, %v16011_v37  ;;  %v22464_v37 = vld [vmem:[%s27269_s16 + $0x90] sm:$0xff]   ;;  %v22465_v21 = vld [vmem:[%s27269_s16 + $0x98] sm:$0xff]  }
 0xf82   : > { %v16019_v12 = vpack.c.bf16 %v16010_v14, %v16009_v2  ;;  %v20878_v5 = vpop.f32.mrb[84].mxu1 }
 0xf83   : > { %v16007_v52 = vadd.f32 %v20878_v5, %v18436_v18  ;;  %v15971_v57 = vpop.f32.mrb[85].mxu1  ;;  %v22469_v5 = vld [vmem:[%s27269_s16 + $0xa8] sm:$0xff]  }
 0xf84   : > { %v16005_v15 = vadd.f32 %v18436_v18, %v15971_v57  ;;  %v20879_v20 = vpop.f32.mrb[86].mxu1  ;;  %20881 = vmatpush3.bf16.msra.mxu1 %v16019_v12  ;;  %v22471_v57 = vld [vmem:[%s27269_s16 + $0xb8] sm:$0xff]  }
 0xf85   : > { %v16008_v23 = vadd.f32 %v20879_v20, %v18436_v18  ;;  %v15974_v49 = vpop.f32.mrb[87].mxu1  ;;  %20882 = vmatprep.subr.bf16.mxu1 %v27618_v43  ;;  %v16015_v22 = vmax.f32 %v16007_v52, 0.0  ;;  %v22470_v52 = vld [vmem:[%s27269_s16 + $0xb0] sm:$0xff]  }
 0xf86   : > { %v16006_v46 = vadd.f32 %v18436_v18, %v15974_v49  ;;  %v16013_v44 = vmax.f32 %v16005_v15, 0.0 }
 0xf87   : > { %v16016_v42 = vmax.f32 %v16008_v23, 0.0  ;;  %v22474_v23 = vld [vmem:[%s27269_s16 + $0xc0] sm:$0xff]  }
 0xf88   : > { %v16014_v26 = vmax.f32 %v16006_v46, 0.0  ;;  %20883 = vmatpush3.bf16.msra.mxu1 %v16020_v30  ;;  %v22468_v30 = vld [vmem:[%s27269_s16 + $0xa0] sm:$0xff]   ;;  %v22475_v46 = vld [vmem:[%s27269_s16 + $0xc8] sm:$0xff]  }
 0xf89   : > { %v16022_v58 = vpack.c.bf16 %v16016_v42, %v16015_v22  ;;  %20884 = vmatprep.subr.bf16.mxu1 %v27618_v43  ;;  %v22476_v22 = vld [vmem:[%s27269_s16 + $0xd0] sm:$0xff]   ;;  %v22477_v42 = vld [vmem:[%s27269_s16 + $0xd8] sm:$0xff]  }
 0xf8a   : > { %v16021_v0 = vpack.c.bf16 %v16014_v26, %v16013_v44 }
 0xf8c   : > { %20885 = vmatpush3.bf16.msra.mxu1 %v16021_v0 }
 0xf8d   : > { %20886 = vmatprep.subr.bf16.mxu1 %v27618_v43 }
 0xf90   : > { %20887 = vmatpush3.bf16.msra.mxu1 %v16022_v58  ;;  %v22480_v58 = vld [vmem:[%s27269_s16 + $0xe0] sm:$0xff]  }
 0xf91   : > { %20904 = vmatprep.subr.bf16.mxu1 %v27618_v43 }
 0xf93   : > { %20889 = vmatmul.mubr.msk.bf16.vlgmr.msra.gmra.mrb[88].mxu1 %vm16028_vm14, %v22435_v10  ;;  %v22456_v10 = vld [vmem:[%s27269_s16 + $0x60] sm:$0xff]  }
 0xf94   : > { %20905 = vmatpush3.bf16.msra.mxu1 %v22436_v53  ;;  %20908 = vmatprep.mubr.msk.bf16.mxu1 %vm22564_vm13, %v27618_v43  ;;  %v22481_v53 = vld [vmem:[%s27269_s16 + $0xe8] sm:$0xff]  }
 0xf95   : > { %20906 = vmatprep.subr.bf16.mxu1 %v27618_v43 }
 0xf98   : > { %20907 = vmatpush3.bf16.msra.mxu1 %v22437_v34  ;;  %v22482_v34 = vld [vmem:[%s27269_s16 + $0xf0] sm:$0xff]  }
 0xf99   : > { %20912 = vmatprep.subr.bf16.mxu1 %v27618_v43 }
 0xf9b   : > { %20909 = vmatmul.mubr.msk.bf16.vlgmr.msra.gmra.mrb[92].mxu1 %vm765_vm11, %v16118_v3 }
 0xf9c   : > { %20913 = vmatpush3.bf16.msra.mxu1 %v22438_v59  ;;  %20920 = vmatprep.mubr.msk.bf16.mxu1 %vm22564_vm13, %v27618_v43  ;;  %v22486_v59 = vld [vmem:[%s27269_s16 + $0x100] sm:$0xff]  }
 0xf9d   : > { %20914 = vmatprep.subr.bf16.mxu1 %v27618_v43 }
 0xfa0   : > { %20915 = vmatpush3.bf16.msra.mxu1 %v22439_v27  ;;  %v22488_v27 = vld [vmem:[%s27269_s16 + $0x110] sm:$0xff]  }
 0xfa1   : > { %20916 = vmatprep.subr.bf16.mxu1 %v27618_v43 }
 0xfa4   : > { %20917 = vmatpush3.bf16.msra.mxu1 %v22440_v9  ;;  %v22489_v9 = vld [vmem:[%s27269_s16 + $0x118] sm:$0xff]  }
 0xfa5   : > { %20918 = vmatprep.subr.bf16.mxu1 %v27618_v43 }
 0xfa8   : > { %20919 = vmatpush3.bf16.msra.mxu1 %v22441_v13 }
 0xfa9   : > { %20924 = vmatprep.subr.bf16.mxu1 %v27618_v43 }
0x1066   : > { %v16066_v19 = vpop.f32.mrb[88].mxu1 }
0x1067   : > { %v16188_v50 = vcombine.high %v16066_v19, %v16066_v19  ;;  %16194 = vst.msk [vmem:[#allocation4 + $0x9] sm:$0xf] %vm16193_vm0, %v16066_v19  ;;  %v20890_v55 = vpop.f32.mrb[89].mxu1 }
0x1068   : > { %v16069_v16 = vpop.f32.mrb[90].mxu1  ;;  %v17045_v55 = vld [vmem:[%s27274_s21] sm:$0xff] }
0x1069   : > { %16195 = vst.msk [vmem:[#allocation4 + $0x11] sm:$0xf] %vm16193_vm0, %v16188_v50  ;;  %v16189_v35 = vcombine.high %v16069_v16, %v16069_v16  ;;  %16196 = vst.msk [vmem:[#allocation4 + $0x19] sm:$0xf] %vm16193_vm0, %v16069_v16  ;;  %v20891_v62 = vpop.f32.mrb[91].mxu1  ;;  %v17046_v16 = vld [vmem:[%s27274_s21 + $0x8] sm:$0xff] }
0x106a   : > { %v22565_v62 = vmov 0.0|0.0  }
0x106b   : > { %16197 = vst.msk [vmem:[#allocation4 + $0x21] sm:$0xf] %vm16193_vm0, %v16189_v35  ;;  %v21040_v35 = vpack.c.bf16 %v17046_v16, %v17045_v55  ;;  %21039 = vmatprep.subr.bf16.mxu0 %v22565_v62 }
0x106d   : > { %21041 = vmatpush3.bf16.msra.mxu0 %v21040_v35 }
0x106e   : > { %v22442_v31 = vld [vmem:[#allocation4 + $0x1] ss:$8 sps:$4 sm:$0xff]   ;;  %21042 = vmatprep.subr.bf16.mxu0 %v22565_v62 }
0x106f   : > { %v22448_v1 = vld [vmem:[#allocation4] ss:$8 sps:$4 sm:$0xff]  }
0x1070   : > { %v22443_v32 = vld [vmem:[#allocation4 + $0x11] ss:$8 sps:$4 sm:$0xff]   ;;  %v22454_v63 = vld [vmem:[#allocation4 + $0x2] ss:$8 sps:$4 sm:$0xff]  }
0x1071   : > { %v16231_v25 = vpack.c.bf16 %v22443_v32, %v22442_v31  ;;  %v22449_v6 = vld [vmem:[#allocation4 + $0x10] ss:$8 sps:$4 sm:$0xff]   ;;  %v17048_v31 = vld [vmem:[%s27274_s21 + $0x18] sm:$0xff] }
0x1072   : > { %v16210_v54 = vpack.c.bf16 %v22449_v6, %v22448_v1  ;;  %v22455_v60 = vld [vmem:[#allocation4 + $0x12] ss:$8 sps:$4 sm:$0xff]   ;;  %v22479_v44 = vld [vmem:[#allocation4 + $0x20] ss:$8 sps:$4 sm:$0xff]   ;;  %v18440_v1 = vld [vmem:[%s27273_s20] ss:$0 sm:$0xff] }
0x1073   : > { %20921 = vmatmul.mubr.msk.bf16.vlgmr.msra.gmra.mrb[92].mxu1 %vm16028_vm14, %v16231_v25  ;;  %v16389_v18 = vpack.c.bf16 %v22455_v60, %v22454_v63  ;;  %v22461_v24 = vld [vmem:[#allocation4 + $0x18] ss:$8 sps:$4 sm:$0xff]   ;;  %v22460_v40 = vld [vmem:[#allocation4 + $0x8] ss:$8 sps:$4 sm:$0xff]  }
0x1074   : > { %20925 = vmatpush3.bf16.msra.mxu1 %v22444_v51  ;;  %20932 = vmatprep.mubr.msk.bf16.mxu1 %vm22564_vm13, %v27618_v43  ;;  %v16481_v56 = vpack.c.bf16 %v22461_v24, %v22460_v40  ;;  %v22467_v2 = vld [vmem:[#allocation4 + $0x19] ss:$8 sps:$4 sm:$0xff]   ;;  %v22466_v14 = vld [vmem:[#allocation4 + $0x9] ss:$8 sps:$4 sm:$0xff]  }
0x1075   : > { %20926 = vmatprep.subr.bf16.mxu1 %v27618_v43  ;;  %v16573_v12 = vpack.c.bf16 %v22467_v2, %v22466_v14  ;;  %v22473_v15 = vld [vmem:[#allocation4 + $0x1a] ss:$8 sps:$4 sm:$0xff]   ;;  %v22472_v20 = vld [vmem:[#allocation4 + $0xa] ss:$8 sps:$4 sm:$0xff]  }
0x1076   : > { %v16665_v49 = vpack.c.bf16 %v22473_v15, %v22472_v20  ;;  %v22478_v26 = vld [vmem:[#allocation4 + $0x10] ss:$8 sps:$4 sm:$0xff]   ;;  %v22485_v45 = vld [vmem:[#allocation4 + $0x21] ss:$8 sps:$4 sm:$0xff]  }
0x1077   : > { %v16758_v0 = vpack.c.bf16 %v22479_v44, %v22478_v26  ;;  %v22484_v41 = vld [vmem:[#allocation4 + $0x11] ss:$8 sps:$4 sm:$0xff]   ;;  %v22491_v13 = vld [vmem:[#allocation4 + $0x22] ss:$8 sps:$4 sm:$0xff]  }
0x1078   : > { %20927 = vmatpush3.bf16.msra.mxu1 %v22445_v8  ;;  %v16850_v3 = vpack.c.bf16 %v22485_v45, %v22484_v41  ;;  %v22490_v19 = vld [vmem:[#allocation4 + $0x12] ss:$8 sps:$4 sm:$0xff]  }
0x1079   : > { %20928 = vmatprep.subr.bf16.mxu1 %v27618_v43  ;;  %v16942_v50 = vpack.c.bf16 %v22491_v13, %v22490_v19  ;;  %v17049_v51 = vld [vmem:[%s27274_s21 + $0x20] sm:$0xff]  ;;  %v17050_v25 = vld [vmem:[%s27274_s21 + $0x28] sm:$0xff] }
0x107a   : > { %v21046_v8 = vpack.c.bf16 %v17050_v25, %v17049_v51 }
0x107c   : > { %20929 = vmatpush3.bf16.msra.mxu1 %v22446_v47  ;;  %v17051_v47 = vld [vmem:[%s27274_s21 + $0x30] sm:$0xff] }
0x107d   : > { %20930 = vmatprep.subr.bf16.mxu1 %v27618_v43 }
0x1080   : > { %20931 = vmatpush3.bf16.msra.mxu1 %v22447_v7  ;;  %v17052_v7 = vld [vmem:[%s27274_s21 + $0x38] sm:$0xff] }
0x1081   : > { %20936 = vmatprep.subr.bf16.mxu1 %v27618_v43  ;;  %v21049_v6 = vpack.c.bf16 %v17052_v7, %v17051_v47 }
0x1083   : > { %20933 = vmatmul.mubr.msk.bf16.vlgmr.msra.gmra.mrb[92].mxu1 %vm16028_vm14, %v16210_v54  ;;  %v18553_v54 = vld [vmem:[%s27270_s17] ss:$0 sm:$0xff] }
0x1084   : > { %20937 = vmatpush3.bf16.msra.mxu1 %v22450_v33  ;;  %20944 = vmatprep.mubr.msk.bf16.mxu1 %vm22564_vm13, %v27618_v43 }
0x1085   : > { %20938 = vmatprep.subr.bf16.mxu1 %v27618_v43 }
0x1088   : > { %20939 = vmatpush3.bf16.msra.mxu1 %v22451_v4 }
0x1089   : > { %20940 = vmatprep.subr.bf16.mxu1 %v27618_v43 }
0x108c   : > { %20941 = vmatpush3.bf16.msra.mxu1 %v22452_v61 }
0x108d   : > { %20942 = vmatprep.subr.bf16.mxu1 %v27618_v43 }
0x1090   : > { %20943 = vmatpush3.bf16.msra.mxu1 %v22453_v48 }
0x1091   : > { %20948 = vmatprep.subr.bf16.mxu1 %v27618_v43 }
0x1093   : > { %20945 = vmatmul.mubr.msk.bf16.vlgmr.msra.gmra.mrb[92].mxu1 %vm16028_vm14, %v16389_v18 }
0x1094   : > { %20949 = vmatpush3.bf16.msra.mxu1 %v22456_v10  ;;  %20956 = vmatprep.mubr.msk.bf16.mxu1 %vm22564_vm13, %v27618_v43 }
0x1095   : > { %20950 = vmatprep.subr.bf16.mxu1 %v27618_v43 }
0x1098   : > { %20951 = vmatpush3.bf16.msra.mxu1 %v22457_v36 }
0x1099   : > { %20952 = vmatprep.subr.bf16.mxu1 %v27618_v43 }
0x109c   : > { %20953 = vmatpush3.bf16.msra.mxu1 %v22458_v17 }
0x109d   : > { %20954 = vmatprep.subr.bf16.mxu1 %v27618_v43 }
0x10a0   : > { %20955 = vmatpush3.bf16.msra.mxu1 %v22459_v28 }
0x10a1   : > { %20960 = vmatprep.subr.bf16.mxu1 %v27618_v43 }
0x10a3   : > { %20957 = vmatmul.mubr.msk.bf16.vlgmr.msra.gmra.mrb[92].mxu1 %vm16028_vm14, %v16481_v56 }
0x10a4   : > { %20961 = vmatpush3.bf16.msra.mxu1 %v22462_v11  ;;  %20968 = vmatprep.mubr.msk.bf16.mxu1 %vm22564_vm13, %v27618_v43 }
0x10a5   : > { %20962 = vmatprep.subr.bf16.mxu1 %v27618_v43 }
0x10a8   : > { %20963 = vmatpush3.bf16.msra.mxu1 %v22463_v29 }
0x10a9   : > { %20964 = vmatprep.subr.bf16.mxu1 %v27618_v43 }
0x10ac   : > { %20965 = vmatpush3.bf16.msra.mxu1 %v22464_v37 }
0x10ad   : > { %20966 = vmatprep.subr.bf16.mxu1 %v27618_v43 }
0x10b0   : > { %20967 = vmatpush3.bf16.msra.mxu1 %v22465_v21 }
0x10b1   : > { %20972 = vmatprep.subr.bf16.mxu1 %v27618_v43 }
0x10b3   : > { %20969 = vmatmul.mubr.msk.bf16.vlgmr.msra.gmra.mrb[92].mxu1 %vm16028_vm14, %v16573_v12 }
0x10b4   : > { %20973 = vmatpush3.bf16.msra.mxu1 %v22468_v30  ;;  %20980 = vmatprep.mubr.msk.bf16.mxu1 %vm22564_vm13, %v27618_v43  ;;  %v17053_v30 = vld [vmem:[%s27275_s22] sm:$0x1] }
0x10b5   : > { %20974 = vmatprep.subr.bf16.mxu1 %v27618_v43 }
0x10b8   : > { %20975 = vmatpush3.bf16.msra.mxu1 %v22469_v5 }
0x10b9   : > { %20976 = vmatprep.subr.bf16.mxu1 %v27618_v43 }
0x10bc   : > { %20977 = vmatpush3.bf16.msra.mxu1 %v22470_v52 }
0x10bd   : > { %20978 = vmatprep.subr.bf16.mxu1 %v27618_v43 }
0x10c0   : > { %20979 = vmatpush3.bf16.msra.mxu1 %v22471_v57 }
0x10c1   : > { %20984 = vmatprep.subr.bf16.mxu1 %v27618_v43 }
0x10c3   : > { %20981 = vmatmul.mubr.msk.bf16.vlgmr.msra.gmra.mrb[92].mxu1 %vm16028_vm14, %v16665_v49 }
0x10c4   : > { %20985 = vmatpush3.bf16.msra.mxu1 %v22474_v23  ;;  %20992 = vmatprep.mubr.msk.bf16.mxu1 %vm22564_vm13, %v27618_v43 }
0x10c5   : > { %20986 = vmatprep.subr.bf16.mxu1 %v27618_v43 }
0x10c8   : > { %20987 = vmatpush3.bf16.msra.mxu1 %v22475_v46 }
0x10c9   : > { %20988 = vmatprep.subr.bf16.mxu1 %v27618_v43 }
0x10cc   : > { %20989 = vmatpush3.bf16.msra.mxu1 %v22476_v22 }
0x10cd   : > { %20990 = vmatprep.subr.bf16.mxu1 %v27618_v43 }
0x10d0   : > { %20991 = vmatpush3.bf16.msra.mxu1 %v22477_v42 }
0x10d1   : > { %20996 = vmatprep.subr.bf16.mxu1 %v27618_v43 }
0x10d3   : > { %20993 = vmatmul.mubr.msk.bf16.vlgmr.msra.gmra.mrb[92].mxu1 %vm16028_vm14, %v16758_v0 }
0x10d4   : > { %20997 = vmatpush3.bf16.msra.mxu1 %v22480_v58  ;;  %21004 = vmatprep.mubr.msk.bf16.mxu1 %vm22564_vm13, %v27618_v43 }
0x10d5   : > { %20998 = vmatprep.subr.bf16.mxu1 %v27618_v43 }
0x10d8   : > { %20999 = vmatpush3.bf16.msra.mxu1 %v22481_v53 }
0x10d9   : > { %21000 = vmatprep.subr.bf16.mxu1 %v27618_v43 }
0x10dc   : > { %21001 = vmatpush3.bf16.msra.mxu1 %v22482_v34 }
0x10dd   : > { %21002 = vmatprep.subr.bf16.mxu1 %v27618_v43 }
0x10e0   : > { %21003 = vmatpush3.bf16.msra.mxu1 %v22483_v39 }
0x10e1   : > { %21008 = vmatprep.subr.bf16.mxu1 %v27618_v43 }
0x10e3   : > { %21005 = vmatmul.mubr.msk.bf16.vlgmr.msra.gmra.mrb[92].mxu1 %vm16028_vm14, %v16850_v3 }
0x10e4   : > { %21009 = vmatpush3.bf16.msra.mxu1 %v22486_v59  ;;  %21016 = vmatprep.mubr.msk.bf16.mxu1 %vm22564_vm13, %v27618_v43 }
0x10e5   : > { %21010 = vmatprep.subr.bf16.mxu1 %v27618_v43 }
0x10e8   : > { %21011 = vmatpush3.bf16.msra.mxu1 %v22487_v38 }
0x10e9   : > { %21012 = vmatprep.subr.bf16.mxu1 %v27618_v43 }
0x10ec   : > { %21013 = vmatpush3.bf16.msra.mxu1 %v22488_v27 }
0x10ed   : > { %21014 = vmatprep.subr.bf16.mxu1 %v27618_v43  ;;  %v17047_v43 = vld [vmem:[%s27274_s21 + $0x10] sm:$0xff] }
0x10ee   : > { %v21043_v32 = vpack.c.bf16 %v17048_v31, %v17047_v43 }
0x10f0   : > { %21015 = vmatpush3.bf16.msra.mxu1 %v22489_v9  ;;  %21044 = vmatpush3.bf16.msra.mxu0 %v21043_v32 }
0x10f1   : > { %21045 = vmatprep.subr.bf16.mxu0 %v22565_v62 }
0x10f3   : > { %21017 = vmatmul.mubr.msk.bf16.vlgmr.msra.gmra.mrb[92].mxu1 %vm16028_vm14, %v16942_v50 }
0x10f4   : > { %21047 = vmatpush3.bf16.msra.mxu0 %v21046_v8 }
0x10f5   : > { %21048 = vmatprep.subr.bf16.mxu0 %v22565_v62 }
0x10f8   : > { %21050 = vmatpush3.bf16.msra.mxu0 %v21049_v6 }
0x11c6   : > { %v17013_v33 = vpop.f32.mrb[92].mxu1 }
0x11c7   : > { %v21099_v4 = vadd.f32 %v18440_v1, %v17013_v33  ;;  %v21018_v61 = vpop.f32.mrb[93].mxu1 }
0x11c8   : > { %v17016_v48 = vpop.f32.mrb[94].mxu1 }
0x11c9   : > { %v21100_v60 = vadd.f32 %v21099_v4, %v18553_v54  ;;  %v21101_v63 = vadd.f32 %v18440_v1, %v17016_v48  ;;  %v21019_v10 = vpop.f32.mrb[95].mxu1 }
0x11cb   : > { %v17033_v18 = vmax.f32 %v21100_v60, 0.0  ;;  %v21102_v36 = vadd.f32 %v21101_v63, %v18553_v54 }
0x11cd   : > { %v17034_v17 = vmax.f32 %v21102_v36, 0.0  ;;  %v17035_v28 = vsel %vm16028_vm14, %v17033_v18, 0.0 }
0x11cf   : > { %v17036_v24 = vsel %vm16028_vm14, %v17034_v17, 0.0 }
0x11d0   : > { %v17037_v40 = vadd.f32 %v17036_v24, %v17035_v28 }
0x11d2   : > { %v17038_v11 = vrot.slane %v17037_v40, 4 }
0x11d4   : > { %v17039_v56 = vadd.f32 %v17038_v11, %v17037_v40 }
0x11d6   : > { %v17040_v29 = vrot.slane %v17039_v56, 2 }
0x11d8   : > { %v17041_v37 = vadd.f32 %v17040_v29, %v17039_v56 }
0x11da   : > { %v17042_v21 = vrot.slane %v17041_v37, 1 }
0x11dc   : > { %v17043_v2 = vadd.f32 %v17042_v21, %v17041_v37 }
0x11de   : > { %v17044_v14 = vmul.f32 0.0625, %v17043_v2 }
0x11e0   : > { %21037 = vmatmul.mubr.msk.f32.vlgmr.msra.gmra.mrb[124].mxu0 %vm16028_vm14, %v17044_v14 }
0x12b3   : > { %v17123_v12 = vpop.f32.mrb[124].mxu0 }
0x12b4   : > { %v17124_v5 = vadd.f32 %v17123_v12, %v17053_v30  ;;  %v21038_v52 = vpop.f32.mrb[125].mxu0 }
0x12b6   : > { %17128 = vst.msk [vmem:[%s702_s29] sm:$0x1] %vm17127_vm1, %v17124_v5 }
0x12b7   : > { %22511 = shalt.err (!%p22508_p3)
}
0x12b8   : > { %s22512_s0 = scalar_lea.hbm %s27211_s8, 16  ;;  %s22516_s24 = scalar_lea.hbm %s27276_s23, 32 }
0x12b9   : > { %p22513_p4 = scmp.ne.s32.totalorder %s27211_s8, %s22512_s0  ;;  %p22517_p9 = scmp.lt.u32.totalorder %s27211_s8, %s27276_s23 }
0x12ba   : > { %p22518_p10 = scmp.lt.u32.totalorder %s22516_s24, %s22512_s0  ;;  %p22520_p12 = scmp.lt.u32.totalorder %s22512_s0, %s27211_s8 }
0x12bb   : > { %p22514_p7 = pnand %p22513_p4, %p22725_p5 }
0x12bc   : > { %p22519_p11 = por %p22518_p10, %p22517_p9 }
0x12bd   : > { %p22515_p8 = pneg %p22514_p7 }
0x12be   : > { %p22521_p13 = por %p22520_p12, %p22519_p11 }
0x12c0   : > { %p22522_p0 = pnand %p22521_p13, %p22515_p8 }
0x12c2   : > { %22525 = shalt.err (!%p22522_p0)
}
0x12c3   : > { %22268 = dma.vmem_to_hbm [thread:$0]  (%p22725_p5), %s27213_s26, 16, %s27211_s8, %s17130_s1  }
0x12c4 PF: > { %p22274_p1 = scmp.ge.s32.totalorder %s22560_s25, 2  ;;  %s17154_s10 = sand.u32 1, %s22548_s4  }
0x12c5   : > { %s17155_s3 = scalar_lea.sflag [#allocation6], %s17154_s10 }
0x12c6   : > { %p22271_p2 = pnand %p22274_p1, %p22729_p6 }
0x12c8   : > { %22543 = dma.done.wait (!%p22271_p2), %s17155_s3, 16  }
0x12c9   : > { %22545 = vsyncadd (!%p22271_p2), %s17155_s3, 4294967280  ;;  %s27621_s25 = sld [smem:[#allocation9_spill]]  ;;  %s27622_s5 = sld [smem:[#allocation8_spill]] }
0x12ca   : > { %s27623_s24 = sld [smem:[#allocation10_spill]]  ;;  %s27624_s4 = smov %s22552_s30 }
0x12cf   : > { %p33_p3 = scmp.ge.s32.totalorder %s27621_s25, 4   ;;  %s27625_s30 = smov %s27622_s5 }
0x12d1   :  { %35 = sbr.rel (!%p33_p3) target bundleno = 15 (0xf), region = 211 }
0x12d8   :  { %17159 = vsyncpa [#allocation6], 1 }
0x12d9   :  { %17161 = vsyncpa [#allocation6 + $0x1], 1 }

</bundles_post_ra>
